<compile_context>
chip_gen: v5e
topology: v5e:2x2
jax: 0.10.0
libtpu: 0.0.40
codegen_flags: <defaults>
</compile_context>

<pallas_src>
import functools

import numpy as np
import jax
import jax.numpy as jnp
from jax.experimental import pallas as pl
from jax.experimental.pallas import tpu as pltpu

BN_EPS = 1e-5
HALO = 32  # >= W+1 for the largest spatial extent used (W0 = 16)


# ----------------------- host-side constant builders ----------------------- #

def _zpe_stat_mats(B, C, H, W, seq):
    """WlT (B*H*W, seq), WrT (C, seq) so that
    pert[j] = sum_{n,c} WlT[n,j] * WrT[c,j] * a[n,c]
    reproduces PyTorch perturb_zpe_flow (batch mean, NCHW flatten, truncate,
    reshape (-1, seq), mean over rows).  a is the (B*H*W, C) NHWC-row tensor."""
    S = H * W
    D = (C * S) // seq * seq
    R = max(D // seq, 1)
    K = np.zeros((seq, S, C), np.float32)
    for c in range(C):
        for s in range(S):
            f = c * S + s
            if f < D:
                K[f % seq, s, c] = 1.0
    WlT = np.zeros((B * S, seq), np.float32)
    WrT = np.zeros((C, seq), np.float32)
    for j in range(seq):
        s_mask = K[j].max(axis=1)
        c_mask = K[j].max(axis=0)
        assert np.array_equal(K[j], np.outer(s_mask, c_mask)), \
            "ZPE statistic is not separable for this shape"
        WlT[:, j] = np.tile(s_mask, B) / float(R * B)
        WrT[:, j] = c_mask
    return WlT, WrT


def _zpe_spatial_expand(B, H, W, seq):
    """E (B*H*W, seq) one-hot: scale[n] = flow[(n % (H*W)) % seq]."""
    S = H * W
    E = np.zeros((B * S, seq), np.float32)
    for n in range(B * S):
        E[n, (n % S) % seq] = 1.0
    return E


def _conv_mask_stack(B, H, W, Cin):
    """(B*H*W, 9*Cin) 0/1 validity mask for the lane-stacked 3x3 taps."""
    S = H * W
    M = np.zeros((B * S, 9 * Cin), np.float32)
    for t in range(9):
        dy, dx = t // 3 - 1, t % 3 - 1
        for n in range(B * S):
            h, w = (n % S) // W, n % W
            if 0 <= h + dy < H and 0 <= w + dx < W:
                M[n, t * Cin:(t + 1) * Cin] = 1.0
    return M


def _zpe_fc_mats(F, seq):
    """Gr (F, seq): pert_row = batch_mean_row @ Gr.  Et (seq, F): scale = flow @ Et."""
    D = F // seq * seq
    R = max(D // seq, 1)
    Gr = np.zeros((F, seq), np.float32)
    for f in range(D):
        Gr[f, f % seq] += 1.0 / R
    Et = np.zeros((seq, F), np.float32)
    for f in range(F):
        Et[f % seq, f] = 1.0
    return Gr, Et


# ------------------------------ fused kernel ------------------------------- #

def _make_kernel(cfg, n_in, n_out, strength, momentum, halo):
    n_blocks = len(cfg)

    def kernel(*refs):
        in_refs = refs[:n_in]
        out_refs = refs[n_in:n_in + n_out]
        xbuf, tapbuf, pbuf, cbuf = refs[n_in + n_out:]

        it = iter(in_refs)
        nxt = lambda: next(it)

        x_in = nxt()                                     # (B*H0*W0, 1)
        flows_in = nxt()                                 # (6, seq)
        blk = [dict(WlT=nxt(), WrT=nxt(), E=nxt(), M=nxt(), Wf=nxt(), bf=nxt())
               for _ in range(n_blocks)]
        WlT4, WrT4, E4 = nxt(), nxt(), nxt()
        w1, b1, w2, b2, w3, b3 = (nxt() for _ in range(6))
        Gr5, E5t = nxt(), nxt()

        out_logits, out_flows = out_refs

        def zpe_flow(a, wlT_ref, wrT_ref, idx):
            # pert[j] = sum_{n,c} WlT[n,j]*WrT[c,j]*a[n,c]  (already the mean),
            # tanh AFTER the mean -> exact perturb_zpe_flow semantics.
            u = jnp.dot(a, wrT_ref[...], preferred_element_type=jnp.float32)
            pert = jnp.sum(u * wlT_ref[...], axis=0, keepdims=True)   # (1, seq)
            pert = jnp.tanh(pert * strength)
            fin = flows_in[idx:idx + 1, :]
            flow = jnp.clip(momentum * fin + (1.0 - momentum) * (1.0 + pert),
                            0.8, 1.2)
            out_flows[idx:idx + 1, :] = flow
            return flow

        # One-time: make every staging row finite so halo rows read by the
        # shifted tap windows are zeros (they get masked to 0 anyway).
        xbuf[...] = jnp.zeros(xbuf.shape, jnp.float32)

        x = x_in[...]

        for k, c in enumerate(cfg):
            Bb, H, W, Cin, Cout = c["B"], c["H"], c["W"], c["Cin"], c["Cout"]
            S = H * W
            rows = Bb * S
            p = blk[k]

            # ---- ZPE: flow update + per-position spatial scaling ------------
            flow = zpe_flow(x, p["WlT"], p["WrT"], k)                    # (1, seq)
            scale = jnp.sum(p["E"][...] * flow, axis=1, keepdims=True)   # (rows, 1)
            xz = x * scale                                               # (rows, Cin)

            # ---- stage xz once (zeroed halo) and build the 9-tap lane stack
            xbuf[pl.ds(halo, rows), 0:Cin] = xz
            for t in range(9):
                off = (t // 3 - 1) * W + (t % 3 - 1)
                tapbuf[0:rows, t * Cin:(t + 1) * Cin] = \
                    xbuf[pl.ds(halo + off, rows), 0:Cin]

            # single fused border-mask multiply + single [conv3x3 | conv1x1] matmul
            taps = tapbuf[0:rows, 0:9 * Cin] * p["M"][...]
            pre = jnp.dot(taps, p["Wf"][...],
                          preferred_element_type=jnp.float32) + p["bf"][...]

            # ReLU only on the main half; shortcut half passes through.
            lane = jax.lax.broadcasted_iota(jnp.int32, (1, 2 * Cout), 1)
            thr = jnp.where(lane < Cout, 0.0, -3.0e38).astype(jnp.float32)
            z = jnp.maximum(pre, thr)                                    # (rows, 2*Cout)

            # ---- MaxPool2d(2) on both halves, then residual add -------------
            Ho = H // 2
            pbuf[0:rows, 0:2 * Cout] = z
            for b in range(Bb):                      # vertical max + even-h compaction
                for ho in range(Ho):
                    n0 = b * S + (2 * ho) * W
                    q0 = (b * Ho + ho) * W
                    a0 = pbuf[pl.ds(n0, W), 0:2 * Cout]
                    a1 = pbuf[pl.ds(n0 + W, W), 0:2 * Cout]
                    cbuf[pl.ds(q0, W), 0:2 * Cout] = jnp.maximum(a0, a1)
            quarter = rows // 4                      # horizontal max + even-w stride
            ye = cbuf[pl.ds(0, quarter, stride=2), 0:2 * Cout]
            yo = cbuf[pl.ds(1, quarter, stride=2), 0:2 * Cout]
            pooled = jnp.maximum(ye, yo)                                 # (rows//4, 2*Cout)
            x = pooled[:, 0:Cout] + pooled[:, Cout:2 * Cout]             # (rows//4, Cout)

        # ---- ZPE stage 4 on the (B, C, 1, 1) map (spatial=True, H*W == 1) ---
        flow4 = zpe_flow(x, WlT4, WrT4, 4)
        x = x * jnp.sum(E4[...] * flow4, axis=1, keepdims=True)

        # ---- FC head ---------------------------------------------------------
        # TODO(synk): nn.Dropout -> identity (inference semantics).
        h = jnp.maximum(
            jnp.dot(x, w1[...], preferred_element_type=jnp.float32) + b1[...], 0.0)
        h = jnp.maximum(
            jnp.dot(h, w2[...], preferred_element_type=jnp.float32) + b2[...], 0.0)
        logits = jnp.dot(h, w3[...], preferred_element_type=jnp.float32) + b3[...]

        # ---- ZPE stage 5 (spatial=False) -------------------------------------
        bm = jnp.mean(logits, axis=0, keepdims=True)                     # (1, n_cls)
        pert5 = jnp.tanh(jnp.dot(bm, Gr5[...],
                                 preferred_element_type=jnp.float32) * strength)
        flow5 = jnp.clip(momentum * flows_in[5:6, :]
                         + (1.0 - momentum) * (1.0 + pert5), 0.8, 1.2)
        out_flows[5:6, :] = flow5
        scale5 = jnp.dot(flow5, E5t[...], preferred_element_type=jnp.float32)
        out_logits[...] = logits * scale5

    return kernel


# --------------------------------- wrapper --------------------------------- #

def zpe_deepnet_forward(x_nchw, params, zpe_flows, *, strength, momentum):
    """Whole ZPEDeepNet forward pass in one fused Pallas kernel."""
    B, C0, H0, W0 = x_nchw.shape
    assert C0 == 1, "first conv expects a single input channel"
    seq = zpe_flows[0].shape[0]

    # NCHW -> NHWC rows; trivial for C == 1 (no transpose needed).
    x2d = x_nchw.reshape(B * H0 * W0, 1)
    flows_in = jnp.stack([f.reshape(-1) for f in zpe_flows], axis=0)   # (6, seq)

    inputs = [x2d, flows_in]
    cfg = []
    H, W, Cin = H0, W0, 1
    max_cin, max_cout = 1, 1
    for bp in params["blocks"]:
        Cout = bp["ws"].shape[1]
        assert H % 2 == 0 and W % 2 == 0, "MaxPool2d(2) requires even H and W"
        assert W + 1 <= HALO
        max_cin, max_cout = max(max_cin, Cin), max(max_cout, Cout)
        cfg.append(dict(B=B, H=H, W=W, Cin=Cin, Cout=Cout))

        WlT, WrT = _zpe_stat_mats(B, Cin, H, W, seq)
        E = _zpe_spatial_expand(B, H, W, seq)
        M = _conv_mask_stack(B, H, W, Cin)

        # Fold eval-mode BatchNorm + conv bias into the weights; fuse the 1x1
        # shortcut into the N dimension (center-tap rows of the 3x3 weight).
        bn_scale = bp["gamma"] / jnp.sqrt(bp["var"] + BN_EPS)            # (1, Cout)
        bn_shift = bp["beta"] - bp["mean"] * bn_scale
        Wf = jnp.zeros((9 * Cin, 2 * Cout), jnp.float32)
        Wf = Wf.at[:, :Cout].set(bp["wc"] * bn_scale)
        Wf = Wf.at[4 * Cin:5 * Cin, Cout:].set(bp["ws"])
        bf = jnp.concatenate([bp["bc"] * bn_scale + bn_shift, bp["bs"]], axis=1)

        inputs += [jnp.asarray(WlT), jnp.asarray(WrT), jnp.asarray(E),
                   jnp.asarray(M), Wf, bf]
        H, W, Cin = H // 2, W // 2, Cout

    WlT4, WrT4 = _zpe_stat_mats(B, Cin, H, W, seq)      # here H == W == 1
    E4 = _zpe_spatial_expand(B, H, W, seq)
    inputs += [jnp.asarray(WlT4), jnp.asarray(WrT4), jnp.asarray(E4)]

    fc = params["fc"]
    inputs += [fc["w1"], fc["b1"], fc["w2"], fc["b2"], fc["w3"], fc["b3"]]
    n_cls = fc["w3"].shape[1]
    Gr5, E5t = _zpe_fc_mats(n_cls, seq)
    inputs += [jnp.asarray(Gr5), jnp.asarray(E5t)]

    n_in = len(inputs)
    out_shape = (jax.ShapeDtypeStruct((B, n_cls), jnp.float32),
                 jax.ShapeDtypeStruct((6, seq), jnp.float32))
    n_out = 2

    rows0 = B * H0 * W0
    scratch_shapes = [
        pltpu.VMEM((rows0 + 2 * HALO, max_cin), jnp.float32),       # xz + halo
        pltpu.VMEM((rows0, 9 * max_cin), jnp.float32),              # stacked taps
        pltpu.VMEM((rows0, 2 * max_cout), jnp.float32),             # pre-pool staging
        pltpu.VMEM((max(8, rows0 // 2), 2 * max_cout), jnp.float32),  # even-h compaction
    ]

    kernel = _make_kernel(cfg, n_in, n_out, float(strength), float(momentum), HALO)
    outs = pl.pallas_call(
        kernel,
        out_shape=out_shape,
        in_specs=[pl.BlockSpec(memory_space=pltpu.MemorySpace.VMEM)
                  for _ in range(n_in)],
        out_specs=(pl.BlockSpec(memory_space=pltpu.MemorySpace.VMEM),) * n_out,
        scratch_shapes=scratch_shapes,
        compiler_params=pltpu.CompilerParams(vmem_limit_bytes=32 * 1024 * 1024),
    )(*inputs)

    logits, flows_out = outs
    new_flows = [flows_out[i] for i in range(6)]
    return logits, new_flows


# ------------------------- deterministic parameters ------------------------ #

def init_params(key, conv_channels, fc_sizes):
    keys = list(jax.random.split(key, 40))
    ki = iter(keys)
    blocks = []
    cin = 1
    for cout in conv_channels:
        wc = (jax.random.normal(next(ki), (3, 3, cin, cout), jnp.float32)
              / jnp.sqrt(9.0 * cin)).reshape(9 * cin, cout)
        bc = 0.01 * jax.random.normal(next(ki), (1, cout), jnp.float32)
        gamma = 1.0 + 0.1 * jax.random.normal(next(ki), (1, cout), jnp.float32)
        beta = 0.1 * jax.random.normal(next(ki), (1, cout), jnp.float32)
        mean = 0.1 * jax.random.normal(next(ki), (1, cout), jnp.float32)
        var = 1.0 + 0.1 * jnp.abs(jax.random.normal(next(ki), (1, cout), jnp.float32))
        ws = jax.random.normal(next(ki), (cin, cout), jnp.float32) / jnp.sqrt(1.0 * cin)
        bs = 0.01 * jax.random.normal(next(ki), (1, cout), jnp.float32)
        blocks.append(dict(wc=wc, bc=bc, gamma=gamma, beta=beta,
                           mean=mean, var=var, ws=ws, bs=bs))
        cin = cout
    d0 = conv_channels[-1]
    fc = dict(
        w1=jax.random.normal(next(ki), (d0, fc_sizes[0]), jnp.float32) / jnp.sqrt(1.0 * d0),
        b1=0.01 * jax.random.normal(next(ki), (1, fc_sizes[0]), jnp.float32),
        w2=jax.random.normal(next(ki), (fc_sizes[0], fc_sizes[1]), jnp.float32) / jnp.sqrt(1.0 * fc_sizes[0]),
        b2=0.01 * jax.random.normal(next(ki), (1, fc_sizes[1]), jnp.float32),
        w3=jax.random.normal(next(ki), (fc_sizes[1], 10), jnp.float32) / jnp.sqrt(1.0 * fc_sizes[1]),
        b3=0.01 * jax.random.normal(next(ki), (1, 10), jnp.float32),
    )
    return dict(blocks=blocks, fc=fc)


if __name__ == "__main__":
    conv_channels = [4, 8, 16, 32]
    fc_sizes = [32, 16]
    sequence_length = 8
    strength, momentum = 0.35, 0.9
    # dropout_rate = 0.05  (identity at inference)

    root = jax.random.PRNGKey(0)
    kp, kx = jax.random.split(root)
    params = init_params(kp, conv_channels, fc_sizes)
    zpe_flows = [jnp.ones((sequence_length,), jnp.float32) for _ in range(6)]
    x = jax.random.normal(kx, (2, 1, 16, 16), jnp.float32)   # PyTorch NCHW input

    fwd = jax.jit(functools.partial(zpe_deepnet_forward,
                                    strength=strength, momentum=momentum))
    out, new_flows = fwd(x, params, zpe_flows)
    jax.block_until_ready(out)
    assert out.shape == (2, 10) and out.dtype == jnp.float32
    assert bool(jnp.all(jnp.isfinite(out)))
    assert all(f.shape == (sequence_length,) for f in new_flows)
    assert all(bool(jnp.all(jnp.isfinite(f))) for f in new_flows)
    print("KERNEL_OK")
</pallas_src>

<mosaic_0001>
module attributes {stable_mosaic.version = 11 : i64} {
  func.func @kernel(%arg0: memref<512x1xf32, #tpu.memory_space<vmem>>, %arg1: memref<6x8xf32, #tpu.memory_space<vmem>>, %arg2: memref<512x8xf32, #tpu.memory_space<vmem>>, %arg3: memref<1x8xf32, #tpu.memory_space<vmem>>, %arg4: memref<512x8xf32, #tpu.memory_space<vmem>>, %arg5: memref<512x9xf32, #tpu.memory_space<vmem>>, %arg6: memref<9x8xf32, #tpu.memory_space<vmem>>, %arg7: memref<1x8xf32, #tpu.memory_space<vmem>>, %arg8: memref<128x8xf32, #tpu.memory_space<vmem>>, %arg9: memref<4x8xf32, #tpu.memory_space<vmem>>, %arg10: memref<128x8xf32, #tpu.memory_space<vmem>>, %arg11: memref<128x36xf32, #tpu.memory_space<vmem>>, %arg12: memref<36x16xf32, #tpu.memory_space<vmem>>, %arg13: memref<1x16xf32, #tpu.memory_space<vmem>>, %arg14: memref<32x8xf32, #tpu.memory_space<vmem>>, %arg15: memref<8x8xf32, #tpu.memory_space<vmem>>, %arg16: memref<32x8xf32, #tpu.memory_space<vmem>>, %arg17: memref<32x72xf32, #tpu.memory_space<vmem>>, %arg18: memref<72x32xf32, #tpu.memory_space<vmem>>, %arg19: memref<1x32xf32, #tpu.memory_space<vmem>>, %arg20: memref<8x8xf32, #tpu.memory_space<vmem>>, %arg21: memref<16x8xf32, #tpu.memory_space<vmem>>, %arg22: memref<8x8xf32, #tpu.memory_space<vmem>>, %arg23: memref<8x144xf32, #tpu.memory_space<vmem>>, %arg24: memref<144x64xf32, #tpu.memory_space<vmem>>, %arg25: memref<1x64xf32, #tpu.memory_space<vmem>>, %arg26: memref<2x8xf32, #tpu.memory_space<vmem>>, %arg27: memref<32x8xf32, #tpu.memory_space<vmem>>, %arg28: memref<2x8xf32, #tpu.memory_space<vmem>>, %arg29: memref<32x32xf32, #tpu.memory_space<vmem>>, %arg30: memref<1x32xf32, #tpu.memory_space<vmem>>, %arg31: memref<32x16xf32, #tpu.memory_space<vmem>>, %arg32: memref<1x16xf32, #tpu.memory_space<vmem>>, %arg33: memref<16x10xf32, #tpu.memory_space<vmem>>, %arg34: memref<1x10xf32, #tpu.memory_space<vmem>>, %arg35: memref<10x8xf32, #tpu.memory_space<vmem>>, %arg36: memref<8x10xf32, #tpu.memory_space<vmem>>, %arg37: memref<2x10xf32, #tpu.memory_space<vmem>>, %arg38: memref<6x8xf32, #tpu.memory_space<vmem>>, %arg39: memref<576x16xf32, #tpu.memory_space<vmem>>, %arg40: memref<512x144xf32, #tpu.memory_space<vmem>>, %arg41: memref<512x64xf32, #tpu.memory_space<vmem>>, %arg42: memref<256x64xf32, #tpu.memory_space<vmem>>) attributes {dimension_semantics = [], scalar_prefetch = 0 : i64, scratch_operands = 4 : i64, tpu.core_type = #tpu.core_type<tc>} {
    %cst = arith.constant 0.000000e+00 : f32
    %0 = vector.broadcast %cst : f32 to vector<576x16xf32>
    %c0 = arith.constant 0 : index
    %c0_0 = arith.constant 0 : index
    %1 = vector.load %arg39[%c0, %c0_0] : memref<576x16xf32, #tpu.memory_space<vmem>>, vector<576x16xf32>
    tpu.vector_store %arg39[%c0, %c0_0], %0 {strides = array<i32>} : memref<576x16xf32, #tpu.memory_space<vmem>>, vector<576x16xf32>,
    %c0_1 = arith.constant 0 : index
    %c0_2 = arith.constant 0 : index
    %2 = vector.load %arg0[%c0_1, %c0_2] : memref<512x1xf32, #tpu.memory_space<vmem>>, vector<512x1xf32>
    %c0_3 = arith.constant 0 : index
    %c0_4 = arith.constant 0 : index
    %3 = vector.load %arg3[%c0_3, %c0_4] : memref<1x8xf32, #tpu.memory_space<vmem>>, vector<1x8xf32>
    %cst_5 = arith.constant dense<0.000000e+00> : vector<512x8xf32>
    %4 = tpu.matmul %2, %3, %cst_5 {dimension_numbers = #tpu.dot_dimension_numbers<[1], [0], [0], [1], [0, 0, 1, 1], [], []>} : vector<512x1xf32>, vector<1x8xf32>, vector<512x8xf32> -> vector<512x8xf32>
    %c0_6 = arith.constant 0 : index
    %c0_7 = arith.constant 0 : index
    %5 = vector.load %arg2[%c0_6, %c0_7] : memref<512x8xf32, #tpu.memory_space<vmem>>, vector<512x8xf32>
    %6 = arith.mulf %4, %5 : vector<512x8xf32>
    %cst_8 = arith.constant dense<0.000000e+00> : vector<8xf32>
    %7 = vector.multi_reduction <add>, %6, %cst_8 [0] : vector<512x8xf32> to vector<8xf32>
    %8 = vector.shape_cast %7 : vector<8xf32> to vector<1x8xf32>
    %cst_9 = arith.constant 3.500000e-01 : f32
    %9 = vector.broadcast %cst_9 : f32 to vector<1x8xf32>
    %10 = arith.mulf %8, %9 : vector<1x8xf32>
    %11 = math.tanh %10 : vector<1x8xf32>
    %c0_10 = arith.constant 0 : index
    %c0_11 = arith.constant 0 : index
    %12 = vector.load %arg1[%c0_10, %c0_11] : memref<6x8xf32, #tpu.memory_space<vmem>>, vector<1x8xf32>
    %cst_12 = arith.constant 0.899999976 : f32
    %13 = vector.broadcast %cst_12 : f32 to vector<1x8xf32>
    %14 = arith.mulf %13, %12 : vector<1x8xf32>
    %cst_13 = arith.constant 1.000000e+00 : f32
    %15 = vector.broadcast %cst_13 : f32 to vector<1x8xf32>
    %16 = arith.addf %15, %11 : vector<1x8xf32>
    %cst_14 = arith.constant 1.000000e-01 : f32
    %17 = vector.broadcast %cst_14 : f32 to vector<1x8xf32>
    %18 = arith.mulf %17, %16 : vector<1x8xf32>
    %19 = arith.addf %14, %18 : vector<1x8xf32>
    %cst_15 = arith.constant 8.000000e-01 : f32
    %cst_16 = arith.constant 1.200000e+00 : f32
    %20 = vector.broadcast %cst_15 : f32 to vector<1x8xf32>
    %21 = arith.maximumf %20, %19 : vector<1x8xf32>
    %22 = vector.broadcast %cst_16 : f32 to vector<1x8xf32>
    %23 = arith.minimumf %22, %21 : vector<1x8xf32>
    %c0_17 = arith.constant 0 : index
    %c0_18 = arith.constant 0 : index
    %24 = vector.load %arg38[%c0_17, %c0_18] : memref<6x8xf32, #tpu.memory_space<vmem>>, vector<1x8xf32>
    tpu.vector_store %arg38[%c0_17, %c0_18], %23 {strides = array<i32>} : memref<6x8xf32, #tpu.memory_space<vmem>>, vector<1x8xf32>,
    %c0_19 = arith.constant 0 : index
    %c0_20 = arith.constant 0 : index
    %25 = vector.load %arg4[%c0_19, %c0_20] : memref<512x8xf32, #tpu.memory_space<vmem>>, vector<512x8xf32>
    %26 = vector.broadcast %23 : vector<1x8xf32> to vector<512x8xf32>
    %27 = arith.mulf %25, %26 : vector<512x8xf32>
    %cst_21 = arith.constant dense<0.000000e+00> : vector<512xf32>
    %28 = vector.multi_reduction <add>, %27, %cst_21 [1] : vector<512x8xf32> to vector<512xf32>
    %29 = vector.shape_cast %28 : vector<512xf32> to vector<512x1xf32>
    %30 = arith.mulf %2, %29 : vector<512x1xf32>
    %c32 = arith.constant 32 : index
    %c0_22 = arith.constant 0 : index
    %31 = vector.load %arg39[%c32, %c0_22] : memref<576x16xf32, #tpu.memory_space<vmem>>, vector<512x1xf32>
    tpu.vector_store %arg39[%c32, %c0_22], %30 {strides = array<i32>} : memref<576x16xf32, #tpu.memory_space<vmem>>, vector<512x1xf32>,
    %c15 = arith.constant 15 : index
    %c0_23 = arith.constant 0 : index
    %32 = vector.load %arg39[%c15, %c0_23] : memref<576x16xf32, #tpu.memory_space<vmem>>, vector<512x1xf32>
    %c0_24 = arith.constant 0 : index
    %c0_25 = arith.constant 0 : index
    %33 = vector.load %arg40[%c0_24, %c0_25] : memref<512x144xf32, #tpu.memory_space<vmem>>, vector<512x1xf32>
    tpu.vector_store %arg40[%c0_24, %c0_25], %32 {strides = array<i32>} : memref<512x144xf32, #tpu.memory_space<vmem>>, vector<512x1xf32>,
    %c16 = arith.constant 16 : index
    %c0_26 = arith.constant 0 : index
    %34 = vector.load %arg39[%c16, %c0_26] : memref<576x16xf32, #tpu.memory_space<vmem>>, vector<512x1xf32>
    %c0_27 = arith.constant 0 : index
    %c1 = arith.constant 1 : index
    %35 = vector.load %arg40[%c0_27, %c1] : memref<512x144xf32, #tpu.memory_space<vmem>>, vector<512x1xf32>
    tpu.vector_store %arg40[%c0_27, %c1], %34 {strides = array<i32>} : memref<512x144xf32, #tpu.memory_space<vmem>>, vector<512x1xf32>,
    %c17 = arith.constant 17 : index
    %c0_28 = arith.constant 0 : index
    %36 = vector.load %arg39[%c17, %c0_28] : memref<576x16xf32, #tpu.memory_space<vmem>>, vector<512x1xf32>
    %c0_29 = arith.constant 0 : index
    %c2 = arith.constant 2 : index
    %37 = vector.load %arg40[%c0_29, %c2] : memref<512x144xf32, #tpu.memory_space<vmem>>, vector<512x1xf32>
    tpu.vector_store %arg40[%c0_29, %c2], %36 {strides = array<i32>} : memref<512x144xf32, #tpu.memory_space<vmem>>, vector<512x1xf32>,
    %c31 = arith.constant 31 : index
    %c0_30 = arith.constant 0 : index
    %38 = vector.load %arg39[%c31, %c0_30] : memref<576x16xf32, #tpu.memory_space<vmem>>, vector<512x1xf32>
    %c0_31 = arith.constant 0 : index
    %c3 = arith.constant 3 : index
    %39 = vector.load %arg40[%c0_31, %c3] : memref<512x144xf32, #tpu.memory_space<vmem>>, vector<512x1xf32>
    tpu.vector_store %arg40[%c0_31, %c3], %38 {strides = array<i32>} : memref<512x144xf32, #tpu.memory_space<vmem>>, vector<512x1xf32>,
    %c32_32 = arith.constant 32 : index
    %c0_33 = arith.constant 0 : index
    %40 = vector.load %arg39[%c32_32, %c0_33] : memref<576x16xf32, #tpu.memory_space<vmem>>, vector<512x1xf32>
    %c0_34 = arith.constant 0 : index
    %c4 = arith.constant 4 : index
    %41 = vector.load %arg40[%c0_34, %c4] : memref<512x144xf32, #tpu.memory_space<vmem>>, vector<512x1xf32>
    tpu.vector_store %arg40[%c0_34, %c4], %40 {strides = array<i32>} : memref<512x144xf32, #tpu.memory_space<vmem>>, vector<512x1xf32>,
    %c33 = arith.constant 33 : index
    %c0_35 = arith.constant 0 : index
    %42 = vector.load %arg39[%c33, %c0_35] : memref<576x16xf32, #tpu.memory_space<vmem>>, vector<512x1xf32>
    %c0_36 = arith.constant 0 : index
    %c5 = arith.constant 5 : index
    %43 = vector.load %arg40[%c0_36, %c5] : memref<512x144xf32, #tpu.memory_space<vmem>>, vector<512x1xf32>
    tpu.vector_store %arg40[%c0_36, %c5], %42 {strides = array<i32>} : memref<512x144xf32, #tpu.memory_space<vmem>>, vector<512x1xf32>,
    %c47 = arith.constant 47 : index
    %c0_37 = arith.constant 0 : index
    %44 = vector.load %arg39[%c47, %c0_37] : memref<576x16xf32, #tpu.memory_space<vmem>>, vector<512x1xf32>
    %c0_38 = arith.constant 0 : index
    %c6 = arith.constant 6 : index
    %45 = vector.load %arg40[%c0_38, %c6] : memref<512x144xf32, #tpu.memory_space<vmem>>, vector<512x1xf32>
    tpu.vector_store %arg40[%c0_38, %c6], %44 {strides = array<i32>} : memref<512x144xf32, #tpu.memory_space<vmem>>, vector<512x1xf32>,
    %c48 = arith.constant 48 : index
    %c0_39 = arith.constant 0 : index
    %46 = vector.load %arg39[%c48, %c0_39] : memref<576x16xf32, #tpu.memory_space<vmem>>, vector<512x1xf32>
    %c0_40 = arith.constant 0 : index
    %c7 = arith.constant 7 : index
    %47 = vector.load %arg40[%c0_40, %c7] : memref<512x144xf32, #tpu.memory_space<vmem>>, vector<512x1xf32>
    tpu.vector_store %arg40[%c0_40, %c7], %46 {strides = array<i32>} : memref<512x144xf32, #tpu.memory_space<vmem>>, vector<512x1xf32>,
    %c49 = arith.constant 49 : index
    %c0_41 = arith.constant 0 : index
    %48 = vector.load %arg39[%c49, %c0_41] : memref<576x16xf32, #tpu.memory_space<vmem>>, vector<512x1xf32>
    %c0_42 = arith.constant 0 : index
    %c8 = arith.constant 8 : index
    %49 = vector.load %arg40[%c0_42, %c8] : memref<512x144xf32, #tpu.memory_space<vmem>>, vector<512x1xf32>
    tpu.vector_store %arg40[%c0_42, %c8], %48 {strides = array<i32>} : memref<512x144xf32, #tpu.memory_space<vmem>>, vector<512x1xf32>,
    %c0_43 = arith.constant 0 : index
    %c0_44 = arith.constant 0 : index
    %50 = vector.load %arg40[%c0_43, %c0_44] : memref<512x144xf32, #tpu.memory_space<vmem>>, vector<512x9xf32>
    %c0_45 = arith.constant 0 : index
    %c0_46 = arith.constant 0 : index
    %51 = vector.load %arg5[%c0_45, %c0_46] : memref<512x9xf32, #tpu.memory_space<vmem>>, vector<512x9xf32>
    %52 = arith.mulf %50, %51 : vector<512x9xf32>
    %c0_47 = arith.constant 0 : index
    %c0_48 = arith.constant 0 : index
    %53 = vector.load %arg6[%c0_47, %c0_48] : memref<9x8xf32, #tpu.memory_space<vmem>>, vector<9x8xf32>
    %cst_49 = arith.constant dense<0.000000e+00> : vector<512x8xf32>
    %54 = tpu.matmul %52, %53, %cst_49 {dimension_numbers = #tpu.dot_dimension_numbers<[1], [0], [0], [1], [0, 0, 1, 1], [], []>} : vector<512x9xf32>, vector<9x8xf32>, vector<512x8xf32> -> vector<512x8xf32>
    %c0_50 = arith.constant 0 : index
    %c0_51 = arith.constant 0 : index
    %55 = vector.load %arg7[%c0_50, %c0_51] : memref<1x8xf32, #tpu.memory_space<vmem>>, vector<1x8xf32>
    %56 = vector.broadcast %55 : vector<1x8xf32> to vector<512x8xf32>
    %57 = arith.addf %54, %56 : vector<512x8xf32>
    %58 = tpu.iota {dimensions = array<i32: 1>} : vector<1x8xi32>
    %c4_i32 = arith.constant 4 : i32
    %59 = vector.broadcast %c4_i32 : i32 to vector<1x8xi32>
    %60 = arith.cmpi slt, %58, %59 : vector<1x8xi32>
    %cst_52 = arith.constant 0.000000e+00 : f32
    %cst_53 = arith.constant -3.000000e+38 : f32
    %61 = vector.broadcast %cst_52 : f32 to vector<1x8xf32>
    %62 = vector.broadcast %cst_53 : f32 to vector<1x8xf32>
    %63 = arith.select %60, %61, %62 : vector<1x8xi1>, vector<1x8xf32>
    %64 = vector.broadcast %63 : vector<1x8xf32> to vector<512x8xf32>
    %65 = arith.maximumf %57, %64 : vector<512x8xf32>
    %c0_54 = arith.constant 0 : index
    %c0_55 = arith.constant 0 : index
    %66 = vector.load %arg41[%c0_54, %c0_55] : memref<512x64xf32, #tpu.memory_space<vmem>>, vector<512x8xf32>
    tpu.vector_store %arg41[%c0_54, %c0_55], %65 {strides = array<i32>} : memref<512x64xf32, #tpu.memory_space<vmem>>, vector<512x8xf32>,
    %c0_56 = arith.constant 0 : index
    %c0_57 = arith.constant 0 : index
    %67 = vector.load %arg41[%c0_56, %c0_57] : memref<512x64xf32, #tpu.memory_space<vmem>>, vector<16x8xf32>
    %c16_58 = arith.constant 16 : index
    %c0_59 = arith.constant 0 : index
    %68 = vector.load %arg41[%c16_58, %c0_59] : memref<512x64xf32, #tpu.memory_space<vmem>>, vector<16x8xf32>
    %69 = arith.maximumf %67, %68 : vector<16x8xf32>
    %c0_60 = arith.constant 0 : index
    %c0_61 = arith.constant 0 : index
    %70 = vector.load %arg42[%c0_60, %c0_61] : memref<256x64xf32, #tpu.memory_space<vmem>>, vector<16x8xf32>
    tpu.vector_store %arg42[%c0_60, %c0_61], %69 {strides = array<i32>} : memref<256x64xf32, #tpu.memory_space<vmem>>, vector<16x8xf32>,
    %c32_62 = arith.constant 32 : index
    %c0_63 = arith.constant 0 : index
    %71 = vector.load %arg41[%c32_62, %c0_63] : memref<512x64xf32, #tpu.memory_space<vmem>>, vector<16x8xf32>
    %c48_64 = arith.constant 48 : index
    %c0_65 = arith.constant 0 : index
    %72 = vector.load %arg41[%c48_64, %c0_65] : memref<512x64xf32, #tpu.memory_space<vmem>>, vector<16x8xf32>
    %73 = arith.maximumf %71, %72 : vector<16x8xf32>
    %c16_66 = arith.constant 16 : index
    %c0_67 = arith.constant 0 : index
    %74 = vector.load %arg42[%c16_66, %c0_67] : memref<256x64xf32, #tpu.memory_space<vmem>>, vector<16x8xf32>
    tpu.vector_store %arg42[%c16_66, %c0_67], %73 {strides = array<i32>} : memref<256x64xf32, #tpu.memory_space<vmem>>, vector<16x8xf32>,
    %c64 = arith.constant 64 : index
    %c0_68 = arith.constant 0 : index
    %75 = vector.load %arg41[%c64, %c0_68] : memref<512x64xf32, #tpu.memory_space<vmem>>, vector<16x8xf32>
    %c80 = arith.constant 80 : index
    %c0_69 = arith.constant 0 : index
    %76 = vector.load %arg41[%c80, %c0_69] : memref<512x64xf32, #tpu.memory_space<vmem>>, vector<16x8xf32>
    %77 = arith.maximumf %75, %76 : vector<16x8xf32>
    %c32_70 = arith.constant 32 : index
    %c0_71 = arith.constant 0 : index
    %78 = vector.load %arg42[%c32_70, %c0_71] : memref<256x64xf32, #tpu.memory_space<vmem>>, vector<16x8xf32>
    tpu.vector_store %arg42[%c32_70, %c0_71], %77 {strides = array<i32>} : memref<256x64xf32, #tpu.memory_space<vmem>>, vector<16x8xf32>,
    %c96 = arith.constant 96 : index
    %c0_72 = arith.constant 0 : index
    %79 = vector.load %arg41[%c96, %c0_72] : memref<512x64xf32, #tpu.memory_space<vmem>>, vector<16x8xf32>
    %c112 = arith.constant 112 : index
    %c0_73 = arith.constant 0 : index
    %80 = vector.load %arg41[%c112, %c0_73] : memref<512x64xf32, #tpu.memory_space<vmem>>, vector<16x8xf32>
    %81 = arith.maximumf %79, %80 : vector<16x8xf32>
    %c48_74 = arith.constant 48 : index
    %c0_75 = arith.constant 0 : index
    %82 = vector.load %arg42[%c48_74, %c0_75] : memref<256x64xf32, #tpu.memory_space<vmem>>, vector<16x8xf32>
    tpu.vector_store %arg42[%c48_74, %c0_75], %81 {strides = array<i32>} : memref<256x64xf32, #tpu.memory_space<vmem>>, vector<16x8xf32>,
    %c128 = arith.constant 128 : index
    %c0_76 = arith.constant 0 : index
    %83 = vector.load %arg41[%c128, %c0_76] : memref<512x64xf32, #tpu.memory_space<vmem>>, vector<16x8xf32>
    %c144 = arith.constant 144 : index
    %c0_77 = arith.constant 0 : index
    %84 = vector.load %arg41[%c144, %c0_77] : memref<512x64xf32, #tpu.memory_space<vmem>>, vector<16x8xf32>
    %85 = arith.maximumf %83, %84 : vector<16x8xf32>
    %c64_78 = arith.constant 64 : index
    %c0_79 = arith.constant 0 : index
    %86 = vector.load %arg42[%c64_78, %c0_79] : memref<256x64xf32, #tpu.memory_space<vmem>>, vector<16x8xf32>
    tpu.vector_store %arg42[%c64_78, %c0_79], %85 {strides = array<i32>} : memref<256x64xf32, #tpu.memory_space<vmem>>, vector<16x8xf32>,
    %c160 = arith.constant 160 : index
    %c0_80 = arith.constant 0 : index
    %87 = vector.load %arg41[%c160, %c0_80] : memref<512x64xf32, #tpu.memory_space<vmem>>, vector<16x8xf32>
    %c176 = arith.constant 176 : index
    %c0_81 = arith.constant 0 : index
    %88 = vector.load %arg41[%c176, %c0_81] : memref<512x64xf32, #tpu.memory_space<vmem>>, vector<16x8xf32>
    %89 = arith.maximumf %87, %88 : vector<16x8xf32>
    %c80_82 = arith.constant 80 : index
    %c0_83 = arith.constant 0 : index
    %90 = vector.load %arg42[%c80_82, %c0_83] : memref<256x64xf32, #tpu.memory_space<vmem>>, vector<16x8xf32>
    tpu.vector_store %arg42[%c80_82, %c0_83], %89 {strides = array<i32>} : memref<256x64xf32, #tpu.memory_space<vmem>>, vector<16x8xf32>,
    %c192 = arith.constant 192 : index
    %c0_84 = arith.constant 0 : index
    %91 = vector.load %arg41[%c192, %c0_84] : memref<512x64xf32, #tpu.memory_space<vmem>>, vector<16x8xf32>
    %c208 = arith.constant 208 : index
    %c0_85 = arith.constant 0 : index
    %92 = vector.load %arg41[%c208, %c0_85] : memref<512x64xf32, #tpu.memory_space<vmem>>, vector<16x8xf32>
    %93 = arith.maximumf %91, %92 : vector<16x8xf32>
    %c96_86 = arith.constant 96 : index
    %c0_87 = arith.constant 0 : index
    %94 = vector.load %arg42[%c96_86, %c0_87] : memref<256x64xf32, #tpu.memory_space<vmem>>, vector<16x8xf32>
    tpu.vector_store %arg42[%c96_86, %c0_87], %93 {strides = array<i32>} : memref<256x64xf32, #tpu.memory_space<vmem>>, vector<16x8xf32>,
    %c224 = arith.constant 224 : index
    %c0_88 = arith.constant 0 : index
    %95 = vector.load %arg41[%c224, %c0_88] : memref<512x64xf32, #tpu.memory_space<vmem>>, vector<16x8xf32>
    %c240 = arith.constant 240 : index
    %c0_89 = arith.constant 0 : index
    %96 = vector.load %arg41[%c240, %c0_89] : memref<512x64xf32, #tpu.memory_space<vmem>>, vector<16x8xf32>
    %97 = arith.maximumf %95, %96 : vector<16x8xf32>
    %c112_90 = arith.constant 112 : index
    %c0_91 = arith.constant 0 : index
    %98 = vector.load %arg42[%c112_90, %c0_91] : memref<256x64xf32, #tpu.memory_space<vmem>>, vector<16x8xf32>
    tpu.vector_store %arg42[%c112_90, %c0_91], %97 {strides = array<i32>} : memref<256x64xf32, #tpu.memory_space<vmem>>, vector<16x8xf32>,
    %c256 = arith.constant 256 : index
    %c0_92 = arith.constant 0 : index
    %99 = vector.load %arg41[%c256, %c0_92] : memref<512x64xf32, #tpu.memory_space<vmem>>, vector<16x8xf32>
    %c272 = arith.constant 272 : index
    %c0_93 = arith.constant 0 : index
    %100 = vector.load %arg41[%c272, %c0_93] : memref<512x64xf32, #tpu.memory_space<vmem>>, vector<16x8xf32>
    %101 = arith.maximumf %99, %100 : vector<16x8xf32>
    %c128_94 = arith.constant 128 : index
    %c0_95 = arith.constant 0 : index
    %102 = vector.load %arg42[%c128_94, %c0_95] : memref<256x64xf32, #tpu.memory_space<vmem>>, vector<16x8xf32>
    tpu.vector_store %arg42[%c128_94, %c0_95], %101 {strides = array<i32>} : memref<256x64xf32, #tpu.memory_space<vmem>>, vector<16x8xf32>,
    %c288 = arith.constant 288 : index
    %c0_96 = arith.constant 0 : index
    %103 = vector.load %arg41[%c288, %c0_96] : memref<512x64xf32, #tpu.memory_space<vmem>>, vector<16x8xf32>
    %c304 = arith.constant 304 : index
    %c0_97 = arith.constant 0 : index
    %104 = vector.load %arg41[%c304, %c0_97] : memref<512x64xf32, #tpu.memory_space<vmem>>, vector<16x8xf32>
    %105 = arith.maximumf %103, %104 : vector<16x8xf32>
    %c144_98 = arith.constant 144 : index
    %c0_99 = arith.constant 0 : index
    %106 = vector.load %arg42[%c144_98, %c0_99] : memref<256x64xf32, #tpu.memory_space<vmem>>, vector<16x8xf32>
    tpu.vector_store %arg42[%c144_98, %c0_99], %105 {strides = array<i32>} : memref<256x64xf32, #tpu.memory_space<vmem>>, vector<16x8xf32>,
    %c320 = arith.constant 320 : index
    %c0_100 = arith.constant 0 : index
    %107 = vector.load %arg41[%c320, %c0_100] : memref<512x64xf32, #tpu.memory_space<vmem>>, vector<16x8xf32>
    %c336 = arith.constant 336 : index
    %c0_101 = arith.constant 0 : index
    %108 = vector.load %arg41[%c336, %c0_101] : memref<512x64xf32, #tpu.memory_space<vmem>>, vector<16x8xf32>
    %109 = arith.maximumf %107, %108 : vector<16x8xf32>
    %c160_102 = arith.constant 160 : index
    %c0_103 = arith.constant 0 : index
    %110 = vector.load %arg42[%c160_102, %c0_103] : memref<256x64xf32, #tpu.memory_space<vmem>>, vector<16x8xf32>
    tpu.vector_store %arg42[%c160_102, %c0_103], %109 {strides = array<i32>} : memref<256x64xf32, #tpu.memory_space<vmem>>, vector<16x8xf32>,
    %c352 = arith.constant 352 : index
    %c0_104 = arith.constant 0 : index
    %111 = vector.load %arg41[%c352, %c0_104] : memref<512x64xf32, #tpu.memory_space<vmem>>, vector<16x8xf32>
    %c368 = arith.constant 368 : index
    %c0_105 = arith.constant 0 : index
    %112 = vector.load %arg41[%c368, %c0_105] : memref<512x64xf32, #tpu.memory_space<vmem>>, vector<16x8xf32>
    %113 = arith.maximumf %111, %112 : vector<16x8xf32>
    %c176_106 = arith.constant 176 : index
    %c0_107 = arith.constant 0 : index
    %114 = vector.load %arg42[%c176_106, %c0_107] : memref<256x64xf32, #tpu.memory_space<vmem>>, vector<16x8xf32>
    tpu.vector_store %arg42[%c176_106, %c0_107], %113 {strides = array<i32>} : memref<256x64xf32, #tpu.memory_space<vmem>>, vector<16x8xf32>,
    %c384 = arith.constant 384 : index
    %c0_108 = arith.constant 0 : index
    %115 = vector.load %arg41[%c384, %c0_108] : memref<512x64xf32, #tpu.memory_space<vmem>>, vector<16x8xf32>
    %c400 = arith.constant 400 : index
    %c0_109 = arith.constant 0 : index
    %116 = vector.load %arg41[%c400, %c0_109] : memref<512x64xf32, #tpu.memory_space<vmem>>, vector<16x8xf32>
    %117 = arith.maximumf %115, %116 : vector<16x8xf32>
    %c192_110 = arith.constant 192 : index
    %c0_111 = arith.constant 0 : index
    %118 = vector.load %arg42[%c192_110, %c0_111] : memref<256x64xf32, #tpu.memory_space<vmem>>, vector<16x8xf32>
    tpu.vector_store %arg42[%c192_110, %c0_111], %117 {strides = array<i32>} : memref<256x64xf32, #tpu.memory_space<vmem>>, vector<16x8xf32>,
    %c416 = arith.constant 416 : index
    %c0_112 = arith.constant 0 : index
    %119 = vector.load %arg41[%c416, %c0_112] : memref<512x64xf32, #tpu.memory_space<vmem>>, vector<16x8xf32>
    %c432 = arith.constant 432 : index
    %c0_113 = arith.constant 0 : index
    %120 = vector.load %arg41[%c432, %c0_113] : memref<512x64xf32, #tpu.memory_space<vmem>>, vector<16x8xf32>
    %121 = arith.maximumf %119, %120 : vector<16x8xf32>
    %c208_114 = arith.constant 208 : index
    %c0_115 = arith.constant 0 : index
    %122 = vector.load %arg42[%c208_114, %c0_115] : memref<256x64xf32, #tpu.memory_space<vmem>>, vector<16x8xf32>
    tpu.vector_store %arg42[%c208_114, %c0_115], %121 {strides = array<i32>} : memref<256x64xf32, #tpu.memory_space<vmem>>, vector<16x8xf32>,
    %c448 = arith.constant 448 : index
    %c0_116 = arith.constant 0 : index
    %123 = vector.load %arg41[%c448, %c0_116] : memref<512x64xf32, #tpu.memory_space<vmem>>, vector<16x8xf32>
    %c464 = arith.constant 464 : index
    %c0_117 = arith.constant 0 : index
    %124 = vector.load %arg41[%c464, %c0_117] : memref<512x64xf32, #tpu.memory_space<vmem>>, vector<16x8xf32>
    %125 = arith.maximumf %123, %124 : vector<16x8xf32>
    %c224_118 = arith.constant 224 : index
    %c0_119 = arith.constant 0 : index
    %126 = vector.load %arg42[%c224_118, %c0_119] : memref<256x64xf32, #tpu.memory_space<vmem>>, vector<16x8xf32>
    tpu.vector_store %arg42[%c224_118, %c0_119], %125 {strides = array<i32>} : memref<256x64xf32, #tpu.memory_space<vmem>>, vector<16x8xf32>,
    %c480 = arith.constant 480 : index
    %c0_120 = arith.constant 0 : index
    %127 = vector.load %arg41[%c480, %c0_120] : memref<512x64xf32, #tpu.memory_space<vmem>>, vector<16x8xf32>
    %c496 = arith.constant 496 : index
    %c0_121 = arith.constant 0 : index
    %128 = vector.load %arg41[%c496, %c0_121] : memref<512x64xf32, #tpu.memory_space<vmem>>, vector<16x8xf32>
    %129 = arith.maximumf %127, %128 : vector<16x8xf32>
    %c240_122 = arith.constant 240 : index
    %c0_123 = arith.constant 0 : index
    %130 = vector.load %arg42[%c240_122, %c0_123] : memref<256x64xf32, #tpu.memory_space<vmem>>, vector<16x8xf32>
    tpu.vector_store %arg42[%c240_122, %c0_123], %129 {strides = array<i32>} : memref<256x64xf32, #tpu.memory_space<vmem>>, vector<16x8xf32>,
    %c0_124 = arith.constant 0 : index
    %c0_125 = arith.constant 0 : index
    %131 = tpu.strided_load %arg42[%c0_124, %c0_125] {strides = array<i32: 2, 1>} : memref<256x64xf32, #tpu.memory_space<vmem>>, vector<128x8xf32>
    %c1_126 = arith.constant 1 : index
    %c0_127 = arith.constant 0 : index
    %132 = tpu.strided_load %arg42[%c1_126, %c0_127] {strides = array<i32: 2, 1>} : memref<256x64xf32, #tpu.memory_space<vmem>>, vector<128x8xf32>
    %133 = arith.maximumf %131, %132 : vector<128x8xf32>
    %134 = vector.extract_strided_slice %133 {offsets = [0, 0], sizes = [128, 4], strides = [1, 1]} : vector<128x8xf32> to vector<128x4xf32>
    %135 = vector.extract_strided_slice %133 {offsets = [0, 4], sizes = [128, 4], strides = [1, 1]} : vector<128x8xf32> to vector<128x4xf32>
    %136 = arith.addf %134, %135 : vector<128x4xf32>
    %c0_128 = arith.constant 0 : index
    %c0_129 = arith.constant 0 : index
    %137 = vector.load %arg9[%c0_128, %c0_129] : memref<4x8xf32, #tpu.memory_space<vmem>>, vector<4x8xf32>
    %cst_130 = arith.constant dense<0.000000e+00> : vector<128x8xf32>
    %138 = tpu.matmul %136, %137, %cst_130 {dimension_numbers = #tpu.dot_dimension_numbers<[1], [0], [0], [1], [0, 0, 1, 1], [], []>} : vector<128x4xf32>, vector<4x8xf32>, vector<128x8xf32> -> vector<128x8xf32>
    %c0_131 = arith.constant 0 : index
    %c0_132 = arith.constant 0 : index
    %139 = vector.load %arg8[%c0_131, %c0_132] : memref<128x8xf32, #tpu.memory_space<vmem>>, vector<128x8xf32>
    %140 = arith.mulf %138, %139 : vector<128x8xf32>
    %cst_133 = arith.constant dense<0.000000e+00> : vector<8xf32>
    %141 = vector.multi_reduction <add>, %140, %cst_133 [0] : vector<128x8xf32> to vector<8xf32>
    %142 = vector.shape_cast %141 : vector<8xf32> to vector<1x8xf32>
    %cst_134 = arith.constant 3.500000e-01 : f32
    %143 = vector.broadcast %cst_134 : f32 to vector<1x8xf32>
    %144 = arith.mulf %142, %143 : vector<1x8xf32>
    %145 = math.tanh %144 : vector<1x8xf32>
    %c1_135 = arith.constant 1 : index
    %c0_136 = arith.constant 0 : index
    %146 = vector.load %arg1[%c1_135, %c0_136] : memref<6x8xf32, #tpu.memory_space<vmem>>, vector<1x8xf32>
    %cst_137 = arith.constant 0.899999976 : f32
    %147 = vector.broadcast %cst_137 : f32 to vector<1x8xf32>
    %148 = arith.mulf %147, %146 : vector<1x8xf32>
    %cst_138 = arith.constant 1.000000e+00 : f32
    %149 = vector.broadcast %cst_138 : f32 to vector<1x8xf32>
    %150 = arith.addf %149, %145 : vector<1x8xf32>
    %cst_139 = arith.constant 1.000000e-01 : f32
    %151 = vector.broadcast %cst_139 : f32 to vector<1x8xf32>
    %152 = arith.mulf %151, %150 : vector<1x8xf32>
    %153 = arith.addf %148, %152 : vector<1x8xf32>
    %cst_140 = arith.constant 8.000000e-01 : f32
    %cst_141 = arith.constant 1.200000e+00 : f32
    %154 = vector.broadcast %cst_140 : f32 to vector<1x8xf32>
    %155 = arith.maximumf %154, %153 : vector<1x8xf32>
    %156 = vector.broadcast %cst_141 : f32 to vector<1x8xf32>
    %157 = arith.minimumf %156, %155 : vector<1x8xf32>
    %c1_142 = arith.constant 1 : index
    %c0_143 = arith.constant 0 : index
    %158 = vector.load %arg38[%c1_142, %c0_143] : memref<6x8xf32, #tpu.memory_space<vmem>>, vector<1x8xf32>
    tpu.vector_store %arg38[%c1_142, %c0_143], %157 {strides = array<i32>} : memref<6x8xf32, #tpu.memory_space<vmem>>, vector<1x8xf32>,
    %c0_144 = arith.constant 0 : index
    %c0_145 = arith.constant 0 : index
    %159 = vector.load %arg10[%c0_144, %c0_145] : memref<128x8xf32, #tpu.memory_space<vmem>>, vector<128x8xf32>
    %160 = vector.broadcast %157 : vector<1x8xf32> to vector<128x8xf32>
    %161 = arith.mulf %159, %160 : vector<128x8xf32>
    %cst_146 = arith.constant dense<0.000000e+00> : vector<128xf32>
    %162 = vector.multi_reduction <add>, %161, %cst_146 [1] : vector<128x8xf32> to vector<128xf32>
    %163 = vector.shape_cast %162 : vector<128xf32> to vector<128x1xf32>
    %164 = vector.broadcast %163 : vector<128x1xf32> to vector<128x4xf32>
    %165 = arith.mulf %136, %164 : vector<128x4xf32>
    %c32_147 = arith.constant 32 : index
    %c0_148 = arith.constant 0 : index
    %166 = vector.load %arg39[%c32_147, %c0_148] : memref<576x16xf32, #tpu.memory_space<vmem>>, vector<128x4xf32>
    tpu.vector_store %arg39[%c32_147, %c0_148], %165 {strides = array<i32>} : memref<576x16xf32, #tpu.memory_space<vmem>>, vector<128x4xf32>,
    %c23 = arith.constant 23 : index
    %c0_149 = arith.constant 0 : index
    %167 = vector.load %arg39[%c23, %c0_149] : memref<576x16xf32, #tpu.memory_space<vmem>>, vector<128x4xf32>
    %c0_150 = arith.constant 0 : index
    %c0_151 = arith.constant 0 : index
    %168 = vector.load %arg40[%c0_150, %c0_151] : memref<512x144xf32, #tpu.memory_space<vmem>>, vector<128x4xf32>
    tpu.vector_store %arg40[%c0_150, %c0_151], %167 {strides = array<i32>} : memref<512x144xf32, #tpu.memory_space<vmem>>, vector<128x4xf32>,
    %c24 = arith.constant 24 : index
    %c0_152 = arith.constant 0 : index
    %169 = vector.load %arg39[%c24, %c0_152] : memref<576x16xf32, #tpu.memory_space<vmem>>, vector<128x4xf32>
    %c0_153 = arith.constant 0 : index
    %c4_154 = arith.constant 4 : index
    %170 = vector.load %arg40[%c0_153, %c4_154] : memref<512x144xf32, #tpu.memory_space<vmem>>, vector<128x4xf32>
    tpu.vector_store %arg40[%c0_153, %c4_154], %169 {strides = array<i32>} : memref<512x144xf32, #tpu.memory_space<vmem>>, vector<128x4xf32>,
    %c25 = arith.constant 25 : index
    %c0_155 = arith.constant 0 : index
    %171 = vector.load %arg39[%c25, %c0_155] : memref<576x16xf32, #tpu.memory_space<vmem>>, vector<128x4xf32>
    %c0_156 = arith.constant 0 : index
    %c8_157 = arith.constant 8 : index
    %172 = vector.load %arg40[%c0_156, %c8_157] : memref<512x144xf32, #tpu.memory_space<vmem>>, vector<128x4xf32>
    tpu.vector_store %arg40[%c0_156, %c8_157], %171 {strides = array<i32>} : memref<512x144xf32, #tpu.memory_space<vmem>>, vector<128x4xf32>,
    %c31_158 = arith.constant 31 : index
    %c0_159 = arith.constant 0 : index
    %173 = vector.load %arg39[%c31_158, %c0_159] : memref<576x16xf32, #tpu.memory_space<vmem>>, vector<128x4xf32>
    %c0_160 = arith.constant 0 : index
    %c12 = arith.constant 12 : index
    %174 = vector.load %arg40[%c0_160, %c12] : memref<512x144xf32, #tpu.memory_space<vmem>>, vector<128x4xf32>
    tpu.vector_store %arg40[%c0_160, %c12], %173 {strides = array<i32>} : memref<512x144xf32, #tpu.memory_space<vmem>>, vector<128x4xf32>,
    %c32_161 = arith.constant 32 : index
    %c0_162 = arith.constant 0 : index
    %175 = vector.load %arg39[%c32_161, %c0_162] : memref<576x16xf32, #tpu.memory_space<vmem>>, vector<128x4xf32>
    %c0_163 = arith.constant 0 : index
    %c16_164 = arith.constant 16 : index
    %176 = vector.load %arg40[%c0_163, %c16_164] : memref<512x144xf32, #tpu.memory_space<vmem>>, vector<128x4xf32>
    tpu.vector_store %arg40[%c0_163, %c16_164], %175 {strides = array<i32>} : memref<512x144xf32, #tpu.memory_space<vmem>>, vector<128x4xf32>,
    %c33_165 = arith.constant 33 : index
    %c0_166 = arith.constant 0 : index
    %177 = vector.load %arg39[%c33_165, %c0_166] : memref<576x16xf32, #tpu.memory_space<vmem>>, vector<128x4xf32>
    %c0_167 = arith.constant 0 : index
    %c20 = arith.constant 20 : index
    %178 = vector.load %arg40[%c0_167, %c20] : memref<512x144xf32, #tpu.memory_space<vmem>>, vector<128x4xf32>
    tpu.vector_store %arg40[%c0_167, %c20], %177 {strides = array<i32>} : memref<512x144xf32, #tpu.memory_space<vmem>>, vector<128x4xf32>,
    %c39 = arith.constant 39 : index
    %c0_168 = arith.constant 0 : index
    %179 = vector.load %arg39[%c39, %c0_168] : memref<576x16xf32, #tpu.memory_space<vmem>>, vector<128x4xf32>
    %c0_169 = arith.constant 0 : index
    %c24_170 = arith.constant 24 : index
    %180 = vector.load %arg40[%c0_169, %c24_170] : memref<512x144xf32, #tpu.memory_space<vmem>>, vector<128x4xf32>
    tpu.vector_store %arg40[%c0_169, %c24_170], %179 {strides = array<i32>} : memref<512x144xf32, #tpu.memory_space<vmem>>, vector<128x4xf32>,
    %c40 = arith.constant 40 : index
    %c0_171 = arith.constant 0 : index
    %181 = vector.load %arg39[%c40, %c0_171] : memref<576x16xf32, #tpu.memory_space<vmem>>, vector<128x4xf32>
    %c0_172 = arith.constant 0 : index
    %c28 = arith.constant 28 : index
    %182 = vector.load %arg40[%c0_172, %c28] : memref<512x144xf32, #tpu.memory_space<vmem>>, vector<128x4xf32>
    tpu.vector_store %arg40[%c0_172, %c28], %181 {strides = array<i32>} : memref<512x144xf32, #tpu.memory_space<vmem>>, vector<128x4xf32>,
    %c41 = arith.constant 41 : index
    %c0_173 = arith.constant 0 : index
    %183 = vector.load %arg39[%c41, %c0_173] : memref<576x16xf32, #tpu.memory_space<vmem>>, vector<128x4xf32>
    %c0_174 = arith.constant 0 : index
    %c32_175 = arith.constant 32 : index
    %184 = vector.load %arg40[%c0_174, %c32_175] : memref<512x144xf32, #tpu.memory_space<vmem>>, vector<128x4xf32>
    tpu.vector_store %arg40[%c0_174, %c32_175], %183 {strides = array<i32>} : memref<512x144xf32, #tpu.memory_space<vmem>>, vector<128x4xf32>,
    %c0_176 = arith.constant 0 : index
    %c0_177 = arith.constant 0 : index
    %185 = vector.load %arg40[%c0_176, %c0_177] : memref<512x144xf32, #tpu.memory_space<vmem>>, vector<128x36xf32>
    %c0_178 = arith.constant 0 : index
    %c0_179 = arith.constant 0 : index
    %186 = vector.load %arg11[%c0_178, %c0_179] : memref<128x36xf32, #tpu.memory_space<vmem>>, vector<128x36xf32>
    %187 = arith.mulf %185, %186 : vector<128x36xf32>
    %c0_180 = arith.constant 0 : index
    %c0_181 = arith.constant 0 : index
    %188 = vector.load %arg12[%c0_180, %c0_181] : memref<36x16xf32, #tpu.memory_space<vmem>>, vector<36x16xf32>
    %cst_182 = arith.constant dense<0.000000e+00> : vector<128x16xf32>
    %189 = tpu.matmul %187, %188, %cst_182 {dimension_numbers = #tpu.dot_dimension_numbers<[1], [0], [0], [1], [0, 0, 1, 1], [], []>} : vector<128x36xf32>, vector<36x16xf32>, vector<128x16xf32> -> vector<128x16xf32>
    %c0_183 = arith.constant 0 : index
    %c0_184 = arith.constant 0 : index
    %190 = vector.load %arg13[%c0_183, %c0_184] : memref<1x16xf32, #tpu.memory_space<vmem>>, vector<1x16xf32>
    %191 = vector.broadcast %190 : vector<1x16xf32> to vector<128x16xf32>
    %192 = arith.addf %189, %191 : vector<128x16xf32>
    %193 = tpu.iota {dimensions = array<i32: 1>} : vector<1x16xi32>
    %c8_i32 = arith.constant 8 : i32
    %194 = vector.broadcast %c8_i32 : i32 to vector<1x16xi32>
    %195 = arith.cmpi slt, %193, %194 : vector<1x16xi32>
    %cst_185 = arith.constant 0.000000e+00 : f32
    %cst_186 = arith.constant -3.000000e+38 : f32
    %196 = vector.broadcast %cst_185 : f32 to vector<1x16xf32>
    %197 = vector.broadcast %cst_186 : f32 to vector<1x16xf32>
    %198 = arith.select %195, %196, %197 : vector<1x16xi1>, vector<1x16xf32>
    %199 = vector.broadcast %198 : vector<1x16xf32> to vector<128x16xf32>
    %200 = arith.maximumf %192, %199 : vector<128x16xf32>
    %c0_187 = arith.constant 0 : index
    %c0_188 = arith.constant 0 : index
    %201 = vector.load %arg41[%c0_187, %c0_188] : memref<512x64xf32, #tpu.memory_space<vmem>>, vector<128x16xf32>
    tpu.vector_store %arg41[%c0_187, %c0_188], %200 {strides = array<i32>} : memref<512x64xf32, #tpu.memory_space<vmem>>, vector<128x16xf32>,
    %c0_189 = arith.constant 0 : index
    %c0_190 = arith.constant 0 : index
    %202 = vector.load %arg41[%c0_189, %c0_190] : memref<512x64xf32, #tpu.memory_space<vmem>>, vector<8x16xf32>
    %c8_191 = arith.constant 8 : index
    %c0_192 = arith.constant 0 : index
    %203 = vector.load %arg41[%c8_191, %c0_192] : memref<512x64xf32, #tpu.memory_space<vmem>>, vector<8x16xf32>
    %204 = arith.maximumf %202, %203 : vector<8x16xf32>
    %c0_193 = arith.constant 0 : index
    %c0_194 = arith.constant 0 : index
    %205 = vector.load %arg42[%c0_193, %c0_194] : memref<256x64xf32, #tpu.memory_space<vmem>>, vector<8x16xf32>
    tpu.vector_store %arg42[%c0_193, %c0_194], %204 {strides = array<i32>} : memref<256x64xf32, #tpu.memory_space<vmem>>, vector<8x16xf32>,
    %c16_195 = arith.constant 16 : index
    %c0_196 = arith.constant 0 : index
    %206 = vector.load %arg41[%c16_195, %c0_196] : memref<512x64xf32, #tpu.memory_space<vmem>>, vector<8x16xf32>
    %c24_197 = arith.constant 24 : index
    %c0_198 = arith.constant 0 : index
    %207 = vector.load %arg41[%c24_197, %c0_198] : memref<512x64xf32, #tpu.memory_space<vmem>>, vector<8x16xf32>
    %208 = arith.maximumf %206, %207 : vector<8x16xf32>
    %c8_199 = arith.constant 8 : index
    %c0_200 = arith.constant 0 : index
    %209 = vector.load %arg42[%c8_199, %c0_200] : memref<256x64xf32, #tpu.memory_space<vmem>>, vector<8x16xf32>
    tpu.vector_store %arg42[%c8_199, %c0_200], %208 {strides = array<i32>} : memref<256x64xf32, #tpu.memory_space<vmem>>, vector<8x16xf32>,
    %c32_201 = arith.constant 32 : index
    %c0_202 = arith.constant 0 : index
    %210 = vector.load %arg41[%c32_201, %c0_202] : memref<512x64xf32, #tpu.memory_space<vmem>>, vector<8x16xf32>
    %c40_203 = arith.constant 40 : index
    %c0_204 = arith.constant 0 : index
    %211 = vector.load %arg41[%c40_203, %c0_204] : memref<512x64xf32, #tpu.memory_space<vmem>>, vector<8x16xf32>
    %212 = arith.maximumf %210, %211 : vector<8x16xf32>
    %c16_205 = arith.constant 16 : index
    %c0_206 = arith.constant 0 : index
    %213 = vector.load %arg42[%c16_205, %c0_206] : memref<256x64xf32, #tpu.memory_space<vmem>>, vector<8x16xf32>
    tpu.vector_store %arg42[%c16_205, %c0_206], %212 {strides = array<i32>} : memref<256x64xf32, #tpu.memory_space<vmem>>, vector<8x16xf32>,
    %c48_207 = arith.constant 48 : index
    %c0_208 = arith.constant 0 : index
    %214 = vector.load %arg41[%c48_207, %c0_208] : memref<512x64xf32, #tpu.memory_space<vmem>>, vector<8x16xf32>
    %c56 = arith.constant 56 : index
    %c0_209 = arith.constant 0 : index
    %215 = vector.load %arg41[%c56, %c0_209] : memref<512x64xf32, #tpu.memory_space<vmem>>, vector<8x16xf32>
    %216 = arith.maximumf %214, %215 : vector<8x16xf32>
    %c24_210 = arith.constant 24 : index
    %c0_211 = arith.constant 0 : index
    %217 = vector.load %arg42[%c24_210, %c0_211] : memref<256x64xf32, #tpu.memory_space<vmem>>, vector<8x16xf32>
    tpu.vector_store %arg42[%c24_210, %c0_211], %216 {strides = array<i32>} : memref<256x64xf32, #tpu.memory_space<vmem>>, vector<8x16xf32>,
    %c64_212 = arith.constant 64 : index
    %c0_213 = arith.constant 0 : index
    %218 = vector.load %arg41[%c64_212, %c0_213] : memref<512x64xf32, #tpu.memory_space<vmem>>, vector<8x16xf32>
    %c72 = arith.constant 72 : index
    %c0_214 = arith.constant 0 : index
    %219 = vector.load %arg41[%c72, %c0_214] : memref<512x64xf32, #tpu.memory_space<vmem>>, vector<8x16xf32>
    %220 = arith.maximumf %218, %219 : vector<8x16xf32>
    %c32_215 = arith.constant 32 : index
    %c0_216 = arith.constant 0 : index
    %221 = vector.load %arg42[%c32_215, %c0_216] : memref<256x64xf32, #tpu.memory_space<vmem>>, vector<8x16xf32>
    tpu.vector_store %arg42[%c32_215, %c0_216], %220 {strides = array<i32>} : memref<256x64xf32, #tpu.memory_space<vmem>>, vector<8x16xf32>,
    %c80_217 = arith.constant 80 : index
    %c0_218 = arith.constant 0 : index
    %222 = vector.load %arg41[%c80_217, %c0_218] : memref<512x64xf32, #tpu.memory_space<vmem>>, vector<8x16xf32>
    %c88 = arith.constant 88 : index
    %c0_219 = arith.constant 0 : index
    %223 = vector.load %arg41[%c88, %c0_219] : memref<512x64xf32, #tpu.memory_space<vmem>>, vector<8x16xf32>
    %224 = arith.maximumf %222, %223 : vector<8x16xf32>
    %c40_220 = arith.constant 40 : index
    %c0_221 = arith.constant 0 : index
    %225 = vector.load %arg42[%c40_220, %c0_221] : memref<256x64xf32, #tpu.memory_space<vmem>>, vector<8x16xf32>
    tpu.vector_store %arg42[%c40_220, %c0_221], %224 {strides = array<i32>} : memref<256x64xf32, #tpu.memory_space<vmem>>, vector<8x16xf32>,
    %c96_222 = arith.constant 96 : index
    %c0_223 = arith.constant 0 : index
    %226 = vector.load %arg41[%c96_222, %c0_223] : memref<512x64xf32, #tpu.memory_space<vmem>>, vector<8x16xf32>
    %c104 = arith.constant 104 : index
    %c0_224 = arith.constant 0 : index
    %227 = vector.load %arg41[%c104, %c0_224] : memref<512x64xf32, #tpu.memory_space<vmem>>, vector<8x16xf32>
    %228 = arith.maximumf %226, %227 : vector<8x16xf32>
    %c48_225 = arith.constant 48 : index
    %c0_226 = arith.constant 0 : index
    %229 = vector.load %arg42[%c48_225, %c0_226] : memref<256x64xf32, #tpu.memory_space<vmem>>, vector<8x16xf32>
    tpu.vector_store %arg42[%c48_225, %c0_226], %228 {strides = array<i32>} : memref<256x64xf32, #tpu.memory_space<vmem>>, vector<8x16xf32>,
    %c112_227 = arith.constant 112 : index
    %c0_228 = arith.constant 0 : index
    %230 = vector.load %arg41[%c112_227, %c0_228] : memref<512x64xf32, #tpu.memory_space<vmem>>, vector<8x16xf32>
    %c120 = arith.constant 120 : index
    %c0_229 = arith.constant 0 : index
    %231 = vector.load %arg41[%c120, %c0_229] : memref<512x64xf32, #tpu.memory_space<vmem>>, vector<8x16xf32>
    %232 = arith.maximumf %230, %231 : vector<8x16xf32>
    %c56_230 = arith.constant 56 : index
    %c0_231 = arith.constant 0 : index
    %233 = vector.load %arg42[%c56_230, %c0_231] : memref<256x64xf32, #tpu.memory_space<vmem>>, vector<8x16xf32>
    tpu.vector_store %arg42[%c56_230, %c0_231], %232 {strides = array<i32>} : memref<256x64xf32, #tpu.memory_space<vmem>>, vector<8x16xf32>,
    %c0_232 = arith.constant 0 : index
    %c0_233 = arith.constant 0 : index
    %234 = tpu.strided_load %arg42[%c0_232, %c0_233] {strides = array<i32: 2, 1>} : memref<256x64xf32, #tpu.memory_space<vmem>>, vector<32x16xf32>
    %c1_234 = arith.constant 1 : index
    %c0_235 = arith.constant 0 : index
    %235 = tpu.strided_load %arg42[%c1_234, %c0_235] {strides = array<i32: 2, 1>} : memref<256x64xf32, #tpu.memory_space<vmem>>, vector<32x16xf32>
    %236 = arith.maximumf %234, %235 : vector<32x16xf32>
    %237 = vector.extract_strided_slice %236 {offsets = [0, 0], sizes = [32, 8], strides = [1, 1]} : vector<32x16xf32> to vector<32x8xf32>
    %238 = vector.extract_strided_slice %236 {offsets = [0, 8], sizes = [32, 8], strides = [1, 1]} : vector<32x16xf32> to vector<32x8xf32>
    %239 = arith.addf %237, %238 : vector<32x8xf32>
    %c0_236 = arith.constant 0 : index
    %c0_237 = arith.constant 0 : index
    %240 = vector.load %arg15[%c0_236, %c0_237] : memref<8x8xf32, #tpu.memory_space<vmem>>, vector<8x8xf32>
    %cst_238 = arith.constant dense<0.000000e+00> : vector<32x8xf32>
    %241 = tpu.matmul %239, %240, %cst_238 {dimension_numbers = #tpu.dot_dimension_numbers<[1], [0], [0], [1], [0, 0, 1, 1], [], []>} : vector<32x8xf32>, vector<8x8xf32>, vector<32x8xf32> -> vector<32x8xf32>
    %c0_239 = arith.constant 0 : index
    %c0_240 = arith.constant 0 : index
    %242 = vector.load %arg14[%c0_239, %c0_240] : memref<32x8xf32, #tpu.memory_space<vmem>>, vector<32x8xf32>
    %243 = arith.mulf %241, %242 : vector<32x8xf32>
    %cst_241 = arith.constant dense<0.000000e+00> : vector<8xf32>
    %244 = vector.multi_reduction <add>, %243, %cst_241 [0] : vector<32x8xf32> to vector<8xf32>
    %245 = vector.shape_cast %244 : vector<8xf32> to vector<1x8xf32>
    %cst_242 = arith.constant 3.500000e-01 : f32
    %246 = vector.broadcast %cst_242 : f32 to vector<1x8xf32>
    %247 = arith.mulf %245, %246 : vector<1x8xf32>
    %248 = math.tanh %247 : vector<1x8xf32>
    %c2_243 = arith.constant 2 : index
    %c0_244 = arith.constant 0 : index
    %249 = vector.load %arg1[%c2_243, %c0_244] : memref<6x8xf32, #tpu.memory_space<vmem>>, vector<1x8xf32>
    %cst_245 = arith.constant 0.899999976 : f32
    %250 = vector.broadcast %cst_245 : f32 to vector<1x8xf32>
    %251 = arith.mulf %250, %249 : vector<1x8xf32>
    %cst_246 = arith.constant 1.000000e+00 : f32
    %252 = vector.broadcast %cst_246 : f32 to vector<1x8xf32>
    %253 = arith.addf %252, %248 : vector<1x8xf32>
    %cst_247 = arith.constant 1.000000e-01 : f32
    %254 = vector.broadcast %cst_247 : f32 to vector<1x8xf32>
    %255 = arith.mulf %254, %253 : vector<1x8xf32>
    %256 = arith.addf %251, %255 : vector<1x8xf32>
    %cst_248 = arith.constant 8.000000e-01 : f32
    %cst_249 = arith.constant 1.200000e+00 : f32
    %257 = vector.broadcast %cst_248 : f32 to vector<1x8xf32>
    %258 = arith.maximumf %257, %256 : vector<1x8xf32>
    %259 = vector.broadcast %cst_249 : f32 to vector<1x8xf32>
    %260 = arith.minimumf %259, %258 : vector<1x8xf32>
    %c2_250 = arith.constant 2 : index
    %c0_251 = arith.constant 0 : index
    %261 = vector.load %arg38[%c2_250, %c0_251] : memref<6x8xf32, #tpu.memory_space<vmem>>, vector<1x8xf32>
    tpu.vector_store %arg38[%c2_250, %c0_251], %260 {strides = array<i32>} : memref<6x8xf32, #tpu.memory_space<vmem>>, vector<1x8xf32>,
    %c0_252 = arith.constant 0 : index
    %c0_253 = arith.constant 0 : index
    %262 = vector.load %arg16[%c0_252, %c0_253] : memref<32x8xf32, #tpu.memory_space<vmem>>, vector<32x8xf32>
    %263 = vector.broadcast %260 : vector<1x8xf32> to vector<32x8xf32>
    %264 = arith.mulf %262, %263 : vector<32x8xf32>
    %cst_254 = arith.constant dense<0.000000e+00> : vector<32xf32>
    %265 = vector.multi_reduction <add>, %264, %cst_254 [1] : vector<32x8xf32> to vector<32xf32>
    %266 = vector.shape_cast %265 : vector<32xf32> to vector<32x1xf32>
    %267 = vector.broadcast %266 : vector<32x1xf32> to vector<32x8xf32>
    %268 = arith.mulf %239, %267 : vector<32x8xf32>
    %c32_255 = arith.constant 32 : index
    %c0_256 = arith.constant 0 : index
    %269 = vector.load %arg39[%c32_255, %c0_256] : memref<576x16xf32, #tpu.memory_space<vmem>>, vector<32x8xf32>
    tpu.vector_store %arg39[%c32_255, %c0_256], %268 {strides = array<i32>} : memref<576x16xf32, #tpu.memory_space<vmem>>, vector<32x8xf32>,
    %c27 = arith.constant 27 : index
    %c0_257 = arith.constant 0 : index
    %270 = vector.load %arg39[%c27, %c0_257] : memref<576x16xf32, #tpu.memory_space<vmem>>, vector<32x8xf32>
    %c0_258 = arith.constant 0 : index
    %c0_259 = arith.constant 0 : index
    %271 = vector.load %arg40[%c0_258, %c0_259] : memref<512x144xf32, #tpu.memory_space<vmem>>, vector<32x8xf32>
    tpu.vector_store %arg40[%c0_258, %c0_259], %270 {strides = array<i32>} : memref<512x144xf32, #tpu.memory_space<vmem>>, vector<32x8xf32>,
    %c28_260 = arith.constant 28 : index
    %c0_261 = arith.constant 0 : index
    %272 = vector.load %arg39[%c28_260, %c0_261] : memref<576x16xf32, #tpu.memory_space<vmem>>, vector<32x8xf32>
    %c0_262 = arith.constant 0 : index
    %c8_263 = arith.constant 8 : index
    %273 = vector.load %arg40[%c0_262, %c8_263] : memref<512x144xf32, #tpu.memory_space<vmem>>, vector<32x8xf32>
    tpu.vector_store %arg40[%c0_262, %c8_263], %272 {strides = array<i32>} : memref<512x144xf32, #tpu.memory_space<vmem>>, vector<32x8xf32>,
    %c29 = arith.constant 29 : index
    %c0_264 = arith.constant 0 : index
    %274 = vector.load %arg39[%c29, %c0_264] : memref<576x16xf32, #tpu.memory_space<vmem>>, vector<32x8xf32>
    %c0_265 = arith.constant 0 : index
    %c16_266 = arith.constant 16 : index
    %275 = vector.load %arg40[%c0_265, %c16_266] : memref<512x144xf32, #tpu.memory_space<vmem>>, vector<32x8xf32>
    tpu.vector_store %arg40[%c0_265, %c16_266], %274 {strides = array<i32>} : memref<512x144xf32, #tpu.memory_space<vmem>>, vector<32x8xf32>,
    %c31_267 = arith.constant 31 : index
    %c0_268 = arith.constant 0 : index
    %276 = vector.load %arg39[%c31_267, %c0_268] : memref<576x16xf32, #tpu.memory_space<vmem>>, vector<32x8xf32>
    %c0_269 = arith.constant 0 : index
    %c24_270 = arith.constant 24 : index
    %277 = vector.load %arg40[%c0_269, %c24_270] : memref<512x144xf32, #tpu.memory_space<vmem>>, vector<32x8xf32>
    tpu.vector_store %arg40[%c0_269, %c24_270], %276 {strides = array<i32>} : memref<512x144xf32, #tpu.memory_space<vmem>>, vector<32x8xf32>,
    %c32_271 = arith.constant 32 : index
    %c0_272 = arith.constant 0 : index
    %278 = vector.load %arg39[%c32_271, %c0_272] : memref<576x16xf32, #tpu.memory_space<vmem>>, vector<32x8xf32>
    %c0_273 = arith.constant 0 : index
    %c32_274 = arith.constant 32 : index
    %279 = vector.load %arg40[%c0_273, %c32_274] : memref<512x144xf32, #tpu.memory_space<vmem>>, vector<32x8xf32>
    tpu.vector_store %arg40[%c0_273, %c32_274], %278 {strides = array<i32>} : memref<512x144xf32, #tpu.memory_space<vmem>>, vector<32x8xf32>,
    %c33_275 = arith.constant 33 : index
    %c0_276 = arith.constant 0 : index
    %280 = vector.load %arg39[%c33_275, %c0_276] : memref<576x16xf32, #tpu.memory_space<vmem>>, vector<32x8xf32>
    %c0_277 = arith.constant 0 : index
    %c40_278 = arith.constant 40 : index
    %281 = vector.load %arg40[%c0_277, %c40_278] : memref<512x144xf32, #tpu.memory_space<vmem>>, vector<32x8xf32>
    tpu.vector_store %arg40[%c0_277, %c40_278], %280 {strides = array<i32>} : memref<512x144xf32, #tpu.memory_space<vmem>>, vector<32x8xf32>,
    %c35 = arith.constant 35 : index
    %c0_279 = arith.constant 0 : index
    %282 = vector.load %arg39[%c35, %c0_279] : memref<576x16xf32, #tpu.memory_space<vmem>>, vector<32x8xf32>
    %c0_280 = arith.constant 0 : index
    %c48_281 = arith.constant 48 : index
    %283 = vector.load %arg40[%c0_280, %c48_281] : memref<512x144xf32, #tpu.memory_space<vmem>>, vector<32x8xf32>
    tpu.vector_store %arg40[%c0_280, %c48_281], %282 {strides = array<i32>} : memref<512x144xf32, #tpu.memory_space<vmem>>, vector<32x8xf32>,
    %c36 = arith.constant 36 : index
    %c0_282 = arith.constant 0 : index
    %284 = vector.load %arg39[%c36, %c0_282] : memref<576x16xf32, #tpu.memory_space<vmem>>, vector<32x8xf32>
    %c0_283 = arith.constant 0 : index
    %c56_284 = arith.constant 56 : index
    %285 = vector.load %arg40[%c0_283, %c56_284] : memref<512x144xf32, #tpu.memory_space<vmem>>, vector<32x8xf32>
    tpu.vector_store %arg40[%c0_283, %c56_284], %284 {strides = array<i32>} : memref<512x144xf32, #tpu.memory_space<vmem>>, vector<32x8xf32>,
    %c37 = arith.constant 37 : index
    %c0_285 = arith.constant 0 : index
    %286 = vector.load %arg39[%c37, %c0_285] : memref<576x16xf32, #tpu.memory_space<vmem>>, vector<32x8xf32>
    %c0_286 = arith.constant 0 : index
    %c64_287 = arith.constant 64 : index
    %287 = vector.load %arg40[%c0_286, %c64_287] : memref<512x144xf32, #tpu.memory_space<vmem>>, vector<32x8xf32>
    tpu.vector_store %arg40[%c0_286, %c64_287], %286 {strides = array<i32>} : memref<512x144xf32, #tpu.memory_space<vmem>>, vector<32x8xf32>,
    %c0_288 = arith.constant 0 : index
    %c0_289 = arith.constant 0 : index
    %288 = vector.load %arg40[%c0_288, %c0_289] : memref<512x144xf32, #tpu.memory_space<vmem>>, vector<32x72xf32>
    %c0_290 = arith.constant 0 : index
    %c0_291 = arith.constant 0 : index
    %289 = vector.load %arg17[%c0_290, %c0_291] : memref<32x72xf32, #tpu.memory_space<vmem>>, vector<32x72xf32>
    %290 = arith.mulf %288, %289 : vector<32x72xf32>
    %c0_292 = arith.constant 0 : index
    %c0_293 = arith.constant 0 : index
    %291 = vector.load %arg18[%c0_292, %c0_293] : memref<72x32xf32, #tpu.memory_space<vmem>>, vector<72x32xf32>
    %cst_294 = arith.constant dense<0.000000e+00> : vector<32x32xf32>
    %292 = tpu.matmul %290, %291, %cst_294 {dimension_numbers = #tpu.dot_dimension_numbers<[1], [0], [0], [1], [0, 0, 1, 1], [], []>} : vector<32x72xf32>, vector<72x32xf32>, vector<32x32xf32> -> vector<32x32xf32>
    %c0_295 = arith.constant 0 : index
    %c0_296 = arith.constant 0 : index
    %293 = vector.load %arg19[%c0_295, %c0_296] : memref<1x32xf32, #tpu.memory_space<vmem>>, vector<1x32xf32>
    %294 = vector.broadcast %293 : vector<1x32xf32> to vector<32x32xf32>
    %295 = arith.addf %292, %294 : vector<32x32xf32>
    %296 = tpu.iota {dimensions = array<i32: 1>} : vector<1x32xi32>
    %c16_i32 = arith.constant 16 : i32
    %297 = vector.broadcast %c16_i32 : i32 to vector<1x32xi32>
    %298 = arith.cmpi slt, %296, %297 : vector<1x32xi32>
    %cst_297 = arith.constant 0.000000e+00 : f32
    %cst_298 = arith.constant -3.000000e+38 : f32
    %299 = vector.broadcast %cst_297 : f32 to vector<1x32xf32>
    %300 = vector.broadcast %cst_298 : f32 to vector<1x32xf32>
    %301 = arith.select %298, %299, %300 : vector<1x32xi1>, vector<1x32xf32>
    %302 = vector.broadcast %301 : vector<1x32xf32> to vector<32x32xf32>
    %303 = arith.maximumf %295, %302 : vector<32x32xf32>
    %c0_299 = arith.constant 0 : index
    %c0_300 = arith.constant 0 : index
    %304 = vector.load %arg41[%c0_299, %c0_300] : memref<512x64xf32, #tpu.memory_space<vmem>>, vector<32x32xf32>
    tpu.vector_store %arg41[%c0_299, %c0_300], %303 {strides = array<i32>} : memref<512x64xf32, #tpu.memory_space<vmem>>, vector<32x32xf32>,
    %c0_301 = arith.constant 0 : index
    %c0_302 = arith.constant 0 : index
    %305 = vector.load %arg41[%c0_301, %c0_302] : memref<512x64xf32, #tpu.memory_space<vmem>>, vector<4x32xf32>
    %c4_303 = arith.constant 4 : index
    %c0_304 = arith.constant 0 : index
    %306 = vector.load %arg41[%c4_303, %c0_304] : memref<512x64xf32, #tpu.memory_space<vmem>>, vector<4x32xf32>
    %307 = arith.maximumf %305, %306 : vector<4x32xf32>
    %c0_305 = arith.constant 0 : index
    %c0_306 = arith.constant 0 : index
    %308 = vector.load %arg42[%c0_305, %c0_306] : memref<256x64xf32, #tpu.memory_space<vmem>>, vector<4x32xf32>
    tpu.vector_store %arg42[%c0_305, %c0_306], %307 {strides = array<i32>} : memref<256x64xf32, #tpu.memory_space<vmem>>, vector<4x32xf32>,
    %c8_307 = arith.constant 8 : index
    %c0_308 = arith.constant 0 : index
    %309 = vector.load %arg41[%c8_307, %c0_308] : memref<512x64xf32, #tpu.memory_space<vmem>>, vector<4x32xf32>
    %c12_309 = arith.constant 12 : index
    %c0_310 = arith.constant 0 : index
    %310 = vector.load %arg41[%c12_309, %c0_310] : memref<512x64xf32, #tpu.memory_space<vmem>>, vector<4x32xf32>
    %311 = arith.maximumf %309, %310 : vector<4x32xf32>
    %c4_311 = arith.constant 4 : index
    %c0_312 = arith.constant 0 : index
    %312 = vector.load %arg42[%c4_311, %c0_312] : memref<256x64xf32, #tpu.memory_space<vmem>>, vector<4x32xf32>
    tpu.vector_store %arg42[%c4_311, %c0_312], %311 {strides = array<i32>} : memref<256x64xf32, #tpu.memory_space<vmem>>, vector<4x32xf32>,
    %c16_313 = arith.constant 16 : index
    %c0_314 = arith.constant 0 : index
    %313 = vector.load %arg41[%c16_313, %c0_314] : memref<512x64xf32, #tpu.memory_space<vmem>>, vector<4x32xf32>
    %c20_315 = arith.constant 20 : index
    %c0_316 = arith.constant 0 : index
    %314 = vector.load %arg41[%c20_315, %c0_316] : memref<512x64xf32, #tpu.memory_space<vmem>>, vector<4x32xf32>
    %315 = arith.maximumf %313, %314 : vector<4x32xf32>
    %c8_317 = arith.constant 8 : index
    %c0_318 = arith.constant 0 : index
    %316 = vector.load %arg42[%c8_317, %c0_318] : memref<256x64xf32, #tpu.memory_space<vmem>>, vector<4x32xf32>
    tpu.vector_store %arg42[%c8_317, %c0_318], %315 {strides = array<i32>} : memref<256x64xf32, #tpu.memory_space<vmem>>, vector<4x32xf32>,
    %c24_319 = arith.constant 24 : index
    %c0_320 = arith.constant 0 : index
    %317 = vector.load %arg41[%c24_319, %c0_320] : memref<512x64xf32, #tpu.memory_space<vmem>>, vector<4x32xf32>
    %c28_321 = arith.constant 28 : index
    %c0_322 = arith.constant 0 : index
    %318 = vector.load %arg41[%c28_321, %c0_322] : memref<512x64xf32, #tpu.memory_space<vmem>>, vector<4x32xf32>
    %319 = arith.maximumf %317, %318 : vector<4x32xf32>
    %c12_323 = arith.constant 12 : index
    %c0_324 = arith.constant 0 : index
    %320 = vector.load %arg42[%c12_323, %c0_324] : memref<256x64xf32, #tpu.memory_space<vmem>>, vector<4x32xf32>
    tpu.vector_store %arg42[%c12_323, %c0_324], %319 {strides = array<i32>} : memref<256x64xf32, #tpu.memory_space<vmem>>, vector<4x32xf32>,
    %c0_325 = arith.constant 0 : index
    %c0_326 = arith.constant 0 : index
    %321 = tpu.strided_load %arg42[%c0_325, %c0_326] {strides = array<i32: 2, 1>} : memref<256x64xf32, #tpu.memory_space<vmem>>, vector<8x32xf32>
    %c1_327 = arith.constant 1 : index
    %c0_328 = arith.constant 0 : index
    %322 = tpu.strided_load %arg42[%c1_327, %c0_328] {strides = array<i32: 2, 1>} : memref<256x64xf32, #tpu.memory_space<vmem>>, vector<8x32xf32>
    %323 = arith.maximumf %321, %322 : vector<8x32xf32>
    %324 = vector.extract_strided_slice %323 {offsets = [0, 0], sizes = [8, 16], strides = [1, 1]} : vector<8x32xf32> to vector<8x16xf32>
    %325 = vector.extract_strided_slice %323 {offsets = [0, 16], sizes = [8, 16], strides = [1, 1]} : vector<8x32xf32> to vector<8x16xf32>
    %326 = arith.addf %324, %325 : vector<8x16xf32>
    %c0_329 = arith.constant 0 : index
    %c0_330 = arith.constant 0 : index
    %327 = vector.load %arg21[%c0_329, %c0_330] : memref<16x8xf32, #tpu.memory_space<vmem>>, vector<16x8xf32>
    %cst_331 = arith.constant dense<0.000000e+00> : vector<8x8xf32>
    %328 = tpu.matmul %326, %327, %cst_331 {dimension_numbers = #tpu.dot_dimension_numbers<[1], [0], [0], [1], [0, 0, 1, 1], [], []>} : vector<8x16xf32>, vector<16x8xf32>, vector<8x8xf32> -> vector<8x8xf32>
    %c0_332 = arith.constant 0 : index
    %c0_333 = arith.constant 0 : index
    %329 = vector.load %arg20[%c0_332, %c0_333] : memref<8x8xf32, #tpu.memory_space<vmem>>, vector<8x8xf32>
    %330 = arith.mulf %328, %329 : vector<8x8xf32>
    %cst_334 = arith.constant dense<0.000000e+00> : vector<8xf32>
    %331 = vector.multi_reduction <add>, %330, %cst_334 [0] : vector<8x8xf32> to vector<8xf32>
    %332 = vector.shape_cast %331 : vector<8xf32> to vector<1x8xf32>
    %cst_335 = arith.constant 3.500000e-01 : f32
    %333 = vector.broadcast %cst_335 : f32 to vector<1x8xf32>
    %334 = arith.mulf %332, %333 : vector<1x8xf32>
    %335 = math.tanh %334 : vector<1x8xf32>
    %c3_336 = arith.constant 3 : index
    %c0_337 = arith.constant 0 : index
    %336 = vector.load %arg1[%c3_336, %c0_337] : memref<6x8xf32, #tpu.memory_space<vmem>>, vector<1x8xf32>
    %cst_338 = arith.constant 0.899999976 : f32
    %337 = vector.broadcast %cst_338 : f32 to vector<1x8xf32>
    %338 = arith.mulf %337, %336 : vector<1x8xf32>
    %cst_339 = arith.constant 1.000000e+00 : f32
    %339 = vector.broadcast %cst_339 : f32 to vector<1x8xf32>
    %340 = arith.addf %339, %335 : vector<1x8xf32>
    %cst_340 = arith.constant 1.000000e-01 : f32
    %341 = vector.broadcast %cst_340 : f32 to vector<1x8xf32>
    %342 = arith.mulf %341, %340 : vector<1x8xf32>
    %343 = arith.addf %338, %342 : vector<1x8xf32>
    %cst_341 = arith.constant 8.000000e-01 : f32
    %cst_342 = arith.constant 1.200000e+00 : f32
    %344 = vector.broadcast %cst_341 : f32 to vector<1x8xf32>
    %345 = arith.maximumf %344, %343 : vector<1x8xf32>
    %346 = vector.broadcast %cst_342 : f32 to vector<1x8xf32>
    %347 = arith.minimumf %346, %345 : vector<1x8xf32>
    %c3_343 = arith.constant 3 : index
    %c0_344 = arith.constant 0 : index
    %348 = vector.load %arg38[%c3_343, %c0_344] : memref<6x8xf32, #tpu.memory_space<vmem>>, vector<1x8xf32>
    tpu.vector_store %arg38[%c3_343, %c0_344], %347 {strides = array<i32>} : memref<6x8xf32, #tpu.memory_space<vmem>>, vector<1x8xf32>,
    %c0_345 = arith.constant 0 : index
    %c0_346 = arith.constant 0 : index
    %349 = vector.load %arg22[%c0_345, %c0_346] : memref<8x8xf32, #tpu.memory_space<vmem>>, vector<8x8xf32>
    %350 = vector.broadcast %347 : vector<1x8xf32> to vector<8x8xf32>
    %351 = arith.mulf %349, %350 : vector<8x8xf32>
    %cst_347 = arith.constant dense<0.000000e+00> : vector<8xf32>
    %352 = vector.multi_reduction <add>, %351, %cst_347 [1] : vector<8x8xf32> to vector<8xf32>
    %353 = vector.shape_cast %352 : vector<8xf32> to vector<8x1xf32>
    %354 = vector.broadcast %353 : vector<8x1xf32> to vector<8x16xf32>
    %355 = arith.mulf %326, %354 : vector<8x16xf32>
    %c32_348 = arith.constant 32 : index
    %c0_349 = arith.constant 0 : index
    %356 = vector.load %arg39[%c32_348, %c0_349] : memref<576x16xf32, #tpu.memory_space<vmem>>, vector<8x16xf32>
    tpu.vector_store %arg39[%c32_348, %c0_349], %355 {strides = array<i32>} : memref<576x16xf32, #tpu.memory_space<vmem>>, vector<8x16xf32>,
    %c29_350 = arith.constant 29 : index
    %c0_351 = arith.constant 0 : index
    %357 = vector.load %arg39[%c29_350, %c0_351] : memref<576x16xf32, #tpu.memory_space<vmem>>, vector<8x16xf32>
    %c0_352 = arith.constant 0 : index
    %c0_353 = arith.constant 0 : index
    %358 = vector.load %arg40[%c0_352, %c0_353] : memref<512x144xf32, #tpu.memory_space<vmem>>, vector<8x16xf32>
    tpu.vector_store %arg40[%c0_352, %c0_353], %357 {strides = array<i32>} : memref<512x144xf32, #tpu.memory_space<vmem>>, vector<8x16xf32>,
    %c30 = arith.constant 30 : index
    %c0_354 = arith.constant 0 : index
    %359 = vector.load %arg39[%c30, %c0_354] : memref<576x16xf32, #tpu.memory_space<vmem>>, vector<8x16xf32>
    %c0_355 = arith.constant 0 : index
    %c16_356 = arith.constant 16 : index
    %360 = vector.load %arg40[%c0_355, %c16_356] : memref<512x144xf32, #tpu.memory_space<vmem>>, vector<8x16xf32>
    tpu.vector_store %arg40[%c0_355, %c16_356], %359 {strides = array<i32>} : memref<512x144xf32, #tpu.memory_space<vmem>>, vector<8x16xf32>,
    %c31_357 = arith.constant 31 : index
    %c0_358 = arith.constant 0 : index
    %361 = vector.load %arg39[%c31_357, %c0_358] : memref<576x16xf32, #tpu.memory_space<vmem>>, vector<8x16xf32>
    %c0_359 = arith.constant 0 : index
    %c32_360 = arith.constant 32 : index
    %362 = vector.load %arg40[%c0_359, %c32_360] : memref<512x144xf32, #tpu.memory_space<vmem>>, vector<8x16xf32>
    tpu.vector_store %arg40[%c0_359, %c32_360], %361 {strides = array<i32>} : memref<512x144xf32, #tpu.memory_space<vmem>>, vector<8x16xf32>,
    %c31_361 = arith.constant 31 : index
    %c0_362 = arith.constant 0 : index
    %363 = vector.load %arg39[%c31_361, %c0_362] : memref<576x16xf32, #tpu.memory_space<vmem>>, vector<8x16xf32>
    %c0_363 = arith.constant 0 : index
    %c48_364 = arith.constant 48 : index
    %364 = vector.load %arg40[%c0_363, %c48_364] : memref<512x144xf32, #tpu.memory_space<vmem>>, vector<8x16xf32>
    tpu.vector_store %arg40[%c0_363, %c48_364], %363 {strides = array<i32>} : memref<512x144xf32, #tpu.memory_space<vmem>>, vector<8x16xf32>,
    %c32_365 = arith.constant 32 : index
    %c0_366 = arith.constant 0 : index
    %365 = vector.load %arg39[%c32_365, %c0_366] : memref<576x16xf32, #tpu.memory_space<vmem>>, vector<8x16xf32>
    %c0_367 = arith.constant 0 : index
    %c64_368 = arith.constant 64 : index
    %366 = vector.load %arg40[%c0_367, %c64_368] : memref<512x144xf32, #tpu.memory_space<vmem>>, vector<8x16xf32>
    tpu.vector_store %arg40[%c0_367, %c64_368], %365 {strides = array<i32>} : memref<512x144xf32, #tpu.memory_space<vmem>>, vector<8x16xf32>,
    %c33_369 = arith.constant 33 : index
    %c0_370 = arith.constant 0 : index
    %367 = vector.load %arg39[%c33_369, %c0_370] : memref<576x16xf32, #tpu.memory_space<vmem>>, vector<8x16xf32>
    %c0_371 = arith.constant 0 : index
    %c80_372 = arith.constant 80 : index
    %368 = vector.load %arg40[%c0_371, %c80_372] : memref<512x144xf32, #tpu.memory_space<vmem>>, vector<8x16xf32>
    tpu.vector_store %arg40[%c0_371, %c80_372], %367 {strides = array<i32>} : memref<512x144xf32, #tpu.memory_space<vmem>>, vector<8x16xf32>,
    %c33_373 = arith.constant 33 : index
    %c0_374 = arith.constant 0 : index
    %369 = vector.load %arg39[%c33_373, %c0_374] : memref<576x16xf32, #tpu.memory_space<vmem>>, vector<8x16xf32>
    %c0_375 = arith.constant 0 : index
    %c96_376 = arith.constant 96 : index
    %370 = vector.load %arg40[%c0_375, %c96_376] : memref<512x144xf32, #tpu.memory_space<vmem>>, vector<8x16xf32>
    tpu.vector_store %arg40[%c0_375, %c96_376], %369 {strides = array<i32>} : memref<512x144xf32, #tpu.memory_space<vmem>>, vector<8x16xf32>,
    %c34 = arith.constant 34 : index
    %c0_377 = arith.constant 0 : index
    %371 = vector.load %arg39[%c34, %c0_377] : memref<576x16xf32, #tpu.memory_space<vmem>>, vector<8x16xf32>
    %c0_378 = arith.constant 0 : index
    %c112_379 = arith.constant 112 : index
    %372 = vector.load %arg40[%c0_378, %c112_379] : memref<512x144xf32, #tpu.memory_space<vmem>>, vector<8x16xf32>
    tpu.vector_store %arg40[%c0_378, %c112_379], %371 {strides = array<i32>} : memref<512x144xf32, #tpu.memory_space<vmem>>, vector<8x16xf32>,
    %c35_380 = arith.constant 35 : index
    %c0_381 = arith.constant 0 : index
    %373 = vector.load %arg39[%c35_380, %c0_381] : memref<576x16xf32, #tpu.memory_space<vmem>>, vector<8x16xf32>
    %c0_382 = arith.constant 0 : index
    %c128_383 = arith.constant 128 : index
    %374 = vector.load %arg40[%c0_382, %c128_383] : memref<512x144xf32, #tpu.memory_space<vmem>>, vector<8x16xf32>
    tpu.vector_store %arg40[%c0_382, %c128_383], %373 {strides = array<i32>} : memref<512x144xf32, #tpu.memory_space<vmem>>, vector<8x16xf32>,
    %c0_384 = arith.constant 0 : index
    %c0_385 = arith.constant 0 : index
    %375 = vector.load %arg40[%c0_384, %c0_385] : memref<512x144xf32, #tpu.memory_space<vmem>>, vector<8x144xf32>
    %c0_386 = arith.constant 0 : index
    %c0_387 = arith.constant 0 : index
    %376 = vector.load %arg23[%c0_386, %c0_387] : memref<8x144xf32, #tpu.memory_space<vmem>>, vector<8x144xf32>
    %377 = arith.mulf %375, %376 : vector<8x144xf32>
    %c0_388 = arith.constant 0 : index
    %c0_389 = arith.constant 0 : index
    %378 = vector.load %arg24[%c0_388, %c0_389] : memref<144x64xf32, #tpu.memory_space<vmem>>, vector<144x64xf32>
    %cst_390 = arith.constant dense<0.000000e+00> : vector<8x64xf32>
    %379 = tpu.matmul %377, %378, %cst_390 {dimension_numbers = #tpu.dot_dimension_numbers<[1], [0], [0], [1], [0, 0, 1, 1], [], []>} : vector<8x144xf32>, vector<144x64xf32>, vector<8x64xf32> -> vector<8x64xf32>
    %c0_391 = arith.constant 0 : index
    %c0_392 = arith.constant 0 : index
    %380 = vector.load %arg25[%c0_391, %c0_392] : memref<1x64xf32, #tpu.memory_space<vmem>>, vector<1x64xf32>
    %381 = vector.broadcast %380 : vector<1x64xf32> to vector<8x64xf32>
    %382 = arith.addf %379, %381 : vector<8x64xf32>
    %383 = tpu.iota {dimensions = array<i32: 1>} : vector<1x64xi32>
    %c32_i32 = arith.constant 32 : i32
    %384 = vector.broadcast %c32_i32 : i32 to vector<1x64xi32>
    %385 = arith.cmpi slt, %383, %384 : vector<1x64xi32>
    %cst_393 = arith.constant 0.000000e+00 : f32
    %cst_394 = arith.constant -3.000000e+38 : f32
    %386 = vector.broadcast %cst_393 : f32 to vector<1x64xf32>
    %387 = vector.broadcast %cst_394 : f32 to vector<1x64xf32>
    %388 = arith.select %385, %386, %387 : vector<1x64xi1>, vector<1x64xf32>
    %389 = vector.broadcast %388 : vector<1x64xf32> to vector<8x64xf32>
    %390 = arith.maximumf %382, %389 : vector<8x64xf32>
    %c0_395 = arith.constant 0 : index
    %c0_396 = arith.constant 0 : index
    %391 = vector.load %arg41[%c0_395, %c0_396] : memref<512x64xf32, #tpu.memory_space<vmem>>, vector<8x64xf32>
    tpu.vector_store %arg41[%c0_395, %c0_396], %390 {strides = array<i32>} : memref<512x64xf32, #tpu.memory_space<vmem>>, vector<8x64xf32>,
    %c0_397 = arith.constant 0 : index
    %c0_398 = arith.constant 0 : index
    %392 = vector.load %arg41[%c0_397, %c0_398] : memref<512x64xf32, #tpu.memory_space<vmem>>, vector<2x64xf32>
    %c2_399 = arith.constant 2 : index
    %c0_400 = arith.constant 0 : index
    %393 = vector.load %arg41[%c2_399, %c0_400] : memref<512x64xf32, #tpu.memory_space<vmem>>, vector<2x64xf32>
    %394 = arith.maximumf %392, %393 : vector<2x64xf32>
    %c0_401 = arith.constant 0 : index
    %c0_402 = arith.constant 0 : index
    %395 = vector.load %arg42[%c0_401, %c0_402] : memref<256x64xf32, #tpu.memory_space<vmem>>, vector<2x64xf32>
    tpu.vector_store %arg42[%c0_401, %c0_402], %394 {strides = array<i32>} : memref<256x64xf32, #tpu.memory_space<vmem>>, vector<2x64xf32>,
    %c4_403 = arith.constant 4 : index
    %c0_404 = arith.constant 0 : index
    %396 = vector.load %arg41[%c4_403, %c0_404] : memref<512x64xf32, #tpu.memory_space<vmem>>, vector<2x64xf32>
    %c6_405 = arith.constant 6 : index
    %c0_406 = arith.constant 0 : index
    %397 = vector.load %arg41[%c6_405, %c0_406] : memref<512x64xf32, #tpu.memory_space<vmem>>, vector<2x64xf32>
    %398 = arith.maximumf %396, %397 : vector<2x64xf32>
    %c2_407 = arith.constant 2 : index
    %c0_408 = arith.constant 0 : index
    %399 = vector.load %arg42[%c2_407, %c0_408] : memref<256x64xf32, #tpu.memory_space<vmem>>, vector<2x64xf32>
    tpu.vector_store %arg42[%c2_407, %c0_408], %398 {strides = array<i32>} : memref<256x64xf32, #tpu.memory_space<vmem>>, vector<2x64xf32>,
    %c0_409 = arith.constant 0 : index
    %c0_410 = arith.constant 0 : index
    %400 = tpu.strided_load %arg42[%c0_409, %c0_410] {strides = array<i32: 2, 1>} : memref<256x64xf32, #tpu.memory_space<vmem>>, vector<2x64xf32>
    %c1_411 = arith.constant 1 : index
    %c0_412 = arith.constant 0 : index
    %401 = tpu.strided_load %arg42[%c1_411, %c0_412] {strides = array<i32: 2, 1>} : memref<256x64xf32, #tpu.memory_space<vmem>>, vector<2x64xf32>
    %402 = arith.maximumf %400, %401 : vector<2x64xf32>
    %403 = vector.extract_strided_slice %402 {offsets = [0, 0], sizes = [2, 32], strides = [1, 1]} : vector<2x64xf32> to vector<2x32xf32>
    %404 = vector.extract_strided_slice %402 {offsets = [0, 32], sizes = [2, 32], strides = [1, 1]} : vector<2x64xf32> to vector<2x32xf32>
    %405 = arith.addf %403, %404 : vector<2x32xf32>
    %c0_413 = arith.constant 0 : index
    %c0_414 = arith.constant 0 : index
    %406 = vector.load %arg27[%c0_413, %c0_414] : memref<32x8xf32, #tpu.memory_space<vmem>>, vector<32x8xf32>
    %cst_415 = arith.constant dense<0.000000e+00> : vector<2x8xf32>
    %407 = tpu.matmul %405, %406, %cst_415 {dimension_numbers = #tpu.dot_dimension_numbers<[1], [0], [0], [1], [0, 0, 1, 1], [], []>} : vector<2x32xf32>, vector<32x8xf32>, vector<2x8xf32> -> vector<2x8xf32>
    %c0_416 = arith.constant 0 : index
    %c0_417 = arith.constant 0 : index
    %408 = vector.load %arg26[%c0_416, %c0_417] : memref<2x8xf32, #tpu.memory_space<vmem>>, vector<2x8xf32>
    %409 = arith.mulf %407, %408 : vector<2x8xf32>
    %cst_418 = arith.constant dense<0.000000e+00> : vector<8xf32>
    %410 = vector.multi_reduction <add>, %409, %cst_418 [0] : vector<2x8xf32> to vector<8xf32>
    %411 = vector.shape_cast %410 : vector<8xf32> to vector<1x8xf32>
    %cst_419 = arith.constant 3.500000e-01 : f32
    %412 = vector.broadcast %cst_419 : f32 to vector<1x8xf32>
    %413 = arith.mulf %411, %412 : vector<1x8xf32>
    %414 = math.tanh %413 : vector<1x8xf32>
    %c4_420 = arith.constant 4 : index
    %c0_421 = arith.constant 0 : index
    %415 = vector.load %arg1[%c4_420, %c0_421] : memref<6x8xf32, #tpu.memory_space<vmem>>, vector<1x8xf32>
    %cst_422 = arith.constant 0.899999976 : f32
    %416 = vector.broadcast %cst_422 : f32 to vector<1x8xf32>
    %417 = arith.mulf %416, %415 : vector<1x8xf32>
    %cst_423 = arith.constant 1.000000e+00 : f32
    %418 = vector.broadcast %cst_423 : f32 to vector<1x8xf32>
    %419 = arith.addf %418, %414 : vector<1x8xf32>
    %cst_424 = arith.constant 1.000000e-01 : f32
    %420 = vector.broadcast %cst_424 : f32 to vector<1x8xf32>
    %421 = arith.mulf %420, %419 : vector<1x8xf32>
    %422 = arith.addf %417, %421 : vector<1x8xf32>
    %cst_425 = arith.constant 8.000000e-01 : f32
    %cst_426 = arith.constant 1.200000e+00 : f32
    %423 = vector.broadcast %cst_425 : f32 to vector<1x8xf32>
    %424 = arith.maximumf %423, %422 : vector<1x8xf32>
    %425 = vector.broadcast %cst_426 : f32 to vector<1x8xf32>
    %426 = arith.minimumf %425, %424 : vector<1x8xf32>
    %c4_427 = arith.constant 4 : index
    %c0_428 = arith.constant 0 : index
    %427 = vector.load %arg38[%c4_427, %c0_428] : memref<6x8xf32, #tpu.memory_space<vmem>>, vector<1x8xf32>
    tpu.vector_store %arg38[%c4_427, %c0_428], %426 {strides = array<i32>} : memref<6x8xf32, #tpu.memory_space<vmem>>, vector<1x8xf32>,
    %c0_429 = arith.constant 0 : index
    %c0_430 = arith.constant 0 : index
    %428 = vector.load %arg28[%c0_429, %c0_430] : memref<2x8xf32, #tpu.memory_space<vmem>>, vector<2x8xf32>
    %429 = vector.broadcast %426 : vector<1x8xf32> to vector<2x8xf32>
    %430 = arith.mulf %428, %429 : vector<2x8xf32>
    %cst_431 = arith.constant dense<0.000000e+00> : vector<2xf32>
    %431 = vector.multi_reduction <add>, %430, %cst_431 [1] : vector<2x8xf32> to vector<2xf32>
    %432 = vector.shape_cast %431 : vector<2xf32> to vector<2x1xf32>
    %433 = vector.broadcast %432 : vector<2x1xf32> to vector<2x32xf32>
    %434 = arith.mulf %405, %433 : vector<2x32xf32>
    %c0_432 = arith.constant 0 : index
    %c0_433 = arith.constant 0 : index
    %435 = vector.load %arg29[%c0_432, %c0_433] : memref<32x32xf32, #tpu.memory_space<vmem>>, vector<32x32xf32>
    %cst_434 = arith.constant dense<0.000000e+00> : vector<2x32xf32>
    %436 = tpu.matmul %434, %435, %cst_434 {dimension_numbers = #tpu.dot_dimension_numbers<[1], [0], [0], [1], [0, 0, 1, 1], [], []>} : vector<2x32xf32>, vector<32x32xf32>, vector<2x32xf32> -> vector<2x32xf32>
    %c0_435 = arith.constant 0 : index
    %c0_436 = arith.constant 0 : index
    %437 = vector.load %arg30[%c0_435, %c0_436] : memref<1x32xf32, #tpu.memory_space<vmem>>, vector<1x32xf32>
    %438 = vector.broadcast %437 : vector<1x32xf32> to vector<2x32xf32>
    %439 = arith.addf %436, %438 : vector<2x32xf32>
    %cst_437 = arith.constant 0.000000e+00 : f32
    %440 = vector.broadcast %cst_437 : f32 to vector<2x32xf32>
    %441 = arith.maximumf %439, %440 : vector<2x32xf32>
    %c0_438 = arith.constant 0 : index
    %c0_439 = arith.constant 0 : index
    %442 = vector.load %arg31[%c0_438, %c0_439] : memref<32x16xf32, #tpu.memory_space<vmem>>, vector<32x16xf32>
    %cst_440 = arith.constant dense<0.000000e+00> : vector<2x16xf32>
    %443 = tpu.matmul %441, %442, %cst_440 {dimension_numbers = #tpu.dot_dimension_numbers<[1], [0], [0], [1], [0, 0, 1, 1], [], []>} : vector<2x32xf32>, vector<32x16xf32>, vector<2x16xf32> -> vector<2x16xf32>
    %c0_441 = arith.constant 0 : index
    %c0_442 = arith.constant 0 : index
    %444 = vector.load %arg32[%c0_441, %c0_442] : memref<1x16xf32, #tpu.memory_space<vmem>>, vector<1x16xf32>
    %445 = vector.broadcast %444 : vector<1x16xf32> to vector<2x16xf32>
    %446 = arith.addf %443, %445 : vector<2x16xf32>
    %cst_443 = arith.constant 0.000000e+00 : f32
    %447 = vector.broadcast %cst_443 : f32 to vector<2x16xf32>
    %448 = arith.maximumf %446, %447 : vector<2x16xf32>
    %c0_444 = arith.constant 0 : index
    %c0_445 = arith.constant 0 : index
    %449 = vector.load %arg33[%c0_444, %c0_445] : memref<16x10xf32, #tpu.memory_space<vmem>>, vector<16x10xf32>
    %cst_446 = arith.constant dense<0.000000e+00> : vector<2x10xf32>
    %450 = tpu.matmul %448, %449, %cst_446 {dimension_numbers = #tpu.dot_dimension_numbers<[1], [0], [0], [1], [0, 0, 1, 1], [], []>} : vector<2x16xf32>, vector<16x10xf32>, vector<2x10xf32> -> vector<2x10xf32>
    %c0_447 = arith.constant 0 : index
    %c0_448 = arith.constant 0 : index
    %451 = vector.load %arg34[%c0_447, %c0_448] : memref<1x10xf32, #tpu.memory_space<vmem>>, vector<1x10xf32>
    %452 = vector.broadcast %451 : vector<1x10xf32> to vector<2x10xf32>
    %453 = arith.addf %450, %452 : vector<2x10xf32>
    %cst_449 = arith.constant dense<0.000000e+00> : vector<10xf32>
    %454 = vector.multi_reduction <add>, %453, %cst_449 [0] : vector<2x10xf32> to vector<10xf32>
    %455 = vector.shape_cast %454 : vector<10xf32> to vector<1x10xf32>
    %cst_450 = arith.constant 2.000000e+00 : f32
    %456 = vector.broadcast %cst_450 : f32 to vector<1x10xf32>
    %457 = arith.divf %455, %456 : vector<1x10xf32>
    %c0_451 = arith.constant 0 : index
    %c0_452 = arith.constant 0 : index
    %458 = vector.load %arg35[%c0_451, %c0_452] : memref<10x8xf32, #tpu.memory_space<vmem>>, vector<10x8xf32>
    %cst_453 = arith.constant dense<0.000000e+00> : vector<1x8xf32>
    %459 = tpu.matmul %457, %458, %cst_453 {dimension_numbers = #tpu.dot_dimension_numbers<[1], [0], [0], [1], [0, 0, 1, 1], [], []>} : vector<1x10xf32>, vector<10x8xf32>, vector<1x8xf32> -> vector<1x8xf32>
    %cst_454 = arith.constant 3.500000e-01 : f32
    %460 = vector.broadcast %cst_454 : f32 to vector<1x8xf32>
    %461 = arith.mulf %459, %460 : vector<1x8xf32>
    %462 = math.tanh %461 : vector<1x8xf32>
    %c5_455 = arith.constant 5 : index
    %c0_456 = arith.constant 0 : index
    %463 = vector.load %arg1[%c5_455, %c0_456] : memref<6x8xf32, #tpu.memory_space<vmem>>, vector<1x8xf32>
    %cst_457 = arith.constant 0.899999976 : f32
    %464 = vector.broadcast %cst_457 : f32 to vector<1x8xf32>
    %465 = arith.mulf %464, %463 : vector<1x8xf32>
    %cst_458 = arith.constant 1.000000e+00 : f32
    %466 = vector.broadcast %cst_458 : f32 to vector<1x8xf32>
    %467 = arith.addf %466, %462 : vector<1x8xf32>
    %cst_459 = arith.constant 1.000000e-01 : f32
    %468 = vector.broadcast %cst_459 : f32 to vector<1x8xf32>
    %469 = arith.mulf %468, %467 : vector<1x8xf32>
    %470 = arith.addf %465, %469 : vector<1x8xf32>
    %cst_460 = arith.constant 8.000000e-01 : f32
    %cst_461 = arith.constant 1.200000e+00 : f32
    %471 = vector.broadcast %cst_460 : f32 to vector<1x8xf32>
    %472 = arith.maximumf %471, %470 : vector<1x8xf32>
    %473 = vector.broadcast %cst_461 : f32 to vector<1x8xf32>
    %474 = arith.minimumf %473, %472 : vector<1x8xf32>
    %c5_462 = arith.constant 5 : index
    %c0_463 = arith.constant 0 : index
    %475 = vector.load %arg38[%c5_462, %c0_463] : memref<6x8xf32, #tpu.memory_space<vmem>>, vector<1x8xf32>
    tpu.vector_store %arg38[%c5_462, %c0_463], %474 {strides = array<i32>} : memref<6x8xf32, #tpu.memory_space<vmem>>, vector<1x8xf32>,
    %c0_464 = arith.constant 0 : index
    %c0_465 = arith.constant 0 : index
    %476 = vector.load %arg36[%c0_464, %c0_465] : memref<8x10xf32, #tpu.memory_space<vmem>>, vector<8x10xf32>
    %cst_466 = arith.constant dense<0.000000e+00> : vector<1x10xf32>
    %477 = tpu.matmul %474, %476, %cst_466 {dimension_numbers = #tpu.dot_dimension_numbers<[1], [0], [0], [1], [0, 0, 1, 1], [], []>} : vector<1x8xf32>, vector<8x10xf32>, vector<1x10xf32> -> vector<1x10xf32>
    %478 = vector.broadcast %477 : vector<1x10xf32> to vector<2x10xf32>
    %479 = arith.mulf %453, %478 : vector<2x10xf32>
    %c0_467 = arith.constant 0 : index
    %c0_468 = arith.constant 0 : index
    %480 = vector.load %arg37[%c0_467, %c0_468] : memref<2x10xf32, #tpu.memory_space<vmem>>, vector<2x10xf32>
    tpu.vector_store %arg37[%c0_467, %c0_468], %479 {strides = array<i32>} : memref<2x10xf32, #tpu.memory_space<vmem>>, vector<2x10xf32>,
    return
  }
}

</mosaic_0001>

<bundles_post_ra>
// kernel: zpe_deepnet_forward.1
= control target key start
LH: loop header
LB: loop body
LE: loop exit
PB: predicated region body
PF: predicated region fallthrough
CT: control target
= control target key end

     0   :  { %s8353_s6 = smov 1   ;;  %s8354_s10 = smov 2   ;;  %s12820_s0 = inlined_call_operand.smem [shape: u32[39], index: -1, kind: input, shape index: {}] }
   0x1   :  { %s8428_s5 = sld [smem:[%s12820_s0]]   ;;  %s8355_s14 = smov 3  }
   0x2   :  { %s8433_s9 = sld [smem:[%s12820_s0 + %s8353_s6]]   ;;  %s8356_s18 = smov 4  }
   0x3   :  { %s8438_s13 = sld [smem:[%s12820_s0 + %s8354_s10]]   ;;  %s8357_s22 = smov 5  }
   0x4   :  { %s8443_s17 = sld [smem:[%s12820_s0 + %s8355_s14]]   ;;  %s8358_s26 = smov 6  }
   0x5   :  { %s8448_s21 = sld [smem:[%s12820_s0 + %s8356_s18]]   ;;  %s8359_s30 = smov 7  }
   0x6   :  { %s8453_s25 = sld [smem:[%s12820_s0 + %s8357_s22]]   ;;  %s8360_s4 = smov 8  }
   0x7   :  { %s8458_s29 = sld [smem:[%s12820_s0 + %s8358_s26]]   ;;  %s8361_s10 = smov 9  }
   0x8   :  { %s8463_s3 = sld [smem:[%s12820_s0 + %s8359_s30]]   ;;  %s8362_s15 = smov 10  }
   0x9   :  { %s8468_s8 = sld [smem:[%s12820_s0 + %s8360_s4]]   ;;  %s8363_s20 = smov 11  }
   0xa   :  { %s8473_s14 = sld [smem:[%s12820_s0 + %s8361_s10]]   ;;  %s8364_s26 = smov 12  }
   0xb   :  { %s8478_s19 = sld [smem:[%s12820_s0 + %s8362_s15]]   ;;  %s8365_s1 = smov 13  }
   0xc   :  { %s8483_s24 = sld [smem:[%s12820_s0 + %s8363_s20]]   ;;  %s8366_s7 = smov 14  }
   0xd   :  { %s8488_s30 = sld [smem:[%s12820_s0 + %s8364_s26]]   ;;  %s8367_s15 = smov 15  }
   0xe   :  { %s8493_s6 = sld [smem:[%s12820_s0 + %s8365_s1]]   ;;  %s8368_s22 = smov 16  }
   0xf   :  { %s8498_s12 = sld [smem:[%s12820_s0 + %s8366_s7]]   ;;  %s8369_s28 = smov 17  }
  0x10   :  { %s8503_s20 = sld [smem:[%s12820_s0 + %s8367_s15]]   ;;  %s8370_s7 = smov 18  }
  0x11   :  { %s8508_s27 = sld [smem:[%s12820_s0 + %s8368_s22]]   ;;  %s8371_s15 = smov 19  }
  0x12   :  { %s8513_s4 = sld [smem:[%s12820_s0 + %s8369_s28]]   ;;  %s8372_s22 = smov 20  }
  0x13   :  { %s8373_s28 = smov 21  }
  0x15   :  { %12832 = sst [smem:[#allocation12_spill]] %s8498_s12 }
  0x16   :  { %12833 = sst [smem:[#allocation13_spill]] %s8503_s20 }
  0x17   :  { %12834 = sst [smem:[#allocation14_spill]] %s8508_s27 }
  0x18   :  { %12835 = sst [smem:[#allocation15_spill]] %s8513_s4 }
  0x19   :  { %s8518_s12 = sld [smem:[%s12820_s0 + %s8370_s7]]   ;;  %s8374_s7 = smov 22  }
  0x1a   :  { %s8523_s20 = sld [smem:[%s12820_s0 + %s8371_s15]]   ;;  %s8375_s15 = smov 23  }
  0x1b   :  { %s8528_s27 = sld [smem:[%s12820_s0 + %s8372_s22]]   ;;  %s8376_s22 = smov 24  }
  0x1c   :  { %s8533_s4 = sld [smem:[%s12820_s0 + %s8373_s28]]   ;;  %s8377_s28 = smov 25  }
  0x1f   :  { %12836 = sst [smem:[#allocation16_spill]] %s8518_s12 }
  0x20   :  { %12837 = sst [smem:[#allocation17_spill]] %s8523_s20 }
  0x21   :  { %12838 = sst [smem:[#allocation18_spill]] %s8528_s27 }
  0x22   :  { %12839 = sst [smem:[#allocation19_spill]] %s8533_s4 }
  0x23   :  { %s8538_s12 = sld [smem:[%s12820_s0 + %s8374_s7]]   ;;  %s8378_s7 = smov 26  }
  0x24   :  { %s8543_s20 = sld [smem:[%s12820_s0 + %s8375_s15]]   ;;  %s8379_s15 = smov 27  }
  0x25   :  { %s8548_s27 = sld [smem:[%s12820_s0 + %s8376_s22]]   ;;  %s8380_s22 = smov 28  }
  0x26   :  { %s8553_s4 = sld [smem:[%s12820_s0 + %s8377_s28]]   ;;  %s8381_s28 = smov 29  }
  0x29   :  { %12840 = sst [smem:[#allocation20_spill]] %s8538_s12 }
  0x2a   :  { %12841 = sst [smem:[#allocation21_spill]] %s8543_s20 }
  0x2b   :  { %12842 = sst [smem:[#allocation22_spill]] %s8548_s27 }
  0x2c   :  { %12843 = sst [smem:[#allocation23_spill]] %s8553_s4 }
  0x2d   :  { %s8558_s12 = sld [smem:[%s12820_s0 + %s8378_s7]]   ;;  %s8382_s7 = smov 30  }
  0x2e   :  { %s8563_s20 = sld [smem:[%s12820_s0 + %s8379_s15]]   ;;  %s8383_s15 = smov 31  }
  0x2f   :  { %s8568_s27 = sld [smem:[%s12820_s0 + %s8380_s22]]   ;;  %s8384_s22 = smov 32  }
  0x30   :  { %s8573_s4 = sld [smem:[%s12820_s0 + %s8381_s28]]   ;;  %s8385_s28 = smov 33  }
  0x33   :  { %12844 = sst [smem:[#allocation24_spill]] %s8558_s12 }
  0x34   :  { %12845 = sst [smem:[#allocation25_spill]] %s8563_s20 }
  0x35   :  { %12846 = sst [smem:[#allocation26_spill]] %s8568_s27 }
  0x36   :  { %12847 = sst [smem:[#allocation27_spill]] %s8573_s4 }
  0x37   :  { %s8578_s12 = sld [smem:[%s12820_s0 + %s8382_s7]]   ;;  %s8386_s7 = smov 34  }
  0x38   :  { %s8583_s20 = sld [smem:[%s12820_s0 + %s8383_s15]]   ;;  %s8387_s15 = smov 35  }
  0x39   :  { %s8588_s27 = sld [smem:[%s12820_s0 + %s8384_s22]]   ;;  %s8388_s22 = smov 36  }
  0x3a   :  { %s8593_s4 = sld [smem:[%s12820_s0 + %s8385_s28]]   ;;  %s8389_s28 = smov 37  }
  0x3d   :  { %12848 = sst [smem:[#allocation28_spill]] %s8578_s12 }
  0x3e   :  { %12849 = sst [smem:[#allocation29_spill]] %s8583_s20 }
  0x3f   :  { %12850 = sst [smem:[#allocation30_spill]] %s8588_s27 }
  0x40   :  { %12851 = sst [smem:[#allocation31_spill]] %s8593_s4 }
  0x41   :  { %s8598_s12 = sld [smem:[%s12820_s0 + %s8386_s7]]   ;;  %s8390_s7 = smov 38  }
  0x42   :  { %s8603_s20 = sld [smem:[%s12820_s0 + %s8387_s15]]  }
  0x43   :  { %s8608_s27 = sld [smem:[%s12820_s0 + %s8388_s22]]  }
  0x44   :  { %s8613_s4 = sld [smem:[%s12820_s0 + %s8389_s28]]  }
  0x47   :  { %12852 = sst [smem:[#allocation32_spill]] %s8598_s12 }
  0x48   :  { %s8618_s12 = sld [smem:[%s12820_s0 + %s8390_s7]]  }
  0x49   :  { %83 = vsyncpa [#allocation7], 0 }
  0x4a   :  { %84 = vsyncpa [#allocation8], 0  ;;  %s93_s15 = sshll.u32 %s8438_s13, 4  ;;  %s8391_s16 = smov [#allocation6]   ;;  %s94_s15 = int_to_ptr.hbm [resolvable:$true] %s93_s15 }
  0x4b   :  { %s95_s18 = sshll.u32 %s8391_s16, 4  ;;  %s8301_s22 = sshra.s32 %s94_s15, 4  ;;  %s96_s18 = int_to_ptr.vmem [resolvable:$true] %s95_s18  ;;  %s8302_s22 = int_to_ptr.hbm [resolvable:$true] %s8301_s22 }
  0x4c   :  { %s8303_s23 = scalar_lea.hbm %s8302_s22, 512  ;;  %s8305_s26 = scalar_lea.hbm %s8438_s13, 512 }
  0x4d   :  { %p8304_p0 = scmp.ne.s32.totalorder %s8302_s22, %s8303_s23  ;;  %p8306_p1 = scmp.lt.s32.totalorder %s8302_s22, %s8438_s13 }
  0x4e   :  { %p8307_p2 = scmp.lt.s32.totalorder %s8305_s26, %s8303_s23 }
  0x50   :  { %p8308_p3 = por %p8307_p2, %p8306_p1 }
  0x52   :  { %p8309_p4 = pnand %p8308_p3, %p8304_p0 }
  0x54   :  { %8312 = shalt.err (!%p8309_p4)
}
  0x55   :  { %s8392_s0 = smov 128   ;;  %s8393_s28 = smov 8  }
  0x56   :  { %101 = dma.hbm_to_vmem [thread:$0]  %s94_s15, 8192, %s96_s18, [#allocation7], %s8392_s0, %s8392_s0, %s8393_s28  }
  0x57   :  { %8349 = dma.done.wait [#allocation7], 8192  }
  0x58   :  { %8350 = vsyncadd [#allocation7], 4294959104  ;;  %vm174_vm0 = vcmask 130048   ;;  %v8394_v0 = vmov 0.0   ;;  %vm505_vm1 = vcmask 1040384   ;;  %vm312_vm2 = vcmask 7168  }
  0x59   :  { %176 = vst.msk [vmem:[#allocation2 + $0x8] sm:$0xff] %vm174_vm0, %v8394_v0  ;;  %v311_v1 = vld [vmem:[%s8443_s17] sm:$0x1]  ;;  %v248_v3 = vld [vmem:[%s8428_s5 + $0x8] sm:$0xff]  ;;  %v249_v4 = vld [vmem:[%s8428_s5 + $0x10] sm:$0xff]  ;;  %vm846_vm3 = vcmask 64512  }
  0x5a   :  { %177 = vst.msk [vmem:[#allocation2 + $0x10] sm:$0xff] %vm174_vm0, %v8394_v0  ;;  %v247_v2 = vld [vmem:[%s8428_s5] sm:$0xff]  ;;  %7961 = vmatpush.msk.msra.mxu0 %vm505_vm1, %v311_v1  ;;  %8142 = vmatpush.msk.msra.mxu3 %vm505_vm1, %v311_v1  ;;  %v250_v5 = vld [vmem:[%s8428_s5 + $0x18] sm:$0xff]  ;;  %v252_v7 = vld [vmem:[%s8428_s5 + $0x28] sm:$0xff]  ;;  %s8395_s13 = smov 1   ;;  %s8396_s17 = smov 2  }
  0x5b   :  { %178 = vst.msk [vmem:[#allocation2 + $0x18] sm:$0xff] %vm174_vm0, %v8394_v0  ;;  %7962 = vmatmul.msk.f32.vlgmr.msra.gmra.mxu0 %vm312_vm2, %v247_v2  ;;  %v251_v6 = vld [vmem:[%s8428_s5 + $0x20] sm:$0xff]  ;;  %v253_v8 = vld [vmem:[%s8428_s5 + $0x30] sm:$0xff]  ;;  %v254_v9 = vld [vmem:[%s8428_s5 + $0x38] sm:$0xff]  ;;  %vm989_vm4 = vcmask 57344   ;;  %vm1888_vm5 = vcmask 15368  }
  0x5c   :  { %179 = vst.msk [vmem:[#allocation2 + $0x20] sm:$0xff] %vm174_vm0, %v8394_v0  ;;  %v255_v10 = vld [vmem:[%s8428_s5 + $0x40] sm:$0xff]  ;;  %v256_v11 = vld [vmem:[%s8428_s5 + $0x48] sm:$0xff]  ;;  %v257_v12 = vld [vmem:[%s8428_s5 + $0x50] sm:$0xff]  ;;  %vm2273_vm6 = vcmask 23568   ;;  %s8397_s1 = smov 4  }
  0x5d   :  { %180 = vst.msk [vmem:[#allocation2 + $0x28] sm:$0xff] %vm174_vm0, %v8394_v0  ;;  %v258_v13 = vld [vmem:[%s8428_s5 + $0x58] sm:$0xff]  ;;  %v259_v14 = vld [vmem:[%s8428_s5 + $0x60] sm:$0xff]  ;;  %v260_v15 = vld [vmem:[%s8428_s5 + $0x68] sm:$0xff]  ;;  %s8398_s2 = smov 3   ;;  %s8399_s7 = smov 7  }
  0x5e   :  { %181 = vst.msk [vmem:[#allocation2 + $0x30] sm:$0xff] %vm174_vm0, %v8394_v0  ;;  %v261_v16 = vld [vmem:[%s8428_s5 + $0x70] sm:$0xff]  ;;  %v262_v17 = vld [vmem:[%s8428_s5 + $0x78] sm:$0xff]  ;;  %v263_v19 = vld [vmem:[%s8428_s5 + $0x80] sm:$0xff]  ;;  %s8400_s10 = smov 6   ;;  %s8401_s11 = smov 5  }
  0x5f   :  { %182 = vst.msk [vmem:[#allocation2 + $0x38] sm:$0xff] %vm174_vm0, %v8394_v0  ;;  %v264_v21 = vld [vmem:[%s8428_s5 + $0x88] sm:$0xff]  ;;  %v265_v23 = vld [vmem:[%s8428_s5 + $0x90] sm:$0xff]  ;;  %v266_v25 = vld [vmem:[%s8428_s5 + $0x98] sm:$0xff]  ;;  %vm2658_vm7 = vcmask 31768   ;;  %vm3043_vm8 = vcmask 39968  }
  0x60   :  { %183 = vst.msk [vmem:[#allocation2 + $0x40] sm:$0xff] %vm174_vm0, %v8394_v0  ;;  %v267_v27 = vld [vmem:[%s8428_s5 + $0xa0] sm:$0xff]  ;;  %v268_v29 = vld [vmem:[%s8428_s5 + $0xa8] sm:$0xff]  ;;  %v269_v31 = vld [vmem:[%s8428_s5 + $0xb0] sm:$0xff]  ;;  %vm3428_vm9 = vcmask 48168   ;;  %vm3813_vm10 = vcmask 56368  }
  0x61   :  { %184 = vst.msk [vmem:[#allocation2 + $0x48] sm:$0xff] %vm174_vm0, %v8394_v0  ;;  %v270_v33 = vld [vmem:[%s8428_s5 + $0xb8] sm:$0xff]  ;;  %v271_v35 = vld [vmem:[%s8428_s5 + $0xc0] sm:$0xff]  ;;  %v272_v37 = vld [vmem:[%s8428_s5 + $0xc8] sm:$0xff]  ;;  %vm4198_vm11 = vcmask 64568   ;;  %vm4583_vm12 = vcmask 72768  }
  0x62   :  { %185 = vst.msk [vmem:[#allocation2 + $0x50] sm:$0xff] %vm174_vm0, %v8394_v0  ;;  %v273_v39 = vld [vmem:[%s8428_s5 + $0xd0] sm:$0xff]  ;;  %v292_v40 = vld [vmem:[%s8428_s5 + $0x168] sm:$0xff]  ;;  %v274_v42 = vld [vmem:[%s8428_s5 + $0xd8] sm:$0xff]  ;;  %vm4846_vm13 = vcmask 72704   ;;  %vm5720_vm15 = vcmask 1043456  }
  0x63   :  { %186 = vst.msk [vmem:[#allocation2 + $0x58] sm:$0xff] %vm174_vm0, %v8394_v0  ;;  %7963 = vmatmul.msk.f32.gmra.mxu0 %vm312_vm2, %v248_v3  ;;  %8007 = vmatmul.msk.f32.vlgmr.msra.gmra.mxu3 %vm312_vm2, %v292_v40  ;;  %v293_v43 = vld [vmem:[%s8428_s5 + $0x170] sm:$0xff]  ;;  %v275_v45 = vld [vmem:[%s8428_s5 + $0xe0] sm:$0xff]  ;;  %v294_v46 = vld [vmem:[%s8428_s5 + $0x178] sm:$0xff]  ;;  %s12856_s15 = sld [smem:[#allocation16_spill]]  ;;  %s8411_s16 = smov 56  }
  0x64   :  { %187 = vst.msk [vmem:[#allocation2 + $0x60] sm:$0xff] %vm174_vm0, %v8394_v0  ;;  %v276_v48 = vld [vmem:[%s8428_s5 + $0xe8] sm:$0xff]  ;;  %v295_v49 = vld [vmem:[%s8428_s5 + $0x180] sm:$0xff]  ;;  %v277_v51 = vld [vmem:[%s8428_s5 + $0xf0] sm:$0xff]  ;;  %s8412_s18 = smov 40   ;;  %s8413_s22 = smov 64  }
  0x65   :  { %188 = vst.msk [vmem:[#allocation2 + $0x68] sm:$0xff] %vm174_vm0, %v8394_v0  ;;  %v296_v52 = vld [vmem:[%s8428_s5 + $0x188] sm:$0xff]  ;;  %v278_v54 = vld [vmem:[%s8428_s5 + $0xf8] sm:$0xff]  ;;  %v297_v55 = vld [vmem:[%s8428_s5 + $0x190] sm:$0xff]  ;;  %s8414_s23 = smov 48   ;;  %s12857_s26 = sld [smem:[#allocation15_spill]] }
  0x66   :  { %189 = vst.msk [vmem:[#allocation2 + $0x70] sm:$0xff] %vm174_vm0, %v8394_v0  ;;  %v719_v56 = vld [vmem:[#allocation6 + $0x8] sm:$0xff]  ;;  %v279_v58 = vld [vmem:[%s8428_s5 + $0x100] sm:$0xff]  ;;  %v720_v60 = vld [vmem:[#allocation6 + $0x10] sm:$0xff]  ;;  %s12858_s0 = sld [smem:[#allocation17_spill]] }
  0x67   :  { %190 = vst.msk [vmem:[#allocation2 + $0x78] sm:$0xff] %vm174_vm0, %v8394_v0  ;;  %v718_v59 = vld [vmem:[#allocation6] sm:$0xff]  ;;  %v298_v61 = vld [vmem:[%s8428_s5 + $0x198] sm:$0xff] }
  0x68   :  { %191 = vst.msk [vmem:[#allocation2 + $0x80] sm:$0xff] %vm174_vm0, %v8394_v0  ;;  %v721_v63 = vld [vmem:[#allocation6 + $0x18] sm:$0xff]  ;;  %v722_v2 = vld [vmem:[#allocation6 + $0x20] sm:$0xff] }
  0x69   :  { %192 = vst.msk [vmem:[#allocation2 + $0x88] sm:$0xff] %vm174_vm0, %v8394_v0 }
  0x6a   :  { %193 = vst.msk [vmem:[#allocation2 + $0x90] sm:$0xff] %vm174_vm0, %v8394_v0 }
  0x6b   :  { %194 = vst.msk [vmem:[#allocation2 + $0x98] sm:$0xff] %vm174_vm0, %v8394_v0  ;;  %7964 = vmatmul.msk.f32.gmra.mxu0 %vm312_vm2, %v249_v4  ;;  %8008 = vmatmul.msk.f32.gmra.mxu3 %vm312_vm2, %v293_v43  ;;  %v730_v43 = vld [vmem:[#allocation6 + $0x60] sm:$0xff] }
  0x6c   :  { %195 = vst.msk [vmem:[#allocation2 + $0xa0] sm:$0xff] %vm174_vm0, %v8394_v0 }
  0x6d   :  { %196 = vst.msk [vmem:[#allocation2 + $0xa8] sm:$0xff] %vm174_vm0, %v8394_v0 }
  0x6e   :  { %197 = vst.msk [vmem:[#allocation2 + $0xb0] sm:$0xff] %vm174_vm0, %v8394_v0 }
  0x6f   :  { %198 = vst.msk [vmem:[#allocation2 + $0xb8] sm:$0xff] %vm174_vm0, %v8394_v0 }
  0x70   :  { %199 = vst.msk [vmem:[#allocation2 + $0xc0] sm:$0xff] %vm174_vm0, %v8394_v0 }
  0x71   :  { %200 = vst.msk [vmem:[#allocation2 + $0xc8] sm:$0xff] %vm174_vm0, %v8394_v0 }
  0x72   :  { %201 = vst.msk [vmem:[#allocation2 + $0xd0] sm:$0xff] %vm174_vm0, %v8394_v0 }
  0x73   :  { %202 = vst.msk [vmem:[#allocation2 + $0xd8] sm:$0xff] %vm174_vm0, %v8394_v0  ;;  %7965 = vmatmul.msk.f32.gmra.mxu0 %vm312_vm2, %v250_v5  ;;  %8009 = vmatmul.msk.f32.gmra.mxu3 %vm312_vm2, %v294_v46  ;;  %v723_v5 = vld [vmem:[#allocation6 + $0x28] sm:$0xff] }
  0x74   :  { %203 = vst.msk [vmem:[#allocation2 + $0xe0] sm:$0xff] %vm174_vm0, %v8394_v0 }
  0x75   :  { %204 = vst.msk [vmem:[#allocation2 + $0xe8] sm:$0xff] %vm174_vm0, %v8394_v0 }
  0x76   :  { %205 = vst.msk [vmem:[#allocation2 + $0xf0] sm:$0xff] %vm174_vm0, %v8394_v0 }
  0x77   :  { %206 = vst.msk [vmem:[#allocation2 + $0xf8] sm:$0xff] %vm174_vm0, %v8394_v0 }
  0x78   :  { %207 = vst.msk [vmem:[#allocation2 + $0x100] sm:$0xff] %vm174_vm0, %v8394_v0 }
  0x79   :  { %208 = vst.msk [vmem:[#allocation2 + $0x108] sm:$0xff] %vm174_vm0, %v8394_v0 }
  0x7a   :  { %209 = vst.msk [vmem:[#allocation2 + $0x110] sm:$0xff] %vm174_vm0, %v8394_v0 }
  0x7b   :  { %210 = vst.msk [vmem:[#allocation2 + $0x118] sm:$0xff] %vm174_vm0, %v8394_v0  ;;  %7966 = vmatmul.msk.f32.gmra.mxu0 %vm312_vm2, %v251_v6  ;;  %8010 = vmatmul.msk.f32.gmra.mxu3 %vm312_vm2, %v295_v49  ;;  %v731_v49 = vld [vmem:[#allocation6 + $0x68] sm:$0xff] }
  0x7c   :  { %211 = vst.msk [vmem:[#allocation2 + $0x120] sm:$0xff] %vm174_vm0, %v8394_v0 }
  0x7d   :  { %212 = vst.msk [vmem:[#allocation2 + $0x128] sm:$0xff] %vm174_vm0, %v8394_v0 }
  0x7e   :  { %213 = vst.msk [vmem:[#allocation2 + $0x130] sm:$0xff] %vm174_vm0, %v8394_v0 }
  0x7f   :  { %214 = vst.msk [vmem:[#allocation2 + $0x138] sm:$0xff] %vm174_vm0, %v8394_v0 }
  0x80   :  { %215 = vst.msk [vmem:[#allocation2 + $0x140] sm:$0xff] %vm174_vm0, %v8394_v0 }
  0x81   :  { %216 = vst.msk [vmem:[#allocation2 + $0x148] sm:$0xff] %vm174_vm0, %v8394_v0 }
  0x82   :  { %217 = vst.msk [vmem:[#allocation2 + $0x150] sm:$0xff] %vm174_vm0, %v8394_v0 }
  0x83   :  { %218 = vst.msk [vmem:[#allocation2 + $0x158] sm:$0xff] %vm174_vm0, %v8394_v0  ;;  %7967 = vmatmul.msk.f32.gmra.mxu0 %vm312_vm2, %v252_v7  ;;  %8011 = vmatmul.msk.f32.gmra.mxu3 %vm312_vm2, %v296_v52  ;;  %v280_v7 = vld [vmem:[%s8428_s5 + $0x108] sm:$0xff] }
  0x84   :  { %219 = vst.msk [vmem:[#allocation2 + $0x160] sm:$0xff] %vm174_vm0, %v8394_v0 }
  0x85   :  { %220 = vst.msk [vmem:[#allocation2 + $0x168] sm:$0xff] %vm174_vm0, %v8394_v0 }
  0x86   :  { %221 = vst.msk [vmem:[#allocation2 + $0x170] sm:$0xff] %vm174_vm0, %v8394_v0 }
  0x87   :  { %222 = vst.msk [vmem:[#allocation2 + $0x178] sm:$0xff] %vm174_vm0, %v8394_v0 }
  0x88   :  { %223 = vst.msk [vmem:[#allocation2 + $0x180] sm:$0xff] %vm174_vm0, %v8394_v0 }
  0x89   :  { %224 = vst.msk [vmem:[#allocation2 + $0x188] sm:$0xff] %vm174_vm0, %v8394_v0 }
  0x8a   :  { %225 = vst.msk [vmem:[#allocation2 + $0x190] sm:$0xff] %vm174_vm0, %v8394_v0 }
  0x8b   :  { %226 = vst.msk [vmem:[#allocation2 + $0x198] sm:$0xff] %vm174_vm0, %v8394_v0  ;;  %7968 = vmatmul.msk.f32.gmra.mxu0 %vm312_vm2, %v253_v8  ;;  %8012 = vmatmul.msk.f32.gmra.mxu3 %vm312_vm2, %v297_v55 }
  0x8c   :  { %227 = vst.msk [vmem:[#allocation2 + $0x1a0] sm:$0xff] %vm174_vm0, %v8394_v0 }
  0x8d   :  { %228 = vst.msk [vmem:[#allocation2 + $0x1a8] sm:$0xff] %vm174_vm0, %v8394_v0 }
  0x8e   :  { %229 = vst.msk [vmem:[#allocation2 + $0x1b0] sm:$0xff] %vm174_vm0, %v8394_v0 }
  0x8f   :  { %230 = vst.msk [vmem:[#allocation2 + $0x1b8] sm:$0xff] %vm174_vm0, %v8394_v0 }
  0x90   :  { %231 = vst.msk [vmem:[#allocation2 + $0x1c0] sm:$0xff] %vm174_vm0, %v8394_v0 }
  0x91   :  { %232 = vst.msk [vmem:[#allocation2 + $0x1c8] sm:$0xff] %vm174_vm0, %v8394_v0 }
  0x92   :  { %233 = vst.msk [vmem:[#allocation2 + $0x1d0] sm:$0xff] %vm174_vm0, %v8394_v0 }
  0x93   :  { %234 = vst.msk [vmem:[#allocation2 + $0x1d8] sm:$0xff] %vm174_vm0, %v8394_v0  ;;  %7969 = vmatmul.msk.f32.gmra.mxu0 %vm312_vm2, %v254_v9  ;;  %8013 = vmatmul.msk.f32.gmra.mxu3 %vm312_vm2, %v298_v61 }
  0x94   :  { %235 = vst.msk [vmem:[#allocation2 + $0x1e0] sm:$0xff] %vm174_vm0, %v8394_v0 }
  0x95   :  { %236 = vst.msk [vmem:[#allocation2 + $0x1e8] sm:$0xff] %vm174_vm0, %v8394_v0 }
  0x96   :  { %237 = vst.msk [vmem:[#allocation2 + $0x1f0] sm:$0xff] %vm174_vm0, %v8394_v0 }
  0x97   :  { %238 = vst.msk [vmem:[#allocation2 + $0x1f8] sm:$0xff] %vm174_vm0, %v8394_v0 }
  0x98   :  { %239 = vst.msk [vmem:[#allocation2 + $0x200] sm:$0xff] %vm174_vm0, %v8394_v0 }
  0x99   :  { %240 = vst.msk [vmem:[#allocation2 + $0x208] sm:$0xff] %vm174_vm0, %v8394_v0 }
  0x9a   :  { %241 = vst.msk [vmem:[#allocation2 + $0x210] sm:$0xff] %vm174_vm0, %v8394_v0 }
  0x9b   :  { %242 = vst.msk [vmem:[#allocation2 + $0x218] sm:$0xff] %vm174_vm0, %v8394_v0  ;;  %7970 = vmatmul.msk.f32.gmra.mxu0 %vm312_vm2, %v255_v10 }
  0x9c   :  { %243 = vst.msk [vmem:[#allocation2 + $0x220] sm:$0xff] %vm174_vm0, %v8394_v0 }
  0x9d   :  { %244 = vst.msk [vmem:[#allocation2 + $0x228] sm:$0xff] %vm174_vm0, %v8394_v0 }
  0x9e   :  { %245 = vst.msk [vmem:[#allocation2 + $0x230] sm:$0xff] %vm174_vm0, %v8394_v0 }
  0xa3   :  { %7971 = vmatmul.msk.f32.gmra.mxu0 %vm312_vm2, %v256_v11 }
  0xab   :  { %7972 = vmatmul.msk.f32.gmra.mxu0 %vm312_vm2, %v257_v12  ;;  %v724_v12 = vld [vmem:[#allocation6 + $0x30] sm:$0xff] }
  0xb3   :  { %7973 = vmatmul.msk.f32.gmra.mxu0 %vm312_vm2, %v258_v13  ;;  %v299_v13 = vld [vmem:[%s8428_s5 + $0x1a0] sm:$0xff] }
  0xb4   :  { %8014 = vmatmul.msk.f32.gmra.mxu3 %vm312_vm2, %v299_v13 }
  0xbb   :  { %7974 = vmatmul.msk.f32.gmra.mxu0 %vm312_vm2, %v259_v14 }
  0xc3   :  { %7975 = vmatmul.msk.f32.gmra.mxu0 %vm312_vm2, %v260_v15 }
  0xcb   :  { %7976 = vmatmul.msk.f32.gmra.mxu0 %vm312_vm2, %v261_v16 }
  0xd3   :  { %7977 = vmatmul.msk.f32.gmra.mxu0 %vm312_vm2, %v262_v17  ;;  %v725_v17 = vld [vmem:[#allocation6 + $0x38] sm:$0xff] }
  0xd8   :  { %v8799_v18 = vpop.f32.mrf.mxu0 }
  0xd9   :  { %v782_v0 = vmul.f32 %v718_v59, %v8799_v18 }
  0xdb   :  { %7978 = vmatmul.msk.f32.gmra.mxu0 %vm312_vm2, %v263_v19  ;;  %v847_v8 = vsel %vm846_vm3, %v782_v0, 0.0 }
  0xe0   :  { %v8803_v20 = vpop.f32.mrf.mxu0 }
  0xe1   :  { %v783_v62 = vmul.f32 %v719_v56, %v8803_v20  ;;  %v732_v56 = vld [vmem:[#allocation6 + $0x70] sm:$0xff] }
  0xe3   :  { %7979 = vmatmul.msk.f32.gmra.mxu0 %vm312_vm2, %v264_v21  ;;  %v848_v3 = vsel %vm846_vm3, %v783_v62, 0.0  ;;  %v726_v21 = vld [vmem:[#allocation6 + $0x40] sm:$0xff] }
  0xe4   :  { %v849_v11 = vadd.f32 %v848_v3, %v847_v8  ;;  %v735_v3 = vld [vmem:[#allocation6 + $0x88] sm:$0xff] }
  0xe8   :  { %v8807_v22 = vpop.f32.mrf.mxu0 }
  0xe9   :  { %v784_v1 = vmul.f32 %v720_v60, %v8807_v22  ;;  %v733_v60 = vld [vmem:[#allocation6 + $0x78] sm:$0xff] }
  0xeb   :  { %7980 = vmatmul.msk.f32.gmra.mxu0 %vm312_vm2, %v265_v23  ;;  %v850_v9 = vsel %vm846_vm3, %v784_v1, 0.0 }
  0xec   :  { %v851_v16 = vadd.f32 %v850_v9, %v849_v11  ;;  %v736_v9 = vld [vmem:[#allocation6 + $0x90] sm:$0xff] }
  0xf0   :  { %v8811_v24 = vpop.f32.mrf.mxu0 }
  0xf1   :  { %v785_v4 = vmul.f32 %v721_v63, %v8811_v24  ;;  %v734_v63 = vld [vmem:[#allocation6 + $0x80] sm:$0xff] }
  0xf3   :  { %7981 = vmatmul.msk.f32.gmra.mxu0 %vm312_vm2, %v266_v25  ;;  %v852_v14 = vsel %vm846_vm3, %v785_v4, 0.0  ;;  %v727_v25 = vld [vmem:[#allocation6 + $0x48] sm:$0xff]  ;;  %v283_v4 = vld [vmem:[%s8428_s5 + $0x120] sm:$0xff] }
  0xf4   :  { %v853_v20 = vadd.f32 %v852_v14, %v851_v16 }
  0xf8   :  { %v8815_v26 = vpop.f32.mrf.mxu0 }
  0xf9   :  { %v786_v10 = vmul.f32 %v722_v2, %v8815_v26 }
  0xfb   :  { %7982 = vmatmul.msk.f32.gmra.mxu0 %vm312_vm2, %v267_v27  ;;  %v854_v18 = vsel %vm846_vm3, %v786_v10, 0.0  ;;  %v281_v27 = vld [vmem:[%s8428_s5 + $0x110] sm:$0xff]  ;;  %v302_v10 = vld [vmem:[%s8428_s5 + $0x1b8] sm:$0xff] }
  0xfc   :  { %v855_v24 = vadd.f32 %v854_v18, %v853_v20  ;;  %v739_v20 = vld [vmem:[#allocation6 + $0xa8] sm:$0xff] }
 0x100   :  { %v8819_v28 = vpop.f32.mrf.mxu0 }
 0x101   :  { %v787_v15 = vmul.f32 %v723_v5, %v8819_v28 }
 0x103   :  { %7983 = vmatmul.msk.f32.gmra.mxu0 %vm312_vm2, %v268_v29  ;;  %v856_v22 = vsel %vm846_vm3, %v787_v15, 0.0 }
 0x108   :  { %v8823_v30 = vpop.f32.mrf.mxu0 }
 0x109   :  { %v788_v19 = vmul.f32 %v724_v12, %v8823_v30  ;;  %v737_v12 = vld [vmem:[#allocation6 + $0x98] sm:$0xff] }
 0x10b   :  { %7984 = vmatmul.msk.f32.gmra.mxu0 %vm312_vm2, %v269_v31  ;;  %v858_v28 = vsel %vm846_vm3, %v788_v19, 0.0  ;;  %v857_v31 = vadd.f32 %v856_v22, %v855_v24  ;;  %v303_v24 = vld [vmem:[%s8428_s5 + $0x1c0] sm:$0xff] }
 0x110   :  { %v8827_v32 = vpop.f32.mrf.mxu0 }
 0x111   :  { %v789_v23 = vmul.f32 %v725_v17, %v8827_v32  ;;  %v859_v32 = vadd.f32 %v858_v28, %v857_v31  ;;  %v740_v31 = vld [vmem:[#allocation6 + $0xb0] sm:$0xff] }
 0x113   :  { %7985 = vmatmul.msk.f32.gmra.mxu0 %vm312_vm2, %v270_v33  ;;  %v728_v33 = vld [vmem:[#allocation6 + $0x50] sm:$0xff]  ;;  %v860_v30 = vsel %vm846_vm3, %v789_v23, 0.0 }
 0x118   :  { %v8831_v34 = vpop.f32.mrf.mxu0 }
 0x119   :  { %v790_v29 = vmul.f32 %v726_v21, %v8831_v34  ;;  %v861_v34 = vadd.f32 %v860_v30, %v859_v32  ;;  %v284_v21 = vld [vmem:[%s8428_s5 + $0x128] sm:$0xff] }
 0x11b   :  { %7986 = vmatmul.msk.f32.gmra.mxu0 %vm312_vm2, %v271_v35  ;;  %v300_v35 = vld [vmem:[%s8428_s5 + $0x1a8] sm:$0xff]  ;;  %v862_v40 = vsel %vm846_vm3, %v790_v29, 0.0 }
 0x11c   :  { %8015 = vmatmul.msk.f32.gmra.mxu3 %vm312_vm2, %v300_v35 }
 0x120   :  { %v8835_v36 = vpop.f32.mrf.mxu0 }
 0x123   :  { %7987 = vmatmul.msk.f32.gmra.mxu0 %vm312_vm2, %v272_v37  ;;  %v791_v37 = vmul.f32 %v727_v25, %v8835_v36 }
 0x128   :  { %v8839_v38 = vpop.f32.mrf.mxu0 }
 0x12b   :  { %7988 = vmatmul.msk.f32.gmra.mxu0 %vm312_vm2, %v273_v39  ;;  %v729_v39 = vld [vmem:[#allocation6 + $0x58] sm:$0xff] }
 0x130   :  { %v8845_v41 = vpop.f32.mrf.mxu0 }
 0x131   :  { %v793_v46 = vmul.f32 %v729_v39, %v8845_v41 }
 0x133   :  { %7989 = vmatmul.msk.f32.gmra.mxu0 %vm312_vm2, %v274_v42  ;;  %v792_v42 = vmul.f32 %v728_v33, %v8839_v38  ;;  %v868_v38 = vsel %vm846_vm3, %v793_v46, 0.0  ;;  %v286_v46 = vld [vmem:[%s8428_s5 + $0x138] sm:$0xff] }
 0x135   :  { %v866_v52 = vsel %vm846_vm3, %v792_v42, 0.0 }
 0x138   :  { %v8851_v44 = vpop.f32.mrf.mxu0 }
 0x13b   :  { %7990 = vmatmul.msk.f32.gmra.mxu0 %vm312_vm2, %v275_v45  ;;  %v864_v45 = vsel %vm846_vm3, %v791_v37, 0.0  ;;  %v285_v37 = vld [vmem:[%s8428_s5 + $0x130] sm:$0xff] }
 0x140   :  { %v8857_v47 = vpop.f32.mrf.mxu0 }
 0x141   :  { %v795_v59 = vmul.f32 %v731_v49, %v8857_v47  ;;  %v305_v49 = vld [vmem:[%s8428_s5 + $0x1d0] sm:$0xff] }
 0x143   :  { %7991 = vmatmul.msk.f32.gmra.mxu0 %vm312_vm2, %v276_v48  ;;  %v863_v48 = vadd.f32 %v862_v40, %v861_v34  ;;  %v872_v0 = vsel %vm846_vm3, %v795_v59, 0.0  ;;  %v304_v40 = vld [vmem:[%s8428_s5 + $0x1c8] sm:$0xff] }
 0x145   :  { %v865_v55 = vadd.f32 %v864_v45, %v863_v48 }
 0x147   :  { %v867_v41 = vadd.f32 %v866_v52, %v865_v55  ;;  %v742_v52 = vld [vmem:[#allocation6 + $0xc0] sm:$0xff] }
 0x148   :  { %v8863_v50 = vpop.f32.mrf.mxu0  ;;  %v287_v55 = vld [vmem:[%s8428_s5 + $0x140] sm:$0xff] }
 0x149   :  { %v796_v62 = vmul.f32 %v732_v56, %v8863_v50 }
 0x14b   :  { %7992 = vmatmul.msk.f32.gmra.mxu0 %vm312_vm2, %v277_v51  ;;  %v282_v51 = vld [vmem:[%s8428_s5 + $0x118] sm:$0xff]  ;;  %v874_v5 = vsel %vm846_vm3, %v796_v62, 0.0 }
 0x150   :  { %v8869_v53 = vpop.f32.mrf.mxu0 }
 0x151   :  { %v797_v1 = vmul.f32 %v733_v60, %v8869_v53 }
 0x153   :  { %7993 = vmatmul.msk.f32.gmra.mxu0 %vm312_vm2, %v278_v54  ;;  %v794_v54 = vmul.f32 %v730_v43, %v8851_v44  ;;  %v869_v44 = vadd.f32 %v868_v38, %v867_v41  ;;  %v876_v50 = vsel %vm846_vm3, %v797_v1, 0.0  ;;  %v741_v43 = vld [vmem:[#allocation6 + $0xb8] sm:$0xff]  ;;  %v743_v41 = vld [vmem:[#allocation6 + $0xc8] sm:$0xff]  ;;  %v744_v1 = vld [vmem:[#allocation6 + $0xd0] sm:$0xff] }
 0x155   :  { %v870_v61 = vsel %vm846_vm3, %v794_v54, 0.0 }
 0x156   :  { %v871_v2 = vadd.f32 %v870_v61, %v869_v44  ;;  %v288_v61 = vld [vmem:[%s8428_s5 + $0x148] sm:$0xff]  ;;  %v307_v44 = vld [vmem:[%s8428_s5 + $0x1e0] sm:$0xff] }
 0x158   :  { %v8875_v57 = vpop.f32.mrf.mxu0  ;;  %v873_v8 = vadd.f32 %v872_v0, %v871_v2 }
 0x15a   :  { %v875_v53 = vadd.f32 %v874_v5, %v873_v8  ;;  %v745_v8 = vld [vmem:[#allocation6 + $0xd8] sm:$0xff] }
 0x15b   :  { %7994 = vmatmul.msk.f32.gmra.mxu0 %vm312_vm2, %v279_v58  ;;  %v301_v58 = vld [vmem:[%s8428_s5 + $0x1b0] sm:$0xff] }
 0x15c   :  { %8016 = vmatmul.msk.f32.gmra.mxu3 %vm312_vm2, %v301_v58  ;;  %v877_v15 = vadd.f32 %v876_v50, %v875_v53  ;;  %v306_v58 = vld [vmem:[%s8428_s5 + $0x1d8] sm:$0xff]  ;;  %v309_v53 = vld [vmem:[%s8428_s5 + $0x1f0] sm:$0xff] }
 0x15d   :  { %v290_v50 = vld [vmem:[%s8428_s5 + $0x158] sm:$0xff] }
 0x160   :  { %v8886_v6 = vpop.f32.mrf.mxu0 }
 0x161   :  { %v799_v11 = vmul.f32 %v735_v3, %v8886_v6  ;;  %v289_v3 = vld [vmem:[%s8428_s5 + $0x150] sm:$0xff] }
 0x163   :  { %7995 = vmatmul.msk.f32.gmra.mxu0 %vm312_vm2, %v280_v7  ;;  %v798_v7 = vmul.f32 %v734_v63, %v8875_v57  ;;  %v738_v57 = vld [vmem:[#allocation6 + $0xa0] sm:$0xff]  ;;  %v880_v16 = vsel %vm846_vm3, %v799_v11, 0.0 }
 0x164   :  { %8017 = vmatmul.msk.f32.gmra.mxu3 %vm312_vm2, %v302_v10 }
 0x165   :  { %v878_v13 = vsel %vm846_vm3, %v798_v7, 0.0 }
 0x166   :  { %v879_v18 = vadd.f32 %v878_v13, %v877_v15 }
 0x168   :  { %v580_v26 = vpop.f32.mrf.mxu0  ;;  %v881_v23 = vadd.f32 %v880_v16, %v879_v18  ;;  %v291_v16 = vld [vmem:[%s8428_s5 + $0x160] sm:$0xff]  ;;  %v310_v18 = vld [vmem:[%s8428_s5 + $0x1f8] sm:$0xff] }
 0x169   :  { %v800_v14 = vmul.f32 %v736_v9, %v580_v26  ;;  %v8968_v9 = vpop.f32.mrf.mxu3 }
 0x16b   :  { %7996 = vmatmul.msk.f32.gmra.mxu0 %vm312_vm2, %v281_v27  ;;  %v882_v6 = vsel %vm846_vm3, %v800_v14, 0.0  ;;  %v746_v14 = vld [vmem:[#allocation6 + $0xe0] sm:$0xff] }
 0x16c   :  { %8018 = vmatmul.msk.f32.gmra.mxu3 %vm312_vm2, %v303_v24  ;;  %v883_v26 = vadd.f32 %v882_v6, %v881_v23 }
 0x170   :  { %v583_v36 = vpop.f32.mrf.mxu0 }
 0x171   :  { %v801_v17 = vmul.f32 %v737_v12, %v583_v36  ;;  %v8975_v15 = vpop.f32.mrf.mxu3 }
 0x173   :  { %7997 = vmatmul.msk.f32.gmra.mxu0 %vm312_vm2, %v282_v51  ;;  %v884_v25 = vsel %vm846_vm3, %v801_v17, 0.0 }
 0x174   :  { %v885_v29 = vadd.f32 %v884_v25, %v883_v26  ;;  %8019 = vmatmul.msk.f32.gmra.mxu3 %vm312_vm2, %v304_v40 }
 0x178   :  { %v586_v47 = vpop.f32.mrf.mxu0 }
 0x179   :  { %v802_v22 = vmul.f32 %v738_v57, %v586_v47  ;;  %v8982_v6 = vpop.f32.mrf.mxu3 }
 0x17b   :  { %7998 = vmatmul.msk.f32.gmra.mxu0 %vm312_vm2, %v283_v4  ;;  %v886_v28 = vsel %vm846_vm3, %v802_v22, 0.0  ;;  %v308_v4 = vld [vmem:[%s8428_s5 + $0x1e8] sm:$0xff] }
 0x17c   :  { %v887_v35 = vadd.f32 %v886_v28, %v885_v29  ;;  %8020 = vmatmul.msk.f32.gmra.mxu3 %vm312_vm2, %v305_v49  ;;  %v751_v49 = vld [vmem:[#allocation6 + $0x108] sm:$0xff] }
 0x180   :  { %v589_v19 = vpop.f32.mrf.mxu0 }
 0x181   :  { %v803_v27 = vmul.f32 %v739_v20, %v589_v19  ;;  %v8985_v26 = vpop.f32.mrf.mxu3 }
 0x183   :  { %7999 = vmatmul.msk.f32.gmra.mxu0 %vm312_vm2, %v284_v21  ;;  %v888_v33 = vsel %vm846_vm3, %v803_v27, 0.0  ;;  %v747_v21 = vld [vmem:[#allocation6 + $0xe8] sm:$0xff]  ;;  %v748_v27 = vld [vmem:[#allocation6 + $0xf0] sm:$0xff] }
 0x184   :  { %v889_v39 = vadd.f32 %v888_v33, %v887_v35  ;;  %8021 = vmatmul.msk.f32.gmra.mxu3 %vm312_vm2, %v306_v58  ;;  %v749_v35 = vld [vmem:[#allocation6 + $0xf8] sm:$0xff] }
 0x188   :  { %v592_v30 = vpop.f32.mrf.mxu0 }
 0x189   :  { %v804_v32 = vmul.f32 %v740_v31, %v592_v30  ;;  %v8988_v30 = vpop.f32.mrf.mxu3 }
 0x18b   :  { %v890_v42 = vsel %vm846_vm3, %v804_v32, 0.0  ;;  %8000 = vmatmul.msk.f32.gmra.mxu0 %vm312_vm2, %v285_v37 }
 0x18c   :  { %v891_v34 = vadd.f32 %v890_v42, %v889_v39  ;;  %8022 = vmatmul.msk.f32.gmra.mxu3 %vm312_vm2, %v307_v44  ;;  %v750_v42 = vld [vmem:[#allocation6 + $0x100] sm:$0xff] }
 0x190   :  { %v595_v45 = vpop.f32.mrf.mxu0 }
 0x191   :  { %v805_v48 = vmul.f32 %v741_v43, %v595_v45 }
 0x193   :  { %v892_v36 = vsel %vm846_vm3, %v805_v48, 0.0  ;;  %8001 = vmatmul.msk.f32.gmra.mxu0 %vm312_vm2, %v286_v46 }
 0x194   :  { %v893_v51 = vadd.f32 %v892_v36, %v891_v34  ;;  %8023 = vmatmul.msk.f32.gmra.mxu3 %vm312_vm2, %v308_v4  ;;  %v8991_v34 = vpop.f32.mrf.mxu3 }
 0x198   :  { %v598_v54 = vpop.f32.mrf.mxu0 }
 0x199   :  { %v806_v56 = vmul.f32 %v742_v52, %v598_v54 }
 0x19b   :  { %v894_v38 = vsel %vm846_vm3, %v806_v56, 0.0  ;;  %8002 = vmatmul.msk.f32.gmra.mxu0 %vm312_vm2, %v287_v55 }
 0x19c   :  { %v895_v59 = vadd.f32 %v894_v38, %v893_v51  ;;  %8024 = vmatmul.msk.f32.gmra.mxu3 %vm312_vm2, %v309_v53  ;;  %v8994_v51 = vpop.f32.mrf.mxu3  ;;  %v756_v53 = vld [vmem:[#allocation6 + $0x130] sm:$0xff] }
 0x1a0   :  { %v601_v60 = vpop.f32.mrf.mxu0 }
 0x1a1   :  { %v807_v62 = vmul.f32 %v743_v41, %v601_v60 }
 0x1a3   :  { %v896_v63 = vsel %vm846_vm3, %v807_v62, 0.0  ;;  %8003 = vmatmul.msk.f32.gmra.mxu0 %vm312_vm2, %v288_v61 }
 0x1a4   :  { %v897_v0 = vadd.f32 %v896_v63, %v895_v59  ;;  %8025 = vmatmul.msk.f32.gmra.mxu3 %vm312_vm2, %v310_v18  ;;  %v8997_v58 = vpop.f32.mrf.mxu3 }
 0x1a8   :  { %v604_v2 = vpop.f32.mrf.mxu0 }
 0x1a9   :  { %v808_v47 = vmul.f32 %v744_v1, %v604_v2 }
 0x1ab   :  { %v898_v5 = vsel %vm846_vm3, %v808_v47, 0.0  ;;  %8004 = vmatmul.msk.f32.gmra.mxu0 %vm312_vm2, %v289_v3  ;;  %v752_v3 = vld [vmem:[#allocation6 + $0x110] sm:$0xff]  ;;  %v753_v47 = vld [vmem:[#allocation6 + $0x118] sm:$0xff] }
 0x1ac   :  { %v899_v7 = vadd.f32 %v898_v5, %v897_v0  ;;  %v8999_v59 = vpop.f32.mrf.mxu3 }
 0x1b0   :  { %v607_v10 = vpop.f32.mrf.mxu0 }
 0x1b1   :  { %v809_v11 = vmul.f32 %v745_v8, %v607_v10  ;;  %v755_v10 = vld [vmem:[#allocation6 + $0x128] sm:$0xff] }
 0x1b3   :  { %v900_v12 = vsel %vm846_vm3, %v809_v11, 0.0  ;;  %8005 = vmatmul.msk.f32.gmra.mxu0 %vm312_vm2, %v290_v50 }
 0x1b4   :  { %v901_v13 = vadd.f32 %v900_v12, %v899_v7  ;;  %v754_v7 = vld [vmem:[#allocation6 + $0x120] sm:$0xff] }
 0x1b8   :  { %v610_v57 = vpop.f32.mrf.mxu0 }
 0x1b9   :  { %v810_v17 = vmul.f32 %v746_v14, %v610_v57 }
 0x1bb   :  { %v902_v19 = vsel %vm846_vm3, %v810_v17, 0.0  ;;  %8006 = vmatmul.msk.f32.gmra.mxu0 %vm312_vm2, %v291_v16  ;;  %v757_v16 = vld [vmem:[#allocation6 + $0x138] sm:$0xff] }
 0x1bc   :  { %v903_v20 = vadd.f32 %v902_v19, %v901_v13 }
 0x1c0   :  { %v613_v22 = vpop.f32.mrf.mxu0 }
 0x1c1   :  { %v811_v23 = vmul.f32 %v747_v21, %v613_v22  ;;  %v758_v21 = vld [vmem:[#allocation6 + $0x140] sm:$0xff] }
 0x1c3   :  { %v904_v24 = vsel %vm846_vm3, %v811_v23, 0.0 }
 0x1c4   :  { %v905_v25 = vadd.f32 %v904_v24, %v903_v20 }
 0x1c8   :  { %v616_v28 = vpop.f32.mrf.mxu0 }
 0x1c9   :  { %v812_v29 = vmul.f32 %v748_v27, %v616_v28 }
 0x1cb   :  { %v906_v31 = vsel %vm846_vm3, %v812_v29, 0.0 }
 0x1cc   :  { %v907_v33 = vadd.f32 %v906_v31, %v905_v25  ;;  %v759_v25 = vld [vmem:[#allocation6 + $0x148] sm:$0xff]  ;;  %v760_v31 = vld [vmem:[#allocation6 + $0x150] sm:$0xff] }
 0x1d0   :  { %v619_v37 = vpop.f32.mrf.mxu0 }
 0x1d1   :  { %v813_v32 = vmul.f32 %v749_v35, %v619_v37 }
 0x1d3   :  { %v908_v39 = vsel %vm846_vm3, %v813_v32, 0.0 }
 0x1d4   :  { %v909_v40 = vadd.f32 %v908_v39, %v907_v33  ;;  %v761_v39 = vld [vmem:[#allocation6 + $0x158] sm:$0xff] }
 0x1d8   :  { %v622_v43 = vpop.f32.mrf.mxu0 }
 0x1d9   :  { %v814_v45 = vmul.f32 %v750_v42, %v622_v43 }
 0x1db   :  { %v910_v46 = vsel %vm846_vm3, %v814_v45, 0.0 }
 0x1dc   :  { %v911_v48 = vadd.f32 %v910_v46, %v909_v40 }
 0x1df   :  { %v9001_v60 = vpop.f32.mrf.mxu3 }
 0x1e0   :  { %v625_v36 = vpop.f32.mrf.mxu0 }
 0x1e1   :  { %v815_v52 = vmul.f32 %v751_v49, %v625_v36 }
 0x1e3   :  { %v912_v54 = vsel %vm846_vm3, %v815_v52, 0.0  ;;  %v763_v52 = vld [vmem:[#allocation6 + $0x168] sm:$0xff] }
 0x1e4   :  { %v913_v55 = vadd.f32 %v912_v54, %v911_v48 }
 0x1e7   :  { %v9003_v44 = vpop.f32.mrf.mxu3 }
 0x1e8   :  { %v628_v56 = vpop.f32.mrf.mxu0 }
 0x1e9   :  { %v816_v5 = vmul.f32 %v752_v3, %v628_v56 }
 0x1eb   :  { %v914_v50 = vsel %vm846_vm3, %v816_v5, 0.0 }
 0x1ec   :  { %v915_v57 = vadd.f32 %v914_v50, %v913_v55  ;;  %v762_v55 = vld [vmem:[#allocation6 + $0x160] sm:$0xff] }
 0x1ef   :  { %v9005_v0 = vpop.f32.mrf.mxu3 }
 0x1f0   :  { %v631_v38 = vpop.f32.mrf.mxu0 }
 0x1f1   :  { %v817_v8 = vmul.f32 %v753_v47, %v631_v38  ;;  %v764_v38 = vld [vmem:[#allocation6 + $0x170] sm:$0xff] }
 0x1f3   :  { %v916_v13 = vsel %vm846_vm3, %v817_v8, 0.0 }
 0x1f4   :  { %v917_v20 = vadd.f32 %v916_v13, %v915_v57 }
 0x1f7   :  { %v9007_v2 = vpop.f32.mrf.mxu3 }
 0x1f8   :  { %v634_v41 = vpop.f32.mrf.mxu0 }
 0x1f9   :  { %v818_v11 = vmul.f32 %v754_v7, %v634_v41  ;;  %v766_v7 = vld [vmem:[#allocation6 + $0x180] sm:$0xff] }
 0x1fa   :  { %v830_v57 = vmul.f32 %v766_v7, %v8985_v26 }
 0x1fb   :  { %v918_v18 = vsel %vm846_vm3, %v818_v11, 0.0 }
 0x1fc   :  { %v919_v24 = vadd.f32 %v918_v18, %v917_v20 }
 0x1ff   :  { %v9010_v12 = vpop.f32.mrf.mxu3 }
 0x200   :  { %v637_v61 = vpop.f32.mrf.mxu0 }
 0x201   :  { %v819_v14 = vmul.f32 %v755_v10, %v637_v61  ;;  %v1568_v10 = vld [vmem:[#allocation2 + $0x10] sm:$0xff] }
 0x202   :  { %1696 = vrot.lane.b32.xlu0 %v1568_v10, %s8395_s13 }
 0x203   :  { %v920_v22 = vsel %vm846_vm3, %v819_v14, 0.0  ;;  %v1569_v14 = vld [vmem:[#allocation2 + $0x18] sm:$0xff] }
 0x204   :  { %v921_v29 = vadd.f32 %v920_v22, %v919_v24  ;;  %1698 = vrot.lane.b32.xlu2 %v1569_v14, %s8395_s13 }
 0x207   :  { %v9017_v40 = vpop.f32.mrf.mxu3 }
 0x208   :  { %v640_v62 = vpop.f32.mrf.mxu0 }
 0x209   :  { %v820_v19 = vmul.f32 %v756_v53, %v640_v62  ;;  %v827_v62 = vmul.f32 %v763_v52, %v8968_v9  ;;  %v1953_v9 = vld [vmem:[#allocation2 + $0x11] sm:$0xff]  ;;  %v767_v53 = vld [vmem:[#allocation6 + $0x188] sm:$0xff] }
 0x20a   :  { %2081 = vrot.lane.b32.xlu1 %v1953_v9, %s8396_s17  ;;  %v831_v18 = vmul.f32 %v767_v53, %v8988_v30  ;;  %v772_v30 = vld [vmem:[#allocation6 + $0x1b0] sm:$0xff] }
 0x20b   :  { %v922_v27 = vsel %vm846_vm3, %v820_v19, 0.0  ;;  %v936_v50 = vsel %vm846_vm3, %v827_v62, 0.0  ;;  %v769_v19 = vld [vmem:[#allocation6 + $0x198] sm:$0xff] }
 0x20c   :  { %v923_v37 = vadd.f32 %v922_v27, %v921_v29  ;;  %v944_v27 = vsel %vm846_vm3, %v831_v18, 0.0  ;;  %v833_v26 = vmul.f32 %v769_v19, %v8994_v51 }
 0x20f   :  { %v9024_v47 = vpop.f32.mrf.mxu3 }
 0x210   :  { %v643_v63 = vpop.f32.mrf.mxu0 }
 0x211   :  { %v821_v23 = vmul.f32 %v757_v16, %v643_v63  ;;  %v768_v16 = vld [vmem:[#allocation6 + $0x190] sm:$0xff] }
 0x212   :  { %v832_v22 = vmul.f32 %v768_v16, %v8991_v34  ;;  %v773_v34 = vld [vmem:[#allocation6 + $0x1b8] sm:$0xff] }
 0x213   :  { %v924_v33 = vsel %vm846_vm3, %v821_v23, 0.0  ;;  %v770_v23 = vld [vmem:[#allocation6 + $0x1a0] sm:$0xff] }
 0x214   :  { %v925_v45 = vadd.f32 %v924_v33, %v923_v37  ;;  %v834_v33 = vmul.f32 %v770_v23, %v8997_v58  ;;  %v948_v37 = vsel %vm846_vm3, %v833_v26, 0.0 }
 0x218   :  { %v646_v1 = vpop.f32.mrf.mxu0 }
 0x219   :  { %v822_v28 = vmul.f32 %v758_v21, %v646_v1  ;;  %v765_v1 = vld [vmem:[#allocation6 + $0x178] sm:$0xff]  ;;  %v942_v21 = vsel %vm846_vm3, %v830_v57, 0.0 }
 0x21a   :  { %v829_v11 = vmul.f32 %v765_v1, %v8982_v6 }
 0x21b   :  { %v926_v42 = vsel %vm846_vm3, %v822_v28, 0.0  ;;  %v771_v28 = vld [vmem:[#allocation6 + $0x1a8] sm:$0xff] }
 0x21c   :  { %v927_v49 = vadd.f32 %v926_v42, %v925_v45  ;;  %v940_v6 = vsel %vm846_vm3, %v829_v11, 0.0  ;;  %v950_v42 = vsel %vm846_vm3, %v834_v33, 0.0  ;;  %v774_v45 = vld [vmem:[#allocation6 + $0x1c0] sm:$0xff] }
 0x220   :  { %v649_v4 = vpop.f32.mrf.mxu0 }
 0x221   :  { %v823_v35 = vmul.f32 %v759_v25, %v649_v4  ;;  %v828_v4 = vmul.f32 %v764_v38, %v8975_v15  ;;  %v709_v25 = vpop.f32.mrf.mxu3 }
 0x223   :  { %v928_v46 = vsel %vm846_vm3, %v823_v35, 0.0  ;;  %v938_v15 = vsel %vm846_vm3, %v828_v4, 0.0 }
 0x224   :  { %v929_v54 = vadd.f32 %v928_v46, %v927_v49  ;;  %v775_v49 = vld [vmem:[#allocation6 + $0x1c8] sm:$0xff] }
 0x225   :  { %v839_v38 = vmul.f32 %v775_v49, %v9007_v2  ;;  %v780_v2 = vld [vmem:[#allocation6 + $0x1f0] sm:$0xff]  ;;  %v994_v49 = vld [vmem:[%s8448_s21 + $0x18] sm:$0xff] }
 0x227   :  { %v960_v1 = vsel %vm846_vm3, %v839_v38, 0.0  ;;  %v999_v38 = vld [vmem:[%s8448_s21 + $0x40] sm:$0xff] }
 0x228   :  { %v652_v17 = vpop.f32.mrf.mxu0 }
 0x229   :  { %v824_v43 = vmul.f32 %v760_v31, %v652_v17  ;;  %v946_v31 = vsel %vm846_vm3, %v832_v22, 0.0 }
 0x22b   :  { %v930_v36 = vsel %vm846_vm3, %v824_v43, 0.0  ;;  %v836_v43 = vmul.f32 %v772_v30, %v9001_v60  ;;  %v777_v60 = vld [vmem:[#allocation6 + $0x1d8] sm:$0xff] }
 0x22c   :  { %v931_v41 = vadd.f32 %v930_v36, %v929_v54  ;;  %v712_v36 = vpop.f32.mrf.mxu3  ;;  %v838_v54 = vmul.f32 %v774_v45, %v9005_v0  ;;  %v779_v0 = vld [vmem:[#allocation6 + $0x1e8] sm:$0xff] }
 0x22d   :  { %v954_v52 = vsel %vm846_vm3, %v836_v43, 0.0  ;;  %v843_v9 = vmul.f32 %v779_v0, %v709_v25  ;;  %v982_v25 = vld [vmem:[%s8433_s9] sm:$0x1]  ;;  %v1000_v0 = vld [vmem:[%s8448_s21 + $0x48] sm:$0xff] }
 0x22e   :  { %v983_v26 = vmul.f32 0.9, %v982_v25 }
 0x230   :  { %v655_v32 = vpop.f32.mrf.mxu0 }
 0x231   :  { %v825_v48 = vmul.f32 %v761_v39, %v655_v32  ;;  %v835_v32 = vmul.f32 %v771_v28, %v8999_v59  ;;  %v776_v59 = vld [vmem:[#allocation6 + $0x1d0] sm:$0xff] }
 0x232   :  { %v840_v62 = vmul.f32 %v776_v59, %v9010_v12 }
 0x233   :  { %v932_v56 = vsel %vm846_vm3, %v825_v48, 0.0  ;;  %v952_v46 = vsel %vm846_vm3, %v835_v32, 0.0  ;;  %v837_v48 = vmul.f32 %v773_v34, %v9003_v44  ;;  %v991_v32 = vld [vmem:[%s8448_s21] sm:$0xff] }
 0x234   :  { %v933_v3 = vadd.f32 %v932_v56, %v931_v41  ;;  %v715_v10 = vpop.f32.mrf.mxu3 }
 0x235   :  { %v956_v56 = vsel %vm846_vm3, %v837_v48, 0.0  ;;  %v996_v48 = vld [vmem:[%s8448_s21 + $0x28] sm:$0xff] }
 0x238   :  { %v658_v61 = vpop.f32.mrf.mxu0 }
 0x239   :  { %v826_v63 = vmul.f32 %v762_v55, %v658_v61  ;;  %v958_v61 = vsel %vm846_vm3, %v838_v54, 0.0 }
 0x23b   :  { %v934_v5 = vsel %vm846_vm3, %v826_v63, 0.0  ;;  %v778_v63 = vld [vmem:[#allocation6 + $0x1e0] sm:$0xff] }
 0x23c   :  { %v935_v8 = vadd.f32 %v934_v5, %v933_v3  ;;  %v841_v3 = vmul.f32 %v777_v60, %v9017_v40  ;;  %v962_v5 = vsel %vm846_vm3, %v840_v62, 0.0  ;;  %v842_v7 = vmul.f32 %v778_v63, %v9024_v47  ;;  %v998_v60 = vld [vmem:[%s8448_s21 + $0x38] sm:$0xff] }
 0x23e   :  { %v937_v13 = vadd.f32 %v936_v50, %v935_v8  ;;  %v781_v50 = vld [vmem:[#allocation6 + $0x1f8] sm:$0xff]  ;;  %v964_v11 = vsel %vm846_vm3, %v841_v3, 0.0  ;;  %v966_v53 = vsel %vm846_vm3, %v842_v7, 0.0 }
 0x23f   :  { %v845_v14 = vmul.f32 %v781_v50, %v715_v10 }
 0x240   :  { %v939_v17 = vadd.f32 %v938_v15, %v937_v13  ;;  %v844_v13 = vmul.f32 %v780_v2, %v712_v36  ;;  %v968_v15 = vsel %vm846_vm3, %v843_v9, 0.0  ;;  %v1009_v9 = vld [vmem:[%s8448_s21 + $0x90] sm:$0xff] }
 0x241   :  { %v972_v47 = vsel %vm846_vm3, %v845_v14, 0.0 }
 0x242   :  { %v941_v20 = vadd.f32 %v940_v6, %v939_v17  ;;  %v970_v16 = vsel %vm846_vm3, %v844_v13, 0.0 }
 0x244   :  { %v943_v24 = vadd.f32 %v942_v21, %v941_v20 }
 0x246   :  { %v945_v29 = vadd.f32 %v944_v27, %v943_v24 }
 0x248   :  { %v947_v35 = vadd.f32 %v946_v31, %v945_v29 }
 0x24a   :  { %v949_v39 = vadd.f32 %v948_v37, %v947_v35  ;;  %v995_v35 = vld [vmem:[%s8448_s21 + $0x20] sm:$0xff]  ;;  %v993_v37 = vld [vmem:[%s8448_s21 + $0x10] sm:$0xff] }
 0x24c   :  { %v951_v51 = vadd.f32 %v950_v42, %v949_v39 }
 0x24e   :  { %v953_v58 = vadd.f32 %v952_v46, %v951_v51 }
 0x250   :  { %v955_v55 = vadd.f32 %v954_v52, %v953_v58  ;;  %v992_v58 = vld [vmem:[%s8448_s21 + $0x8] sm:$0xff] }
 0x252   :  { %v957_v41 = vadd.f32 %v956_v56, %v955_v55 }
 0x254   :  { %v959_v44 = vadd.f32 %v958_v61, %v957_v41  ;;  %v997_v41 = vld [vmem:[%s8448_s21 + $0x30] sm:$0xff] }
 0x256   :  { %v961_v4 = vadd.f32 %v960_v1, %v959_v44 }
 0x258   :  { %v963_v8 = vadd.f32 %v962_v5, %v961_v4  ;;  %v1006_v4 = vld [vmem:[%s8448_s21 + $0x78] sm:$0xff]  ;;  %v1001_v5 = vld [vmem:[%s8448_s21 + $0x50] sm:$0xff] }
 0x25a   :  { %v965_v12 = vadd.f32 %v964_v11, %v963_v8 }
 0x25c   :  { %v967_v40 = vadd.f32 %v966_v53, %v965_v12  ;;  %v1004_v12 = vld [vmem:[%s8448_s21 + $0x68] sm:$0xff]  ;;  %v1002_v53 = vld [vmem:[%s8448_s21 + $0x58] sm:$0xff] }
 0x25e   :  { %v969_v57 = vadd.f32 %v968_v15, %v967_v40 }
 0x260   :  { %v971_v17 = vadd.f32 %v970_v16, %v969_v57 }
 0x262   :  { %v973_v6 = vadd.f32 %v972_v47, %v971_v17  ;;  %v1012_v47 = vld [vmem:[%s8448_s21 + $0xa8] sm:$0xff]  ;;  %v1005_v17 = vld [vmem:[%s8448_s21 + $0x70] sm:$0xff] }
 0x264   :  { %v974_v18 = vrot.slane %v973_v6, 4 }
 0x266   :  { %v975_v19 = vadd.f32 %v974_v18, %v973_v6  ;;  %v1003_v6 = vld [vmem:[%s8448_s21 + $0x60] sm:$0xff]  ;;  %v1440_v18 = vld [vmem:[#allocation2 + $0xf] sm:$0xff] }
 0x267   :  { %1504 = vst.msk [vmem:[#allocation3] sm:$0xff] %vm312_vm2, %v1440_v18 }
 0x268   :  { %v976_v20 = vrot.slane %v975_v19, 2 }
 0x26a   :  { %v977_v21 = vadd.f32 %v976_v20, %v975_v19 }
 0x26c   :  { %v978_v22 = vrot.slane %v977_v21, 1 }
 0x26e   :  { %v979_v23 = vadd.f32 %v978_v22, %v977_v21 }
 0x270   :  { %v980_v24 = vmul.f32 0.35, %v979_v23 }
 0x272   :  { %8219 = vtanh.f32 %v980_v24 }
 0x274   :  { %v1697_v24 = vpop.permute.xlu0 %1696 }
 0x275   :  { %1889 = vst.msk [vmem:[#allocation3] sm:$0xff] %vm1888_vm5, %v1697_v24 }
 0x278   :  { %v8220_v27 = vpop.eup %8219 }
 0x279   :  { %v984_v28 = vadd.f32 1.0, %v8220_v27  ;;  %v1016_v27 = vld [vmem:[%s8448_s21 + $0xc8] sm:$0xff] }
 0x27b   :  { %v985_v29 = vmul.f32 0.1, %v984_v28 }
 0x27c   :  { %v2082_v28 = vpop.permute.xlu1 %2081 }
 0x27d   :  { %v986_v31 = vadd.f32 %v985_v29, %v983_v26  ;;  %v1007_v26 = vld [vmem:[%s8448_s21 + $0x80] sm:$0xff]  ;;  %v1008_v29 = vld [vmem:[%s8448_s21 + $0x88] sm:$0xff]  ;;  %2274 = vst.msk [vmem:[#allocation3] sm:$0xff] %vm2273_vm6, %v2082_v28  ;;  %v8242_v28 = vld [vmem:[%s8428_s5 + $0x78] sm:$0xff] }
 0x27f   :  { %v987_v33 = vmax.f32 %v986_v31, 0.8 }
 0x281   :  { %v988_v30 = vmin.f32 %v987_v33, 1.2 }
 0x283   :  { %v9068_v34 = vperm.slane %v988_v30, 0  ;;  %990 = vst.msk [vmem:[%s8618_s12] sm:$0x1] %vm989_vm4, %v988_v30 }
 0x285   :  { %v1060_v39 = vmul.f32 %v9068_v34, %v995_v35  ;;  %v1058_v42 = vmul.f32 %v9068_v34, %v993_v37  ;;  %v1056_v43 = vmul.f32 %v9068_v34, %v991_v32  ;;  %v1061_v36 = vmul.f32 %v9068_v34, %v996_v48 }
 0x286   :  { %v1059_v52 = vmul.f32 %v9068_v34, %v994_v49  ;;  %v1057_v54 = vmul.f32 %v9068_v34, %v992_v58  ;;  %v1064_v61 = vmul.f32 %v9068_v34, %v999_v38  ;;  %v1063_v62 = vmul.f32 %v9068_v34, %v998_v60  ;;  %v1011_v58 = vld [vmem:[%s8448_s21 + $0xa0] sm:$0xff] }
 0x287   :  { %v1132_v45 = vsel %vm846_vm3, %v1060_v39, 0.0  ;;  %v1126_v51 = vsel %vm846_vm3, %v1058_v42, 0.0  ;;  %v1120_v46 = vsel %vm846_vm3, %v1056_v43, 0.0  ;;  %v1135_v59 = vsel %vm846_vm3, %v1061_v36, 0.0  ;;  %v1015_v39 = vld [vmem:[%s8448_s21 + $0xc0] sm:$0xff]  ;;  %v1010_v42 = vld [vmem:[%s8448_s21 + $0x98] sm:$0xff]  ;;  %v1699_v43 = vpop.permute.xlu2 %1698 }
 0x288   :  { %1133 = vadd.xlane.f32.xlu2 %v1132_v45  ;;  %1127 = vadd.xlane.f32.xlu1 %v1126_v51  ;;  %v1129_v55 = vsel %vm846_vm3, %v1059_v52, 0.0  ;;  %v1123_v56 = vsel %vm846_vm3, %v1057_v54, 0.0  ;;  %v1062_v44 = vmul.f32 %v9068_v34, %v997_v41  ;;  %v1144_v63 = vsel %vm846_vm3, %v1064_v61, 0.0  ;;  %v1441_v45 = vld [vmem:[#allocation2 + $0x17] sm:$0xff] }
 0x289   :  { %1121 = vadd.xlane.f32.xlu0 %v1120_v46  ;;  %v1141_v1 = vsel %vm846_vm3, %v1063_v62, 0.0  ;;  %v1071_v7 = vmul.f32 %v9068_v34, %v1006_v4  ;;  %v1065_v8 = vmul.f32 %v9068_v34, %v1000_v0  ;;  %v1066_v2 = vmul.f32 %v9068_v34, %v1001_v5  ;;  %1505 = vst.msk [vmem:[#allocation3 + $0x10] sm:$0xff] %vm312_vm2, %v1441_v45  ;;  %v1013_v54 = vld [vmem:[%s8448_s21 + $0xb0] sm:$0xff]  ;;  %v8233_v62 = vld [vmem:[%s8428_s5 + $0x20] sm:$0xff] }
 0x28a   :  { %v1138_v3 = vsel %vm846_vm3, %v1062_v44, 0.0  ;;  %v1074_v13 = vmul.f32 %v9068_v34, %v1009_v9  ;;  %v1069_v14 = vmul.f32 %v9068_v34, %v1004_v12  ;;  %v1067_v40 = vmul.f32 %v9068_v34, %v1002_v53  ;;  %1890 = vst.msk [vmem:[#allocation3 + $0x10] sm:$0xff] %vm1888_vm5, %v1699_v43  ;;  %v8235_v4 = vld [vmem:[%s8428_s5] sm:$0xff]  ;;  %v8238_v9 = vld [vmem:[%s8428_s5 + $0x8] sm:$0xff] }
 0x28b   :  { %v1165_v10 = vsel %vm846_vm3, %v1071_v7, 0.0  ;;  %v1147_v50 = vsel %vm846_vm3, %v1065_v8, 0.0  ;;  %v1150_v11 = vsel %vm846_vm3, %v1066_v2, 0.0  ;;  %v1077_v19 = vmul.f32 %v9068_v34, %v1012_v47  ;;  %v8236_v8 = vld [vmem:[%s8428_s5 + $0x28] sm:$0xff] }
 0x28c   :  { %v1174_v15 = vsel %vm846_vm3, %v1074_v13, 0.0  ;;  %v1159_v57 = vsel %vm846_vm3, %v1069_v14, 0.0  ;;  %v1153_v16 = vsel %vm846_vm3, %v1067_v40, 0.0  ;;  %v1070_v20 = vmul.f32 %v9068_v34, %v1005_v17 }
 0x28d   :  { %v1068_v21 = vmul.f32 %v9068_v34, %v1003_v6  ;;  %v1183_v22 = vsel %vm846_vm3, %v1077_v19, 0.0  ;;  %v1081_v31 = vmul.f32 %v9068_v34, %v1016_v27  ;;  %v1072_v33 = vmul.f32 %v9068_v34, %v1007_v26  ;;  %v8241_v6 = vld [vmem:[%s8428_s5 + $0x30] sm:$0xff] }
 0x28e   :  { %v1162_v23 = vsel %vm846_vm3, %v1070_v20, 0.0  ;;  %v1073_v30 = vmul.f32 %v9068_v34, %v1008_v29  ;;  %v1080_v51 = vmul.f32 %v9068_v34, %v1015_v39  ;;  %v1075_v46 = vmul.f32 %v9068_v34, %v1010_v42 }
 0x28f   :  { %v1156_v25 = vsel %vm846_vm3, %v1068_v21, 0.0  ;;  %v1195_v35 = vsel %vm846_vm3, %v1081_v31, 0.0  ;;  %v1168_v37 = vsel %vm846_vm3, %v1072_v33, 0.0  ;;  %v1076_v36 = vmul.f32 %v9068_v34, %v1011_v58  ;;  %v8243_v31 = vld [vmem:[%s8428_s5 + $0x48] sm:$0xff] }
 0x290   :  { %1136 = vadd.xlane.f32.xlu2 %v1135_v59  ;;  %1130 = vadd.xlane.f32.xlu1 %v1129_v55  ;;  %v1171_v32 = vsel %vm846_vm3, %v1073_v30, 0.0  ;;  %v1192_v48 = vsel %vm846_vm3, %v1080_v51, 0.0  ;;  %v1177_v49 = vsel %vm846_vm3, %v1075_v46, 0.0  ;;  %v1078_v59 = vmul.f32 %v9068_v34, %v1013_v54  ;;  %v8246_v58 = vld [vmem:[%s8428_s5 + $0x68] sm:$0xff]  ;;  %v8247_v54 = vld [vmem:[%s8428_s5 + $0x58] sm:$0xff] }
 0x291   :  { %1124 = vadd.xlane.f32.xlu0 %v1123_v56  ;;  %v1180_v52 = vsel %vm846_vm3, %v1076_v36, 0.0  ;;  %v1014_v56 = vld [vmem:[%s8448_s21 + $0xb8] sm:$0xff] }
 0x292   :  { %v1186_v55 = vsel %vm846_vm3, %v1078_v59, 0.0  ;;  %v1079_v38 = vmul.f32 %v9068_v34, %v1014_v56 }
 0x294   :  { %v1189_v60 = vsel %vm846_vm3, %v1079_v38, 0.0 }
 0x298   :  { %1145 = vadd.xlane.f32.xlu2 %v1144_v63  ;;  %1142 = vadd.xlane.f32.xlu1 %v1141_v1  ;;  %v8234_v63 = vld [vmem:[%s8428_s5 + $0x10] sm:$0xff] }
 0x299   :  { %1139 = vadd.xlane.f32.xlu0 %v1138_v3 }
 0x2a0   :  { %1166 = vadd.xlane.f32.xlu2 %v1165_v10  ;;  %1148 = vadd.xlane.f32.xlu1 %v1147_v50  ;;  %v8237_v10 = vld [vmem:[%s8428_s5 + $0x18] sm:$0xff] }
 0x2a1   :  { %1151 = vadd.xlane.f32.xlu0 %v1150_v11 }
 0x2a8   :  { %1175 = vadd.xlane.f32.xlu2 %v1174_v15  ;;  %1160 = vadd.xlane.f32.xlu1 %v1159_v57  ;;  %v8239_v15 = vld [vmem:[%s8428_s5 + $0x40] sm:$0xff] }
 0x2a9   :  { %1154 = vadd.xlane.f32.xlu0 %v1153_v16  ;;  %v8240_v16 = vld [vmem:[%s8428_s5 + $0x38] sm:$0xff] }
 0x2b0   :  { %1184 = vadd.xlane.f32.xlu2 %v1183_v22  ;;  %1163 = vadd.xlane.f32.xlu1 %v1162_v23 }
 0x2b1   :  { %1157 = vadd.xlane.f32.xlu0 %v1156_v25 }
 0x2b8   :  { %1196 = vadd.xlane.f32.xlu2 %v1195_v35  ;;  %1169 = vadd.xlane.f32.xlu1 %v1168_v37  ;;  %v8244_v35 = vld [vmem:[%s8428_s5 + $0x50] sm:$0xff] }
 0x2b9   :  { %1172 = vadd.xlane.f32.xlu0 %v1171_v32 }
 0x2c0   :  { %1193 = vadd.xlane.f32.xlu1 %v1192_v48  ;;  %v8245_v48 = vld [vmem:[%s8428_s5 + $0x90] sm:$0xff] }
 0x2c1   :  { %1178 = vadd.xlane.f32.xlu0 %v1177_v49 }
 0x2c9   :  { %1181 = vadd.xlane.f32.xlu0 %v1180_v52 }
 0x2d1   :  { %1187 = vadd.xlane.f32.xlu0 %v1186_v55 }
 0x2d9   :  { %1190 = vadd.xlane.f32.xlu0 %v1189_v60 }
 0x2fb   :  { %v1134_v41 = vpop.xlane.xlu2 %1133  ;;  %v1128_v61 = vpop.xlane.xlu1 %1127 }
 0x2fc   :  { %v1316_v44 = vmul.f32 %v8233_v62, %v1134_v41  ;;  %v1314_v1 = vmul.f32 %v8234_v63, %v1128_v61  ;;  %v1122_v3 = vpop.xlane.xlu0 %1121  ;;  %v8248_v61 = vld [vmem:[%s8428_s5 + $0xa8] sm:$0xff] }
 0x2fd   :  { %v1312_v0 = vmul.f32 %v8235_v4, %v1122_v3  ;;  %v8250_v3 = vld [vmem:[%s8428_s5 + $0x60] sm:$0xff] }
 0x2fe   :  { %1380 = vst.msk [vmem:[#allocation2 + $0x40] sm:$0xff] %vm312_vm2, %v1316_v44  ;;  %v8249_v44 = vld [vmem:[%s8428_s5 + $0x70] sm:$0xff] }
 0x2ff   :  { %1378 = vst.msk [vmem:[#allocation2 + $0x30] sm:$0xff] %vm312_vm2, %v1314_v1 }
 0x300   :  { %1376 = vst.msk [vmem:[#allocation2 + $0x20] sm:$0xff] %vm312_vm2, %v1312_v0 }
 0x303   :  { %v1137_v5 = vpop.xlane.xlu2 %1136  ;;  %v1131_v7 = vpop.xlane.xlu1 %1130 }
 0x304   :  { %v1317_v2 = vmul.f32 %v8236_v8, %v1137_v5  ;;  %v1315_v50 = vmul.f32 %v8237_v10, %v1131_v7  ;;  %v1125_v11 = vpop.xlane.xlu0 %1124 }
 0x305   :  { %v1313_v12 = vmul.f32 %v8238_v9, %v1125_v11  ;;  %v9248_v0 = vld [vmem:[#allocation2 + $0x40] sm:$0xff] }
 0x306   :  { %1381 = vst.msk [vmem:[#allocation2 + $0x48] sm:$0xff] %vm312_vm2, %v1317_v2  ;;  %v9206_v39 = vld [vmem:[#allocation2 + $0x30] sm:$0xff]  ;;  %v8252_v9 = vld [vmem:[%s8428_s5 + $0x80] sm:$0xff] }
 0x307   :  { %1379 = vst.msk [vmem:[#allocation2 + $0x38] sm:$0xff] %vm312_vm2, %v1315_v50  ;;  %v9163_v53 = vld [vmem:[#allocation2 + $0x20] sm:$0xff]  ;;  %v8251_v50 = vld [vmem:[%s8428_s5 + $0xc8] sm:$0xff] }
 0x308   :  { %v2338_v13 = vld [vmem:[#allocation2 + $0x1f] sm:$0xff]  ;;  %1377 = vst.msk [vmem:[#allocation2 + $0x28] sm:$0xff] %vm312_vm2, %v1313_v12  ;;  %2851 = vrot.lane.b32.xlu0 %v9163_v53, %s8397_s1 }
 0x309   :  { %2466 = vrot.lane.b32.xlu2 %v2338_v13, %s8398_s2  ;;  %1506 = vst.msk [vmem:[#allocation3 + $0x20] sm:$0xff] %vm312_vm2, %v2338_v13  ;;  %v1954_v56 = vld [vmem:[#allocation2 + $0x19] sm:$0xff] }
 0x30b   :  { %v1146_v14 = vpop.xlane.xlu2 %1145  ;;  %v1143_v40 = vpop.xlane.xlu1 %1142 }
 0x30c   :  { %v1320_v57 = vmul.f32 %v8239_v15, %v1146_v14  ;;  %v1319_v47 = vmul.f32 %v8240_v16, %v1143_v40  ;;  %v1140_v17 = vpop.xlane.xlu0 %1139  ;;  %v8253_v14 = vld [vmem:[%s8428_s5 + $0x88] sm:$0xff] }
 0x30d   :  { %v1318_v18 = vmul.f32 %v8241_v6, %v1140_v17  ;;  %v9185_v23 = vld [vmem:[#allocation2 + $0x47] sm:$0xff] }
 0x30e   :  { %1384 = vst.msk [vmem:[#allocation2 + $0x60] sm:$0xff] %vm312_vm2, %v1320_v57  ;;  %v9174_v19 = vld [vmem:[#allocation2 + $0x38] sm:$0xff]  ;;  %v9270_v57 = vld [vmem:[#allocation2 + $0x41] sm:$0xff] }
 0x30f   :  { %1383 = vst.msk [vmem:[#allocation2 + $0x58] sm:$0xff] %vm312_vm2, %v1319_v47  ;;  %4008 = vrot.lane.b32.xlu1 %v9174_v19, %s8399_s7  ;;  %v3493_v20 = vld [vmem:[#allocation2 + $0x2f] sm:$0xff]  ;;  %v9179_v21 = vld [vmem:[#allocation2 + $0x21] sm:$0xff]  ;;  %v9190_v25 = vld [vmem:[#allocation2 + $0x37] sm:$0xff] }
 0x310   :  { %v2339_v22 = vld [vmem:[#allocation2 + $0x27] sm:$0xff]  ;;  %1382 = vst.msk [vmem:[#allocation2 + $0x50] sm:$0xff] %vm312_vm2, %v1318_v18  ;;  %3621 = vrot.lane.b32.xlu0 %v3493_v20, %s8400_s10  ;;  %v9187_v24 = vld [vmem:[#allocation2 + $0x3f] sm:$0xff]  ;;  %v9204_v32 = vld [vmem:[#allocation2 + $0x31] sm:$0xff] }
 0x311   :  { %3236 = vrot.lane.b32.xlu2 %v9179_v21, %s8401_s11  ;;  %1507 = vst.msk [vmem:[#allocation3 + $0x30] sm:$0xff] %vm312_vm2, %v2339_v22  ;;  %v9251_v5 = vld [vmem:[#allocation2 + $0x28] sm:$0xff]  ;;  %v8254_v18 = vld [vmem:[%s8428_s5 + $0xc0] sm:$0xff] }
 0x312   :  { %1510 = vst.msk [vmem:[#allocation3 + $0x60] sm:$0xff] %vm312_vm2, %v9187_v24  ;;  %v3109_v7 = vld [vmem:[#allocation2 + $0x29] sm:$0xff] }
 0x313   :  { %v1167_v27 = vpop.xlane.xlu2 %1166  ;;  %v1149_v26 = vpop.xlane.xlu1 %1148  ;;  %1508 = vst.msk [vmem:[#allocation3 + $0x40] sm:$0xff] %vm312_vm2, %v3493_v20 }
 0x314   :  { %v1327_v29 = vmul.f32 %v8242_v28, %v1167_v27  ;;  %v1321_v33 = vmul.f32 %v8243_v31, %v1149_v26  ;;  %v1152_v30 = vpop.xlane.xlu0 %1151  ;;  %1511 = vst.msk [vmem:[#allocation3 + $0x70] sm:$0xff] %vm312_vm2, %v9185_v23  ;;  %v8255_v27 = vld [vmem:[%s8428_s5 + $0x98] sm:$0xff] }
 0x315   :  { %v1322_v37 = vmul.f32 %v8244_v35, %v1152_v30  ;;  %1509 = vst.msk [vmem:[#allocation3 + $0x50] sm:$0xff] %vm312_vm2, %v9190_v25 }
 0x316   :  { %1391 = vst.msk [vmem:[#allocation2 + $0x98] sm:$0xff] %vm312_vm2, %v1327_v29  ;;  %v9209_v42 = vld [vmem:[#allocation2 + $0x5f] sm:$0xff] }
 0x317   :  { %1385 = vst.msk [vmem:[#allocation2 + $0x68] sm:$0xff] %vm312_vm2, %v1321_v33  ;;  %2470 = vrot.lane.b32.xlu1 %v3493_v20, %s8398_s2  ;;  %v9216_v43 = vld [vmem:[#allocation2 + $0x57] sm:$0xff]  ;;  %v9218_v45 = vld [vmem:[#allocation2 + $0x4f] sm:$0xff] }
 0x318   :  { %1386 = vst.msk [vmem:[#allocation2 + $0x70] sm:$0xff] %vm312_vm2, %v1322_v37  ;;  %4391 = vrot.lane.b32.xlu0 %v9204_v32, %s8393_s28  ;;  %v9298_v29 = vld [vmem:[#allocation2 + $0x39] sm:$0xff]  ;;  %v9302_v31 = vld [vmem:[#allocation2 + $0x50] sm:$0xff] }
 0x319   :  { %4006 = vrot.lane.b32.xlu2 %v9206_v39, %s8399_s7  ;;  %1512 = vst.msk [vmem:[#allocation3 + $0x80] sm:$0xff] %vm312_vm2, %v9218_v45  ;;  %v8256_v37 = vld [vmem:[%s8428_s5 + $0xa0] sm:$0xff] }
 0x31a   :  { %1514 = vst.msk [vmem:[#allocation3 + $0xa0] sm:$0xff] %vm312_vm2, %v9209_v42 }
 0x31b   :  { %v1176_v51 = vpop.xlane.xlu2 %1175  ;;  %v1161_v46 = vpop.xlane.xlu1 %1160  ;;  %1513 = vst.msk [vmem:[#allocation3 + $0x90] sm:$0xff] %vm312_vm2, %v9216_v43 }
 0x31c   :  { %v1330_v49 = vmul.f32 %v8245_v48, %v1176_v51  ;;  %v1325_v36 = vmul.f32 %v8246_v58, %v1161_v46  ;;  %v1155_v52 = vpop.xlane.xlu0 %1154  ;;  %v8257_v58 = vld [vmem:[%s8428_s5 + $0xb0] sm:$0xff] }
 0x31d   :  { %v1323_v59 = vmul.f32 %v8247_v54, %v1155_v52  ;;  %v9335_v52 = vld [vmem:[#allocation2 + $0x49] sm:$0xff] }
 0x31e   :  { %1394 = vst.msk [vmem:[#allocation2 + $0xb0] sm:$0xff] %vm312_vm2, %v1330_v49  ;;  %v9230_v55 = vld [vmem:[#allocation2 + $0x67] sm:$0xff] }
 0x31f   :  { %1389 = vst.msk [vmem:[#allocation2 + $0x88] sm:$0xff] %vm312_vm2, %v1325_v36  ;;  %3240 = vrot.lane.b32.xlu1 %v9204_v32, %s8401_s11  ;;  %v9235_v38 = vld [vmem:[#allocation2 + $0x6f] sm:$0xff] }
 0x320   :  { %1387 = vst.msk [vmem:[#allocation2 + $0x78] sm:$0xff] %vm312_vm2, %v1323_v59  ;;  %2083 = vrot.lane.b32.xlu0 %v1954_v56, %s8396_s17 }
 0x321   :  { %2468 = vrot.lane.b32.xlu2 %v2339_v22, %s8398_s2  ;;  %1515 = vst.msk [vmem:[#allocation3 + $0xb0] sm:$0xff] %vm312_vm2, %v9230_v55 }
 0x322   :  { %1516 = vst.msk [vmem:[#allocation3 + $0xc0] sm:$0xff] %vm312_vm2, %v9235_v38 }
 0x323   :  { %v1185_v60 = vpop.xlane.xlu2 %1184  ;;  %v1164_v41 = vpop.xlane.xlu1 %1163 }
 0x324   :  { %v1333_v62 = vmul.f32 %v8248_v61, %v1185_v60  ;;  %v1326_v63 = vmul.f32 %v8249_v44, %v1164_v41  ;;  %v1158_v1 = vpop.xlane.xlu0 %1157  ;;  %v8258_v60 = vld [vmem:[%s8428_s5 + $0xb8] sm:$0xff] }
 0x325   :  { %v1324_v4 = vmul.f32 %v8250_v3, %v1158_v1  ;;  %v9394_v3 = vld [vmem:[#allocation2 + $0x61] sm:$0xff] }
 0x326   :  { %1397 = vst.msk [vmem:[#allocation2 + $0xc8] sm:$0xff] %vm312_vm2, %v1333_v62 }
 0x327   :  { %1390 = vst.msk [vmem:[#allocation2 + $0x90] sm:$0xff] %vm312_vm2, %v1326_v63  ;;  %4010 = vrot.lane.b32.xlu1 %v9248_v0, %s8399_s7  ;;  %v9255_v8 = vld [vmem:[#allocation2 + $0x77] sm:$0xff] }
 0x328   :  { %1388 = vst.msk [vmem:[#allocation2 + $0x80] sm:$0xff] %vm312_vm2, %v1324_v4  ;;  %2853 = vrot.lane.b32.xlu0 %v9251_v5, %s8397_s1  ;;  %v9388_v63 = vld [vmem:[#allocation2 + $0x51] sm:$0xff]  ;;  %v9398_v4 = vld [vmem:[#allocation2 + $0x60] sm:$0xff] }
 0x329   :  { %3238 = vrot.lane.b32.xlu2 %v3109_v7, %s8401_s11  ;;  %1517 = vst.msk [vmem:[#allocation3 + $0xd0] sm:$0xff] %vm312_vm2, %v9255_v8 }
 0x32b   :  { %v1197_v2 = vpop.xlane.xlu2 %1196  ;;  %v1170_v10 = vpop.xlane.xlu1 %1169 }
 0x32c   :  { %v1337_v11 = vmul.f32 %v8251_v50, %v1197_v2  ;;  %v1328_v12 = vmul.f32 %v8252_v9, %v1170_v10  ;;  %v1173_v13 = vpop.xlane.xlu0 %1172  ;;  %v9414_v10 = vld [vmem:[#allocation2 + $0x58] sm:$0xff] }
 0x32d   :  { %v1329_v40 = vmul.f32 %v8253_v14, %v1173_v13  ;;  %v4712_v13 = vld [vmem:[%s8453_s25] sm:$0xff] }
 0x32e   :  { %1401 = vst.msk [vmem:[#allocation2 + $0xe8] sm:$0xff] %vm312_vm2, %v1337_v11  ;;  %v9267_v15 = vld [vmem:[#allocation2 + $0x8f] sm:$0xff]  ;;  %v9282_v17 = vld [vmem:[#allocation2 + $0x97] sm:$0xff] }
 0x32f   :  { %1392 = vst.msk [vmem:[#allocation2 + $0xa0] sm:$0xff] %vm312_vm2, %v1328_v12  ;;  %2087 = vrot.lane.b32.xlu1 %v3109_v7, %s8396_s17  ;;  %v9278_v16 = vld [vmem:[#allocation2 + $0x7f] sm:$0xff]  ;;  %v9280_v47 = vld [vmem:[#allocation2 + $0x87] sm:$0xff] }
 0x330   :  { %1393 = vst.msk [vmem:[#allocation2 + $0xa8] sm:$0xff] %vm312_vm2, %v1329_v40  ;;  %4395 = vrot.lane.b32.xlu0 %v9270_v57, %s8393_s28 }
 0x331   :  { %3623 = vrot.lane.b32.xlu2 %v9190_v25, %s8400_s10  ;;  %1520 = vst.msk [vmem:[#allocation3 + $0x100] sm:$0xff] %vm312_vm2, %v9267_v15 }
 0x332   :  { %1521 = vst.msk [vmem:[#allocation3 + $0x110] sm:$0xff] %vm312_vm2, %v9282_v17 }
 0x333   :  { %v1194_v6 = vpop.xlane.xlu1 %1193  ;;  %1518 = vst.msk [vmem:[#allocation3 + $0xe0] sm:$0xff] %vm312_vm2, %v9278_v16 }
 0x334   :  { %v1336_v20 = vmul.f32 %v8254_v18, %v1194_v6  ;;  %v1179_v22 = vpop.xlane.xlu0 %1178  ;;  %1519 = vst.msk [vmem:[#allocation3 + $0xf0] sm:$0xff] %vm312_vm2, %v9280_v47 }
 0x335   :  { %v1331_v26 = vmul.f32 %v8255_v27, %v1179_v22 }
 0x336   :  { %1400 = vst.msk [vmem:[#allocation2 + $0xe0] sm:$0xff] %vm312_vm2, %v1336_v20  ;;  %v9295_v28 = vld [vmem:[#allocation2 + $0x9f] sm:$0xff]  ;;  %v9441_v20 = vld [vmem:[#allocation2 + $0x69] sm:$0xff] }
 0x337   :  { %1395 = vst.msk [vmem:[#allocation2 + $0xb8] sm:$0xff] %vm312_vm2, %v1331_v26  ;;  %2857 = vrot.lane.b32.xlu1 %v9174_v19, %s8397_s1  ;;  %v9304_v33 = vld [vmem:[#allocation2 + $0xaf] sm:$0xff]  ;;  %v9310_v30 = vld [vmem:[#allocation2 + $0xa7] sm:$0xff]  ;;  %v9453_v26 = vld [vmem:[#allocation2 + $0x78] sm:$0xff] }
 0x338   :  { %4014 = vrot.lane.b32.xlu0 %v9302_v31, %s8399_s7  ;;  %1522 = vst.msk [vmem:[#allocation3 + $0x120] sm:$0xff] %vm312_vm2, %v9295_v28 }
 0x339   :  { %4393 = vrot.lane.b32.xlu2 %v9298_v29, %s8393_s28  ;;  %1523 = vst.msk [vmem:[#allocation3 + $0x130] sm:$0xff] %vm312_vm2, %v9310_v30 }
 0x33a   :  { %1524 = vst.msk [vmem:[#allocation3 + $0x140] sm:$0xff] %vm312_vm2, %v9304_v33 }
 0x33c   :  { %v1182_v35 = vpop.xlane.xlu0 %1181 }
 0x33d   :  { %v1332_v51 = vmul.f32 %v8256_v37, %v1182_v35  ;;  %v9319_v46 = vld [vmem:[#allocation2 + $0xe7] sm:$0xff] }
 0x33e   :  { %v9321_v48 = vld [vmem:[#allocation2 + $0xb7] sm:$0xff]  ;;  %1531 = vst.msk [vmem:[#allocation3 + $0x1b0] sm:$0xff] %vm312_vm2, %v9319_v46  ;;  %v4713_v37 = vld [vmem:[%s8453_s25 + $0x8] sm:$0xff] }
 0x33f   :  { %1396 = vst.msk [vmem:[#allocation2 + $0xc0] sm:$0xff] %vm312_vm2, %v1332_v51  ;;  %3627 = vrot.lane.b32.xlu1 %v9185_v23, %s8400_s10  ;;  %v9466_v51 = vld [vmem:[#allocation2 + $0x79] sm:$0xff] }
 0x340   :  { %2091 = vrot.lane.b32.xlu0 %v9298_v29, %s8396_s17  ;;  %1525 = vst.msk [vmem:[#allocation3 + $0x150] sm:$0xff] %vm312_vm2, %v9321_v48 }
 0x341   :  { %1700 = vrot.lane.b32.xlu2 %v9163_v53, %s8395_s13  ;;  %v2728_v53 = vld [vmem:[#allocation2 + $0x48] sm:$0xff] }
 0x344   :  { %v1188_v49 = vpop.xlane.xlu0 %1187 }
 0x345   :  { %v1334_v36 = vmul.f32 %v8257_v58, %v1188_v49 }
 0x346   :  { %v9337_v54 = vld [vmem:[#allocation2 + $0xbf] sm:$0xff]  ;;  %v9342_v59 = vld [vmem:[#allocation2 + $0xc7] sm:$0xff] }
 0x347   :  { %1398 = vst.msk [vmem:[#allocation2 + $0xd0] sm:$0xff] %vm312_vm2, %v1334_v36  ;;  %4397 = vrot.lane.b32.xlu1 %v9335_v52, %s8393_s28 }
 0x348   :  { %2861 = vrot.lane.b32.xlu0 %v2728_v53, %s8397_s1  ;;  %1527 = vst.msk [vmem:[#allocation3 + $0x170] sm:$0xff] %vm312_vm2, %v9342_v59 }
 0x349   :  { %2085 = vrot.lane.b32.xlu2 %v9179_v21, %s8396_s17  ;;  %1526 = vst.msk [vmem:[#allocation3 + $0x160] sm:$0xff] %vm312_vm2, %v9337_v54 }
 0x34c   :  { %v1191_v56 = vpop.xlane.xlu0 %1190 }
 0x34d   :  { %v1335_v41 = vmul.f32 %v8258_v60, %v1191_v56 }
 0x34e   :  { %v9352_v61 = vld [vmem:[#allocation2 + $0xcf] sm:$0xff] }
 0x34f   :  { %1399 = vst.msk [vmem:[#allocation2 + $0xd8] sm:$0xff] %vm312_vm2, %v1335_v41  ;;  %2089 = vrot.lane.b32.xlu1 %v9204_v32, %s8396_s17  ;;  %v9377_v32 = vld [vmem:[#allocation2 + $0x59] sm:$0xff] }
 0x350   :  { %3631 = vrot.lane.b32.xlu0 %v9216_v43, %s8400_s10  ;;  %1528 = vst.msk [vmem:[#allocation3 + $0x180] sm:$0xff] %vm312_vm2, %v9352_v61 }
 0x351   :  { %2855 = vrot.lane.b32.xlu2 %v9206_v39, %s8397_s1 }
 0x356   :  { %v9363_v21 = vld [vmem:[#allocation2 + $0xdf] sm:$0xff]  ;;  %v9367_v62 = vld [vmem:[#allocation2 + $0xd7] sm:$0xff] }
 0x357   :  { %2859 = vrot.lane.b32.xlu1 %v9248_v0, %s8397_s1  ;;  %1530 = vst.msk [vmem:[#allocation3 + $0x1a0] sm:$0xff] %vm312_vm2, %v9363_v21 }
 0x358   :  { %1708 = vrot.lane.b32.xlu0 %v9248_v0, %s8395_s13  ;;  %1529 = vst.msk [vmem:[#allocation3 + $0x190] sm:$0xff] %vm312_vm2, %v9367_v62  ;;  %v4841_v0 = vld [vmem:[%s8458_s29 + $0x8] sm:$0x1] }
 0x359   :  { %3625 = vrot.lane.b32.xlu2 %v9187_v24, %s8400_s10  ;;  %8026 = vmatpush.msk.msra.mxu1 %vm505_vm1, %v4841_v0 }
 0x35a   :  { %8143 = vmatpush.msk.msra.mxu2 %vm505_vm1, %v4841_v0  ;;  %vm5671_vm1 = vcmask 31744  }
 0x35f   :  { %4401 = vrot.lane.b32.xlu1 %v9377_v32, %s8393_s28 }
 0x360   :  { %2478 = vrot.lane.b32.xlu0 %v9218_v45, %s8398_s2 }
 0x361   :  { %1702 = vrot.lane.b32.xlu2 %v9251_v5, %s8395_s13  ;;  %v4840_v5 = vld [vmem:[%s8458_s29] sm:$0xff]  ;;  %s8406_s29 = smov 28  }
 0x362   :  { %5057 = vmatpush.msra.mxu1 %v4840_v5  ;;  %8144 = vmatpush.msra.mxu2 %v4840_v5 }
 0x363   :  { %v2467_v44 = vpop.permute.xlu2 %2466 }
 0x364   :  { %2659 = vst.msk [vmem:[#allocation3] sm:$0xff] %vm2658_vm7, %v2467_v44 }
 0x367   :  { %3633 = vrot.lane.b32.xlu1 %v9209_v42, %s8400_s10 }
 0x368   :  { %3248 = vrot.lane.b32.xlu0 %v9388_v63, %s8401_s11 }
 0x369   :  { %2472 = vrot.lane.b32.xlu2 %v9190_v25, %s8398_s2 }
 0x36b   :  { %v3237_v1 = vpop.permute.xlu2 %3236 }
 0x36f   :  { %4403 = vrot.lane.b32.xlu1 %v9394_v3, %s8393_s28 }
 0x370   :  { %4018 = vrot.lane.b32.xlu0 %v9398_v4, %s8399_s7 }
 0x371   :  { %3242 = vrot.lane.b32.xlu2 %v9298_v29, %s8401_s11 }
 0x373   :  { %v4007_v25 = vpop.permute.xlu2 %4006 }
 0x377   :  { %2095 = vrot.lane.b32.xlu1 %v9335_v52, %s8396_s17 }
 0x378   :  { %1710 = vrot.lane.b32.xlu0 %v2728_v53, %s8395_s13 }
 0x379   :  { %4012 = vrot.lane.b32.xlu2 %v2728_v53, %s8399_s7 }
 0x37a   :  { %v2852_v2 = vpop.permute.xlu0 %2851 }
 0x37b   :  { %v2469_v7 = vpop.permute.xlu2 %2468  ;;  %3044 = vst.msk [vmem:[#allocation3] sm:$0xff] %vm3043_vm8, %v2852_v2 }
 0x37c   :  { %3429 = vst.msk [vmem:[#allocation3] sm:$0xff] %vm3428_vm9, %v3237_v1  ;;  %v4714_v1 = vld [vmem:[%s8453_s25 + $0x10] sm:$0xff] }
 0x37f   :  { %2865 = vrot.lane.b32.xlu1 %v9414_v10, %s8397_s1 }
 0x380   :  { %2480 = vrot.lane.b32.xlu0 %v9216_v43, %s8398_s2 }
 0x381   :  { %1704 = vrot.lane.b32.xlu2 %v9206_v39, %s8395_s13  ;;  %v4009_v50 = vpop.permute.xlu1 %4008 }
 0x382   :  { %v3622_v9 = vpop.permute.xlu0 %3621 }
 0x383   :  { %v3239_v11 = vpop.permute.xlu2 %3238  ;;  %3814 = vst.msk [vmem:[#allocation3] sm:$0xff] %vm3813_vm10, %v3622_v9  ;;  %v9522_v9 = vld [vmem:[#allocation2 + $0x81] sm:$0xff] }
 0x384   :  { %4199 = vst.msk [vmem:[#allocation3] sm:$0xff] %vm4198_vm11, %v4007_v25  ;;  %v9501_v25 = vld [vmem:[#allocation2 + $0x71] sm:$0xff] }
 0x387   :  { %3637 = vrot.lane.b32.xlu1 %v9235_v38, %s8400_s10 }
 0x388   :  { %3250 = vrot.lane.b32.xlu0 %v9377_v32, %s8401_s11 }
 0x389   :  { %2474 = vrot.lane.b32.xlu2 %v9187_v24, %s8398_s2  ;;  %v2471_v39 = vpop.permute.xlu1 %2470 }
 0x38a   :  { %v4392_v12 = vpop.permute.xlu0 %4391 }
 0x38b   :  { %v3624_v43 = vpop.permute.xlu2 %3623  ;;  %4584 = vst.msk [vmem:[#allocation3] sm:$0xff] %vm4583_vm12, %v4392_v12 }
 0x38f   :  { %2484 = vrot.lane.b32.xlu1 %v9230_v55, %s8398_s2 }
 0x390   :  { %3635 = vrot.lane.b32.xlu0 %v9230_v55, %s8400_s10 }
 0x391   :  { %3244 = vrot.lane.b32.xlu2 %v9270_v57, %s8401_s11  ;;  %v3241_v24 = vpop.permute.xlu1 %3240 }
 0x392   :  { %v2084_v40 = vpop.permute.xlu0 %2083  ;;  %v4648_v6 = vld [vmem:[#allocation3] sm:$0xff] }
 0x393   :  { %v4394_v14 = vpop.permute.xlu2 %4393  ;;  %2275 = vst.msk [vmem:[#allocation3 + $0x10] sm:$0xff] %vm2273_vm6, %v2084_v40  ;;  %v4776_v18 = vmul.f32 %v4712_v13, %v4648_v6  ;;  %v9538_v13 = vld [vmem:[#allocation2 + $0x68] sm:$0xff] }
 0x394   :  { %2660 = vst.msk [vmem:[#allocation3 + $0x10] sm:$0xff] %vm2658_vm7, %v2469_v7  ;;  %v2733_v7 = vld [vmem:[#allocation2 + $0x70] sm:$0xff] }
 0x395   :  { %8027 = vmatmul.msk.f32.vlgmr.msra.gmra.mxu1 %vm4846_vm13, %v4776_v18 }
 0x397   :  { %3254 = vrot.lane.b32.xlu1 %v9441_v20, %s8401_s11 }
 0x398   :  { %4405 = vrot.lane.b32.xlu0 %v9441_v20, %s8393_s28 }
 0x399   :  { %3629 = vrot.lane.b32.xlu2 %v9218_v45, %s8400_s10  ;;  %v4011_v55 = vpop.permute.xlu1 %4010 }
 0x39a   :  { %v2854_v27 = vpop.permute.xlu0 %2853 }
 0x39b   :  { %v1701_v22 = vpop.permute.xlu2 %1700  ;;  %3045 = vst.msk [vmem:[#allocation3 + $0x10] sm:$0xff] %vm3043_vm8, %v2854_v27 }
 0x39c   :  { %1891 = vst.msk [vmem:[#allocation3 + $0x20] sm:$0xff] %vm1888_vm5, %v1701_v22 }
 0x39d   :  { %3430 = vst.msk [vmem:[#allocation3 + $0x10] sm:$0xff] %vm3428_vm9, %v3239_v11 }
 0x39e   :  { %3815 = vst.msk [vmem:[#allocation3 + $0x10] sm:$0xff] %vm3813_vm10, %v3624_v43 }
 0x39f   :  { %4200 = vst.msk [vmem:[#allocation3 + $0x10] sm:$0xff] %vm4198_vm11, %v4009_v50  ;;  %4024 = vrot.lane.b32.xlu1 %v9453_v26, %s8399_s7 }
 0x3a0   :  { %4585 = vst.msk [vmem:[#allocation3 + $0x10] sm:$0xff] %vm4583_vm12, %v4394_v14  ;;  %1712 = vrot.lane.b32.xlu0 %v9302_v31, %s8395_s13 }
 0x3a1   :  { %4399 = vrot.lane.b32.xlu2 %v9388_v63, %s8393_s28  ;;  %v2088_v45 = vpop.permute.xlu1 %2087 }
 0x3a2   :  { %v4396_v35 = vpop.permute.xlu0 %4395 }
 0x3a3   :  { %v2086_v29 = vpop.permute.xlu2 %2085 }
 0x3a4   :  { %2276 = vst.msk [vmem:[#allocation3 + $0x20] sm:$0xff] %vm2273_vm6, %v2086_v29 }
 0x3a5   :  { %2661 = vst.msk [vmem:[#allocation3 + $0x20] sm:$0xff] %vm2658_vm7, %v2471_v39  ;;  %v9524_v39 = vld [vmem:[#allocation2 + $0x89] sm:$0xff] }
 0x3a7   :  { %4409 = vrot.lane.b32.xlu1 %v9466_v51, %s8393_s28  ;;  %v4649_v49 = vld [vmem:[#allocation3 + $0x10] sm:$0xff] }
 0x3a8   :  { %2097 = vrot.lane.b32.xlu0 %v9388_v63, %s8396_s17  ;;  %v4777_v58 = vmul.f32 %v4713_v37, %v4649_v49 }
 0x3a9   :  { %1706 = vrot.lane.b32.xlu2 %v9174_v19, %s8395_s13  ;;  %v2858_v36 = vpop.permute.xlu1 %2857 }
 0x3aa   :  { %8028 = vmatmul.msk.f32.gmra.mxu1 %vm4846_vm13, %v4777_v58  ;;  %v9475_v56 = vpop.permute.xlu0 %4014  ;;  %v9590_v58 = vld [vmem:[#allocation2 + $0xa1] sm:$0xff] }
 0x3ab   :  { %v2856_v53 = vpop.permute.xlu2 %2855 }
 0x3ac   :  { %3046 = vst.msk [vmem:[#allocation3 + $0x20] sm:$0xff] %vm3043_vm8, %v2856_v53 }
 0x3ad   :  { %3431 = vst.msk [vmem:[#allocation3 + $0x20] sm:$0xff] %vm3428_vm9, %v3241_v24  ;;  %v4715_v24 = vld [vmem:[%s8453_s25 + $0x18] sm:$0xff] }
 0x3af   :  { %1716 = vrot.lane.b32.xlu1 %v9398_v4, %s8395_s13 }
 0x3b0   :  { %2867 = vrot.lane.b32.xlu0 %v9398_v4, %s8397_s1 }
 0x3b1   :  { %2476 = vrot.lane.b32.xlu2 %v9185_v23, %s8398_s2  ;;  %v3628_v19 = vpop.permute.xlu1 %3627 }
 0x3b2   :  { %v9485_v41 = vpop.permute.xlu0 %2091 }
 0x3b3   :  { %v3626_v60 = vpop.permute.xlu2 %3625 }
 0x3b4   :  { %3816 = vst.msk [vmem:[#allocation3 + $0x20] sm:$0xff] %vm3813_vm10, %v3626_v60  ;;  %v4716_v60 = vld [vmem:[%s8453_s25 + $0x20] sm:$0xff] }
 0x3b5   :  { %4201 = vst.msk [vmem:[#allocation3 + $0x20] sm:$0xff] %vm4198_vm11, %v4011_v55  ;;  %v9554_v55 = vld [vmem:[#allocation2 + $0x91] sm:$0xff] }
 0x3b6   :  { %4586 = vst.msk [vmem:[#allocation3 + $0x20] sm:$0xff] %vm4583_vm12, %v4396_v35  ;;  %v9579_v35 = vld [vmem:[#allocation2 + $0x88] sm:$0xff] }
 0x3b7   :  { %2486 = vrot.lane.b32.xlu1 %v9235_v38, %s8398_s2 }
 0x3b8   :  { %3639 = vrot.lane.b32.xlu0 %v9255_v8, %s8400_s10 }
 0x3b9   :  { %3246 = vrot.lane.b32.xlu2 %v9335_v52, %s8401_s11  ;;  %v4398_v23 = vpop.permute.xlu1 %4397 }
 0x3ba   :  { %v9496_v63 = vpop.permute.xlu0 %2861 }
 0x3bb   :  { %v1703_v44 = vpop.permute.xlu2 %1702 }
 0x3bc   :  { %1892 = vst.msk [vmem:[#allocation3 + $0x30] sm:$0xff] %vm1888_vm5, %v1703_v44 }
 0x3bd   :  { %2277 = vst.msk [vmem:[#allocation3 + $0x30] sm:$0xff] %vm2273_vm6, %v2088_v45  ;;  %v4650_v4 = vld [vmem:[#allocation3 + $0x20] sm:$0xff] }
 0x3be   :  { %v4778_v0 = vmul.f32 %v4714_v1, %v4650_v4 }
 0x3bf   :  { %3256 = vrot.lane.b32.xlu1 %v9501_v25, %s8401_s11 }
 0x3c0   :  { %8029 = vmatmul.msk.f32.gmra.mxu1 %vm4846_vm13, %v4778_v0  ;;  %2101 = vrot.lane.b32.xlu0 %v9394_v3, %s8396_s17 }
 0x3c1   :  { %4016 = vrot.lane.b32.xlu2 %v9414_v10, %s8399_s7  ;;  %v2090_v38 = vpop.permute.xlu1 %2089 }
 0x3c2   :  { %v9510_v5 = vpop.permute.xlu0 %3631 }
 0x3c3   :  { %v2473_v52 = vpop.permute.xlu2 %2472 }
 0x3c4   :  { %2662 = vst.msk [vmem:[#allocation3 + $0x30] sm:$0xff] %vm2658_vm7, %v2473_v52 }
 0x3c5   :  { %3047 = vst.msk [vmem:[#allocation3 + $0x30] sm:$0xff] %vm3043_vm8, %v2858_v36 }
 0x3c7   :  { %3641 = vrot.lane.b32.xlu1 %v9278_v16, %s8400_s10 }
 0x3c8   :  { %2871 = vrot.lane.b32.xlu0 %v2733_v7, %s8397_s1 }
 0x3c9   :  { %2093 = vrot.lane.b32.xlu2 %v9270_v57, %s8396_s17  ;;  %v2860_v2 = vpop.permute.xlu1 %2859 }
 0x3ca   :  { %v1709_v11 = vpop.permute.xlu0 %1708 }
 0x3cb   :  { %v3243_v50 = vpop.permute.xlu2 %3242  ;;  %1895 = vst.msk [vmem:[#allocation3 + $0x60] sm:$0xff] %vm1888_vm5, %v1709_v11 }
 0x3cc   :  { %3432 = vst.msk [vmem:[#allocation3 + $0x30] sm:$0xff] %vm3428_vm9, %v3243_v50 }
 0x3cd   :  { %3817 = vst.msk [vmem:[#allocation3 + $0x30] sm:$0xff] %vm3813_vm10, %v3628_v19 }
 0x3cf   :  { %4411 = vrot.lane.b32.xlu1 %v9522_v9, %s8393_s28 }
 0x3d0   :  { %4413 = vrot.lane.b32.xlu0 %v9524_v39, %s8393_s28 }
 0x3d1   :  { %2863 = vrot.lane.b32.xlu2 %v9302_v31, %s8397_s1  ;;  %v9532_v57 = vpop.permute.xlu1 %4401 }
 0x3d2   :  { %v9534_v12 = vpop.permute.xlu0 %2478 }
 0x3d3   :  { %v4013_v43 = vpop.permute.xlu2 %4012 }
 0x3d4   :  { %4202 = vst.msk [vmem:[#allocation3 + $0x30] sm:$0xff] %vm4198_vm11, %v4013_v43 }
 0x3d5   :  { %4587 = vst.msk [vmem:[#allocation3 + $0x30] sm:$0xff] %vm4583_vm12, %v4398_v23 }
 0x3d7   :  { %1718 = vrot.lane.b32.xlu1 %v9538_v13, %s8395_s13 }
 0x3d8   :  { %3645 = vrot.lane.b32.xlu0 %v9267_v15, %s8400_s10 }
 0x3d9   :  { %4020 = vrot.lane.b32.xlu2 %v9538_v13, %s8399_s7  ;;  %v9546_v31 = vpop.permute.xlu1 %3633 }
 0x3da   :  { %v9549_v40 = vpop.permute.xlu0 %3248 }
 0x3db   :  { %v1705_v14 = vpop.permute.xlu2 %1704 }
 0x3dc   :  { %1893 = vst.msk [vmem:[#allocation3 + $0x40] sm:$0xff] %vm1888_vm5, %v1705_v14  ;;  %v4651_v6 = vld [vmem:[#allocation3 + $0x30] sm:$0xff] }
 0x3dd   :  { %2278 = vst.msk [vmem:[#allocation3 + $0x40] sm:$0xff] %vm2273_vm6, %v2090_v38  ;;  %v4779_v18 = vmul.f32 %v4715_v24, %v4651_v6  ;;  %v8402_v24 = vmov -3e+38  }
 0x3df   :  { %8030 = vmatmul.msk.f32.gmra.mxu1 %vm4846_vm13, %v4779_v18  ;;  %2103 = vrot.lane.b32.xlu1 %v9441_v20, %s8396_s17  ;;  %v9656_v18 = vld [vmem:[#allocation2 + $0x80] sm:$0xff] }
 0x3e0   :  { %4415 = vrot.lane.b32.xlu0 %v9554_v55, %s8393_s28 }
 0x3e1   :  { %2482 = vrot.lane.b32.xlu2 %v9209_v42, %s8398_s2  ;;  %v9562_v22 = vpop.permute.xlu1 %4403 }
 0x3e2   :  { %v9564_v45 = vpop.permute.xlu0 %4018 }
 0x3e3   :  { %v2475_v27 = vpop.permute.xlu2 %2474 }
 0x3e4   :  { %2663 = vst.msk [vmem:[#allocation3 + $0x40] sm:$0xff] %vm2658_vm7, %v2475_v27 }
 0x3e5   :  { %3048 = vst.msk [vmem:[#allocation3 + $0x40] sm:$0xff] %vm3043_vm8, %v2860_v2  ;;  %v9633_v2 = vld [vmem:[#allocation2 + $0x90] sm:$0xff] }
 0x3e7   :  { %2873 = vrot.lane.b32.xlu1 %v9453_v26, %s8397_s1 }
 0x3e8   :  { %2107 = vrot.lane.b32.xlu0 %v9466_v51, %s8396_s17 }
 0x3e9   :  { %3252 = vrot.lane.b32.xlu2 %v9394_v3, %s8401_s11  ;;  %v2096_v42 = vpop.permute.xlu1 %2095 }
 0x3ea   :  { %v1711_v29 = vpop.permute.xlu0 %1710 }
 0x3eb   :  { %v3245_v20 = vpop.permute.xlu2 %3244  ;;  %1896 = vst.msk [vmem:[#allocation3 + $0x70] sm:$0xff] %vm1888_vm5, %v1711_v29 }
 0x3ec   :  { %3433 = vst.msk [vmem:[#allocation3 + $0x40] sm:$0xff] %vm3428_vm9, %v3245_v20  ;;  %v4717_v20 = vld [vmem:[%s8453_s25 + $0x28] sm:$0xff] }
 0x3ed   :  { %2281 = vst.msk [vmem:[#allocation3 + $0x70] sm:$0xff] %vm2273_vm6, %v2096_v42 }
 0x3ef   :  { %3643 = vrot.lane.b32.xlu1 %v9280_v47, %s8400_s10 }
 0x3f0   :  { %2877 = vrot.lane.b32.xlu0 %v9579_v35, %s8397_s1 }
 0x3f1   :  { %4022 = vrot.lane.b32.xlu2 %v2733_v7, %s8399_s7  ;;  %v2866_v3 = vpop.permute.xlu1 %2865 }
 0x3f2   :  { %v2481_v49 = vpop.permute.xlu0 %2480 }
 0x3f3   :  { %v3630_v37 = vpop.permute.xlu2 %3629  ;;  %2666 = vst.msk [vmem:[#allocation3 + $0x70] sm:$0xff] %vm2658_vm7, %v2481_v49 }
 0x3f4   :  { %3818 = vst.msk [vmem:[#allocation3 + $0x40] sm:$0xff] %vm3813_vm10, %v3630_v37 }
 0x3f5   :  { %4203 = vst.msk [vmem:[#allocation3 + $0x40] sm:$0xff] %vm4198_vm11, %v9475_v56  ;;  %v9602_v56 = vld [vmem:[#allocation2 + $0x99] sm:$0xff] }
 0x3f6   :  { %3051 = vst.msk [vmem:[#allocation3 + $0x70] sm:$0xff] %vm3043_vm8, %v2866_v3 }
 0x3f7   :  { %1720 = vrot.lane.b32.xlu1 %v2733_v7, %s8395_s13 }
 0x3f8   :  { %4419 = vrot.lane.b32.xlu0 %v9590_v58, %s8393_s28 }
 0x3f9   :  { %4407 = vrot.lane.b32.xlu2 %v9501_v25, %s8393_s28  ;;  %v9596_v36 = vpop.permute.xlu1 %3637 }
 0x3fa   :  { %v3251_v19 = vpop.permute.xlu0 %3250 }
 0x3fb   :  { %v4400_v53 = vpop.permute.xlu2 %4399  ;;  %3436 = vst.msk [vmem:[#allocation3 + $0x70] sm:$0xff] %vm3428_vm9, %v3251_v19 }
 0x3fc   :  { %4588 = vst.msk [vmem:[#allocation3 + $0x40] sm:$0xff] %vm4583_vm12, %v4400_v53 }
 0x3ff   :  { %2490 = vrot.lane.b32.xlu1 %v9278_v16, %s8398_s2  ;;  %v9618_v16 = vld [vmem:[#allocation2 + $0xa8] sm:$0xff] }
 0x400   :  { %3266 = vrot.lane.b32.xlu0 %v9602_v56, %s8401_s11 }
 0x401   :  { %1714 = vrot.lane.b32.xlu2 %v9414_v10, %s8395_s13  ;;  %v9609_v23 = vpop.permute.xlu1 %2484  ;;  %v5251_v10 = vlaneseq }
 0x402   :  { %v3636_v1 = vpop.permute.xlu0 %3635 }
 0x403   :  { %v1707_v44 = vpop.permute.xlu2 %1706  ;;  %v4652_v4 = vld [vmem:[#allocation3 + $0x40] sm:$0xff]  ;;  %3821 = vst.msk [vmem:[#allocation3 + $0x70] sm:$0xff] %vm3813_vm10, %v3636_v1  ;;  %v9631_v7 = vand.u32 127, %v5251_v10 }
 0x404   :  { %1894 = vst.msk [vmem:[#allocation3 + $0x50] sm:$0xff] %vm1888_vm5, %v1707_v44  ;;  %v4780_v0 = vmul.f32 %v4716_v60, %v4652_v4 }
 0x405   :  { %2279 = vst.msk [vmem:[#allocation3 + $0x50] sm:$0xff] %vm2273_vm6, %v9485_v41  ;;  %vm5253_vm14 = vcmp.lt.s32.totalorder %v9631_v7, 4 }
 0x406   :  { %8031 = vmatmul.msk.f32.gmra.mxu1 %vm4846_vm13, %v4780_v0  ;;  %v9649_v14 = vsel %vm5253_vm14, 0.0, %v8402_v24  ;;  %vm7191_vm14 = vcmask 130112  }
 0x407   :  { %3260 = vrot.lane.b32.xlu1 %v9522_v9, %s8401_s11 }
 0x408   :  { %4036 = vrot.lane.b32.xlu0 %v9618_v16, %s8399_s7 }
 0x409   :  { %2099 = vrot.lane.b32.xlu2 %v9377_v32, %s8396_s17  ;;  %v9624_v38 = vpop.permute.xlu1 %3254  ;;  %v9642_v32 = vld [vmem:[%s8463_s3] ss:$0 sm:$0xff] }
 0x40a   :  { %v9626_v52 = vpop.permute.xlu0 %4405 }
 0x40b   :  { %v2477_v41 = vpop.permute.xlu2 %2476 }
 0x40c   :  { %2664 = vst.msk [vmem:[#allocation3 + $0x50] sm:$0xff] %vm2658_vm7, %v2477_v41 }
 0x40d   :  { %3049 = vst.msk [vmem:[#allocation3 + $0x50] sm:$0xff] %vm3043_vm8, %v9496_v63 }
 0x40f   :  { %4030 = vrot.lane.b32.xlu1 %v9633_v2, %s8399_s7 }
 0x410   :  { %1728 = vrot.lane.b32.xlu0 %v9633_v2, %s8395_s13 }
 0x411   :  { %2869 = vrot.lane.b32.xlu2 %v9538_v13, %s8397_s1  ;;  %v9645_v50 = vpop.permute.xlu1 %4024 }
 0x412   :  { %v1713_v11 = vpop.permute.xlu0 %1712  ;;  %v5059_v43 = vpop.f32.mrf.mxu1 }
 0x413   :  { %v3247_v63 = vpop.permute.xlu2 %3246  ;;  %v5060_v13 = vadd.f32 %v9642_v32, %v5059_v43  ;;  %1897 = vst.msk [vmem:[#allocation3 + $0x80] sm:$0xff] %vm1888_vm5, %v1713_v11 }
 0x414   :  { %3434 = vst.msk [vmem:[#allocation3 + $0x50] sm:$0xff] %vm3428_vm9, %v3247_v63 }
 0x415   :  { %3819 = vst.msk [vmem:[#allocation3 + $0x50] sm:$0xff] %vm3813_vm10, %v9510_v5  ;;  %v5255_v6 = vmax.f32 %v5060_v13, %v9649_v14 }
 0x417   :  { %1722 = vrot.lane.b32.xlu1 %v9453_v26, %s8395_s13  ;;  %5319 = vst.msk [vmem:[#allocation4] sm:$0xff] %vm846_vm3, %v5255_v6 }
 0x418   :  { %2498 = vrot.lane.b32.xlu0 %v9295_v28, %s8398_s2 }
 0x419   :  { %4026 = vrot.lane.b32.xlu2 %v9656_v18, %s8399_s7  ;;  %v9665_v5 = vpop.permute.xlu1 %4409 }
 0x41a   :  { %v2098_v42 = vpop.permute.xlu0 %2097 }
 0x41b   :  { %v4017_v27 = vpop.permute.xlu2 %4016  ;;  %2282 = vst.msk [vmem:[#allocation3 + $0x80] sm:$0xff] %vm2273_vm6, %v2098_v42 }
 0x41c   :  { %4204 = vst.msk [vmem:[#allocation3 + $0x50] sm:$0xff] %vm4198_vm11, %v4017_v27 }
 0x41d   :  { %4589 = vst.msk [vmem:[#allocation3 + $0x50] sm:$0xff] %vm4583_vm12, %v9532_v57 }
 0x41f   :  { %2492 = vrot.lane.b32.xlu1 %v9280_v47, %s8398_s2 }
 0x420   :  { %3268 = vrot.lane.b32.xlu0 %v9590_v58, %s8401_s11 }
 0x421   :  { %2488 = vrot.lane.b32.xlu2 %v9255_v8, %s8398_s2  ;;  %v1717_v26 = vpop.permute.xlu1 %1716 }
 0x422   :  { %1899 = vst.msk [vmem:[#allocation3 + $0xa0] sm:$0xff] %vm1888_vm5, %v1717_v26  ;;  %v2868_v3 = vpop.permute.xlu0 %2867 }
 0x423   :  { %v2094_v29 = vpop.permute.xlu2 %2093 }
 0x424   :  { %2280 = vst.msk [vmem:[#allocation3 + $0x60] sm:$0xff] %vm2273_vm6, %v2094_v29  ;;  %v4653_v57 = vld [vmem:[#allocation3 + $0x50] sm:$0xff] }
 0x425   :  { %2665 = vst.msk [vmem:[#allocation3 + $0x60] sm:$0xff] %vm2658_vm7, %v9534_v12  ;;  %v4781_v37 = vmul.f32 %v4717_v20, %v4653_v57  ;;  %v9772_v57 = vld [vmem:[#allocation2 + $0xb8] sm:$0xff] }
 0x427   :  { %8032 = vmatmul.msk.f32.gmra.mxu1 %vm4846_vm13, %v4781_v37  ;;  %v5062_v47 = vpop.f32.mrf.mxu1  ;;  %3262 = vrot.lane.b32.xlu1 %v9524_v39, %s8401_s11 }
 0x428   :  { %v5063_v8 = vadd.f32 %v9642_v32, %v5062_v47  ;;  %3653 = vrot.lane.b32.xlu0 %v9304_v33, %s8400_s10 }
 0x429   :  { %3258 = vrot.lane.b32.xlu2 %v9466_v51, %s8401_s11  ;;  %v2487_v49 = vpop.permute.xlu1 %2486  ;;  %v9703_v51 = vld [vmem:[#allocation2 + $0xb1] sm:$0xff] }
 0x42a   :  { %v5256_v53 = vmax.f32 %v5063_v8, %v9649_v14  ;;  %v9691_v12 = vpop.permute.xlu0 %3639 }
 0x42b   :  { %v2864_v19 = vpop.permute.xlu2 %2863 }
 0x42c   :  { %3050 = vst.msk [vmem:[#allocation3 + $0x60] sm:$0xff] %vm3043_vm8, %v2864_v19 }
 0x42d   :  { %5320 = vst.msk [vmem:[#allocation4 + $0x8] sm:$0xff] %vm846_vm3, %v5256_v53 }
 0x42e   :  { %3435 = vst.msk [vmem:[#allocation3 + $0x60] sm:$0xff] %vm3428_vm9, %v9549_v40 }
 0x42f   :  { %3820 = vst.msk [vmem:[#allocation3 + $0x60] sm:$0xff] %vm3813_vm10, %v9546_v31  ;;  %3647 = vrot.lane.b32.xlu1 %v9282_v17, %s8400_s10 }
 0x430   :  { %4205 = vst.msk [vmem:[#allocation3 + $0x60] sm:$0xff] %vm4198_vm11, %v9564_v45  ;;  %4423 = vrot.lane.b32.xlu0 %v9703_v51, %s8393_s28  ;;  %v4718_v45 = vld [vmem:[%s8453_s25 + $0x30] sm:$0xff] }
 0x431   :  { %4590 = vst.msk [vmem:[#allocation3 + $0x60] sm:$0xff] %vm4583_vm12, %v9562_v22  ;;  %4028 = vrot.lane.b32.xlu2 %v9579_v35, %s8399_s7  ;;  %v3257_v40 = vpop.permute.xlu1 %3256  ;;  %v9719_v22 = vld [vmem:[#allocation2 + $0x98] sm:$0xff] }
 0x432   :  { %v2102_v31 = vpop.permute.xlu0 %2101 }
 0x433   :  { %v4021_v60 = vpop.permute.xlu2 %4020  ;;  %2284 = vst.msk [vmem:[#allocation3 + $0xa0] sm:$0xff] %vm2273_vm6, %v2102_v31 }
 0x434   :  { %4206 = vst.msk [vmem:[#allocation3 + $0x70] sm:$0xff] %vm4198_vm11, %v4021_v60  ;;  %v9789_v60 = vld [vmem:[#allocation2 + $0xb9] sm:$0xff] }
 0x435   :  { %4591 = vst.msk [vmem:[#allocation3 + $0x70] sm:$0xff] %vm4583_vm12, %v9626_v52 }
 0x436   :  { %2669 = vst.msk [vmem:[#allocation3 + $0xa0] sm:$0xff] %vm2658_vm7, %v2487_v49 }
 0x437   :  { %4417 = vrot.lane.b32.xlu1 %v9602_v56, %s8393_s28 }
 0x438   :  { %v4654_v44 = vld [vmem:[#allocation3 + $0x60] sm:$0xff]  ;;  %1730 = vrot.lane.b32.xlu0 %v9719_v22, %s8395_s13 }
 0x439   :  { %2105 = vrot.lane.b32.xlu2 %v9501_v25, %s8396_s17  ;;  %v4782_v1 = vmul.f32 %v4718_v45, %v4654_v44  ;;  %v3642_v4 = vpop.permute.xlu1 %3641  ;;  %v4719_v25 = vld [vmem:[%s8453_s25 + $0x38] sm:$0xff] }
 0x43a   :  { %v2872_v10 = vpop.permute.xlu0 %2871 }
 0x43b   :  { %8033 = vmatmul.msk.f32.gmra.mxu1 %vm4846_vm13, %v4782_v1  ;;  %v2483_v0 = vpop.permute.xlu2 %2482  ;;  %3054 = vst.msk [vmem:[#allocation3 + $0xa0] sm:$0xff] %vm3043_vm8, %v2872_v10 }
 0x43c   :  { %2667 = vst.msk [vmem:[#allocation3 + $0x80] sm:$0xff] %vm2658_vm7, %v2483_v0  ;;  %v4655_v63 = vld [vmem:[#allocation3 + $0x70] sm:$0xff] }
 0x43d   :  { %3052 = vst.msk [vmem:[#allocation3 + $0x80] sm:$0xff] %vm3043_vm8, %v2868_v3  ;;  %v5065_v41 = vpop.f32.mrf.mxu1  ;;  %v4783_v43 = vmul.f32 %v4719_v25, %v4655_v63  ;;  %v4722_v25 = vld [vmem:[%s8453_s25 + $0x50] sm:$0xff] }
 0x43e   :  { %v5066_v52 = vadd.f32 %v9642_v32, %v5065_v41  ;;  %3439 = vst.msk [vmem:[#allocation3 + $0xa0] sm:$0xff] %vm3428_vm9, %v3257_v40  ;;  %v9785_v40 = vld [vmem:[#allocation2 + $0xa0] sm:$0xff] }
 0x43f   :  { %3824 = vst.msk [vmem:[#allocation3 + $0xa0] sm:$0xff] %vm3813_vm10, %v3642_v4  ;;  %1724 = vrot.lane.b32.xlu1 %v9656_v18, %s8395_s13 }
 0x440   :  { %v5257_v11 = vmax.f32 %v5066_v52, %v9649_v14  ;;  %2115 = vrot.lane.b32.xlu0 %v9602_v56, %s8396_s17 }
 0x441   :  { %2875 = vrot.lane.b32.xlu2 %v9656_v18, %s8397_s1  ;;  %v9741_v13 = vpop.permute.xlu1 %4411  ;;  %v5383_v18 = vld [vmem:[#allocation4] sm:$0xff] }
 0x442   :  { %5321 = vst.msk [vmem:[#allocation4 + $0x10] sm:$0xff] %vm846_vm3, %v5257_v11  ;;  %v9744_v27 = vpop.permute.xlu0 %4413  ;;  %v9846_v11 = vld [vmem:[#allocation2 + $0xa9] sm:$0xff] }
 0x443   :  { %8034 = vmatmul.msk.f32.gmra.mxu1 %vm4846_vm13, %v4783_v43  ;;  %v3253_v6 = vpop.permute.xlu2 %3252 }
 0x444   :  { %3437 = vst.msk [vmem:[#allocation3 + $0x80] sm:$0xff] %vm3428_vm9, %v3253_v6 }
 0x445   :  { %3822 = vst.msk [vmem:[#allocation3 + $0x80] sm:$0xff] %vm3813_vm10, %v9596_v36 }
 0x447   :  { %2109 = vrot.lane.b32.xlu1 %v9522_v9, %s8396_s17 }
 0x448   :  { %2885 = vrot.lane.b32.xlu0 %v9618_v16, %s8397_s1 }
 0x449   :  { %v5385_v56 = vld [vmem:[#allocation4 + $0x10] sm:$0xff]  ;;  %4032 = vrot.lane.b32.xlu2 %v9719_v22, %s8399_s7  ;;  %v1719_v26 = vpop.permute.xlu1 %1718 }
 0x44a   :  { %v5387_v42 = vmax.f32 %v5383_v18, %v5385_v56  ;;  %1900 = vst.msk [vmem:[#allocation3 + $0xb0] sm:$0xff] %vm1888_vm5, %v1719_v26  ;;  %v9756_v29 = vpop.permute.xlu0 %3645 }
 0x44b   :  { %v4023_v20 = vpop.permute.xlu2 %4022 }
 0x44c   :  { %5389 = vst.msk [vmem:[#allocation5] sm:$0xff] %vm846_vm3, %v5387_v42 }
 0x44d   :  { %4207 = vst.msk [vmem:[#allocation3 + $0x80] sm:$0xff] %vm4198_vm11, %v4023_v20 }
 0x44f   :  { %2879 = vrot.lane.b32.xlu1 %v9633_v2, %s8397_s1 }
 0x450   :  { %3655 = vrot.lane.b32.xlu0 %v9321_v48, %s8400_s10 }
 0x451   :  { %2494 = vrot.lane.b32.xlu2 %v9267_v15, %s8398_s2  ;;  %v2104_v9 = vpop.permute.xlu1 %2103  ;;  %v4720_v15 = vld [vmem:[%s8453_s25 + $0x40] sm:$0xff] }
 0x452   :  { %2285 = vst.msk [vmem:[#allocation3 + $0xb0] sm:$0xff] %vm2273_vm6, %v2104_v9  ;;  %v9767_v3 = vpop.permute.xlu0 %4415 }
 0x453   :  { %v4408_v36 = vpop.permute.xlu2 %4407 }
 0x454   :  { %4592 = vst.msk [vmem:[#allocation3 + $0x80] sm:$0xff] %vm4583_vm12, %v4408_v36 }
 0x457   :  { %3649 = vrot.lane.b32.xlu1 %v9295_v28, %s8400_s10 }
 0x458   :  { %4040 = vrot.lane.b32.xlu0 %v9772_v57, %s8399_s7 }
 0x459   :  { %3264 = vrot.lane.b32.xlu2 %v9554_v55, %s8401_s11  ;;  %v2874_v2 = vpop.permute.xlu1 %2873 }
 0x45a   :  { %v9779_v47 = vpop.permute.xlu0 %2107 }
 0x45b   :  { %v1715_v37 = vpop.permute.xlu2 %1714  ;;  %v4656_v8 = vld [vmem:[#allocation3 + $0x80] sm:$0xff] }
 0x45c   :  { %1898 = vst.msk [vmem:[#allocation3 + $0x90] sm:$0xff] %vm1888_vm5, %v1715_v37  ;;  %v5068_v49 = vpop.f32.mrf.mxu1  ;;  %v4784_v53 = vmul.f32 %v4720_v15, %v4656_v8 }
 0x45d   :  { %v5069_v28 = vadd.f32 %v9642_v32, %v5068_v49 }
 0x45e   :  { %8035 = vmatmul.msk.f32.gmra.mxu1 %vm4846_vm13, %v4784_v53 }
 0x45f   :  { %v5258_v19 = vmax.f32 %v5069_v28, %v9649_v14  ;;  %1726 = vrot.lane.b32.xlu1 %v9579_v35, %s8395_s13  ;;  %v5384_v35 = vld [vmem:[#allocation4 + $0x8] sm:$0xff] }
 0x460   :  { %4425 = vrot.lane.b32.xlu0 %v9789_v60, %s8393_s28 }
 0x461   :  { %5322 = vst.msk [vmem:[#allocation4 + $0x18] sm:$0xff] %vm846_vm3, %v5258_v19  ;;  %4034 = vrot.lane.b32.xlu2 %v9785_v40, %s8399_s7  ;;  %v3644_v31 = vpop.permute.xlu1 %3643 }
 0x462   :  { %v9796_v44 = vpop.permute.xlu0 %2877 }
 0x463   :  { %v2100_v45 = vpop.permute.xlu2 %2099 }
 0x464   :  { %2283 = vst.msk [vmem:[#allocation3 + $0x90] sm:$0xff] %vm2273_vm6, %v2100_v45 }
 0x465   :  { %2668 = vst.msk [vmem:[#allocation3 + $0x90] sm:$0xff] %vm2658_vm7, %v9609_v23 }
 0x467   :  { %2496 = vrot.lane.b32.xlu1 %v9282_v17, %s8398_s2  ;;  %v9817_v17 = vld [vmem:[#allocation2 + $0xb0] sm:$0xff] }
 0x468   :  { %v5386_v1 = vld [vmem:[#allocation4 + $0x18] sm:$0xff]  ;;  %2117 = vrot.lane.b32.xlu0 %v9590_v58, %s8396_s17 }
 0x469   :  { %v5388_v4 = vmax.f32 %v5384_v35, %v5386_v1  ;;  %2111 = vrot.lane.b32.xlu2 %v9524_v39, %s8396_s17  ;;  %v1721_v0 = vpop.permute.xlu1 %1720  ;;  %v4724_v35 = vld [vmem:[%s8453_s25 + $0x60] sm:$0xff] }
 0x46a   :  { %v9808_v41 = vpop.permute.xlu0 %4419  ;;  %1901 = vst.msk [vmem:[#allocation3 + $0xc0] sm:$0xff] %vm1888_vm5, %v1721_v0 }
 0x46b   :  { %5390 = vst.msk [vmem:[#allocation5 + $0x8] sm:$0xff] %vm846_vm3, %v5388_v4  ;;  %v2870_v10 = vpop.permute.xlu2 %2869 }
 0x46c   :  { %3053 = vst.msk [vmem:[#allocation3 + $0x90] sm:$0xff] %vm3043_vm8, %v2870_v10 }
 0x46d   :  { %3438 = vst.msk [vmem:[#allocation3 + $0x90] sm:$0xff] %vm3428_vm9, %v9624_v38  ;;  %v4721_v38 = vld [vmem:[%s8453_s25 + $0x48] sm:$0xff] }
 0x46e   :  { %3823 = vst.msk [vmem:[#allocation3 + $0x90] sm:$0xff] %vm3813_vm10, %v9691_v12 }
 0x46f   :  { %4208 = vst.msk [vmem:[#allocation3 + $0x90] sm:$0xff] %vm4198_vm11, %v9645_v50  ;;  %4038 = vrot.lane.b32.xlu1 %v9817_v17, %s8399_s7 }
 0x470   :  { %4593 = vst.msk [vmem:[#allocation3 + $0x90] sm:$0xff] %vm4583_vm12, %v9665_v5  ;;  %2887 = vrot.lane.b32.xlu0 %v9817_v17, %s8397_s1 }
 0x471   :  { %2881 = vrot.lane.b32.xlu2 %v9719_v22, %s8397_s1  ;;  %v2491_v39 = vpop.permute.xlu1 %2490 }
 0x472   :  { %v9828_v23 = vpop.permute.xlu0 %3266 }
 0x473   :  { %v4027_v58 = vpop.permute.xlu2 %4026 }
 0x474   :  { %4209 = vst.msk [vmem:[#allocation3 + $0xa0] sm:$0xff] %vm4198_vm11, %v4027_v58 }
 0x475   :  { %4594 = vst.msk [vmem:[#allocation3 + $0xa0] sm:$0xff] %vm4583_vm12, %v9741_v13 }
 0x477   :  { %v4657_v50 = vld [vmem:[#allocation3 + $0x90] sm:$0xff]  ;;  %2500 = vrot.lane.b32.xlu1 %v9310_v30, %s8398_s2 }
 0x478   :  { %v4785_v5 = vmul.f32 %v4721_v38, %v4657_v50  ;;  %3657 = vrot.lane.b32.xlu0 %v9337_v54, %s8400_s10  ;;  %v9925_v38 = vld [vmem:[#allocation2 + $0xc1] sm:$0xff] }
 0x479   :  { %3651 = vrot.lane.b32.xlu2 %v9310_v30, %s8400_s10  ;;  %v3261_v12 = vpop.permute.xlu1 %3260  ;;  %v4725_v50 = vld [vmem:[%s8453_s25 + $0x68] sm:$0xff] }
 0x47a   :  { %8036 = vmatmul.msk.f32.gmra.mxu1 %vm4846_vm13, %v4785_v5  ;;  %v9841_v52 = vpop.permute.xlu0 %4036 }
 0x47b   :  { %v2489_v22 = vpop.permute.xlu2 %2488 }
 0x47c   :  { %2670 = vst.msk [vmem:[#allocation3 + $0xb0] sm:$0xff] %vm2658_vm7, %v2489_v22  ;;  %v4658_v63 = vld [vmem:[#allocation3 + $0xa0] sm:$0xff] }
 0x47d   :  { %3055 = vst.msk [vmem:[#allocation3 + $0xb0] sm:$0xff] %vm3043_vm8, %v2874_v2  ;;  %v4786_v43 = vmul.f32 %v4722_v25, %v4658_v63  ;;  %v9884_v2 = vld [vmem:[#allocation2 + $0xc8] sm:$0xff]  ;;  %v9935_v25 = vld [vmem:[#allocation2 + $0xc0] sm:$0xff] }
 0x480   :  { %1734 = vrot.lane.b32.xlu0 %v9618_v16, %s8395_s13 }
 0x481   :  { %4421 = vrot.lane.b32.xlu2 %v9846_v11, %s8393_s28  ;;  %v4031_v30 = vpop.permute.xlu1 %4030 }
 0x482   :  { %8037 = vmatmul.msk.f32.gmra.mxu1 %vm4846_vm13, %v4786_v43  ;;  %v1729_v6 = vpop.permute.xlu0 %1728 }
 0x483   :  { %v3259_v13 = vpop.permute.xlu2 %3258  ;;  %v5071_v18 = vpop.f32.mrf.mxu1  ;;  %1905 = vst.msk [vmem:[#allocation3 + $0x100] sm:$0xff] %vm1888_vm5, %v1729_v6 }
 0x484   :  { %3440 = vst.msk [vmem:[#allocation3 + $0xb0] sm:$0xff] %vm3428_vm9, %v3259_v13  ;;  %v5072_v56 = vadd.f32 %v9642_v32, %v5071_v18 }
 0x485   :  { %3825 = vst.msk [vmem:[#allocation3 + $0xb0] sm:$0xff] %vm3813_vm10, %v3644_v31  ;;  %v1018_v31 = vld [vmem:[%s8448_s21 + $0xd8] sm:$0xff] }
 0x486   :  { %v5259_v42 = vmax.f32 %v5072_v56, %v9649_v14 }
 0x488   :  { %5323 = vst.msk [vmem:[#allocation4 + $0x20] sm:$0xff] %vm846_vm3, %v5259_v42  ;;  %2504 = vrot.lane.b32.xlu0 %v9321_v48, %s8398_s2  ;;  %v9948_v42 = vld [vmem:[#allocation2 + $0xd1] sm:$0xff] }
 0x489   :  { %2113 = vrot.lane.b32.xlu2 %v9554_v55, %s8396_s17  ;;  %v1723_v16 = vpop.permute.xlu1 %1722  ;;  %v4723_v55 = vld [vmem:[%s8453_s25 + $0x58] sm:$0xff] }
 0x48a   :  { %1902 = vst.msk [vmem:[#allocation3 + $0xd0] sm:$0xff] %vm1888_vm5, %v1723_v16  ;;  %v9864_v20 = vpop.permute.xlu0 %2498 }
 0x48b   :  { %v4029_v26 = vpop.permute.xlu2 %4028  ;;  %2287 = vst.msk [vmem:[#allocation3 + $0xd0] sm:$0xff] %vm2273_vm6, %v9779_v47  ;;  %v1017_v47 = vld [vmem:[%s8448_s21 + $0xd0] sm:$0xff] }
 0x48c   :  { %4210 = vst.msk [vmem:[#allocation3 + $0xb0] sm:$0xff] %vm4198_vm11, %v4029_v26  ;;  %v1082_v53 = vmul.f32 %v9068_v34, %v1017_v47 }
 0x48d   :  { %4595 = vst.msk [vmem:[#allocation3 + $0xb0] sm:$0xff] %vm4583_vm12, %v9744_v27 }
 0x48e   :  { %v1198_v28 = vsel %vm846_vm3, %v1082_v53, 0.0 }
 0x490   :  { %3274 = vrot.lane.b32.xlu0 %v9789_v60, %s8401_s11 }
 0x491   :  { %2883 = vrot.lane.b32.xlu2 %v9785_v40, %s8397_s1  ;;  %v2493_v48 = vpop.permute.xlu1 %2492 }
 0x492   :  { %2672 = vst.msk [vmem:[#allocation3 + $0xd0] sm:$0xff] %vm2658_vm7, %v2493_v48  ;;  %v9877_v36 = vpop.permute.xlu0 %3268 }
 0x493   :  { %v2106_v9 = vpop.permute.xlu2 %2105  ;;  %3057 = vst.msk [vmem:[#allocation3 + $0xd0] sm:$0xff] %vm3043_vm8, %v9796_v44 }
 0x494   :  { %2286 = vst.msk [vmem:[#allocation3 + $0xc0] sm:$0xff] %vm2273_vm6, %v2106_v9  ;;  %v4659_v27 = vld [vmem:[#allocation3 + $0xb0] sm:$0xff] }
 0x495   :  { %2671 = vst.msk [vmem:[#allocation3 + $0xc0] sm:$0xff] %vm2658_vm7, %v2491_v39  ;;  %v4787_v15 = vmul.f32 %v4723_v55, %v4659_v27  ;;  %v5391_v27 = vld [vmem:[#allocation4 + $0x20] sm:$0xff] }
 0x497   :  { %8038 = vmatmul.msk.f32.gmra.mxu1 %vm4846_vm13, %v4787_v15 }
 0x498   :  { %4044 = vrot.lane.b32.xlu0 %v9884_v2, %s8399_s7 }
 0x499   :  { %3270 = vrot.lane.b32.xlu2 %v9846_v11, %s8401_s11  ;;  %v3263_v37 = vpop.permute.xlu1 %3262 }
 0x49a   :  { %3442 = vst.msk [vmem:[#allocation3 + $0xd0] sm:$0xff] %vm3428_vm9, %v3263_v37  ;;  %v9892_v49 = vpop.permute.xlu0 %3653 }
 0x49b   :  { %v2876_v8 = vpop.permute.xlu2 %2875 }
 0x49c   :  { %3056 = vst.msk [vmem:[#allocation3 + $0xc0] sm:$0xff] %vm3043_vm8, %v2876_v8 }
 0x49d   :  { %3441 = vst.msk [vmem:[#allocation3 + $0xc0] sm:$0xff] %vm3428_vm9, %v3261_v12 }
 0x49e   :  { %3826 = vst.msk [vmem:[#allocation3 + $0xc0] sm:$0xff] %vm3813_vm10, %v9756_v29 }
 0x49f   :  { %4211 = vst.msk [vmem:[#allocation3 + $0xc0] sm:$0xff] %vm4198_vm11, %v4031_v30 }
 0x4a0   :  { %4596 = vst.msk [vmem:[#allocation3 + $0xc0] sm:$0xff] %vm4583_vm12, %v9767_v3  ;;  %1736 = vrot.lane.b32.xlu0 %v9817_v17, %s8395_s13 }
 0x4a1   :  { %1732 = vrot.lane.b32.xlu2 %v9785_v40, %s8395_s13  ;;  %v3648_v19 = vpop.permute.xlu1 %3647  ;;  %1199 = vadd.xlane.f32.xlu1 %v1198_v28  ;;  %v1083_v40 = vmul.f32 %v9068_v34, %v1018_v31  ;;  %v9979_v31 = vld [vmem:[#allocation2 + $0xc9] sm:$0xff] }
 0x4a2   :  { %3827 = vst.msk [vmem:[#allocation3 + $0xd0] sm:$0xff] %vm3813_vm10, %v3648_v19  ;;  %v9909_v29 = vpop.permute.xlu0 %4423 }
 0x4a3   :  { %v4033_v45 = vpop.permute.xlu2 %4032  ;;  %v1201_v10 = vsel %vm846_vm3, %v1083_v40, 0.0 }
 0x4a4   :  { %4212 = vst.msk [vmem:[#allocation3 + $0xd0] sm:$0xff] %vm4198_vm11, %v4033_v45  ;;  %v5074_v44 = vpop.f32.mrf.mxu1  ;;  %v4726_v45 = vld [vmem:[%s8453_s25 + $0x70] sm:$0xff] }
 0x4a5   :  { %v5075_v3 = vadd.f32 %v9642_v32, %v5074_v44 }
 0x4a7   :  { %v5260_v1 = vmax.f32 %v5075_v3, %v9649_v14  ;;  %v4660_v4 = vld [vmem:[#allocation3 + $0xc0] sm:$0xff] }
 0x4a8   :  { %v4788_v0 = vmul.f32 %v4724_v35, %v4660_v4  ;;  %2506 = vrot.lane.b32.xlu0 %v9337_v54, %s8398_s2 }
 0x4a9   :  { %5324 = vst.msk [vmem:[#allocation4 + $0x28] sm:$0xff] %vm846_vm3, %v5260_v1  ;;  %2502 = vrot.lane.b32.xlu2 %v9304_v33, %s8398_s2  ;;  %v4418_v17 = vpop.permute.xlu1 %4417  ;;  %1202 = vadd.xlane.f32.xlu1 %v1201_v10 }
 0x4aa   :  { %8039 = vmatmul.msk.f32.gmra.mxu1 %vm4846_vm13, %v4788_v0  ;;  %4597 = vst.msk [vmem:[#allocation3 + $0xd0] sm:$0xff] %vm4583_vm12, %v4418_v17  ;;  %v1731_v58 = vpop.permute.xlu0 %1730 }
 0x4ab   :  { %v2495_v39 = vpop.permute.xlu2 %2494  ;;  %1906 = vst.msk [vmem:[#allocation3 + $0x110] sm:$0xff] %vm1888_vm5, %v1731_v58 }
 0x4b0   :  { %3276 = vrot.lane.b32.xlu0 %v9925_v38, %s8401_s11  ;;  %v5392_v53 = vld [vmem:[#allocation4 + $0x28] sm:$0xff] }
 0x4b1   :  { %3272 = vrot.lane.b32.xlu2 %v9703_v51, %s8401_s11  ;;  %v1725_v33 = vpop.permute.xlu1 %1724  ;;  %v4661_v54 = vld [vmem:[#allocation3 + $0xd0] sm:$0xff] }
 0x4b2   :  { %1903 = vst.msk [vmem:[#allocation3 + $0xe0] sm:$0xff] %vm1888_vm5, %v1725_v33  ;;  %v2116_v12 = vpop.permute.xlu0 %2115  ;;  %v4789_v22 = vmul.f32 %v4725_v50, %v4661_v54  ;;  %v1019_v33 = vld [vmem:[%s8448_s21 + $0xe0] sm:$0xff] }
 0x4b3   :  { %v3265_v5 = vpop.permute.xlu2 %3264  ;;  %2291 = vst.msk [vmem:[#allocation3 + $0x110] sm:$0xff] %vm2273_vm6, %v2116_v12  ;;  %v1084_v12 = vmul.f32 %v9068_v34, %v1019_v33 }
 0x4b4   :  { %8040 = vmatmul.msk.f32.gmra.mxu1 %vm4846_vm13, %v4789_v22 }
 0x4b8   :  { %v5077_v63 = vpop.f32.mrf.mxu1  ;;  %3661 = vrot.lane.b32.xlu0 %v9352_v61, %s8400_s10 }
 0x4b9   :  { %v5078_v43 = vadd.f32 %v9642_v32, %v5077_v63  ;;  %4042 = vrot.lane.b32.xlu2 %v9935_v25, %s8399_s7  ;;  %v2110_v30 = vpop.permute.xlu1 %2109 }
 0x4ba   :  { %2288 = vst.msk [vmem:[#allocation3 + $0xe0] sm:$0xff] %vm2273_vm6, %v2110_v30  ;;  %v9944_v18 = vpop.permute.xlu0 %2885 }
 0x4bb   :  { %v5261_v13 = vmax.f32 %v5078_v43, %v9649_v14  ;;  %v4035_v6 = vpop.permute.xlu2 %4034  ;;  %2673 = vst.msk [vmem:[#allocation3 + $0xe0] sm:$0xff] %vm2658_vm7, %v2495_v39 }
 0x4bd   :  { %5325 = vst.msk [vmem:[#allocation4 + $0x30] sm:$0xff] %vm846_vm3, %v5261_v13 }
 0x4c0   :  { %v5080_v56 = vpop.f32.mrf.mxu1  ;;  %4431 = vrot.lane.b32.xlu0 %v9948_v42, %s8393_s28 }
 0x4c1   :  { %v5081_v16 = vadd.f32 %v9642_v32, %v5080_v56  ;;  %2119 = vrot.lane.b32.xlu2 %v9846_v11, %s8396_s17  ;;  %v2880_v26 = vpop.permute.xlu1 %2879  ;;  %v1021_v56 = vld [vmem:[%s8448_s21 + $0xf0] sm:$0xff] }
 0x4c2   :  { %3058 = vst.msk [vmem:[#allocation3 + $0xe0] sm:$0xff] %vm3043_vm8, %v2880_v26  ;;  %v9957_v9 = vpop.permute.xlu0 %3655  ;;  %4427 = vrot.lane.b32.xlu1 %v9925_v38, %s8393_s28 }
 0x4c3   :  { %v5262_v48 = vmax.f32 %v5081_v16, %v9649_v14  ;;  %v2112_v55 = vpop.permute.xlu2 %2111  ;;  %3443 = vst.msk [vmem:[#allocation3 + $0xe0] sm:$0xff] %vm3428_vm9, %v3265_v5  ;;  %v4729_v16 = vld [vmem:[%s8453_s25 + $0x88] sm:$0xff] }
 0x4c4   :  { %v5393_v15 = vld [vmem:[#allocation4 + $0x30] sm:$0xff] }
 0x4c5   :  { %v5395_v37 = vmax.f32 %v5391_v27, %v5393_v15  ;;  %5326 = vst.msk [vmem:[#allocation4 + $0x38] sm:$0xff] %vm846_vm3, %v5262_v48  ;;  %v1086_v48 = vmul.f32 %v9068_v34, %v1021_v56 }
 0x4c7   :  { %5397 = vst.msk [vmem:[#allocation5 + $0x10] sm:$0xff] %vm846_vm3, %v5395_v37  ;;  %v1210_v37 = vsel %vm846_vm3, %v1086_v48, 0.0  ;;  %v1035_v48 = vld [vmem:[%s8448_s21 + $0x160] sm:$0xff] }
 0x4c8   :  { %1738 = vrot.lane.b32.xlu0 %v9772_v57, %s8395_s13 }
 0x4c9   :  { %2889 = vrot.lane.b32.xlu2 %v9772_v57, %s8397_s1  ;;  %v3650_v11 = vpop.permute.xlu1 %3649 }
 0x4ca   :  { %3828 = vst.msk [vmem:[#allocation3 + $0xe0] sm:$0xff] %vm3813_vm10, %v3650_v11  ;;  %v9969_v8 = vpop.permute.xlu0 %4040  ;;  %3659 = vrot.lane.b32.xlu1 %v9342_v59, %s8400_s10 }
 0x4cb   :  { %v2882_v47 = vpop.permute.xlu2 %2881  ;;  %4213 = vst.msk [vmem:[#allocation3 + $0xe0] sm:$0xff] %vm4198_vm11, %v4035_v6 }
 0x4cc   :  { %v5394_v28 = vld [vmem:[#allocation4 + $0x38] sm:$0xff]  ;;  %4598 = vst.msk [vmem:[#allocation3 + $0xe0] sm:$0xff] %vm4583_vm12, %v9808_v41 }
 0x4cd   :  { %v5396_v19 = vmax.f32 %v5392_v53, %v5394_v28  ;;  %v10049_v28 = vld [vmem:[#allocation2 + $0xd0] sm:$0xff] }
 0x4cf   :  { %5398 = vst.msk [vmem:[#allocation5 + $0x18] sm:$0xff] %vm846_vm3, %v5396_v19 }
 0x4d0   :  { %2123 = vrot.lane.b32.xlu0 %v9789_v60, %s8396_s17 }
 0x4d1   :  { %v1727_v57 = vpop.permute.xlu1 %1726 }
 0x4d2   :  { %1904 = vst.msk [vmem:[#allocation3 + $0xf0] sm:$0xff] %vm1888_vm5, %v1727_v57  ;;  %v4426_v3 = vpop.permute.xlu0 %4425  ;;  %4429 = vrot.lane.b32.xlu1 %v9979_v31, %s8393_s28 }
 0x4d3   :  { %v3652_v44 = vpop.permute.xlu2 %3651  ;;  %2289 = vst.msk [vmem:[#allocation3 + $0xf0] sm:$0xff] %vm2273_vm6, %v2112_v55  ;;  %v4662_v35 = vld [vmem:[#allocation3 + $0xe0] sm:$0xff] }
 0x4d4   :  { %v4790_v41 = vmul.f32 %v4726_v45, %v4662_v35 }
 0x4d6   :  { %8041 = vmatmul.msk.f32.gmra.mxu1 %vm4846_vm13, %v4790_v41 }
 0x4d8   :  { %2893 = vrot.lane.b32.xlu0 %v9884_v2, %s8397_s1 }
 0x4d9   :  { %v2497_v60 = vpop.permute.xlu1 %2496 }
 0x4da   :  { %2674 = vst.msk [vmem:[#allocation3 + $0xf0] sm:$0xff] %vm2658_vm7, %v2497_v60  ;;  %v2118_v1 = vpop.permute.xlu0 %2117  ;;  %2121 = vrot.lane.b32.xlu1 %v9703_v51, %s8396_s17 }
 0x4db   :  { %v4422_v40 = vpop.permute.xlu2 %4421  ;;  %3059 = vst.msk [vmem:[#allocation3 + $0xf0] sm:$0xff] %vm3043_vm8, %v2882_v47  ;;  %v5083_v4 = vpop.f32.mrf.mxu1 }
 0x4dc   :  { %3444 = vst.msk [vmem:[#allocation3 + $0xf0] sm:$0xff] %vm3428_vm9, %v9828_v23  ;;  %v5084_v0 = vadd.f32 %v9642_v32, %v5083_v4  ;;  %v4727_v23 = vld [vmem:[%s8453_s25 + $0x78] sm:$0xff] }
 0x4dd   :  { %3829 = vst.msk [vmem:[#allocation3 + $0xf0] sm:$0xff] %vm3813_vm10, %v3652_v44 }
 0x4de   :  { %4214 = vst.msk [vmem:[#allocation3 + $0xf0] sm:$0xff] %vm4198_vm11, %v9841_v52  ;;  %v5263_v10 = vmax.f32 %v5084_v0, %v9649_v14  ;;  %v8259_v0 = vld [vmem:[%s8428_s5 + $0xd0] sm:$0xff] }
 0x4df   :  { %4599 = vst.msk [vmem:[#allocation3 + $0xf0] sm:$0xff] %vm4583_vm12, %v4422_v40 }
 0x4e0   :  { %5327 = vst.msk [vmem:[#allocation4 + $0x40] sm:$0xff] %vm846_vm3, %v5263_v10 }
 0x4e1   :  { %v4039_v51 = vpop.permute.xlu1 %4038 }
 0x4e2   :  { %v2888_v39 = vpop.permute.xlu0 %2887  ;;  %2891 = vrot.lane.b32.xlu1 %v9935_v25, %s8397_s1 }
 0x4e3   :  { %v2114_v17 = vpop.permute.xlu2 %2113 }
 0x4e4   :  { %2290 = vst.msk [vmem:[#allocation3 + $0x100] sm:$0xff] %vm2273_vm6, %v2114_v17 }
 0x4e5   :  { %2675 = vst.msk [vmem:[#allocation3 + $0x100] sm:$0xff] %vm2658_vm7, %v9864_v20  ;;  %v1204_v20 = vsel %vm846_vm3, %v1084_v12, 0.0 }
 0x4e6   :  { %v4663_v58 = vld [vmem:[#allocation3 + $0xf0] sm:$0xff] }
 0x4e7   :  { %v4791_v52 = vmul.f32 %v4727_v23, %v4663_v58  ;;  %v5399_v19 = vld [vmem:[#allocation4 + $0x40] sm:$0xff]  ;;  %v8260_v23 = vld [vmem:[%s8428_s5 + $0xd8] sm:$0xff] }
 0x4e9   :  { %v2501_v50 = vpop.permute.xlu1 %2500  ;;  %8042 = vmatmul.msk.f32.gmra.mxu1 %vm4846_vm13, %v4791_v52 }
 0x4ea   :  { %2676 = vst.msk [vmem:[#allocation3 + $0x110] sm:$0xff] %vm2658_vm7, %v2501_v50  ;;  %v3658_v5 = vpop.permute.xlu0 %3657 }
 0x4eb   :  { %v2884_v54 = vpop.permute.xlu2 %2883  ;;  %3061 = vst.msk [vmem:[#allocation3 + $0x110] sm:$0xff] %vm3043_vm8, %v9944_v18 }
 0x4ec   :  { %3060 = vst.msk [vmem:[#allocation3 + $0x100] sm:$0xff] %vm3043_vm8, %v2884_v54 }
 0x4ed   :  { %3445 = vst.msk [vmem:[#allocation3 + $0x100] sm:$0xff] %vm3428_vm9, %v9877_v36  ;;  %v4728_v36 = vld [vmem:[%s8453_s25 + $0x80] sm:$0xff] }
 0x4ee   :  { %3830 = vst.msk [vmem:[#allocation3 + $0x100] sm:$0xff] %vm3813_vm10, %v9892_v49 }
 0x4ef   :  { %4215 = vst.msk [vmem:[#allocation3 + $0x100] sm:$0xff] %vm4198_vm11, %v4039_v51 }
 0x4f0   :  { %4600 = vst.msk [vmem:[#allocation3 + $0x100] sm:$0xff] %vm4583_vm12, %v9909_v29 }
 0x4f2   :  { %1205 = vadd.xlane.f32.xlu2 %v1204_v20  ;;  %v1735_v63 = vpop.permute.xlu0 %1734 }
 0x4f3   :  { %v3271_v22 = vpop.permute.xlu2 %3270  ;;  %1908 = vst.msk [vmem:[#allocation3 + $0x130] sm:$0xff] %vm1888_vm5, %v1735_v63 }
 0x4f4   :  { %3446 = vst.msk [vmem:[#allocation3 + $0x110] sm:$0xff] %vm3428_vm9, %v3271_v22 }
 0x4f5   :  { %3831 = vst.msk [vmem:[#allocation3 + $0x110] sm:$0xff] %vm3813_vm10, %v9957_v9 }
 0x4f6   :  { %4216 = vst.msk [vmem:[#allocation3 + $0x110] sm:$0xff] %vm4198_vm11, %v9969_v8  ;;  %v1020_v8 = vld [vmem:[%s8448_s21 + $0xe8] sm:$0xff] }
 0x4f7   :  { %4601 = vst.msk [vmem:[#allocation3 + $0x110] sm:$0xff] %vm4583_vm12, %v4426_v3  ;;  %v5086_v49 = vpop.f32.mrf.mxu1  ;;  %v4664_v29 = vld [vmem:[#allocation3 + $0x100] sm:$0xff]  ;;  %v1085_v53 = vmul.f32 %v9068_v34, %v1020_v8 }
 0x4f8   :  { %v5087_v43 = vadd.f32 %v9642_v32, %v5086_v49  ;;  %v4792_v30 = vmul.f32 %v4728_v36, %v4664_v29  ;;  %v10100_v36 = vld [vmem:[#allocation2 + $0xd9] sm:$0xff] }
 0x4f9   :  { %v1207_v35 = vsel %vm846_vm3, %v1085_v53, 0.0 }
 0x4fa   :  { %v5264_v13 = vmax.f32 %v5087_v43, %v9649_v14  ;;  %8043 = vmatmul.msk.f32.gmra.mxu1 %vm4846_vm13, %v4792_v30  ;;  %v2505_v18 = vpop.permute.xlu0 %2504 }
 0x4fb   :  { %v1733_v6 = vpop.permute.xlu2 %1732 }
 0x4fc   :  { %5328 = vst.msk [vmem:[#allocation4 + $0x48] sm:$0xff] %vm846_vm3, %v5264_v13 }
 0x4fd   :  { %1907 = vst.msk [vmem:[#allocation3 + $0x120] sm:$0xff] %vm1888_vm5, %v1733_v6 }
 0x4fe   :  { %2292 = vst.msk [vmem:[#allocation3 + $0x120] sm:$0xff] %vm2273_vm6, %v2118_v1  ;;  %v4665_v26 = vld [vmem:[#allocation3 + $0x110] sm:$0xff] }
 0x4ff   :  { %v5089_v55 = vpop.f32.mrf.mxu1  ;;  %v4793_v9 = vmul.f32 %v4729_v16, %v4665_v26 }
 0x500   :  { %v5090_v27 = vadd.f32 %v9642_v32, %v5089_v55  ;;  %v1100_v55 = vmul.f32 %v9068_v34, %v1035_v48 }
 0x502   :  { %v5265_v15 = vmax.f32 %v5090_v27, %v9649_v14  ;;  %8044 = vmatmul.msk.f32.gmra.mxu1 %vm4846_vm13, %v4793_v9  ;;  %1211 = vadd.xlane.f32.xlu0 %v1210_v37  ;;  %v3275_v47 = vpop.permute.xlu0 %3274  ;;  %v1252_v27 = vsel %vm846_vm3, %v1100_v55, 0.0  ;;  %v1037_v37 = vld [vmem:[%s8448_s21 + $0x170] sm:$0xff] }
 0x503   :  { %v2503_v11 = vpop.permute.xlu2 %2502  ;;  %v5400_v50 = vld [vmem:[#allocation4 + $0x48] sm:$0xff] }
 0x504   :  { %5329 = vst.msk [vmem:[#allocation4 + $0x50] sm:$0xff] %vm846_vm3, %v5265_v15  ;;  %v10133_v15 = vld [vmem:[#allocation2 + $0xe0] sm:$0xff] }
 0x505   :  { %2677 = vst.msk [vmem:[#allocation3 + $0x120] sm:$0xff] %vm2658_vm7, %v2503_v11  ;;  %v4731_v11 = vld [vmem:[%s8453_s25 + $0x98] sm:$0xff] }
 0x506   :  { %3062 = vst.msk [vmem:[#allocation3 + $0x120] sm:$0xff] %vm3043_vm8, %v2888_v39 }
 0x50a   :  { %4046 = vrot.lane.b32.xlu2 %v10049_v28, %s8399_s7  ;;  %v10053_v44 = vpop.permute.xlu0 %4044 }
 0x50b   :  { %v5401_v57 = vld [vmem:[#allocation4 + $0x50] sm:$0xff]  ;;  %v3273_v45 = vpop.permute.xlu2 %3272 }
 0x50c   :  { %v5403_v3 = vmax.f32 %v5399_v19, %v5401_v57  ;;  %3447 = vst.msk [vmem:[#allocation3 + $0x120] sm:$0xff] %vm3428_vm9, %v3273_v45  ;;  %1208 = vadd.xlane.f32.xlu1 %v1207_v35  ;;  %v10145_v45 = vld [vmem:[#allocation2 + $0xe1] sm:$0xff] }
 0x50d   :  { %3832 = vst.msk [vmem:[#allocation3 + $0x120] sm:$0xff] %vm3813_vm10, %v3658_v5  ;;  %v10082_v5 = vld [vmem:[#allocation2 + $0xd8] sm:$0xff] }
 0x50e   :  { %5405 = vst.msk [vmem:[#allocation5 + $0x20] sm:$0xff] %vm846_vm3, %v5403_v3 }
 0x512   :  { %2508 = vrot.lane.b32.xlu2 %v9342_v59, %s8398_s2  ;;  %v1737_v60 = vpop.permute.xlu0 %1736 }
 0x513   :  { %v4043_v41 = vpop.permute.xlu2 %4042  ;;  %1909 = vst.msk [vmem:[#allocation3 + $0x140] sm:$0xff] %vm1888_vm5, %v1737_v60 }
 0x514   :  { %4217 = vst.msk [vmem:[#allocation3 + $0x120] sm:$0xff] %vm4198_vm11, %v4043_v41  ;;  %v5092_v40 = vpop.f32.mrf.mxu1  ;;  %v1200_v4 = vpop.xlane.xlu1 %1199 }
 0x515   :  { %v5093_v1 = vadd.f32 %v9642_v32, %v5092_v40  ;;  %v1338_v10 = vmul.f32 %v8259_v0, %v1200_v4  ;;  %v1022_v4 = vld [vmem:[%s8448_s21 + $0xf8] sm:$0xff] }
 0x516   :  { %3665 = vrot.lane.b32.xlu0 %v9363_v21, %s8400_s10 }
 0x517   :  { %v5266_v51 = vmax.f32 %v5093_v1, %v9649_v14  ;;  %1402 = vst.msk [vmem:[#allocation2 + $0xf0] sm:$0xff] %vm312_vm2, %v1338_v10 }
 0x519   :  { %5330 = vst.msk [vmem:[#allocation4 + $0x58] sm:$0xff] %vm846_vm3, %v5266_v51 }
 0x51a   :  { %3278 = vrot.lane.b32.xlu2 %v9979_v31, %s8401_s11  ;;  %v10072_v17 = vpop.permute.xlu0 %2506 }
 0x51b   :  { %v2120_v59 = vpop.permute.xlu2 %2119 }
 0x51c   :  { %2293 = vst.msk [vmem:[#allocation3 + $0x130] sm:$0xff] %vm2273_vm6, %v2120_v59  ;;  %v1203_v39 = vpop.xlane.xlu1 %1202 }
 0x51d   :  { %2678 = vst.msk [vmem:[#allocation3 + $0x130] sm:$0xff] %vm2658_vm7, %v2505_v18  ;;  %v1339_v58 = vmul.f32 %v8260_v23, %v1203_v39  ;;  %v8261_v39 = vld [vmem:[%s8428_s5 + $0xe0] sm:$0xff] }
 0x51e   :  { %1742 = vrot.lane.b32.xlu0 %v9884_v2, %s8395_s13  ;;  %v10079_v52 = vld [vmem:[#allocation2 + $0xef] sm:$0xff] }
 0x51f   :  { %1403 = vst.msk [vmem:[#allocation2 + $0xf8] sm:$0xff] %vm312_vm2, %v1339_v58 }
 0x520   :  { %v5402_v33 = vld [vmem:[#allocation4 + $0x58] sm:$0xff]  ;;  %1532 = vst.msk [vmem:[#allocation3 + $0x1c0] sm:$0xff] %vm312_vm2, %v10079_v52 }
 0x521   :  { %v5404_v54 = vmax.f32 %v5400_v50, %v5402_v33  ;;  %v10166_v50 = vld [vmem:[%s8463_s3] ss:$0 sm:$0xff] }
 0x522   :  { %4048 = vrot.lane.b32.xlu2 %v10082_v5, %s8399_s7  ;;  %v10089_v20 = vpop.permute.xlu0 %3276 }
 0x523   :  { %5406 = vst.msk [vmem:[#allocation5 + $0x28] sm:$0xff] %vm846_vm3, %v5404_v54  ;;  %v2890_v12 = vpop.permute.xlu2 %2889 }
 0x524   :  { %3063 = vst.msk [vmem:[#allocation3 + $0x130] sm:$0xff] %vm3043_vm8, %v2890_v12 }
 0x525   :  { %3448 = vst.msk [vmem:[#allocation3 + $0x130] sm:$0xff] %vm3428_vm9, %v3275_v47  ;;  %3663 = vrot.lane.b32.xlu1 %v9367_v62, %s8400_s10  ;;  %v1102_v47 = vmul.f32 %v9068_v34, %v1037_v37 }
 0x526   :  { %v10095_v22 = vld [vmem:[#allocation2 + $0xf7] sm:$0xff] }
 0x527   :  { %v5095_v2 = vpop.f32.mrf.mxu1  ;;  %1533 = vst.msk [vmem:[#allocation3 + $0x1d0] sm:$0xff] %vm312_vm2, %v10095_v22  ;;  %v1258_v57 = vsel %vm846_vm3, %v1102_v47, 0.0 }
 0x528   :  { %v5096_v63 = vadd.f32 %v9642_v32, %v5095_v2 }
 0x52a   :  { %v5267_v49 = vmax.f32 %v5096_v63, %v9649_v14  ;;  %4433 = vrot.lane.b32.xlu2 %v10100_v36, %s8393_s28  ;;  %v3662_v29 = vpop.permute.xlu0 %3661 }
 0x52c   :  { %5331 = vst.msk [vmem:[#allocation4 + $0x60] sm:$0xff] %vm846_vm3, %v5267_v49 }
 0x52d   :  { %2125 = vrot.lane.b32.xlu1 %v9925_v38, %s8396_s17 }
 0x531   :  { %v5098_v43 = vpop.f32.mrf.mxu1 }
 0x532   :  { %1740 = vrot.lane.b32.xlu2 %v9935_v25, %s8395_s13  ;;  %v10110_v30 = vpop.permute.xlu0 %4431  ;;  %v5099_v13 = vadd.f32 %v9642_v32, %v5098_v43  ;;  %v4730_v25 = vld [vmem:[%s8453_s25 + $0x90] sm:$0xff] }
 0x533   :  { %v5407_v10 = vld [vmem:[#allocation4 + $0x60] sm:$0xff] }
 0x534   :  { %v5268_v6 = vmax.f32 %v5099_v13, %v9649_v14  ;;  %v4428_v18 = vpop.permute.xlu1 %4427  ;;  %v10181_v13 = vld [vmem:[#allocation2 + $0xe9] sm:$0xff] }
 0x535   :  { %4602 = vst.msk [vmem:[#allocation3 + $0x120] sm:$0xff] %vm4583_vm12, %v4428_v18  ;;  %2895 = vrot.lane.b32.xlu1 %v10049_v28, %s8397_s1 }
 0x536   :  { %5332 = vst.msk [vmem:[#allocation4 + $0x68] sm:$0xff] %vm846_vm3, %v5268_v6  ;;  %v4732_v6 = vld [vmem:[%s8453_s25 + $0xa0] sm:$0xff] }
 0x53a   :  { %2510 = vrot.lane.b32.xlu2 %v9352_v61, %s8398_s2  ;;  %v1739_v38 = vpop.permute.xlu0 %1738 }
 0x53b   :  { %1910 = vst.msk [vmem:[#allocation3 + $0x150] sm:$0xff] %vm1888_vm5, %v1739_v38 }
 0x53c   :  { %v3660_v56 = vpop.permute.xlu1 %3659  ;;  %v4666_v16 = vld [vmem:[#allocation3 + $0x120] sm:$0xff] }
 0x53d   :  { %3833 = vst.msk [vmem:[#allocation3 + $0x130] sm:$0xff] %vm3813_vm10, %v3660_v56  ;;  %v4794_v26 = vmul.f32 %v4730_v25, %v4666_v16  ;;  %v5408_v63 = vld [vmem:[#allocation4 + $0x68] sm:$0xff]  ;;  %v8263_v56 = vld [vmem:[%s8428_s5 + $0xf0] sm:$0xff] }
 0x53e   :  { %4218 = vst.msk [vmem:[#allocation3 + $0x130] sm:$0xff] %vm4198_vm11, %v10053_v44  ;;  %v1023_v44 = vld [vmem:[%s8448_s21 + $0x100] sm:$0xff] }
 0x53f   :  { %8045 = vmatmul.msk.f32.gmra.mxu1 %vm4846_vm13, %v4794_v26  ;;  %v1088_v35 = vmul.f32 %v9068_v34, %v1023_v44 }
 0x541   :  { %v1216_v1 = vsel %vm846_vm3, %v1088_v35, 0.0 }
 0x542   :  { %3280 = vrot.lane.b32.xlu2 %v9948_v42, %s8401_s11  ;;  %v2124_v61 = vpop.permute.xlu0 %2123 }
 0x543   :  { %2295 = vst.msk [vmem:[#allocation3 + $0x150] sm:$0xff] %vm2273_vm6, %v2124_v61 }
 0x544   :  { %v4430_v9 = vpop.permute.xlu1 %4429 }
 0x545   :  { %4603 = vst.msk [vmem:[#allocation3 + $0x130] sm:$0xff] %vm4583_vm12, %v4430_v9 }
 0x548   :  { %1253 = vadd.xlane.f32.xlu0 %v1252_v27  ;;  %v1036_v27 = vld [vmem:[%s8448_s21 + $0x168] sm:$0xff] }
 0x54a   :  { %4050 = vrot.lane.b32.xlu2 %v10133_v15, %s8399_s7 }
 0x54c   :  { %v2122_v8 = vpop.permute.xlu1 %2121  ;;  %v4667_v53 = vld [vmem:[#allocation3 + $0x130] sm:$0xff] }
 0x54d   :  { %2294 = vst.msk [vmem:[#allocation3 + $0x140] sm:$0xff] %vm2273_vm6, %v2122_v8  ;;  %v4795_v19 = vmul.f32 %v4731_v11, %v4667_v53  ;;  %v1101_v11 = vmul.f32 %v9068_v34, %v1036_v27  ;;  %v8264_v53 = vld [vmem:[%s8428_s5 + $0xe8] sm:$0xff] }
 0x54e   :  { %2679 = vst.msk [vmem:[#allocation3 + $0x140] sm:$0xff] %vm2658_vm7, %v10072_v17  ;;  %v1024_v27 = vld [vmem:[%s8448_s21 + $0x108] sm:$0xff] }
 0x54f   :  { %8046 = vmatmul.msk.f32.gmra.mxu1 %vm4846_vm13, %v4795_v19  ;;  %v1255_v44 = vsel %vm846_vm3, %v1101_v11, 0.0 }
 0x550   :  { %1259 = vadd.xlane.f32.xlu0 %v1258_v57 }
 0x552   :  { %4435 = vrot.lane.b32.xlu2 %v10145_v45, %s8393_s28 }
 0x553   :  { %v5101_v3 = vpop.f32.mrf.mxu1 }
 0x554   :  { %v5102_v41 = vadd.f32 %v9642_v32, %v5101_v3  ;;  %v2892_v60 = vpop.permute.xlu1 %2891  ;;  %v1087_v32 = vmul.f32 %v9068_v34, %v1022_v4 }
 0x555   :  { %3064 = vst.msk [vmem:[#allocation3 + $0x140] sm:$0xff] %vm3043_vm8, %v2892_v60 }
 0x556   :  { %v5269_v40 = vmax.f32 %v5102_v41, %v9649_v14  ;;  %3449 = vst.msk [vmem:[#allocation3 + $0x140] sm:$0xff] %vm3428_vm9, %v10089_v20  ;;  %v1213_v0 = vsel %vm846_vm3, %v1087_v32, 0.0  ;;  %v2894_v20 = vpop.permute.xlu0 %2893  ;;  %v4733_v32 = vld [vmem:[%s8453_s25 + $0xa8] sm:$0xff] }
 0x557   :  { %3834 = vst.msk [vmem:[#allocation3 + $0x140] sm:$0xff] %vm3813_vm10, %v3662_v29  ;;  %v1034_v29 = vld [vmem:[%s8448_s21 + $0x158] sm:$0xff] }
 0x558   :  { %5333 = vst.msk [vmem:[#allocation4 + $0x70] sm:$0xff] %vm846_vm3, %v5269_v40  ;;  %1217 = vadd.xlane.f32.xlu0 %v1216_v1  ;;  %v1099_v25 = vmul.f32 %v9068_v34, %v1034_v29 }
 0x55a   :  { %v1249_v9 = vsel %vm846_vm3, %v1099_v25, 0.0  ;;  %v8266_v25 = vld [vmem:[%s8428_s5 + $0x170] sm:$0xff] }
 0x55f   :  { %v5409_v51 = vld [vmem:[#allocation4 + $0x70] sm:$0xff]  ;;  %1214 = vadd.xlane.f32.xlu1 %v1213_v0  ;;  %v10240_v0 = vld [vmem:[#allocation2 + $0xe8] sm:$0xff] }
 0x560   :  { %v5411_v59 = vmax.f32 %v5407_v10, %v5409_v51 }
 0x562   :  { %5413 = vst.msk [vmem:[#allocation5 + $0x30] sm:$0xff] %vm846_vm3, %v5411_v59  ;;  %v10244_v59 = vld [vmem:[#allocation2 + $0xf1] sm:$0xff] }
 0x565   :  { %v1206_v17 = vpop.xlane.xlu2 %1205 }
 0x566   :  { %v1340_v23 = vmul.f32 %v8261_v39, %v1206_v17  ;;  %v5104_v58 = vpop.f32.mrf.mxu1 }
 0x567   :  { %v5105_v33 = vadd.f32 %v10166_v50, %v5104_v58 }
 0x568   :  { %1404 = vst.msk [vmem:[#allocation2 + $0x100] sm:$0xff] %vm312_vm2, %v1340_v23  ;;  %v1038_v23 = vld [vmem:[%s8448_s21 + $0x178] sm:$0xff] }
 0x569   :  { %v5270_v54 = vmax.f32 %v5105_v33, %v9649_v14  ;;  %v1103_v33 = vmul.f32 %v9068_v34, %v1038_v23  ;;  %v1040_v23 = vld [vmem:[%s8448_s21 + $0x188] sm:$0xff] }
 0x56b   :  { %5334 = vst.msk [vmem:[#allocation4 + $0x78] sm:$0xff] %vm846_vm3, %v5270_v54  ;;  %v1261_v54 = vsel %vm846_vm3, %v1103_v33, 0.0 }
 0x56c   :  { %3667 = vrot.lane.b32.xlu0 %v9319_v46, %s8400_s10 }
 0x56d   :  { %v4047_v12 = vpop.permute.xlu2 %4046 }
 0x56e   :  { %4219 = vst.msk [vmem:[#allocation3 + $0x140] sm:$0xff] %vm4198_vm11, %v4047_v12 }
 0x56f   :  { %4604 = vst.msk [vmem:[#allocation3 + $0x140] sm:$0xff] %vm4583_vm12, %v10110_v30  ;;  %v10176_v2 = vld [vmem:[#allocation2 + $0xff] sm:$0xff] }
 0x570   :  { %1534 = vst.msk [vmem:[#allocation3 + $0x1e0] sm:$0xff] %vm312_vm2, %v10176_v2 }
 0x572   :  { %v5410_v49 = vld [vmem:[#allocation4 + $0x78] sm:$0xff] }
 0x573   :  { %v5412_v43 = vmax.f32 %v5408_v63, %v5410_v49  ;;  %v8265_v49 = vld [vmem:[%s8428_s5 + $0x160] sm:$0xff] }
 0x574   :  { %4437 = vrot.lane.b32.xlu0 %v10181_v13, %s8393_s28 }
 0x575   :  { %v2509_v18 = vpop.permute.xlu2 %2508  ;;  %5414 = vst.msk [vmem:[#allocation5 + $0x38] sm:$0xff] %vm846_vm3, %v5412_v43  ;;  %v1212_v30 = vpop.xlane.xlu0 %1211 }
 0x576   :  { %v4668_v38 = vld [vmem:[#allocation3 + $0x140] sm:$0xff]  ;;  %2680 = vst.msk [vmem:[#allocation3 + $0x150] sm:$0xff] %vm2658_vm7, %v2509_v18  ;;  %v1342_v16 = vmul.f32 %v8263_v56, %v1212_v30 }
 0x577   :  { %v5107_v26 = vpop.f32.mrf.mxu1  ;;  %v4796_v48 = vmul.f32 %v4732_v6, %v4668_v38  ;;  %3065 = vst.msk [vmem:[#allocation3 + $0x150] sm:$0xff] %vm3043_vm8, %v2894_v20  ;;  %v4734_v20 = vld [vmem:[%s8453_s25 + $0xb0] sm:$0xff]  ;;  %v1039_v38 = vld [vmem:[%s8448_s21 + $0x180] sm:$0xff] }
 0x578   :  { %v5108_v61 = vadd.f32 %v10166_v50, %v5107_v26  ;;  %1406 = vst.msk [vmem:[#allocation2 + $0x110] sm:$0xff] %vm312_vm2, %v1342_v16  ;;  %2127 = vrot.lane.b32.xlu1 %v9979_v31, %s8396_s17  ;;  %v1104_v16 = vmul.f32 %v9068_v34, %v1039_v38 }
 0x579   :  { %8047 = vmatmul.msk.f32.gmra.mxu1 %vm4846_vm13, %v4796_v48 }
 0x57a   :  { %v5271_v55 = vmax.f32 %v5108_v61, %v9649_v14 }
 0x57b   :  { %1250 = vadd.xlane.f32.xlu2 %v1249_v9 }
 0x57c   :  { %5335 = vst.msk [vmem:[#allocation4 + $0x80] sm:$0xff] %vm846_vm3, %v5271_v55  ;;  %1744 = vrot.lane.b32.xlu0 %v10049_v28, %s8395_s13  ;;  %v1264_v55 = vsel %vm846_vm3, %v1104_v16, 0.0 }
 0x57d   :  { %v3279_v37 = vpop.permute.xlu2 %3278 }
 0x57e   :  { %3450 = vst.msk [vmem:[#allocation3 + $0x150] sm:$0xff] %vm3428_vm9, %v3279_v37  ;;  %v8267_v37 = vld [vmem:[%s8428_s5 + $0x100] sm:$0xff] }
 0x57f   :  { %v5110_v47 = vpop.f32.mrf.mxu1  ;;  %v1209_v31 = vpop.xlane.xlu1 %1208 }
 0x580   :  { %v5111_v8 = vadd.f32 %v10166_v50, %v5110_v47  ;;  %v1341_v19 = vmul.f32 %v8264_v53, %v1209_v31  ;;  %2512 = vrot.lane.b32.xlu1 %v9367_v62, %s8398_s2  ;;  %v1089_v31 = vmul.f32 %v9068_v34, %v1024_v27 }
 0x582   :  { %v5272_v57 = vmax.f32 %v5111_v8, %v9649_v14  ;;  %1405 = vst.msk [vmem:[#allocation2 + $0x108] sm:$0xff] %vm312_vm2, %v1341_v19 }
 0x583   :  { %1256 = vadd.xlane.f32.xlu2 %v1255_v44  ;;  %v5415_v26 = vld [vmem:[#allocation4 + $0x80] sm:$0xff]  ;;  %v8268_v44 = vld [vmem:[%s8428_s5 + $0xf8] sm:$0xff] }
 0x584   :  { %5336 = vst.msk [vmem:[#allocation4 + $0x88] sm:$0xff] %vm846_vm3, %v5272_v57  ;;  %2129 = vrot.lane.b32.xlu0 %v9948_v42, %s8396_s17  ;;  %v1219_v57 = vsel %vm846_vm3, %v1089_v31, 0.0 }
 0x585   :  { %v4049_v28 = vpop.permute.xlu2 %4048 }
 0x588   :  { %v3666_v3 = vpop.permute.xlu0 %3665  ;;  %3282 = vrot.lane.b32.xlu1 %v10100_v36, %s8401_s11 }
 0x589   :  { %v10216_v35 = vld [vmem:[#allocation2 + $0x10f] sm:$0xff]  ;;  %v10218_v62 = vld [vmem:[#allocation2 + $0x107] sm:$0xff] }
 0x58a   :  { %1536 = vst.msk [vmem:[#allocation3 + $0x200] sm:$0xff] %vm312_vm2, %v10216_v35 }
 0x58b   :  { %1535 = vst.msk [vmem:[#allocation3 + $0x1f0] sm:$0xff] %vm312_vm2, %v10218_v62 }
 0x58c   :  { %2899 = vrot.lane.b32.xlu0 %v10133_v15, %s8397_s1 }
 0x58d   :  { %v4434_v41 = vpop.permute.xlu2 %4433 }
 0x590   :  { %v1743_v42 = vpop.permute.xlu0 %1742 }
 0x591   :  { %1912 = vst.msk [vmem:[#allocation3 + $0x170] sm:$0xff] %vm1888_vm5, %v1743_v42 }
 0x594   :  { %3284 = vrot.lane.b32.xlu0 %v10145_v45, %s8401_s11 }
 0x595   :  { %v1741_v60 = vpop.permute.xlu2 %1740 }
 0x596   :  { %1911 = vst.msk [vmem:[#allocation3 + $0x160] sm:$0xff] %vm1888_vm5, %v1741_v60 }
 0x597   :  { %v3664_v40 = vpop.permute.xlu1 %3663 }
 0x598   :  { %3835 = vst.msk [vmem:[#allocation3 + $0x150] sm:$0xff] %vm3813_vm10, %v3664_v40 }
 0x599   :  { %4220 = vst.msk [vmem:[#allocation3 + $0x150] sm:$0xff] %vm4198_vm11, %v4049_v28  ;;  %v5416_v28 = vld [vmem:[#allocation4 + $0x88] sm:$0xff] }
 0x59a   :  { %4605 = vst.msk [vmem:[#allocation3 + $0x150] sm:$0xff] %vm4583_vm12, %v4434_v41 }
 0x59b   :  { %2897 = vrot.lane.b32.xlu2 %v10082_v5, %s8397_s1 }
 0x59c   :  { %3669 = vrot.lane.b32.xlu0 %v10079_v52, %s8400_s10 }
 0x59d   :  { %v2511_v1 = vpop.permute.xlu2 %2510 }
 0x59f   :  { %v2126_v4 = vpop.permute.xlu1 %2125 }
 0x5a0   :  { %2296 = vst.msk [vmem:[#allocation3 + $0x160] sm:$0xff] %vm2273_vm6, %v2126_v4 }
 0x5a1   :  { %2681 = vst.msk [vmem:[#allocation3 + $0x160] sm:$0xff] %vm2658_vm7, %v2511_v1  ;;  %v4669_v10 = vld [vmem:[#allocation3 + $0x150] sm:$0xff] }
 0x5a2   :  { %v4797_v51 = vmul.f32 %v4733_v32, %v4669_v10  ;;  %v1025_v1 = vld [vmem:[%s8448_s21 + $0x110] sm:$0xff] }
 0x5a3   :  { %4052 = vrot.lane.b32.xlu2 %v10240_v0, %s8399_s7  ;;  %v1090_v4 = vmul.f32 %v9068_v34, %v1025_v1 }
 0x5a4   :  { %4439 = vrot.lane.b32.xlu0 %v10244_v59, %s8393_s28  ;;  %8048 = vmatmul.msk.f32.gmra.mxu1 %vm4846_vm13, %v4797_v51 }
 0x5a5   :  { %v3281_v17 = vpop.permute.xlu2 %3280  ;;  %v1222_v32 = vsel %vm846_vm3, %v1090_v4, 0.0 }
 0x5a7   :  { %v2896_v39 = vpop.permute.xlu1 %2895 }
 0x5a8   :  { %3066 = vst.msk [vmem:[#allocation3 + $0x160] sm:$0xff] %vm3043_vm8, %v2896_v39 }
 0x5a9   :  { %3451 = vst.msk [vmem:[#allocation3 + $0x160] sm:$0xff] %vm3428_vm9, %v3281_v17  ;;  %v10297_v17 = vld [vmem:[#allocation2 + $0xf0] sm:$0xff] }
 0x5aa   :  { %3836 = vst.msk [vmem:[#allocation3 + $0x160] sm:$0xff] %vm3813_vm10, %v3666_v3 }
 0x5ac   :  { %1746 = vrot.lane.b32.xlu0 %v10082_v5, %s8395_s13 }
 0x5ad   :  { %v4051_v58 = vpop.permute.xlu2 %4050 }
 0x5ae   :  { %4221 = vst.msk [vmem:[#allocation3 + $0x160] sm:$0xff] %vm4198_vm11, %v4051_v58  ;;  %v8269_v58 = vld [vmem:[%s8428_s5 + $0x158] sm:$0xff] }
 0x5b2   :  { %1262 = vadd.xlane.f32.xlu1 %v1261_v54 }
 0x5b4   :  { %2131 = vrot.lane.b32.xlu0 %v10100_v36, %s8396_s17 }
 0x5b5   :  { %v4436_v12 = vpop.permute.xlu2 %4435 }
 0x5b6   :  { %4606 = vst.msk [vmem:[#allocation3 + $0x160] sm:$0xff] %vm4583_vm12, %v4436_v12  ;;  %v1105_v12 = vmul.f32 %v9068_v34, %v1040_v23  ;;  %v8272_v23 = vld [vmem:[%s8428_s5 + $0x180] sm:$0xff] }
 0x5bb   :  { %v1254_v63 = vpop.xlane.xlu0 %1253 }
 0x5bc   :  { %v1356_v29 = vmul.f32 %v8265_v49, %v1254_v63  ;;  %2901 = vrot.lane.b32.xlu0 %v10240_v0, %s8397_s1  ;;  %v5113_v5 = vpop.f32.mrf.mxu1  ;;  %v1267_v63 = vsel %vm846_vm3, %v1105_v12, 0.0 }
 0x5bd   :  { %v4670_v43 = vld [vmem:[#allocation3 + $0x160] sm:$0xff]  ;;  %v5114_v6 = vadd.f32 %v10166_v50, %v5113_v5  ;;  %v8270_v5 = vld [vmem:[%s8428_s5 + $0x168] sm:$0xff] }
 0x5be   :  { %v4798_v18 = vmul.f32 %v4734_v20, %v4670_v43  ;;  %1420 = vst.msk [vmem:[#allocation2 + $0x180] sm:$0xff] %vm312_vm2, %v1356_v29 }
 0x5bf   :  { %v5273_v36 = vmax.f32 %v5114_v6, %v9649_v14 }
 0x5c0   :  { %8049 = vmatmul.msk.f32.gmra.mxu1 %vm4846_vm13, %v4798_v18 }
 0x5c1   :  { %5337 = vst.msk [vmem:[#allocation4 + $0x90] sm:$0xff] %vm846_vm3, %v5273_v36 }
 0x5c3   :  { %v1260_v30 = vpop.xlane.xlu0 %1259 }
 0x5c4   :  { %v1358_v56 = vmul.f32 %v8266_v25, %v1260_v30 }
 0x5c6   :  { %1422 = vst.msk [vmem:[#allocation2 + $0x190] sm:$0xff] %vm312_vm2, %v1358_v56 }
 0x5c8   :  { %v5417_v48 = vld [vmem:[#allocation4 + $0x90] sm:$0xff] }
 0x5c9   :  { %v5419_v61 = vmax.f32 %v5415_v26, %v5417_v48  ;;  %v4735_v48 = vld [vmem:[%s8453_s25 + $0xb8] sm:$0xff] }
 0x5cb   :  { %5421 = vst.msk [vmem:[#allocation5 + $0x40] sm:$0xff] %vm846_vm3, %v5419_v61  ;;  %v1218_v9 = vpop.xlane.xlu0 %1217  ;;  %2514 = vrot.lane.b32.xlu1 %v9363_v21, %s8398_s2  ;;  %v10338_v61 = vld [vmem:[#allocation2 + $0xf8] sm:$0xff] }
 0x5cc   :  { %1265 = vadd.xlane.f32.xlu2 %v1264_v55  ;;  %v1344_v11 = vmul.f32 %v8267_v37, %v1218_v9  ;;  %v5116_v47 = vpop.f32.mrf.mxu1  ;;  %v10343_v37 = vld [vmem:[#allocation2 + $0xf9] sm:$0xff] }
 0x5cd   :  { %v5117_v8 = vadd.f32 %v10166_v50, %v5116_v47  ;;  %v1026_v47 = vld [vmem:[%s8448_s21 + $0x118] sm:$0xff] }
 0x5ce   :  { %1408 = vst.msk [vmem:[#allocation2 + $0x120] sm:$0xff] %vm312_vm2, %v1344_v11  ;;  %v1091_v31 = vmul.f32 %v9068_v34, %v1026_v47 }
 0x5cf   :  { %v5274_v53 = vmax.f32 %v5117_v8, %v9649_v14 }
 0x5d1   :  { %5338 = vst.msk [vmem:[#allocation4 + $0x98] sm:$0xff] %vm846_vm3, %v5274_v53 }
 0x5d2   :  { %v1215_v19 = vpop.xlane.xlu1 %1214 }
 0x5d3   :  { %v1343_v21 = vmul.f32 %v8268_v44, %v1215_v19 }
 0x5d4   :  { %1220 = vadd.xlane.f32.xlu2 %v1219_v57  ;;  %v1225_v57 = vsel %vm846_vm3, %v1091_v31, 0.0 }
 0x5d5   :  { %1407 = vst.msk [vmem:[#allocation2 + $0x118] sm:$0xff] %vm312_vm2, %v1343_v21  ;;  %v1041_v21 = vld [vmem:[%s8448_s21 + $0x190] sm:$0xff] }
 0x5d8   :  { %v5418_v3 = vld [vmem:[#allocation4 + $0x98] sm:$0xff] }
 0x5d9   :  { %v5420_v41 = vmax.f32 %v5416_v28, %v5418_v3  ;;  %v8271_v3 = vld [vmem:[%s8428_s5 + $0x178] sm:$0xff] }
 0x5db   :  { %5422 = vst.msk [vmem:[#allocation5 + $0x48] sm:$0xff] %vm846_vm3, %v5420_v41 }
 0x5dc   :  { %v10289_v42 = vld [vmem:[#allocation2 + $0x117] sm:$0xff]  ;;  %v1474_v60 = vld [vmem:[#allocation2 + $0x11f] sm:$0xff] }
 0x5dd   :  { %1537 = vst.msk [vmem:[#allocation3 + $0x210] sm:$0xff] %vm312_vm2, %v10289_v42 }
 0x5de   :  { %v3668_v40 = vpop.permute.xlu0 %3667  ;;  %1538 = vst.msk [vmem:[#allocation3 + $0x220] sm:$0xff] %vm312_vm2, %v1474_v60 }
 0x5e6   :  { %1223 = vadd.xlane.f32.xlu0 %v1222_v32  ;;  %v4438_v10 = vpop.permute.xlu0 %4437 }
 0x5ea   :  { %v2128_v51 = vpop.permute.xlu1 %2127 }
 0x5eb   :  { %2297 = vst.msk [vmem:[#allocation3 + $0x170] sm:$0xff] %vm2273_vm6, %v2128_v51 }
 0x5ec   :  { %4054 = vrot.lane.b32.xlu2 %v10297_v17, %s8399_s7 }
 0x5ee   :  { %v1251_v39 = vpop.xlane.xlu2 %1250  ;;  %v1745_v54 = vpop.permute.xlu0 %1744 }
 0x5ef   :  { %v1355_v33 = vmul.f32 %v8269_v58, %v1251_v39  ;;  %1913 = vst.msk [vmem:[#allocation3 + $0x180] sm:$0xff] %vm1888_vm5, %v1745_v54  ;;  %v10395_v54 = vld [vmem:[#allocation2 + $0x101] sm:$0xff] }
 0x5f1   :  { %1419 = vst.msk [vmem:[#allocation2 + $0x178] sm:$0xff] %vm312_vm2, %v1355_v33  ;;  %v10385_v33 = vld [vmem:[#allocation2 + $0x108] sm:$0xff] }
 0x5f2   :  { %v2513_v20 = vpop.permute.xlu1 %2512 }
 0x5f3   :  { %2682 = vst.msk [vmem:[#allocation3 + $0x170] sm:$0xff] %vm2658_vm7, %v2513_v20  ;;  %v8273_v20 = vld [vmem:[%s8428_s5 + $0x108] sm:$0xff] }
 0x5f4   :  { %2516 = vrot.lane.b32.xlu2 %v9319_v46, %s8398_s2 }
 0x5f5   :  { %1268 = vadd.xlane.f32.xlu1 %v1267_v63 }
 0x5f6   :  { %v1257_v49 = vpop.xlane.xlu2 %1256  ;;  %v5119_v29 = vpop.f32.mrf.mxu1 }
 0x5f7   :  { %v1357_v43 = vmul.f32 %v8270_v5, %v1257_v49  ;;  %v5120_v6 = vadd.f32 %v10166_v50, %v5119_v29  ;;  %v2130_v18 = vpop.permute.xlu0 %2129 }
 0x5f8   :  { %2298 = vst.msk [vmem:[#allocation3 + $0x180] sm:$0xff] %vm2273_vm6, %v2130_v18  ;;  %v1486_v36 = vld [vmem:[#allocation2 + $0x17f] sm:$0xff] }
 0x5f9   :  { %1421 = vst.msk [vmem:[#allocation2 + $0x188] sm:$0xff] %vm312_vm2, %v1357_v43  ;;  %v5275_v30 = vmax.f32 %v5120_v6, %v9649_v14 }
 0x5fa   :  { %1550 = vst.msk [vmem:[#allocation3 + $0x2e0] sm:$0xff] %vm312_vm2, %v1486_v36  ;;  %2133 = vrot.lane.b32.xlu0 %v10145_v45, %s8396_s17  ;;  %v3283_v38 = vpop.permute.xlu1 %3282  ;;  %v4736_v36 = vld [vmem:[%s8453_s25 + $0xc0] sm:$0xff] }
 0x5fb   :  { %5339 = vst.msk [vmem:[#allocation4 + $0xa0] sm:$0xff] %vm846_vm3, %v5275_v30 }
 0x5fc   :  { %3286 = vrot.lane.b32.xlu2 %v10181_v13, %s8401_s11 }
 0x5fe   :  { %v2898_v46 = vpop.permute.xlu2 %2897 }
 0x5ff   :  { %3067 = vst.msk [vmem:[#allocation3 + $0x170] sm:$0xff] %vm3043_vm8, %v2898_v46  ;;  %v2900_v25 = vpop.permute.xlu0 %2899 }
 0x600   :  { %3452 = vst.msk [vmem:[#allocation3 + $0x170] sm:$0xff] %vm3428_vm9, %v3283_v38  ;;  %v10324_v56 = vld [vmem:[#allocation2 + $0x187] sm:$0xff]  ;;  %v10327_v16 = vld [vmem:[#allocation2 + $0x18f] sm:$0xff] }
 0x601   :  { %3837 = vst.msk [vmem:[#allocation3 + $0x170] sm:$0xff] %vm3813_vm10, %v3668_v40  ;;  %v8274_v38 = vld [vmem:[%s8428_s5 + $0x110] sm:$0xff] }
 0x602   :  { %1551 = vst.msk [vmem:[#allocation3 + $0x2f0] sm:$0xff] %vm312_vm2, %v10324_v56  ;;  %v5423_v49 = vld [vmem:[#allocation4 + $0xa0] sm:$0xff] }
 0x603   :  { %1552 = vst.msk [vmem:[#allocation3 + $0x300] sm:$0xff] %vm312_vm2, %v10327_v16 }
 0x604   :  { %3671 = vrot.lane.b32.xlu2 %v10095_v22, %s8400_s10 }
 0x606   :  { %v4053_v45 = vpop.permute.xlu2 %4052 }
 0x607   :  { %4222 = vst.msk [vmem:[#allocation3 + $0x170] sm:$0xff] %vm4198_vm11, %v4053_v45  ;;  %v3285_v26 = vpop.permute.xlu0 %3284 }
 0x608   :  { %4607 = vst.msk [vmem:[#allocation3 + $0x170] sm:$0xff] %vm4583_vm12, %v4438_v10  ;;  %v10377_v10 = vld [vmem:[#allocation2 + $0x100] sm:$0xff] }
 0x60e   :  { %4056 = vrot.lane.b32.xlu1 %v10338_v61, %s8399_s7 }
 0x60f   :  { %v3670_v55 = vpop.permute.xlu0 %3669  ;;  %v4671_v9 = vld [vmem:[#allocation3 + $0x170] sm:$0xff] }
 0x610   :  { %v4799_v27 = vmul.f32 %v4735_v48, %v4671_v9 }
 0x612   :  { %8050 = vmatmul.msk.f32.gmra.mxu1 %vm4846_vm13, %v4799_v27 }
 0x616   :  { %4441 = vrot.lane.b32.xlu1 %v10343_v37, %s8393_s28 }
 0x617   :  { %v10345_v11 = vpop.permute.xlu0 %4439 }
 0x61e   :  { %1748 = vrot.lane.b32.xlu1 %v10133_v15, %s8395_s13  ;;  %v1106_v15 = vmul.f32 %v9068_v34, %v1041_v21 }
 0x61f   :  { %v1747_v8 = vpop.permute.xlu0 %1746 }
 0x620   :  { %1914 = vst.msk [vmem:[#allocation3 + $0x190] sm:$0xff] %vm1888_vm5, %v1747_v8  ;;  %v1270_v40 = vsel %vm846_vm3, %v1106_v15, 0.0 }
 0x621   :  { %v5122_v53 = vpop.f32.mrf.mxu1 }
 0x622   :  { %v5123_v19 = vadd.f32 %v10166_v50, %v5122_v53  ;;  %v1033_v53 = vld [vmem:[%s8448_s21 + $0x150] sm:$0xff] }
 0x624   :  { %v5276_v44 = vmax.f32 %v5123_v19, %v9649_v14  ;;  %1226 = vadd.xlane.f32.xlu0 %v1225_v57  ;;  %v1098_v19 = vmul.f32 %v9068_v34, %v1033_v53 }
 0x625   :  { %v1263_v28 = vpop.xlane.xlu1 %1262 }
 0x626   :  { %5340 = vst.msk [vmem:[#allocation4 + $0xa8] sm:$0xff] %vm846_vm3, %v5276_v44  ;;  %v1359_v41 = vmul.f32 %v8271_v3, %v1263_v28  ;;  %2518 = vrot.lane.b32.xlu1 %v10079_v52, %s8398_s2  ;;  %v1246_v57 = vsel %vm846_vm3, %v1098_v19, 0.0  ;;  %v1044_v28 = vld [vmem:[%s8448_s21 + $0x1a8] sm:$0xff] }
 0x627   :  { %v2132_v60 = vpop.permute.xlu0 %2131  ;;  %v1109_v3 = vmul.f32 %v9068_v34, %v1044_v28 }
 0x628   :  { %2299 = vst.msk [vmem:[#allocation3 + $0x190] sm:$0xff] %vm2273_vm6, %v2132_v60  ;;  %v4737_v60 = vld [vmem:[%s8453_s25 + $0xc8] sm:$0xff] }
 0x629   :  { %1423 = vst.msk [vmem:[#allocation2 + $0x198] sm:$0xff] %vm312_vm2, %v1359_v41 }
 0x62d   :  { %1271 = vadd.xlane.f32.xlu2 %v1270_v40 }
 0x62e   :  { %3288 = vrot.lane.b32.xlu1 %v10244_v59, %s8401_s11 }
 0x630   :  { %v10368_v1 = vld [vmem:[#allocation2 + $0x197] sm:$0xff] }
 0x631   :  { %1553 = vst.msk [vmem:[#allocation3 + $0x310] sm:$0xff] %vm312_vm2, %v10368_v1 }
 0x636   :  { %3673 = vrot.lane.b32.xlu1 %v10176_v2, %s8400_s10 }
 0x638   :  { %2905 = vrot.lane.b32.xlu0 %v10338_v61, %s8397_s1 }
 0x63d   :  { %v5125_v52 = vpop.f32.mrf.mxu1  ;;  %v2515_v32 = vpop.permute.xlu1 %2514 }
 0x63e   :  { %v5126_v4 = vadd.f32 %v10166_v50, %v5125_v52  ;;  %2683 = vst.msk [vmem:[#allocation3 + $0x180] sm:$0xff] %vm2658_vm7, %v2515_v32  ;;  %4058 = vrot.lane.b32.xlu1 %v10377_v10, %s8399_s7  ;;  %v1043_v32 = vld [vmem:[%s8448_s21 + $0x1a0] sm:$0xff] }
 0x63f   :  { %v1266_v51 = vpop.xlane.xlu2 %1265  ;;  %3068 = vst.msk [vmem:[#allocation3 + $0x180] sm:$0xff] %vm3043_vm8, %v2900_v25 }
 0x640   :  { %v5277_v39 = vmax.f32 %v5126_v4, %v9649_v14  ;;  %v1360_v58 = vmul.f32 %v8272_v23, %v1266_v51  ;;  %3453 = vst.msk [vmem:[#allocation3 + $0x180] sm:$0xff] %vm3428_vm9, %v3285_v26  ;;  %4060 = vrot.lane.b32.xlu0 %v10385_v33, %s8399_s7 }
 0x641   :  { %3838 = vst.msk [vmem:[#allocation3 + $0x180] sm:$0xff] %vm3813_vm10, %v3670_v55  ;;  %v8275_v55 = vld [vmem:[%s8428_s5 + $0x188] sm:$0xff] }
 0x642   :  { %5341 = vst.msk [vmem:[#allocation4 + $0xb0] sm:$0xff] %vm846_vm3, %v5277_v39  ;;  %v1279_v39 = vsel %vm846_vm3, %v1109_v3, 0.0 }
 0x643   :  { %1424 = vst.msk [vmem:[#allocation2 + $0x1a0] sm:$0xff] %vm312_vm2, %v1360_v58  ;;  %v1108_v58 = vmul.f32 %v9068_v34, %v1043_v32 }
 0x645   :  { %2903 = vrot.lane.b32.xlu2 %v10297_v17, %s8397_s1 }
 0x646   :  { %4443 = vrot.lane.b32.xlu1 %v10395_v54, %s8393_s28 }
 0x647   :  { %v1221_v12 = vpop.xlane.xlu2 %1220 }
 0x648   :  { %v1345_v63 = vmul.f32 %v8273_v20, %v1221_v12  ;;  %1752 = vrot.lane.b32.xlu0 %v10297_v17, %s8395_s13  ;;  %v2902_v17 = vpop.permute.xlu0 %2901  ;;  %v10465_v12 = vld [vmem:[#allocation2 + $0x109] sm:$0xff] }
 0x649   :  { %v5425_v29 = vld [vmem:[#allocation4 + $0xb0] sm:$0xff] }
 0x64a   :  { %v5427_v5 = vmax.f32 %v5423_v49, %v5425_v29  ;;  %1409 = vst.msk [vmem:[#allocation2 + $0x128] sm:$0xff] %vm312_vm2, %v1345_v63  ;;  %v1490_v43 = vld [vmem:[#allocation2 + $0x19f] sm:$0xff]  ;;  %v1276_v63 = vsel %vm846_vm3, %v1108_v58, 0.0 }
 0x64b   :  { %1554 = vst.msk [vmem:[#allocation3 + $0x320] sm:$0xff] %vm312_vm2, %v1490_v43  ;;  %v8276_v49 = vld [vmem:[%s8428_s5 + $0x118] sm:$0xff]  ;;  %v5424_v43 = vld [vmem:[#allocation4 + $0xa8] sm:$0xff] }
 0x64c   :  { %5429 = vst.msk [vmem:[#allocation5 + $0x50] sm:$0xff] %vm846_vm3, %v5427_v5  ;;  %v10534_v58 = vld [vmem:[#allocation2 + $0x198] sm:$0xff] }
 0x64e   :  { %1750 = vrot.lane.b32.xlu1 %v10240_v0, %s8395_s13 }
 0x64f   :  { %v4055_v6 = vpop.permute.xlu2 %4054 }
 0x650   :  { %4223 = vst.msk [vmem:[#allocation3 + $0x180] sm:$0xff] %vm4198_vm11, %v4055_v6  ;;  %2137 = vrot.lane.b32.xlu0 %v10244_v59, %s8396_s17 }
 0x651   :  { %4608 = vst.msk [vmem:[#allocation3 + $0x180] sm:$0xff] %vm4583_vm12, %v10345_v11  ;;  %v1475_v18 = vld [vmem:[#allocation2 + $0x127] sm:$0xff] }
 0x652   :  { %1539 = vst.msk [vmem:[#allocation3 + $0x230] sm:$0xff] %vm312_vm2, %v1475_v18  ;;  %v1027_v11 = vld [vmem:[%s8448_s21 + $0x120] sm:$0xff] }
 0x653   :  { %v1092_v47 = vmul.f32 %v9068_v34, %v1027_v11 }
 0x655   :  { %v1228_v31 = vsel %vm846_vm3, %v1092_v47, 0.0 }
 0x656   :  { %2135 = vrot.lane.b32.xlu1 %v10181_v13, %s8396_s17  ;;  %v1042_v13 = vld [vmem:[%s8448_s21 + $0x198] sm:$0xff] }
 0x657   :  { %v2517_v30 = vpop.permute.xlu2 %2516  ;;  %v1107_v48 = vmul.f32 %v9068_v34, %v1042_v13 }
 0x658   :  { %2684 = vst.msk [vmem:[#allocation3 + $0x190] sm:$0xff] %vm2658_vm7, %v2517_v30  ;;  %v4672_v0 = vld [vmem:[#allocation3 + $0x180] sm:$0xff]  ;;  %2522 = vrot.lane.b32.xlu0 %v10176_v2, %s8398_s2 }
 0x659   :  { %3069 = vst.msk [vmem:[#allocation3 + $0x190] sm:$0xff] %vm3043_vm8, %v2902_v17  ;;  %v4800_v46 = vmul.f32 %v4736_v36, %v4672_v0  ;;  %v1224_v59 = vpop.xlane.xlu0 %1223  ;;  %v1273_v27 = vsel %vm846_vm3, %v1107_v48, 0.0  ;;  %v8277_v36 = vld [vmem:[%s8428_s5 + $0x190] sm:$0xff] }
 0x65a   :  { %v1346_v25 = vmul.f32 %v8274_v38, %v1224_v59  ;;  %v10496_v48 = vld [vmem:[#allocation2 + $0x111] sm:$0xff] }
 0x65b   :  { %8051 = vmatmul.msk.f32.gmra.mxu1 %vm4846_vm13, %v4800_v46 }
 0x65c   :  { %1410 = vst.msk [vmem:[#allocation2 + $0x130] sm:$0xff] %vm312_vm2, %v1346_v25 }
 0x65e   :  { %2520 = vrot.lane.b32.xlu1 %v10095_v22, %s8398_s2 }
 0x65f   :  { %v3287_v45 = vpop.permute.xlu2 %3286 }
 0x660   :  { %3454 = vst.msk [vmem:[#allocation3 + $0x190] sm:$0xff] %vm3428_vm9, %v3287_v45  ;;  %3292 = vrot.lane.b32.xlu0 %v10395_v54, %s8401_s11 }
 0x663   :  { %v10428_v2 = vld [vmem:[#allocation2 + $0x12f] sm:$0xff] }
 0x664   :  { %1540 = vst.msk [vmem:[#allocation3 + $0x240] sm:$0xff] %vm312_vm2, %v10428_v2 }
 0x666   :  { %3290 = vrot.lane.b32.xlu1 %v10343_v37, %s8401_s11 }
 0x667   :  { %v3672_v26 = vpop.permute.xlu2 %3671 }
 0x668   :  { %3839 = vst.msk [vmem:[#allocation3 + $0x190] sm:$0xff] %vm3813_vm10, %v3672_v26  ;;  %3677 = vrot.lane.b32.xlu0 %v10216_v35, %s8400_s10  ;;  %v1269_v22 = vpop.xlane.xlu1 %1268  ;;  %v10491_v26 = vld [vmem:[#allocation2 + $0x110] sm:$0xff] }
 0x669   :  { %v1361_v9 = vmul.f32 %v8275_v55, %v1269_v22 }
 0x66b   :  { %1425 = vst.msk [vmem:[#allocation2 + $0x1a8] sm:$0xff] %vm312_vm2, %v1361_v9  ;;  %v4738_v9 = vld [vmem:[%s8453_s25 + $0xd0] sm:$0xff] }
 0x66c   :  { %v2134_v15 = vpop.permute.xlu0 %2133 }
 0x66e   :  { %1274 = vadd.xlane.f32.xlu2 %v1273_v27  ;;  %3675 = vrot.lane.b32.xlu1 %v10218_v62, %s8400_s10  ;;  %v1028_v27 = vld [vmem:[%s8448_s21 + $0x128] sm:$0xff] }
 0x672   :  { %v1491_v8 = vld [vmem:[#allocation2 + $0x1a7] sm:$0xff] }
 0x673   :  { %1555 = vst.msk [vmem:[#allocation3 + $0x330] sm:$0xff] %vm312_vm2, %v1491_v8 }
 0x676   :  { %1229 = vadd.xlane.f32.xlu2 %v1228_v31  ;;  %v1093_v31 = vmul.f32 %v9068_v34, %v1028_v27 }
 0x678   :  { %v1231_v19 = vsel %vm846_vm3, %v1093_v31, 0.0 }
 0x67e   :  { %1247 = vadd.xlane.f32.xlu2 %v1246_v57 }
 0x680   :  { %v4057_v44 = vpop.permute.xlu1 %4056 }
 0x681   :  { %4224 = vst.msk [vmem:[#allocation3 + $0x190] sm:$0xff] %vm4198_vm11, %v4057_v44  ;;  %v1613_v44 = vld [vmem:[#allocation2 + $0x178] sm:$0xff] }
 0x688   :  { %v4442_v21 = vpop.permute.xlu1 %4441 }
 0x689   :  { %4609 = vst.msk [vmem:[#allocation3 + $0x190] sm:$0xff] %vm4583_vm12, %v4442_v21  ;;  %v1029_v21 = vld [vmem:[%s8448_s21 + $0x130] sm:$0xff] }
 0x68f   :  { %v5128_v41 = vpop.f32.mrf.mxu1 }
 0x690   :  { %v5129_v40 = vadd.f32 %v10166_v50, %v5128_v41  ;;  %v1749_v52 = vpop.permute.xlu1 %1748  ;;  %v4673_v4 = vld [vmem:[#allocation3 + $0x190] sm:$0xff] }
 0x691   :  { %1915 = vst.msk [vmem:[#allocation3 + $0x1a0] sm:$0xff] %vm1888_vm5, %v1749_v52  ;;  %v4801_v23 = vmul.f32 %v4737_v60, %v4673_v4  ;;  %v1998_v60 = vld [vmem:[#allocation2 + $0x179] sm:$0xff] }
 0x692   :  { %v5278_v51 = vmax.f32 %v5129_v40, %v9649_v14  ;;  %2300 = vst.msk [vmem:[#allocation3 + $0x1a0] sm:$0xff] %vm2273_vm6, %v2134_v15  ;;  %1280 = vadd.xlane.f32.xlu0 %v1279_v39  ;;  %v8278_v39 = vld [vmem:[%s8428_s5 + $0x198] sm:$0xff] }
 0x693   :  { %8052 = vmatmul.msk.f32.gmra.mxu1 %vm4846_vm13, %v4801_v23 }
 0x694   :  { %5342 = vst.msk [vmem:[#allocation4 + $0xb8] sm:$0xff] %vm846_vm3, %v5278_v51 }
 0x696   :  { %4445 = vrot.lane.b32.xlu2 %v10465_v12, %s8393_s28 }
 0x697   :  { %v1227_v20 = vpop.xlane.xlu0 %1226 }
 0x698   :  { %v1347_v29 = vmul.f32 %v8276_v49, %v1227_v20  ;;  %1277 = vadd.xlane.f32.xlu1 %v1276_v63  ;;  %v2519_v5 = vpop.permute.xlu1 %2518  ;;  %v8279_v20 = vld [vmem:[%s8428_s5 + $0x120] sm:$0xff] }
 0x699   :  { %2685 = vst.msk [vmem:[#allocation3 + $0x1a0] sm:$0xff] %vm2658_vm7, %v2519_v5  ;;  %v10554_v5 = vld [vmem:[#allocation2 + $0x118] sm:$0xff] }
 0x69a   :  { %1411 = vst.msk [vmem:[#allocation2 + $0x138] sm:$0xff] %vm312_vm2, %v1347_v29  ;;  %v10550_v29 = vld [vmem:[#allocation2 + $0x188] sm:$0xff] }
 0x69b   :  { %v5426_v6 = vld [vmem:[#allocation4 + $0xb8] sm:$0xff] }
 0x69c   :  { %v5428_v17 = vmax.f32 %v5424_v43, %v5426_v6  ;;  %v8280_v43 = vld [vmem:[%s8428_s5 + $0x150] sm:$0xff] }
 0x69e   :  { %5430 = vst.msk [vmem:[#allocation5 + $0x58] sm:$0xff] %vm846_vm3, %v5428_v17  ;;  %2907 = vrot.lane.b32.xlu2 %v10377_v10, %s8397_s1 }
 0x6a0   :  { %v1272_v18 = vpop.xlane.xlu2 %1271  ;;  %v3289_v0 = vpop.permute.xlu1 %3288 }
 0x6a1   :  { %v1362_v30 = vmul.f32 %v8277_v36, %v1272_v18  ;;  %v10477_v46 = vld [vmem:[#allocation2 + $0x137] sm:$0xff]  ;;  %v10566_v18 = vld [vmem:[#allocation2 + $0x189] sm:$0xff] }
 0x6a2   :  { %1541 = vst.msk [vmem:[#allocation3 + $0x250] sm:$0xff] %vm312_vm2, %v10477_v46 }
 0x6a3   :  { %1426 = vst.msk [vmem:[#allocation2 + $0x1b0] sm:$0xff] %vm312_vm2, %v1362_v30 }
 0x6a6   :  { %2524 = vrot.lane.b32.xlu0 %v10218_v62, %s8398_s2 }
 0x6a8   :  { %v2904_v59 = vpop.permute.xlu2 %2903  ;;  %v3674_v38 = vpop.permute.xlu1 %3673 }
 0x6a9   :  { %3070 = vst.msk [vmem:[#allocation3 + $0x1a0] sm:$0xff] %vm3043_vm8, %v2904_v59  ;;  %v4739_v59 = vld [vmem:[%s8453_s25 + $0xd8] sm:$0xff] }
 0x6aa   :  { %3455 = vst.msk [vmem:[#allocation3 + $0x1a0] sm:$0xff] %vm3428_vm9, %v3289_v0  ;;  %v10486_v25 = vld [vmem:[#allocation2 + $0x1af] sm:$0xff]  ;;  %v2906_v45 = vpop.permute.xlu0 %2905 }
 0x6ab   :  { %3840 = vst.msk [vmem:[#allocation3 + $0x1a0] sm:$0xff] %vm3813_vm10, %v3674_v38 }
 0x6ac   :  { %1556 = vst.msk [vmem:[#allocation3 + $0x340] sm:$0xff] %vm312_vm2, %v10486_v25 }
 0x6b0   :  { %v4059_v13 = vpop.permute.xlu1 %4058 }
 0x6b1   :  { %4225 = vst.msk [vmem:[#allocation3 + $0x1a0] sm:$0xff] %vm4198_vm11, %v4059_v13  ;;  %4062 = vrot.lane.b32.xlu1 %v10491_v26, %s8399_s7 }
 0x6b2   :  { %v4061_v62 = vpop.permute.xlu0 %4060 }
 0x6b8   :  { %v4444_v22 = vpop.permute.xlu1 %4443 }
 0x6b9   :  { %4610 = vst.msk [vmem:[#allocation3 + $0x1a0] sm:$0xff] %vm4583_vm12, %v4444_v22  ;;  %4447 = vrot.lane.b32.xlu1 %v10496_v48, %s8393_s28  ;;  %v10585_v22 = vld [vmem:[#allocation2 + $0x11f] sm:$0xff] }
 0x6ba   :  { %v1753_v55 = vpop.permute.xlu0 %1752 }
 0x6bb   :  { %1917 = vst.msk [vmem:[#allocation3 + $0x1c0] sm:$0xff] %vm1888_vm5, %v1753_v55 }
 0x6c0   :  { %v1751_v11 = vpop.permute.xlu1 %1750  ;;  %v4674_v47 = vld [vmem:[#allocation3 + $0x1a0] sm:$0xff] }
 0x6c1   :  { %1916 = vst.msk [vmem:[#allocation3 + $0x1b0] sm:$0xff] %vm1888_vm5, %v1751_v11  ;;  %1754 = vrot.lane.b32.xlu1 %v10338_v61, %s8395_s13  ;;  %v4802_v8 = vmul.f32 %v4738_v9, %v4674_v47  ;;  %v1094_v61 = vmul.f32 %v9068_v34, %v1029_v21  ;;  %v8281_v9 = vld [vmem:[%s8428_s5 + $0x1a8] sm:$0xff]  ;;  %v10593_v47 = vld [vmem:[#allocation2 + $0x120] sm:$0xff] }
 0x6c2   :  { %v2138_v53 = vpop.permute.xlu0 %2137 }
 0x6c3   :  { %2302 = vst.msk [vmem:[#allocation3 + $0x1c0] sm:$0xff] %vm2273_vm6, %v2138_v53  ;;  %8053 = vmatmul.msk.f32.gmra.mxu1 %vm4846_vm13, %v4802_v8  ;;  %v1234_v3 = vsel %vm846_vm3, %v1094_v61, 0.0  ;;  %v8282_v8 = vld [vmem:[%s8428_s5 + $0x1a0] sm:$0xff] }
 0x6c4   :  { %v10619_v61 = vld [vmem:[#allocation2 + $0x121] sm:$0xff] }
 0x6c7   :  { %1232 = vadd.xlane.f32.xlu2 %v1231_v19 }
 0x6c8   :  { %v2136_v57 = vpop.permute.xlu1 %2135 }
 0x6c9   :  { %2301 = vst.msk [vmem:[#allocation3 + $0x1b0] sm:$0xff] %vm2273_vm6, %v2136_v57  ;;  %1786 = vrot.lane.b32.xlu1 %v1613_v44, %s8395_s13 }
 0x6ca   :  { %v2523_v28 = vpop.permute.xlu0 %2522 }
 0x6cb   :  { %2687 = vst.msk [vmem:[#allocation3 + $0x1c0] sm:$0xff] %vm2658_vm7, %v2523_v28  ;;  %v1045_v28 = vld [vmem:[%s8448_s21 + $0x1b0] sm:$0xff] }
 0x6d0   :  { %1235 = vadd.xlane.f32.xlu0 %v1234_v3  ;;  %v2521_v41 = vpop.permute.xlu1 %2520 }
 0x6d1   :  { %2686 = vst.msk [vmem:[#allocation3 + $0x1b0] sm:$0xff] %vm2658_vm7, %v2521_v41  ;;  %2171 = vrot.lane.b32.xlu1 %v1998_v60, %s8396_s17  ;;  %v1999_v41 = vld [vmem:[#allocation2 + $0x181] sm:$0xff] }
 0x6d2   :  { %3071 = vst.msk [vmem:[#allocation3 + $0x1b0] sm:$0xff] %vm3043_vm8, %v2906_v45  ;;  %v10577_v45 = vld [vmem:[#allocation2 + $0x119] sm:$0xff] }
 0x6d8   :  { %v5131_v15 = vpop.f32.mrf.mxu1  ;;  %v3291_v52 = vpop.permute.xlu1 %3290 }
 0x6d9   :  { %v5132_v40 = vadd.f32 %v10166_v50, %v5131_v15  ;;  %3456 = vst.msk [vmem:[#allocation3 + $0x1b0] sm:$0xff] %vm3428_vm9, %v3291_v52  ;;  %2909 = vrot.lane.b32.xlu1 %v10385_v33, %s8397_s1 }
 0x6db   :  { %v5279_v4 = vmax.f32 %v5132_v40, %v9649_v14  ;;  %v4740_v40 = vld [vmem:[%s8453_s25 + $0xe0] sm:$0xff] }
 0x6dd   :  { %5343 = vst.msk [vmem:[#allocation4 + $0xc0] sm:$0xff] %vm846_vm3, %v5279_v4  ;;  %v10634_v4 = vld [vmem:[#allocation2 + $0x1a1] sm:$0xff] }
 0x6df   :  { %2139 = vrot.lane.b32.xlu2 %v10343_v37, %s8396_s17 }
 0x6e0   :  { %v3676_v51 = vpop.permute.xlu1 %3675 }
 0x6e1   :  { %v1275_v32 = vpop.xlane.xlu2 %1274  ;;  %3841 = vst.msk [vmem:[#allocation3 + $0x1b0] sm:$0xff] %vm3813_vm10, %v3676_v51  ;;  %3294 = vrot.lane.b32.xlu1 %v10465_v12, %s8401_s11  ;;  %v1614_v51 = vld [vmem:[#allocation2 + $0x180] sm:$0xff] }
 0x6e2   :  { %v1363_v23 = vmul.f32 %v8278_v39, %v1275_v32  ;;  %4226 = vst.msk [vmem:[#allocation3 + $0x1b0] sm:$0xff] %vm4198_vm11, %v4061_v62  ;;  %v8283_v39 = vld [vmem:[%s8428_s5 + $0x128] sm:$0xff] }
 0x6e4   :  { %1427 = vst.msk [vmem:[#allocation2 + $0x1b8] sm:$0xff] %vm312_vm2, %v1363_v23  ;;  %4096 = vrot.lane.b32.xlu0 %v10534_v58, %s8399_s7 }
 0x6e7   :  { %2556 = vrot.lane.b32.xlu2 %v10324_v56, %s8398_s2 }
 0x6e9   :  { %v1230_v37 = vpop.xlane.xlu2 %1229  ;;  %3679 = vrot.lane.b32.xlu1 %v10289_v42, %s8400_s10 }
 0x6ea   :  { %v1348_v63 = vmul.f32 %v8279_v20, %v1230_v37  ;;  %v10646_v20 = vld [vmem:[#allocation2 + $0x190] sm:$0xff] }
 0x6eb   :  { %v10543_v49 = vld [vmem:[#allocation2 + $0x1b7] sm:$0xff] }
 0x6ec   :  { %1412 = vst.msk [vmem:[#allocation2 + $0x140] sm:$0xff] %vm312_vm2, %v1348_v63  ;;  %2526 = vrot.lane.b32.xlu0 %v10216_v35, %s8398_s2  ;;  %v3293_v35 = vpop.permute.xlu0 %3292 }
 0x6ed   :  { %1557 = vst.msk [vmem:[#allocation3 + $0x350] sm:$0xff] %vm312_vm2, %v10543_v49 }
 0x6ef   :  { %2941 = vrot.lane.b32.xlu2 %v10550_v29, %s8397_s1 }
 0x6f1   :  { %v1248_v56 = vpop.xlane.xlu2 %1247  ;;  %4064 = vrot.lane.b32.xlu1 %v10554_v5, %s8399_s7 }
 0x6f2   :  { %v1354_v6 = vmul.f32 %v8280_v43, %v1248_v56  ;;  %v10651_v43 = vld [vmem:[%s8463_s3] ss:$0 sm:$0xff] }
 0x6f3   :  { %v10559_v17 = vld [vmem:[#allocation2 + $0x13f] sm:$0xff] }
 0x6f4   :  { %1418 = vst.msk [vmem:[#allocation2 + $0x170] sm:$0xff] %vm312_vm2, %v1354_v6  ;;  %2911 = vrot.lane.b32.xlu0 %v10491_v26, %s8397_s1  ;;  %v3678_v0 = vpop.permute.xlu0 %3677 }
 0x6f5   :  { %1542 = vst.msk [vmem:[#allocation3 + $0x260] sm:$0xff] %vm312_vm2, %v10559_v17 }
 0x6f7   :  { %3326 = vrot.lane.b32.xlu2 %v10566_v18, %s8401_s11 }
 0x6f9   :  { %v4446_v36 = vpop.permute.xlu2 %4445  ;;  %3711 = vrot.lane.b32.xlu1 %v10368_v1, %s8400_s10 }
 0x6fa   :  { %4611 = vst.msk [vmem:[#allocation3 + $0x1b0] sm:$0xff] %vm4583_vm12, %v4446_v36 }
 0x6fb   :  { %v1485_v30 = vld [vmem:[#allocation2 + $0x177] sm:$0xff] }
 0x6fc   :  { %1549 = vst.msk [vmem:[#allocation3 + $0x2d0] sm:$0xff] %vm312_vm2, %v1485_v30  ;;  %3296 = vrot.lane.b32.xlu0 %v10496_v48, %s8401_s11  ;;  %v8285_v30 = vld [vmem:[%s8428_s5 + $0x130] sm:$0xff] }
 0x701   :  { %v2908_v38 = vpop.permute.xlu2 %2907  ;;  %v4675_v13 = vld [vmem:[#allocation3 + $0x1b0] sm:$0xff]  ;;  %4449 = vrot.lane.b32.xlu1 %v10577_v45, %s8393_s28 }
 0x702   :  { %3072 = vst.msk [vmem:[#allocation3 + $0x1c0] sm:$0xff] %vm3043_vm8, %v2908_v38  ;;  %v4803_v62 = vmul.f32 %v4739_v59, %v4675_v13  ;;  %v10665_v38 = vld [vmem:[#allocation2 + $0x191] sm:$0xff] }
 0x703   :  { %3457 = vst.msk [vmem:[#allocation3 + $0x1c0] sm:$0xff] %vm3428_vm9, %v3293_v35 }
 0x704   :  { %3842 = vst.msk [vmem:[#allocation3 + $0x1c0] sm:$0xff] %vm3813_vm10, %v3678_v0  ;;  %8054 = vmatmul.msk.f32.gmra.mxu1 %vm4846_vm13, %v4803_v62  ;;  %3681 = vrot.lane.b32.xlu0 %v10585_v22, %s8400_s10 }
 0x705   :  { %v1281_v55 = vpop.xlane.xlu0 %1280 }
 0x706   :  { %v1365_v27 = vmul.f32 %v8281_v9, %v1281_v55  ;;  %v1030_v55 = vld [vmem:[%s8448_s21 + $0x138] sm:$0xff]  ;;  %v5431_v9 = vld [vmem:[#allocation4 + $0xc0] sm:$0xff] }
 0x708   :  { %1429 = vst.msk [vmem:[#allocation2 + $0x1c8] sm:$0xff] %vm312_vm2, %v1365_v27 }
 0x709   :  { %1756 = vrot.lane.b32.xlu1 %v10377_v10, %s8395_s13  ;;  %v10603_v10 = vld [vmem:[#allocation2 + $0x19f] sm:$0xff] }
 0x70b   :  { %v1278_v11 = vpop.xlane.xlu1 %1277 }
 0x70c   :  { %v1364_v31 = vmul.f32 %v8282_v8, %v1278_v11  ;;  %4066 = vrot.lane.b32.xlu0 %v10593_v47, %s8399_s7  ;;  %v1095_v8 = vmul.f32 %v9068_v34, %v1030_v55 }
 0x70e   :  { %1428 = vst.msk [vmem:[#allocation2 + $0x1c0] sm:$0xff] %vm312_vm2, %v1364_v31 }
 0x710   :  { %v5134_v53 = vpop.f32.mrf.mxu1 }
 0x711   :  { %v5135_v19 = vadd.f32 %v10166_v50, %v5134_v53  ;;  %2141 = vrot.lane.b32.xlu1 %v10395_v54, %s8396_s17  ;;  %v10614_v50 = vld [vmem:[#allocation2 + $0x199] sm:$0xff]  ;;  %v1110_v54 = vmul.f32 %v9068_v34, %v1045_v28 }
 0x713   :  { %v5280_v57 = vmax.f32 %v5135_v19, %v9649_v14  ;;  %v1282_v3 = vsel %vm846_vm3, %v1110_v54, 0.0  ;;  %v1237_v19 = vsel %vm846_vm3, %v1095_v8, 0.0  ;;  %v8286_v8 = vld [vmem:[%s8428_s5 + $0x1b0] sm:$0xff] }
 0x714   :  { %3713 = vrot.lane.b32.xlu0 %v10603_v10, %s8400_s10 }
 0x715   :  { %5344 = vst.msk [vmem:[#allocation4 + $0xc8] sm:$0xff] %vm846_vm3, %v5280_v57  ;;  %v10608_v44 = vld [vmem:[#allocation2 + $0x1bf] sm:$0xff]  ;;  %v1495_v21 = vld [vmem:[#allocation2 + $0x1c7] sm:$0xff] }
 0x716   :  { %1558 = vst.msk [vmem:[#allocation3 + $0x360] sm:$0xff] %vm312_vm2, %v10608_v44 }
 0x717   :  { %1559 = vst.msk [vmem:[#allocation3 + $0x370] sm:$0xff] %vm312_vm2, %v1495_v21  ;;  %v10681_v21 = vld [vmem:[#allocation2 + $0x127] sm:$0xff] }
 0x718   :  { %v2525_v23 = vpop.permute.xlu0 %2524 }
 0x719   :  { %4481 = vrot.lane.b32.xlu1 %v10614_v50, %s8393_s28 }
 0x71c   :  { %4451 = vrot.lane.b32.xlu0 %v10619_v61, %s8393_s28 }
 0x720   :  { %1283 = vadd.xlane.f32.xlu2 %v1282_v3 }
 0x721   :  { %2173 = vrot.lane.b32.xlu1 %v1999_v41, %s8396_s17  ;;  %v10687_v41 = vld [vmem:[#allocation2 + $0x128] sm:$0xff] }
 0x723   :  { %v4063_v60 = vpop.permute.xlu1 %4062 }
 0x724   :  { %4227 = vst.msk [vmem:[#allocation3 + $0x1c0] sm:$0xff] %vm4198_vm11, %v4063_v60  ;;  %1758 = vrot.lane.b32.xlu0 %v10385_v33, %s8395_s13 }
 0x729   :  { %2558 = vrot.lane.b32.xlu1 %v10327_v16, %s8398_s2 }
 0x72b   :  { %v4448_v15 = vpop.permute.xlu1 %4447 }
 0x72c   :  { %4612 = vst.msk [vmem:[#allocation3 + $0x1c0] sm:$0xff] %vm4583_vm12, %v4448_v15  ;;  %2143 = vrot.lane.b32.xlu0 %v10465_v12, %s8396_s17 }
 0x733   :  { %v1755_v52 = vpop.permute.xlu1 %1754  ;;  %v4676_v32 = vld [vmem:[#allocation3 + $0x1c0] sm:$0xff] }
 0x734   :  { %1918 = vst.msk [vmem:[#allocation3 + $0x1d0] sm:$0xff] %vm1888_vm5, %v1755_v52  ;;  %4483 = vrot.lane.b32.xlu0 %v10634_v4, %s8393_s28  ;;  %v4804_v33 = vmul.f32 %v4740_v40, %v4676_v32  ;;  %v10692_v40 = vld [vmem:[#allocation2 + $0x1a7] sm:$0xff]  ;;  %v1046_v32 = vld [vmem:[%s8448_s21 + $0x1b8] sm:$0xff] }
 0x736   :  { %8055 = vmatmul.msk.f32.gmra.mxu1 %vm4846_vm13, %v4804_v33 }
 0x738   :  { %1788 = vrot.lane.b32.xlu2 %v1614_v51, %s8395_s13  ;;  %v10698_v51 = vld [vmem:[#allocation2 + $0x129] sm:$0xff] }
 0x73a   :  { %v1233_v16 = vpop.xlane.xlu2 %1232 }
 0x73b   :  { %v1349_v12 = vmul.f32 %v8283_v39, %v1233_v16  ;;  %v1787_v37 = vpop.permute.xlu1 %1786  ;;  %v10700_v16 = vld [vmem:[#allocation2 + $0x1a0] sm:$0xff]  ;;  %v1111_v39 = vmul.f32 %v9068_v34, %v1046_v32 }
 0x73c   :  { %2528 = vrot.lane.b32.xlu0 %v10289_v42, %s8398_s2  ;;  %1934 = vst.msk [vmem:[#allocation3 + $0x2d0] sm:$0xff] %vm1888_vm5, %v1787_v37 }
 0x73d   :  { %1413 = vst.msk [vmem:[#allocation2 + $0x148] sm:$0xff] %vm312_vm2, %v1349_v12 }
 0x740   :  { %2943 = vrot.lane.b32.xlu2 %v10646_v20, %s8397_s1  ;;  %v5137_v63 = vpop.f32.mrf.mxu1 }
 0x741   :  { %v5138_v6 = vadd.f32 %v10651_v43, %v5137_v63 }
 0x742   :  { %v2140_v56 = vpop.permute.xlu2 %2139 }
 0x743   :  { %2303 = vst.msk [vmem:[#allocation3 + $0x1d0] sm:$0xff] %vm2273_vm6, %v2140_v56  ;;  %v5281_v35 = vmax.f32 %v5138_v6, %v9649_v14  ;;  %v1236_v42 = vpop.xlane.xlu0 %1235  ;;  %v2172_v36 = vpop.permute.xlu1 %2171  ;;  %v4741_v56 = vld [vmem:[%s8453_s25 + $0xe8] sm:$0xff] }
 0x744   :  { %2688 = vst.msk [vmem:[#allocation3 + $0x1d0] sm:$0xff] %vm2658_vm7, %v2525_v23  ;;  %v1350_v0 = vmul.f32 %v8285_v30, %v1236_v42  ;;  %2913 = vrot.lane.b32.xlu0 %v10554_v5, %s8397_s1  ;;  %v10661_v59 = vld [vmem:[#allocation2 + $0x147] sm:$0xff]  ;;  %v1285_v23 = vsel %vm846_vm3, %v1111_v39, 0.0 }
 0x745   :  { %2319 = vst.msk [vmem:[#allocation3 + $0x2d0] sm:$0xff] %vm2273_vm6, %v2172_v36 }
 0x746   :  { %5345 = vst.msk [vmem:[#allocation4 + $0xd0] sm:$0xff] %vm846_vm3, %v5281_v35 }
 0x747   :  { %1414 = vst.msk [vmem:[#allocation2 + $0x150] sm:$0xff] %vm312_vm2, %v1350_v0 }
 0x748   :  { %3328 = vrot.lane.b32.xlu2 %v10665_v38, %s8401_s11  ;;  %1543 = vst.msk [vmem:[#allocation3 + $0x270] sm:$0xff] %vm312_vm2, %v10661_v59 }
 0x74a   :  { %v2557_v13 = vpop.permute.xlu2 %2556 }
 0x74b   :  { %2704 = vst.msk [vmem:[#allocation3 + $0x2d0] sm:$0xff] %vm2658_vm7, %v2557_v13  ;;  %v2910_v62 = vpop.permute.xlu1 %2909  ;;  %v10724_v13 = vld [vmem:[#allocation2 + $0x1a9] sm:$0xff] }
 0x74c   :  { %3073 = vst.msk [vmem:[#allocation3 + $0x1d0] sm:$0xff] %vm3043_vm8, %v2910_v62  ;;  %3298 = vrot.lane.b32.xlu0 %v10577_v45, %s8401_s11  ;;  %v5432_v62 = vld [vmem:[#allocation4 + $0xc8] sm:$0xff] }
 0x74d   :  { %v5433_v27 = vld [vmem:[#allocation4 + $0xd0] sm:$0xff] }
 0x74e   :  { %v5435_v11 = vmax.f32 %v5431_v9, %v5433_v27  ;;  %v1480_v31 = vld [vmem:[#allocation2 + $0x14f] sm:$0xff] }
 0x74f   :  { %1544 = vst.msk [vmem:[#allocation3 + $0x280] sm:$0xff] %vm312_vm2, %v1480_v31 }
 0x750   :  { %5437 = vst.msk [vmem:[#allocation5 + $0x60] sm:$0xff] %vm846_vm3, %v5435_v11 }
 0x752   :  { %v2942_v53 = vpop.permute.xlu2 %2941 }
 0x753   :  { %3089 = vst.msk [vmem:[#allocation3 + $0x2d0] sm:$0xff] %vm3043_vm8, %v2942_v53  ;;  %v3295_v57 = vpop.permute.xlu1 %3294  ;;  %1238 = vadd.xlane.f32.xlu1 %v1237_v19 }
 0x754   :  { %3458 = vst.msk [vmem:[#allocation3 + $0x1d0] sm:$0xff] %vm3428_vm9, %v3295_v57  ;;  %3683 = vrot.lane.b32.xlu0 %v10681_v21, %s8400_s10 }
 0x756   :  { %v4097_v28 = vpop.permute.xlu0 %4096 }
 0x75a   :  { %v3327_v54 = vpop.permute.xlu2 %3326 }
 0x75b   :  { %3474 = vst.msk [vmem:[#allocation3 + $0x2d0] sm:$0xff] %vm3428_vm9, %v3327_v54  ;;  %v3680_v3 = vpop.permute.xlu1 %3679 }
 0x75c   :  { %3843 = vst.msk [vmem:[#allocation3 + $0x1d0] sm:$0xff] %vm3813_vm10, %v3680_v3  ;;  %4068 = vrot.lane.b32.xlu0 %v10687_v41, %s8399_s7 }
 0x75e   :  { %v2527_v60 = vpop.permute.xlu0 %2526 }
 0x763   :  { %v4065_v15 = vpop.permute.xlu1 %4064 }
 0x764   :  { %4228 = vst.msk [vmem:[#allocation3 + $0x1d0] sm:$0xff] %vm4198_vm11, %v4065_v15  ;;  %3715 = vrot.lane.b32.xlu0 %v10692_v40, %s8400_s10 }
 0x766   :  { %v2912_v52 = vpop.permute.xlu0 %2911 }
 0x76b   :  { %v3712_v33 = vpop.permute.xlu1 %3711 }
 0x76c   :  { %3859 = vst.msk [vmem:[#allocation3 + $0x2d0] sm:$0xff] %vm3813_vm10, %v3712_v33  ;;  %4453 = vrot.lane.b32.xlu0 %v10698_v51, %s8393_s28  ;;  %4098 = vrot.lane.b32.xlu1 %v10700_v16, %s8399_s7  ;;  %v1031_v33 = vld [vmem:[%s8448_s21 + $0x140] sm:$0xff] }
 0x76d   :  { %4244 = vst.msk [vmem:[#allocation3 + $0x2d0] sm:$0xff] %vm4198_vm11, %v4097_v28  ;;  %v1096_v39 = vmul.f32 %v9068_v34, %v1031_v33 }
 0x76e   :  { %v3297_v12 = vpop.permute.xlu0 %3296 }
 0x771   :  { %1286 = vadd.xlane.f32.xlu2 %v1285_v23  ;;  %v1240_v23 = vsel %vm846_vm3, %v1096_v39, 0.0 }
 0x773   :  { %v4450_v37 = vpop.permute.xlu1 %4449 }
 0x774   :  { %4613 = vst.msk [vmem:[#allocation3 + $0x1d0] sm:$0xff] %vm4583_vm12, %v4450_v37  ;;  %1760 = vrot.lane.b32.xlu0 %v10491_v26, %s8395_s13  ;;  %2175 = vrot.lane.b32.xlu1 %v10566_v18, %s8396_s17 }
 0x776   :  { %v3682_v63 = vpop.permute.xlu0 %3681 }
 0x77b   :  { %v1757_v6 = vpop.permute.xlu1 %1756  ;;  %v4677_v35 = vld [vmem:[#allocation3 + $0x1d0] sm:$0xff] }
 0x77c   :  { %1919 = vst.msk [vmem:[#allocation3 + $0x1e0] sm:$0xff] %vm1888_vm5, %v1757_v6  ;;  %2145 = vrot.lane.b32.xlu0 %v10496_v48, %s8396_s17  ;;  %2560 = vrot.lane.b32.xlu1 %v10368_v1, %s8398_s2  ;;  %v4805_v42 = vmul.f32 %v4741_v56, %v4677_v35  ;;  %v10772_v56 = vld [vmem:[#allocation2 + $0x130] sm:$0xff] }
 0x77e   :  { %v4067_v36 = vpop.permute.xlu0 %4066  ;;  %8056 = vmatmul.msk.f32.gmra.mxu1 %vm4846_vm13, %v4805_v42 }
 0x781   :  { %v5140_v26 = vpop.f32.mrf.mxu1 }
 0x782   :  { %v5141_v30 = vadd.f32 %v10651_v43, %v5140_v26 }
 0x783   :  { %v2142_v0 = vpop.permute.xlu1 %2141 }
 0x784   :  { %v5282_v18 = vmax.f32 %v5141_v30, %v9649_v14  ;;  %2304 = vst.msk [vmem:[#allocation3 + $0x1e0] sm:$0xff] %vm2273_vm6, %v2142_v0  ;;  %4485 = vrot.lane.b32.xlu0 %v10724_v13, %s8393_s28  ;;  %v1047_v30 = vld [vmem:[%s8448_s21 + $0x1c0] sm:$0xff] }
 0x785   :  { %2689 = vst.msk [vmem:[#allocation3 + $0x1e0] sm:$0xff] %vm2658_vm7, %v2527_v60  ;;  %v1112_v0 = vmul.f32 %v9068_v34, %v1047_v30 }
 0x786   :  { %5346 = vst.msk [vmem:[#allocation4 + $0xd8] sm:$0xff] %vm846_vm3, %v5282_v18  ;;  %v3714_v1 = vpop.permute.xlu0 %3713  ;;  %v10785_v18 = vld [vmem:[#allocation2 + $0x131] sm:$0xff] }
 0x787   :  { %3074 = vst.msk [vmem:[#allocation3 + $0x1e0] sm:$0xff] %vm3043_vm8, %v2912_v52 }
 0x788   :  { %3459 = vst.msk [vmem:[#allocation3 + $0x1e0] sm:$0xff] %vm3428_vm9, %v3297_v12 }
 0x789   :  { %1790 = vrot.lane.b32.xlu2 %v10550_v29, %s8395_s13  ;;  %3844 = vst.msk [vmem:[#allocation3 + $0x1e0] sm:$0xff] %vm3813_vm10, %v3682_v63  ;;  %v4757_v29 = vld [vmem:[%s8453_s25 + $0x168] sm:$0xff] }
 0x78a   :  { %4229 = vst.msk [vmem:[#allocation3 + $0x1e0] sm:$0xff] %vm4198_vm11, %v4067_v36 }
 0x78b   :  { %v4482_v48 = vpop.permute.xlu1 %4481 }
 0x78c   :  { %4629 = vst.msk [vmem:[#allocation3 + $0x2d0] sm:$0xff] %vm4583_vm12, %v4482_v48  ;;  %2530 = vrot.lane.b32.xlu0 %v10585_v22, %s8398_s2  ;;  %v4742_v22 = vld [vmem:[%s8453_s25 + $0xf0] sm:$0xff]  ;;  %v10790_v48 = vld [vmem:[#allocation2 + $0x1a8] sm:$0xff] }
 0x78d   :  { %v5434_v55 = vld [vmem:[#allocation4 + $0xd8] sm:$0xff] }
 0x78e   :  { %v5436_v9 = vmax.f32 %v5432_v62, %v5434_v55  ;;  %v4452_v27 = vpop.permute.xlu0 %4451  ;;  %v1288_v62 = vsel %vm846_vm3, %v1112_v0, 0.0 }
 0x78f   :  { %4614 = vst.msk [vmem:[#allocation3 + $0x1e0] sm:$0xff] %vm4583_vm12, %v4452_v27  ;;  %v8287_v27 = vld [vmem:[%s8428_s5 + $0x138] sm:$0xff] }
 0x790   :  { %5438 = vst.msk [vmem:[#allocation5 + $0x68] sm:$0xff] %vm846_vm3, %v5436_v9 }
 0x791   :  { %2945 = vrot.lane.b32.xlu2 %v10534_v58, %s8397_s1 }
 0x793   :  { %v1284_v11 = vpop.xlane.xlu2 %1283  ;;  %v2174_v53 = vpop.permute.xlu1 %2173  ;;  %v4693_v19 = vld [vmem:[#allocation3 + $0x2d0] sm:$0xff] }
 0x794   :  { %v1366_v31 = vmul.f32 %v8286_v8, %v1284_v11  ;;  %2915 = vrot.lane.b32.xlu0 %v10593_v47, %s8397_s1  ;;  %v4821_v57 = vmul.f32 %v4757_v29, %v4693_v19  ;;  %v10803_v11 = vld [vmem:[#allocation2 + $0x1b0] sm:$0xff] }
 0x796   :  { %1430 = vst.msk [vmem:[#allocation2 + $0x1d0] sm:$0xff] %vm312_vm2, %v1366_v31  ;;  %v1759_v28 = vpop.permute.xlu0 %1758  ;;  %8072 = vmatmul.msk.f32.vlgmr.msra.gmra.mxu2 %vm4846_vm13, %v4821_v57  ;;  %v4678_v54 = vld [vmem:[#allocation3 + $0x1e0] sm:$0xff]  ;;  %v8288_v57 = vld [vmem:[%s8428_s5 + $0x1b8] sm:$0xff] }
 0x797   :  { %1920 = vst.msk [vmem:[#allocation3 + $0x1f0] sm:$0xff] %vm1888_vm5, %v1759_v28  ;;  %v4806_v3 = vmul.f32 %v4742_v22, %v4678_v54 }
 0x799   :  { %3330 = vrot.lane.b32.xlu2 %v10614_v50, %s8401_s11  ;;  %8057 = vmatmul.msk.f32.gmra.mxu1 %vm4846_vm13, %v4806_v3  ;;  %v4758_v3 = vld [vmem:[%s8453_s25 + $0x170] sm:$0xff] }
 0x79b   :  { %v1789_v60 = vpop.permute.xlu2 %1788  ;;  %v2559_v15 = vpop.permute.xlu1 %2558 }
 0x79c   :  { %1935 = vst.msk [vmem:[#allocation3 + $0x2e0] sm:$0xff] %vm1888_vm5, %v1789_v60  ;;  %3300 = vrot.lane.b32.xlu0 %v10619_v61, %s8401_s11 }
 0x79d   :  { %2320 = vst.msk [vmem:[#allocation3 + $0x2e0] sm:$0xff] %vm2273_vm6, %v2174_v53  ;;  %v10759_v52 = vld [vmem:[#allocation2 + $0x1cf] sm:$0xff] }
 0x79e   :  { %2705 = vst.msk [vmem:[#allocation3 + $0x2e0] sm:$0xff] %vm2658_vm7, %v2559_v15  ;;  %v2144_v32 = vpop.permute.xlu0 %2143 }
 0x79f   :  { %1560 = vst.msk [vmem:[#allocation3 + $0x380] sm:$0xff] %vm312_vm2, %v10759_v52 }
 0x7a0   :  { %2305 = vst.msk [vmem:[#allocation3 + $0x1f0] sm:$0xff] %vm2273_vm6, %v2144_v32 }
 0x7a3   :  { %v2944_v12 = vpop.permute.xlu2 %2943 }
 0x7a4   :  { %3090 = vst.msk [vmem:[#allocation3 + $0x2e0] sm:$0xff] %vm3043_vm8, %v2944_v12  ;;  %3685 = vrot.lane.b32.xlu0 %v10428_v2, %s8400_s10 }
 0x7a6   :  { %v4484_v37 = vpop.permute.xlu0 %4483  ;;  %1241 = vadd.xlane.f32.xlu1 %v1240_v23  ;;  %v1032_v23 = vld [vmem:[%s8448_s21 + $0x148] sm:$0xff] }
 0x7ab   :  { %v3329_v63 = vpop.permute.xlu2 %3328 }
 0x7ac   :  { %3475 = vst.msk [vmem:[#allocation3 + $0x2e0] sm:$0xff] %vm3428_vm9, %v3329_v63  ;;  %4070 = vrot.lane.b32.xlu0 %v10772_v56, %s8399_s7 }
 0x7ad   :  { %3860 = vst.msk [vmem:[#allocation3 + $0x2e0] sm:$0xff] %vm3813_vm10, %v3714_v1 }
 0x7ae   :  { %v2529_v6 = vpop.permute.xlu0 %2528 }
 0x7af   :  { %2690 = vst.msk [vmem:[#allocation3 + $0x1f0] sm:$0xff] %vm2658_vm7, %v2529_v6 }
 0x7b3   :  { %v5143_v35 = vpop.f32.mrf.mxu1 }
 0x7b4   :  { %3717 = vrot.lane.b32.xlu0 %v10486_v25, %s8400_s10  ;;  %v5144_v42 = vadd.f32 %v10651_v43, %v5143_v35 }
 0x7b6   :  { %v5283_v36 = vmax.f32 %v5144_v42, %v9649_v14  ;;  %v2914_v26 = vpop.permute.xlu0 %2913  ;;  %v10856_v42 = vld [vmem:[#allocation2 + $0x138] sm:$0xff] }
 0x7b7   :  { %3075 = vst.msk [vmem:[#allocation3 + $0x1f0] sm:$0xff] %vm3043_vm8, %v2914_v26 }
 0x7b8   :  { %5347 = vst.msk [vmem:[#allocation4 + $0xe0] sm:$0xff] %vm846_vm3, %v5283_v36 }
 0x7bc   :  { %4455 = vrot.lane.b32.xlu0 %v10785_v18, %s8393_s28 }
 0x7be   :  { %v3299_v1 = vpop.permute.xlu0 %3298 }
 0x7bf   :  { %3460 = vst.msk [vmem:[#allocation3 + $0x1f0] sm:$0xff] %vm3428_vm9, %v3299_v1  ;;  %4100 = vrot.lane.b32.xlu1 %v10790_v48, %s8399_s7  ;;  %v10866_v1 = vld [vmem:[#allocation2 + $0x139] sm:$0xff] }
 0x7c2   :  { %1289 = vadd.xlane.f32.xlu2 %v1288_v62 }
 0x7c4   :  { %1762 = vrot.lane.b32.xlu0 %v10554_v5, %s8395_s13 }
 0x7c6   :  { %v3684_v55 = vpop.permute.xlu0 %3683  ;;  %v1239_v9 = vpop.xlane.xlu1 %1238 }
 0x7c7   :  { %3845 = vst.msk [vmem:[#allocation3 + $0x1f0] sm:$0xff] %vm3813_vm10, %v3684_v55  ;;  %v1351_v29 = vmul.f32 %v8287_v27, %v1239_v9  ;;  %2177 = vrot.lane.b32.xlu1 %v10665_v38, %s8396_s17  ;;  %v10814_v38 = vld [vmem:[#allocation2 + $0x1b1] sm:$0xff]  ;;  %v1048_v55 = vld [vmem:[%s8448_s21 + $0x1c8] sm:$0xff] }
 0x7c8   :  { %v10872_v9 = vld [vmem:[#allocation2 + $0x1b8] sm:$0xff]  ;;  %v1113_v27 = vmul.f32 %v9068_v34, %v1048_v55 }
 0x7c9   :  { %1415 = vst.msk [vmem:[#allocation2 + $0x158] sm:$0xff] %vm312_vm2, %v1351_v29 }
 0x7cc   :  { %4102 = vrot.lane.b32.xlu0 %v10803_v11, %s8399_s7 }
 0x7ce   :  { %v4069_v8 = vpop.permute.xlu0 %4068 }
 0x7cf   :  { %4230 = vst.msk [vmem:[#allocation3 + $0x1f0] sm:$0xff] %vm4198_vm11, %v4069_v8  ;;  %2562 = vrot.lane.b32.xlu1 %v10603_v10, %s8398_s2  ;;  %v1291_v8 = vsel %vm846_vm3, %v1113_v27, 0.0 }
 0x7d0   :  { %v10810_v5 = vld [vmem:[#allocation2 + $0x157] sm:$0xff] }
 0x7d1   :  { %1545 = vst.msk [vmem:[#allocation3 + $0x290] sm:$0xff] %vm312_vm2, %v10810_v5 }
 0x7d4   :  { %4487 = vrot.lane.b32.xlu0 %v10814_v38, %s8393_s28 }
 0x7d6   :  { %v3716_v31 = vpop.permute.xlu0 %3715 }
 0x7da   :  { %1792 = vrot.lane.b32.xlu2 %v10646_v20, %s8395_s13  ;;  %v4743_v20 = vld [vmem:[%s8453_s25 + $0xf8] sm:$0xff] }
 0x7dc   :  { %1794 = vrot.lane.b32.xlu0 %v10534_v58, %s8395_s13 }
 0x7de   :  { %v4454_v10 = vpop.permute.xlu0 %4453  ;;  %v4099_v53 = vpop.permute.xlu1 %4098 }
 0x7df   :  { %4615 = vst.msk [vmem:[#allocation3 + $0x1f0] sm:$0xff] %vm4583_vm12, %v4454_v10 }
 0x7e0   :  { %4245 = vst.msk [vmem:[#allocation3 + $0x2e0] sm:$0xff] %vm4198_vm11, %v4099_v53 }
 0x7e1   :  { %4630 = vst.msk [vmem:[#allocation3 + $0x2e0] sm:$0xff] %vm4583_vm12, %v4484_v37 }
 0x7e2   :  { %2947 = vrot.lane.b32.xlu2 %v10700_v16, %s8397_s1 }
 0x7e4   :  { %v1287_v19 = vpop.xlane.xlu2 %1286  ;;  %2179 = vrot.lane.b32.xlu0 %v10614_v50, %s8396_s17 }
 0x7e5   :  { %v1367_v22 = vmul.f32 %v8288_v57, %v1287_v19 }
 0x7e6   :  { %v1761_v58 = vpop.permute.xlu0 %1760  ;;  %v2176_v28 = vpop.permute.xlu1 %2175  ;;  %v4679_v54 = vld [vmem:[#allocation3 + $0x1f0] sm:$0xff] }
 0x7e7   :  { %1431 = vst.msk [vmem:[#allocation2 + $0x1d8] sm:$0xff] %vm312_vm2, %v1367_v22  ;;  %v4807_v60 = vmul.f32 %v4743_v20, %v4679_v54 }
 0x7e8   :  { %1921 = vst.msk [vmem:[#allocation3 + $0x200] sm:$0xff] %vm1888_vm5, %v1761_v58  ;;  %v4694_v15 = vld [vmem:[#allocation3 + $0x2e0] sm:$0xff] }
 0x7e9   :  { %8058 = vmatmul.msk.f32.gmra.mxu1 %vm4846_vm13, %v4807_v60  ;;  %v4822_v32 = vmul.f32 %v4758_v3, %v4694_v15  ;;  %v8289_v58 = vld [vmem:[%s8428_s5 + $0x140] sm:$0xff] }
 0x7ea   :  { %3332 = vrot.lane.b32.xlu2 %v10634_v4, %s8401_s11  ;;  %v5439_v60 = vld [vmem:[#allocation4 + $0xe0] sm:$0xff] }
 0x7eb   :  { %8073 = vmatmul.msk.f32.gmra.mxu2 %vm4846_vm13, %v4822_v32 }
 0x7ec   :  { %v1791_v33 = vpop.permute.xlu2 %1790  ;;  %2564 = vrot.lane.b32.xlu0 %v10692_v40, %s8398_s2  ;;  %v1097_v40 = vmul.f32 %v9068_v34, %v1032_v23  ;;  %v4744_v23 = vld [vmem:[%s8453_s25 + $0x100] sm:$0xff] }
 0x7ed   :  { %1936 = vst.msk [vmem:[#allocation3 + $0x2f0] sm:$0xff] %vm1888_vm5, %v1791_v33 }
 0x7ee   :  { %2321 = vst.msk [vmem:[#allocation3 + $0x2f0] sm:$0xff] %vm2273_vm6, %v2176_v28  ;;  %v10842_v50 = vld [vmem:[#allocation2 + $0x1d7] sm:$0xff]  ;;  %v2146_v39 = vpop.permute.xlu0 %2145  ;;  %v2561_v12 = vpop.permute.xlu1 %2560  ;;  %v1243_v6 = vsel %vm846_vm3, %v1097_v40, 0.0 }
 0x7ef   :  { %1561 = vst.msk [vmem:[#allocation3 + $0x390] sm:$0xff] %vm312_vm2, %v10842_v50 }
 0x7f0   :  { %2306 = vst.msk [vmem:[#allocation3 + $0x200] sm:$0xff] %vm2273_vm6, %v2146_v39 }
 0x7f1   :  { %2706 = vst.msk [vmem:[#allocation3 + $0x2f0] sm:$0xff] %vm2658_vm7, %v2561_v12 }
 0x7f4   :  { %v2946_v37 = vpop.permute.xlu2 %2945  ;;  %2949 = vrot.lane.b32.xlu0 %v10790_v48, %s8397_s1 }
 0x7f5   :  { %3091 = vst.msk [vmem:[#allocation3 + $0x2f0] sm:$0xff] %vm3043_vm8, %v2946_v37  ;;  %v8290_v37 = vld [vmem:[%s8428_s5 + $0x1c0] sm:$0xff] }
 0x7f6   :  { %v10853_v63 = vpop.permute.xlu0 %4485 }
 0x7f9   :  { %1244 = vadd.xlane.f32.xlu1 %v1243_v6 }
 0x7fb   :  { %v5146_v36 = vpop.f32.mrf.mxu1 }
 0x7fc   :  { %v3331_v35 = vpop.permute.xlu2 %3330  ;;  %4072 = vrot.lane.b32.xlu0 %v10856_v42, %s8399_s7  ;;  %v5147_v26 = vadd.f32 %v10651_v43, %v5146_v36 }
 0x7fd   :  { %3476 = vst.msk [vmem:[#allocation3 + $0x2f0] sm:$0xff] %vm3428_vm9, %v3331_v35 }
 0x7fe   :  { %3861 = vst.msk [vmem:[#allocation3 + $0x2f0] sm:$0xff] %vm3813_vm10, %v3716_v31  ;;  %v5284_v30 = vmax.f32 %v5147_v26, %v9649_v14  ;;  %v2531_v0 = vpop.permute.xlu0 %2530  ;;  %v10881_v31 = vld [vmem:[#allocation2 + $0x1b9] sm:$0xff] }
 0x7ff   :  { %2691 = vst.msk [vmem:[#allocation3 + $0x200] sm:$0xff] %vm2658_vm7, %v2531_v0  ;;  %v4759_v26 = vld [vmem:[%s8453_s25 + $0x178] sm:$0xff] }
 0x800   :  { %5348 = vst.msk [vmem:[#allocation4 + $0xe8] sm:$0xff] %vm846_vm3, %v5284_v30 }
 0x804   :  { %4457 = vrot.lane.b32.xlu0 %v10866_v1, %s8393_s28 }
 0x806   :  { %v2916_v62 = vpop.permute.xlu0 %2915 }
 0x807   :  { %3076 = vst.msk [vmem:[#allocation3 + $0x200] sm:$0xff] %vm3043_vm8, %v2916_v62 }
 0x80c   :  { %4104 = vrot.lane.b32.xlu0 %v10872_v9, %s8399_s7 }
 0x80e   :  { %v3301_v29 = vpop.permute.xlu0 %3300 }
 0x80f   :  { %3461 = vst.msk [vmem:[#allocation3 + $0x200] sm:$0xff] %vm3428_vm9, %v3301_v29 }
 0x812   :  { %2147 = vrot.lane.b32.xlu1 %v10577_v45, %s8396_s17 }
 0x813   :  { %1292 = vadd.xlane.f32.xlu2 %v1291_v8 }
 0x814   :  { %4489 = vrot.lane.b32.xlu0 %v10881_v31, %s8393_s28 }
 0x816   :  { %v3686_v10 = vpop.permute.xlu0 %3685  ;;  %v5149_v53 = vpop.f32.mrf.mxu1 }
 0x817   :  { %3846 = vst.msk [vmem:[#allocation3 + $0x200] sm:$0xff] %vm3813_vm10, %v3686_v10  ;;  %v5150_v19 = vadd.f32 %v10651_v43, %v5149_v53 }
 0x819   :  { %v1242_v57 = vpop.xlane.xlu1 %1241  ;;  %v5194_v22 = vpop.f32.mrf.mxu2  ;;  %v5285_v20 = vmax.f32 %v5150_v19, %v9649_v14  ;;  %v4760_v19 = vld [vmem:[%s8453_s25 + $0x180] sm:$0xff] }
 0x81a   :  { %v1352_v28 = vmul.f32 %v8289_v58, %v1242_v57  ;;  %v5195_v54 = vadd.f32 %v10651_v43, %v5194_v22  ;;  %2917 = vrot.lane.b32.xlu1 %v10687_v41, %s8397_s1  ;;  %v1050_v22 = vld [vmem:[%s8448_s21 + $0x1d8] sm:$0xff] }
 0x81b   :  { %5349 = vst.msk [vmem:[#allocation4 + $0xf0] sm:$0xff] %vm846_vm3, %v5285_v20 }
 0x81c   :  { %v5300_v45 = vmax.f32 %v5195_v54, %v9649_v14  ;;  %2534 = vrot.lane.b32.xlu0 %v10428_v2, %s8398_s2  ;;  %1416 = vst.msk [vmem:[#allocation2 + $0x160] sm:$0xff] %vm312_vm2, %v1352_v28  ;;  %v1115_v28 = vmul.f32 %v9068_v34, %v1050_v22 }
 0x81e   :  { %5364 = vst.msk [vmem:[#allocation4 + $0x168] sm:$0xff] %vm846_vm3, %v5300_v45  ;;  %v4071_v3 = vpop.permute.xlu0 %4070 }
 0x81f   :  { %4231 = vst.msk [vmem:[#allocation3 + $0x200] sm:$0xff] %vm4198_vm11, %v4071_v3 }
 0x822   :  { %3302 = vrot.lane.b32.xlu1 %v10698_v51, %s8401_s11  ;;  %v5441_v15 = vld [vmem:[#allocation4 + $0xf0] sm:$0xff] }
 0x823   :  { %v5443_v32 = vmax.f32 %v5439_v60, %v5441_v15  ;;  %v10903_v33 = vld [vmem:[#allocation2 + $0x15f] sm:$0xff] }
 0x824   :  { %2919 = vrot.lane.b32.xlu0 %v10772_v56, %s8397_s1  ;;  %1546 = vst.msk [vmem:[#allocation3 + $0x2a0] sm:$0xff] %vm312_vm2, %v10903_v33 }
 0x825   :  { %5445 = vst.msk [vmem:[#allocation5 + $0x70] sm:$0xff] %vm846_vm3, %v5443_v32 }
 0x826   :  { %v3718_v2 = vpop.permute.xlu0 %3717 }
 0x82a   :  { %3334 = vrot.lane.b32.xlu1 %v10724_v13, %s8401_s11 }
 0x82b   :  { %2532 = vrot.lane.b32.xlu2 %v10681_v21, %s8398_s2 }
 0x82c   :  { %2951 = vrot.lane.b32.xlu0 %v10803_v11, %s8397_s1 }
 0x82e   :  { %v4456_v39 = vpop.permute.xlu0 %4455 }
 0x82f   :  { %4616 = vst.msk [vmem:[#allocation3 + $0x200] sm:$0xff] %vm4583_vm12, %v4456_v39 }
 0x831   :  { %v4101_v12 = vpop.permute.xlu1 %4100 }
 0x832   :  { %4246 = vst.msk [vmem:[#allocation3 + $0x2f0] sm:$0xff] %vm4198_vm11, %v4101_v12  ;;  %3719 = vrot.lane.b32.xlu1 %v10543_v49, %s8400_s10  ;;  %v8291_v12 = vld [vmem:[%s8428_s5 + $0x148] sm:$0xff] }
 0x833   :  { %3687 = vrot.lane.b32.xlu2 %v10477_v46, %s8400_s10  ;;  %4631 = vst.msk [vmem:[#allocation3 + $0x2f0] sm:$0xff] %vm4583_vm12, %v10853_v63 }
 0x834   :  { %3336 = vrot.lane.b32.xlu0 %v10814_v38, %s8401_s11 }
 0x835   :  { %v1290_v21 = vpop.xlane.xlu2 %1289 }
 0x836   :  { %v1368_v40 = vmul.f32 %v8290_v37, %v1290_v21  ;;  %v1763_v6 = vpop.permute.xlu0 %1762  ;;  %v4680_v35 = vld [vmem:[#allocation3 + $0x200] sm:$0xff] }
 0x837   :  { %v4808_v36 = vmul.f32 %v4744_v23, %v4680_v35  ;;  %1922 = vst.msk [vmem:[#allocation3 + $0x210] sm:$0xff] %vm1888_vm5, %v1763_v6  ;;  %v10978_v6 = vld [vmem:[#allocation2 + $0x141] sm:$0xff] }
 0x838   :  { %1432 = vst.msk [vmem:[#allocation2 + $0x1e0] sm:$0xff] %vm312_vm2, %v1368_v40  ;;  %v5440_v35 = vld [vmem:[#allocation4 + $0xe8] sm:$0xff] }
 0x839   :  { %8059 = vmatmul.msk.f32.gmra.mxu1 %vm4846_vm13, %v4808_v36  ;;  %v2178_v30 = vpop.permute.xlu1 %2177 }
 0x83a   :  { %1764 = vrot.lane.b32.xlu1 %v10593_v47, %s8395_s13  ;;  %v4695_v63 = vld [vmem:[#allocation3 + $0x2f0] sm:$0xff] }
 0x83b   :  { %v4823_v0 = vmul.f32 %v4759_v26, %v4695_v63 }
 0x83d   :  { %v1793_v62 = vpop.permute.xlu2 %1792  ;;  %8074 = vmatmul.msk.f32.gmra.mxu2 %vm4846_vm13, %v4823_v0  ;;  %v10996_v0 = vld [vmem:[#allocation2 + $0x1c7] sm:$0xff] }
 0x83e   :  { %1937 = vst.msk [vmem:[#allocation3 + $0x300] sm:$0xff] %vm1888_vm5, %v1793_v62  ;;  %v4103_v55 = vpop.permute.xlu0 %4102  ;;  %v10998_v62 = vld [vmem:[#allocation2 + $0x1c0] sm:$0xff] }
 0x83f   :  { %2322 = vst.msk [vmem:[#allocation3 + $0x300] sm:$0xff] %vm2273_vm6, %v2178_v30  ;;  %v10935_v27 = vld [vmem:[#allocation2 + $0x1df] sm:$0xff] }
 0x840   :  { %1562 = vst.msk [vmem:[#allocation3 + $0x3a0] sm:$0xff] %vm312_vm2, %v10935_v27 }
 0x841   :  { %v2563_v29 = vpop.permute.xlu1 %2562 }
 0x842   :  { %2707 = vst.msk [vmem:[#allocation3 + $0x300] sm:$0xff] %vm2658_vm7, %v2563_v29  ;;  %2149 = vrot.lane.b32.xlu1 %v10619_v61, %s8396_s17  ;;  %v1049_v61 = vld [vmem:[%s8448_s21 + $0x1d0] sm:$0xff] }
 0x845   :  { %v2948_v47 = vpop.permute.xlu2 %2947 }
 0x846   :  { %3092 = vst.msk [vmem:[#allocation3 + $0x300] sm:$0xff] %vm3043_vm8, %v2948_v47  ;;  %v4488_v8 = vpop.permute.xlu0 %4487 }
 0x84a   :  { %1796 = vrot.lane.b32.xlu1 %v10700_v16, %s8395_s13  ;;  %v1114_v16 = vmul.f32 %v9068_v34, %v1049_v61 }
 0x84c   :  { %v1294_v54 = vsel %vm846_vm3, %v1114_v16, 0.0 }
 0x84d   :  { %v3333_v10 = vpop.permute.xlu2 %3332 }
 0x84e   :  { %3477 = vst.msk [vmem:[#allocation3 + $0x300] sm:$0xff] %vm3428_vm9, %v3333_v10  ;;  %v1795_v53 = vpop.permute.xlu0 %1794 }
 0x84f   :  { %3862 = vst.msk [vmem:[#allocation3 + $0x300] sm:$0xff] %vm3813_vm10, %v3718_v2  ;;  %v10969_v2 = vld [vmem:[#allocation2 + $0x140] sm:$0xff] }
 0x850   :  { %4247 = vst.msk [vmem:[#allocation3 + $0x300] sm:$0xff] %vm4198_vm11, %v4103_v55 }
 0x851   :  { %4632 = vst.msk [vmem:[#allocation3 + $0x300] sm:$0xff] %vm4583_vm12, %v4488_v8  ;;  %v8292_v8 = vld [vmem:[%s8428_s5 + $0x1c8] sm:$0xff] }
 0x852   :  { %1938 = vst.msk [vmem:[#allocation3 + $0x310] sm:$0xff] %vm1888_vm5, %v1795_v53  ;;  %2181 = vrot.lane.b32.xlu1 %v10634_v4, %s8396_s17  ;;  %v1297_v4 = vsel %vm846_vm3, %v1115_v28, 0.0 }
 0x856   :  { %v2180_v57 = vpop.permute.xlu0 %2179 }
 0x857   :  { %2323 = vst.msk [vmem:[#allocation3 + $0x310] sm:$0xff] %vm2273_vm6, %v2180_v57 }
 0x858   :  { %v4696_v20 = vld [vmem:[#allocation3 + $0x300] sm:$0xff] }
 0x859   :  { %v4824_v58 = vmul.f32 %v4760_v19, %v4696_v20 }
 0x85a   :  { %3304 = vrot.lane.b32.xlu1 %v10785_v18, %s8401_s11 }
 0x85b   :  { %8075 = vmatmul.msk.f32.gmra.mxu2 %vm4846_vm13, %v4824_v58 }
 0x85c   :  { %1295 = vadd.xlane.f32.xlu2 %v1294_v54  ;;  %v11065_v54 = vld [vmem:[#allocation2 + $0x150] sm:$0xff] }
 0x85e   :  { %1298 = vadd.xlane.f32.xlu0 %v1297_v4  ;;  %v2565_v45 = vpop.permute.xlu0 %2564  ;;  %v11070_v4 = vld [vmem:[#allocation2 + $0x148] sm:$0xff] }
 0x85f   :  { %2708 = vst.msk [vmem:[#allocation3 + $0x310] sm:$0xff] %vm2658_vm7, %v2565_v45 }
 0x862   :  { %3689 = vrot.lane.b32.xlu1 %v10559_v17, %s8400_s10 }
 0x866   :  { %v2950_v3 = vpop.permute.xlu0 %2949  ;;  %v5152_v60 = vpop.f32.mrf.mxu1 }
 0x867   :  { %3093 = vst.msk [vmem:[#allocation3 + $0x310] sm:$0xff] %vm3043_vm8, %v2950_v3  ;;  %v5153_v15 = vadd.f32 %v10651_v43, %v5152_v60 }
 0x869   :  { %v5286_v32 = vmax.f32 %v5153_v15, %v9649_v14 }
 0x86a   :  { %4074 = vrot.lane.b32.xlu1 %v10969_v2, %s8399_s7 }
 0x86b   :  { %5350 = vst.msk [vmem:[#allocation4 + $0xf8] sm:$0xff] %vm846_vm3, %v5286_v32 }
 0x86c   :  { %v1245_v39 = vpop.xlane.xlu1 %1244 }
 0x86d   :  { %v1353_v21 = vmul.f32 %v8291_v12, %v1245_v39  ;;  %v11079_v39 = vld [vmem:[#allocation2 + $0x151] sm:$0xff]  ;;  %v11083_v12 = vld [vmem:[#allocation2 + $0x149] sm:$0xff] }
 0x86e   :  { %v5197_v23 = vpop.f32.mrf.mxu2  ;;  %v4073_v55 = vpop.permute.xlu0 %4072 }
 0x86f   :  { %1417 = vst.msk [vmem:[#allocation2 + $0x168] sm:$0xff] %vm312_vm2, %v1353_v21  ;;  %v5198_v37 = vadd.f32 %v10651_v43, %v5197_v23 }
 0x871   :  { %v5301_v40 = vmax.f32 %v5198_v37, %v9649_v14 }
 0x872   :  { %v5442_v36 = vld [vmem:[#allocation4 + $0xf8] sm:$0xff]  ;;  %3306 = vrot.lane.b32.xlu0 %v10866_v1, %s8401_s11  ;;  %4459 = vrot.lane.b32.xlu1 %v10978_v6, %s8393_s28 }
 0x873   :  { %v5444_v26 = vmax.f32 %v5440_v35, %v5442_v36  ;;  %5365 = vst.msk [vmem:[#allocation4 + $0x170] sm:$0xff] %vm846_vm3, %v5301_v40  ;;  %v11090_v35 = vld [vmem:[#allocation2 + $0x1d0] sm:$0xff]  ;;  %v11094_v36 = vld [vmem:[#allocation2 + $0x1c8] sm:$0xff] }
 0x874   :  { %2566 = vrot.lane.b32.xlu2 %v10486_v25, %s8398_s2  ;;  %v11006_v25 = vld [vmem:[#allocation2 + $0x1c1] sm:$0xff] }
 0x875   :  { %5446 = vst.msk [vmem:[#allocation5 + $0x78] sm:$0xff] %vm846_vm3, %v5444_v26 }
 0x876   :  { %v10988_v30 = vld [vmem:[#allocation2 + $0x167] sm:$0xff]  ;;  %v10990_v63 = vld [vmem:[#allocation2 + $0x16f] sm:$0xff]  ;;  %v4458_v53 = vpop.permute.xlu0 %4457 }
 0x877   :  { %1547 = vst.msk [vmem:[#allocation3 + $0x2b0] sm:$0xff] %vm312_vm2, %v10988_v30 }
 0x878   :  { %1548 = vst.msk [vmem:[#allocation3 + $0x2c0] sm:$0xff] %vm312_vm2, %v10990_v63 }
 0x87a   :  { %3723 = vrot.lane.b32.xlu0 %v10996_v0, %s8400_s10  ;;  %4106 = vrot.lane.b32.xlu1 %v10998_v62, %s8399_s7 }
 0x87c   :  { %3721 = vrot.lane.b32.xlu2 %v10608_v44, %s8400_s10 }
 0x882   :  { %1768 = vrot.lane.b32.xlu0 %v10772_v56, %s8395_s13  ;;  %4491 = vrot.lane.b32.xlu1 %v11006_v25, %s8393_s28 }
 0x884   :  { %1766 = vrot.lane.b32.xlu2 %v10687_v41, %s8395_s13  ;;  %v2148_v29 = vpop.permute.xlu1 %2147 }
 0x885   :  { %2307 = vst.msk [vmem:[#allocation3 + $0x210] sm:$0xff] %vm2273_vm6, %v2148_v29  ;;  %v1051_v29 = vld [vmem:[%s8448_s21 + $0x1e0] sm:$0xff] }
 0x886   :  { %v1293_v47 = vpop.xlane.xlu2 %1292 }
 0x887   :  { %v1369_v10 = vmul.f32 %v8292_v8, %v1293_v47  ;;  %v1116_v47 = vmul.f32 %v9068_v34, %v1051_v29 }
 0x889   :  { %1433 = vst.msk [vmem:[#allocation2 + $0x1e8] sm:$0xff] %vm312_vm2, %v1369_v10  ;;  %v11103_v10 = vld [vmem:[#allocation2 + $0x1d1] sm:$0xff] }
 0x88a   :  { %2153 = vrot.lane.b32.xlu0 %v10785_v18, %s8396_s17  ;;  %2536 = vrot.lane.b32.xlu1 %v10477_v46, %s8398_s2  ;;  %v4105_v18 = vpop.permute.xlu0 %4104 }
 0x88c   :  { %2151 = vrot.lane.b32.xlu2 %v10698_v51, %s8396_s17  ;;  %v2918_v56 = vpop.permute.xlu1 %2917 }
 0x88e   :  { %v2533_v41 = vpop.permute.xlu2 %2532 }
 0x88f   :  { %2692 = vst.msk [vmem:[#allocation3 + $0x210] sm:$0xff] %vm2658_vm7, %v2533_v41  ;;  %v5472_v41 = vld [vmem:[#allocation4 + $0x168] sm:$0xff] }
 0x890   :  { %3077 = vst.msk [vmem:[#allocation3 + $0x210] sm:$0xff] %vm3043_vm8, %v2918_v56  ;;  %v11025_v61 = vld [vmem:[#allocation2 + $0x1e7] sm:$0xff] }
 0x891   :  { %1563 = vst.msk [vmem:[#allocation3 + $0x3b0] sm:$0xff] %vm312_vm2, %v11025_v61  ;;  %v11107_v56 = vld [vmem:[#allocation2 + $0x1c9] sm:$0xff] }
 0x892   :  { %1800 = vrot.lane.b32.xlu0 %v10803_v11, %s8395_s13  ;;  %2921 = vrot.lane.b32.xlu1 %v10856_v42, %s8397_s1  ;;  %v4745_v11 = vld [vmem:[%s8453_s25 + $0x108] sm:$0xff]  ;;  %v4490_v16 = vpop.permute.xlu0 %4489 }
 0x894   :  { %1798 = vrot.lane.b32.xlu2 %v10790_v48, %s8395_s13  ;;  %v3303_v46 = vpop.permute.xlu1 %3302 }
 0x895   :  { %3462 = vst.msk [vmem:[#allocation3 + $0x210] sm:$0xff] %vm3428_vm9, %v3303_v46 }
 0x896   :  { %v3688_v51 = vpop.permute.xlu2 %3687 }
 0x897   :  { %3847 = vst.msk [vmem:[#allocation3 + $0x210] sm:$0xff] %vm3813_vm10, %v3688_v51 }
 0x898   :  { %4232 = vst.msk [vmem:[#allocation3 + $0x210] sm:$0xff] %vm4198_vm11, %v4073_v55 }
 0x899   :  { %4617 = vst.msk [vmem:[#allocation3 + $0x210] sm:$0xff] %vm4583_vm12, %v4458_v53  ;;  %v1300_v53 = vsel %vm846_vm3, %v1116_v47, 0.0  ;;  %v4762_v47 = vld [vmem:[%s8453_s25 + $0x190] sm:$0xff] }
 0x89a   :  { %2185 = vrot.lane.b32.xlu0 %v10814_v38, %s8396_s17  ;;  %2953 = vrot.lane.b32.xlu1 %v10872_v9, %s8397_s1  ;;  %v11057_v38 = vld [vmem:[#allocation2 + $0x14f] sm:$0xff]  ;;  %v2535_v22 = vpop.permute.xlu0 %2534 }
 0x89c   :  { %2183 = vrot.lane.b32.xlu2 %v10724_v13, %s8396_s17  ;;  %v3335_v48 = vpop.permute.xlu1 %3334 }
 0x89d   :  { %3478 = vst.msk [vmem:[#allocation3 + $0x310] sm:$0xff] %vm3428_vm9, %v3335_v48 }
 0x8a0   :  { %v4681_v19 = vld [vmem:[#allocation3 + $0x210] sm:$0xff] }
 0x8a1   :  { %v4809_v57 = vmul.f32 %v4745_v11, %v4681_v19  ;;  %v8293_v11 = vld [vmem:[%s8428_s5 + $0x1d0] sm:$0xff] }
 0x8a2   :  { %3308 = vrot.lane.b32.xlu0 %v10978_v6, %s8401_s11  ;;  %3338 = vrot.lane.b32.xlu1 %v10881_v31, %s8401_s11  ;;  %v2920_v3 = vpop.permute.xlu0 %2919 }
 0x8a3   :  { %8060 = vmatmul.msk.f32.gmra.mxu1 %vm4846_vm13, %v4809_v57 }
 0x8a4   :  { %2568 = vrot.lane.b32.xlu2 %v10543_v49, %s8398_s2  ;;  %v3720_v13 = vpop.permute.xlu1 %3719  ;;  %v4761_v49 = vld [vmem:[%s8453_s25 + $0x188] sm:$0xff] }
 0x8a5   :  { %3863 = vst.msk [vmem:[#allocation3 + $0x310] sm:$0xff] %vm3813_vm10, %v3720_v13 }
 0x8a6   :  { %4248 = vst.msk [vmem:[#allocation3 + $0x310] sm:$0xff] %vm4198_vm11, %v4105_v18 }
 0x8a7   :  { %4633 = vst.msk [vmem:[#allocation3 + $0x310] sm:$0xff] %vm4583_vm12, %v4490_v16  ;;  %v8294_v16 = vld [vmem:[%s8428_s5 + $0x1d8] sm:$0xff] }
 0x8aa   :  { %3693 = vrot.lane.b32.xlu0 %v11057_v38, %s8400_s10  ;;  %v2952_v23 = vpop.permute.xlu0 %2951 }
 0x8ac   :  { %3691 = vrot.lane.b32.xlu2 %v10661_v59, %s8400_s10  ;;  %v1765_v20 = vpop.permute.xlu1 %1764 }
 0x8ad   :  { %1923 = vst.msk [vmem:[#allocation3 + $0x220] sm:$0xff] %vm1888_vm5, %v1765_v20 }
 0x8ae   :  { %v4697_v58 = vld [vmem:[#allocation3 + $0x310] sm:$0xff] }
 0x8af   :  { %v4825_v28 = vmul.f32 %v4761_v49, %v4697_v58 }
 0x8b1   :  { %8076 = vmatmul.msk.f32.gmra.mxu2 %vm4846_vm13, %v4825_v28 }
 0x8b2   :  { %4078 = vrot.lane.b32.xlu0 %v11065_v54, %s8399_s7  ;;  %v3337_v8 = vpop.permute.xlu0 %3336 }
 0x8b4   :  { %4076 = vrot.lane.b32.xlu2 %v11070_v4, %s8399_s7  ;;  %v2150_v45 = vpop.permute.xlu1 %2149 }
 0x8b5   :  { %2308 = vst.msk [vmem:[#allocation3 + $0x220] sm:$0xff] %vm2273_vm6, %v2150_v45 }
 0x8b6   :  { %2693 = vst.msk [vmem:[#allocation3 + $0x220] sm:$0xff] %vm2658_vm7, %v2535_v22  ;;  %v5155_v60 = vpop.f32.mrf.mxu1 }
 0x8b7   :  { %3078 = vst.msk [vmem:[#allocation3 + $0x220] sm:$0xff] %vm3043_vm8, %v2920_v3  ;;  %v5156_v15 = vadd.f32 %v10651_v43, %v5155_v60 }
 0x8b9   :  { %v5287_v32 = vmax.f32 %v5156_v15, %v9649_v14 }
 0x8ba   :  { %4463 = vrot.lane.b32.xlu0 %v11079_v39, %s8393_s28 }
 0x8bb   :  { %5351 = vst.msk [vmem:[#allocation4 + $0x100] sm:$0xff] %vm846_vm3, %v5287_v32  ;;  %v4746_v32 = vld [vmem:[%s8453_s25 + $0x110] sm:$0xff] }
 0x8bc   :  { %4461 = vrot.lane.b32.xlu2 %v11083_v12, %s8393_s28  ;;  %v1797_v21 = vpop.permute.xlu1 %1796 }
 0x8bd   :  { %1939 = vst.msk [vmem:[#allocation3 + $0x320] sm:$0xff] %vm1888_vm5, %v1797_v21 }
 0x8c0   :  { %v5200_v37 = vpop.f32.mrf.mxu2 }
 0x8c1   :  { %v5201_v40 = vadd.f32 %v10651_v43, %v5200_v37 }
 0x8c2   :  { %4110 = vrot.lane.b32.xlu0 %v11090_v35, %s8399_s7 }
 0x8c3   :  { %v5302_v26 = vmax.f32 %v5201_v40, %v9649_v14 }
 0x8c4   :  { %4108 = vrot.lane.b32.xlu2 %v11094_v36, %s8399_s7  ;;  %v2182_v55 = vpop.permute.xlu1 %2181 }
 0x8c5   :  { %5366 = vst.msk [vmem:[#allocation4 + $0x178] sm:$0xff] %vm846_vm3, %v5302_v26 }
 0x8c6   :  { %2324 = vst.msk [vmem:[#allocation3 + $0x320] sm:$0xff] %vm2273_vm6, %v2182_v55 }
 0x8ca   :  { %4495 = vrot.lane.b32.xlu0 %v11103_v10, %s8393_s28 }
 0x8cc   :  { %4493 = vrot.lane.b32.xlu2 %v11107_v56, %s8393_s28  ;;  %v5474_v46 = vld [vmem:[#allocation4 + $0x178] sm:$0xff]  ;;  %v3305_v51 = vpop.permute.xlu1 %3304  ;;  %1301 = vadd.xlane.f32.xlu1 %v1300_v53 }
 0x8cd   :  { %v5476_v18 = vmax.f32 %v5472_v41, %v5474_v46  ;;  %3463 = vst.msk [vmem:[#allocation3 + $0x220] sm:$0xff] %vm3428_vm9, %v3305_v51 }
 0x8cf   :  { %v1296_v48 = vpop.xlane.xlu2 %1295  ;;  %5478 = vst.msk [vmem:[#allocation5 + $0xb8] sm:$0xff] %vm846_vm3, %v5476_v18 }
 0x8d0   :  { %v1370_v19 = vmul.f32 %v8293_v11, %v1296_v48 }
 0x8d1   :  { %v1299_v57 = vpop.xlane.xlu0 %1298 }
 0x8d2   :  { %1434 = vst.msk [vmem:[#allocation2 + $0x1f0] sm:$0xff] %vm312_vm2, %v1370_v19  ;;  %v1371_v13 = vmul.f32 %v8294_v16, %v1299_v57  ;;  %2540 = vrot.lane.b32.xlu0 %v10661_v59, %s8398_s2  ;;  %v1052_v19 = vld [vmem:[%s8448_s21 + $0x1e8] sm:$0xff]  ;;  %v1053_v57 = vld [vmem:[%s8448_s21 + $0x1f0] sm:$0xff] }
 0x8d4   :  { %2538 = vrot.lane.b32.xlu2 %v10559_v17, %s8398_s2  ;;  %1435 = vst.msk [vmem:[#allocation2 + $0x1f8] sm:$0xff] %vm312_vm2, %v1371_v13  ;;  %v3690_v22 = vpop.permute.xlu1 %3689  ;;  %v1118_v13 = vmul.f32 %v9068_v34, %v1053_v57  ;;  %v1054_v57 = vld [vmem:[%s8448_s21 + $0x1f8] sm:$0xff]  ;;  %s8404_s21 = smov 20  }
 0x8d5   :  { %3848 = vst.msk [vmem:[#allocation3 + $0x220] sm:$0xff] %vm3813_vm10, %v3690_v22 }
 0x8d7   :  { %v2567_v20 = vpop.permute.xlu2 %2566 }
 0x8d8   :  { %2709 = vst.msk [vmem:[#allocation3 + $0x320] sm:$0xff] %vm2658_vm7, %v2567_v20  ;;  %v1306_v20 = vsel %vm846_vm3, %v1118_v13, 0.0 }
 0x8d9   :  { %3094 = vst.msk [vmem:[#allocation3 + $0x320] sm:$0xff] %vm3043_vm8, %v2952_v23  ;;  %v11125_v49 = vld [vmem:[#allocation2 + $0x1ef] sm:$0xff] }
 0x8da   :  { %3479 = vst.msk [vmem:[#allocation3 + $0x320] sm:$0xff] %vm3428_vm9, %v3337_v8  ;;  %2925 = vrot.lane.b32.xlu0 %v11070_v4, %s8397_s1 }
 0x8db   :  { %1564 = vst.msk [vmem:[#allocation3 + $0x3c0] sm:$0xff] %vm312_vm2, %v11125_v49  ;;  %v11134_v17 = vld [vmem:[#allocation2 + $0x1f7] sm:$0xff] }
 0x8dc   :  { %2923 = vrot.lane.b32.xlu2 %v10969_v2, %s8397_s1  ;;  %v4075_v59 = vpop.permute.xlu1 %4074  ;;  %1565 = vst.msk [vmem:[#allocation3 + $0x3d0] sm:$0xff] %vm312_vm2, %v11134_v17 }
 0x8dd   :  { %4233 = vst.msk [vmem:[#allocation3 + $0x220] sm:$0xff] %vm4198_vm11, %v4075_v59 }
 0x8de   :  { %v5203_v58 = vpop.f32.mrf.mxu2 }
 0x8df   :  { %v5204_v28 = vadd.f32 %v10651_v43, %v5203_v58  ;;  %v3722_v45 = vpop.permute.xlu2 %3721 }
 0x8e0   :  { %3864 = vst.msk [vmem:[#allocation3 + $0x320] sm:$0xff] %vm3813_vm10, %v3722_v45  ;;  %v11199_v45 = vld [vmem:[%s8463_s3] ss:$0 sm:$0xff] }
 0x8e1   :  { %v5303_v3 = vmax.f32 %v5204_v28, %v9649_v14 }
 0x8e2   :  { %2957 = vrot.lane.b32.xlu0 %v11094_v36, %s8397_s1 }
 0x8e3   :  { %5367 = vst.msk [vmem:[#allocation4 + $0x180] sm:$0xff] %vm846_vm3, %v5303_v3 }
 0x8e4   :  { %2955 = vrot.lane.b32.xlu2 %v10998_v62, %s8397_s1  ;;  %v3307_v60 = vpop.permute.xlu0 %3306  ;;  %v4460_v15 = vpop.permute.xlu1 %4459 }
 0x8e5   :  { %4618 = vst.msk [vmem:[#allocation3 + $0x220] sm:$0xff] %vm4583_vm12, %v4460_v15  ;;  %2570 = vrot.lane.b32.xlu1 %v10608_v44, %s8398_s2 }
 0x8e7   :  { %v1767_v43 = vpop.permute.xlu2 %1766 }
 0x8e8   :  { %1924 = vst.msk [vmem:[#allocation3 + $0x230] sm:$0xff] %vm1888_vm5, %v1767_v43  ;;  %v11203_v43 = vld [vmem:[#allocation2 + $0x158] sm:$0xff] }
 0x8ea   :  { %3342 = vrot.lane.b32.xlu0 %v11107_v56, %s8401_s11 }
 0x8ec   :  { %3340 = vrot.lane.b32.xlu2 %v11006_v25, %s8401_s11  ;;  %v3724_v21 = vpop.permute.xlu0 %3723  ;;  %v4107_v23 = vpop.permute.xlu1 %4106  ;;  %v4682_v37 = vld [vmem:[#allocation3 + $0x220] sm:$0xff] }
 0x8ed   :  { %4249 = vst.msk [vmem:[#allocation3 + $0x320] sm:$0xff] %vm4198_vm11, %v4107_v23  ;;  %3725 = vrot.lane.b32.xlu1 %v10759_v52, %s8400_s10  ;;  %v4810_v44 = vmul.f32 %v4746_v32, %v4682_v37  ;;  %v4747_v32 = vld [vmem:[%s8453_s25 + $0x118] sm:$0xff] }
 0x8ef   :  { %v2152_v40 = vpop.permute.xlu2 %2151  ;;  %8061 = vmatmul.msk.f32.gmra.mxu1 %vm4846_vm13, %v4810_v44  ;;  %v11215_v44 = vld [vmem:[#allocation2 + $0x159] sm:$0xff] }
 0x8f0   :  { %2309 = vst.msk [vmem:[#allocation3 + $0x230] sm:$0xff] %vm2273_vm6, %v2152_v40 }
 0x8f4   :  { %v1769_v26 = vpop.permute.xlu0 %1768  ;;  %v4492_v55 = vpop.permute.xlu1 %4491 }
 0x8f5   :  { %1925 = vst.msk [vmem:[#allocation3 + $0x240] sm:$0xff] %vm1888_vm5, %v1769_v26  ;;  %1770 = vrot.lane.b32.xlu1 %v10856_v42, %s8395_s13 }
 0x8f6   :  { %4634 = vst.msk [vmem:[#allocation3 + $0x320] sm:$0xff] %vm4583_vm12, %v4492_v55 }
 0x8f7   :  { %v1799_v29 = vpop.permute.xlu2 %1798 }
 0x8f8   :  { %1940 = vst.msk [vmem:[#allocation3 + $0x330] sm:$0xff] %vm1888_vm5, %v1799_v29  ;;  %v11222_v29 = vld [vmem:[#allocation2 + $0x1d8] sm:$0xff] }
 0x8fc   :  { %v2154_v8 = vpop.permute.xlu0 %2153  ;;  %v2537_v53 = vpop.permute.xlu1 %2536 }
 0x8fd   :  { %2310 = vst.msk [vmem:[#allocation3 + $0x240] sm:$0xff] %vm2273_vm6, %v2154_v8  ;;  %2155 = vrot.lane.b32.xlu1 %v10866_v1, %s8396_s17  ;;  %v4698_v41 = vld [vmem:[#allocation3 + $0x320] sm:$0xff] }
 0x8fe   :  { %2694 = vst.msk [vmem:[#allocation3 + $0x230] sm:$0xff] %vm2658_vm7, %v2537_v53  ;;  %v4826_v42 = vmul.f32 %v4762_v47, %v4698_v41 }
 0x8ff   :  { %v2184_v46 = vpop.permute.xlu2 %2183 }
 0x900   :  { %2325 = vst.msk [vmem:[#allocation3 + $0x330] sm:$0xff] %vm2273_vm6, %v2184_v46  ;;  %8077 = vmatmul.msk.f32.gmra.mxu2 %vm4846_vm13, %v4826_v42  ;;  %v11234_v42 = vld [vmem:[#allocation2 + $0x1d9] sm:$0xff] }
 0x904   :  { %v1801_v51 = vpop.permute.xlu0 %1800  ;;  %v2922_v18 = vpop.permute.xlu1 %2921 }
 0x905   :  { %1941 = vst.msk [vmem:[#allocation3 + $0x340] sm:$0xff] %vm1888_vm5, %v1801_v51  ;;  %1802 = vrot.lane.b32.xlu1 %v10872_v9, %s8395_s13  ;;  %v1117_v9 = vmul.f32 %v9068_v34, %v1052_v19 }
 0x906   :  { %3079 = vst.msk [vmem:[#allocation3 + $0x230] sm:$0xff] %vm3043_vm8, %v2922_v18 }
 0x907   :  { %v2569_v1 = vpop.permute.xlu2 %2568  ;;  %3464 = vst.msk [vmem:[#allocation3 + $0x230] sm:$0xff] %vm3428_vm9, %v3307_v60  ;;  %v1303_v22 = vsel %vm846_vm3, %v1117_v9, 0.0 }
 0x908   :  { %2710 = vst.msk [vmem:[#allocation3 + $0x330] sm:$0xff] %vm2658_vm7, %v2569_v1  ;;  %v8296_v1 = vld [vmem:[%s8428_s5 + $0x1e0] sm:$0xff] }
 0x90c   :  { %v2186_v48 = vpop.permute.xlu0 %2185  ;;  %v2954_v11 = vpop.permute.xlu1 %2953 }
 0x90d   :  { %2326 = vst.msk [vmem:[#allocation3 + $0x340] sm:$0xff] %vm2273_vm6, %v2186_v48  ;;  %2187 = vrot.lane.b32.xlu1 %v10881_v31, %s8396_s17 }
 0x90e   :  { %3095 = vst.msk [vmem:[#allocation3 + $0x330] sm:$0xff] %vm3043_vm8, %v2954_v11 }
 0x90f   :  { %v3692_v16 = vpop.permute.xlu2 %3691 }
 0x910   :  { %3849 = vst.msk [vmem:[#allocation3 + $0x230] sm:$0xff] %vm3813_vm10, %v3692_v16 }
 0x914   :  { %1307 = vadd.xlane.f32.xlu0 %v1306_v20  ;;  %v3339_v59 = vpop.permute.xlu1 %3338  ;;  %v3309_v15 = vpop.permute.xlu0 %3308 }
 0x915   :  { %1304 = vadd.xlane.f32.xlu2 %v1303_v22  ;;  %3480 = vst.msk [vmem:[#allocation3 + $0x330] sm:$0xff] %vm3428_vm9, %v3339_v59  ;;  %3310 = vrot.lane.b32.xlu1 %v11083_v12, %s8401_s11  ;;  %v1119_v22 = vmul.f32 %v9068_v34, %v1054_v57 }
 0x916   :  { %3865 = vst.msk [vmem:[#allocation3 + $0x330] sm:$0xff] %vm3813_vm10, %v3724_v21 }
 0x917   :  { %v4077_v31 = vpop.permute.xlu2 %4076 }
 0x918   :  { %4234 = vst.msk [vmem:[#allocation3 + $0x230] sm:$0xff] %vm4198_vm11, %v4077_v31 }
 0x91c   :  { %v3694_v40 = vpop.permute.xlu0 %3693 }
 0x91d   :  { %3695 = vrot.lane.b32.xlu1 %v10810_v5, %s8400_s10 }
 0x91f   :  { %v4462_v58 = vpop.permute.xlu2 %4461 }
 0x920   :  { %4619 = vst.msk [vmem:[#allocation3 + $0x230] sm:$0xff] %vm4583_vm12, %v4462_v58  ;;  %v5158_v28 = vpop.f32.mrf.mxu1  ;;  %v4764_v58 = vld [vmem:[%s8453_s25 + $0x1a0] sm:$0xff] }
 0x921   :  { %v5159_v3 = vadd.f32 %v11199_v45, %v5158_v28 }
 0x923   :  { %v5288_v60 = vmax.f32 %v5159_v3, %v9649_v14 }
 0x924   :  { %v4079_v46 = vpop.permute.xlu0 %4078 }
 0x925   :  { %5352 = vst.msk [vmem:[#allocation4 + $0x108] sm:$0xff] %vm846_vm3, %v5288_v60  ;;  %4080 = vrot.lane.b32.xlu1 %v11203_v43, %s8399_s7 }
 0x927   :  { %v4109_v21 = vpop.permute.xlu2 %4108  ;;  %v4683_v23 = vld [vmem:[#allocation3 + $0x230] sm:$0xff] }
 0x928   :  { %4250 = vst.msk [vmem:[#allocation3 + $0x330] sm:$0xff] %vm4198_vm11, %v4109_v21  ;;  %v4811_v37 = vmul.f32 %v4747_v32, %v4683_v23  ;;  %2574 = vrot.lane.b32.xlu0 %v10759_v52, %s8398_s2  ;;  %v4763_v52 = vld [vmem:[%s8453_s25 + $0x198] sm:$0xff] }
 0x92a   :  { %8062 = vmatmul.msk.f32.gmra.mxu1 %vm4846_vm13, %v4811_v37 }
 0x92c   :  { %v4464_v11 = vpop.permute.xlu0 %4463 }
 0x92d   :  { %2572 = vrot.lane.b32.xlu2 %v10996_v0, %s8398_s2  ;;  %4465 = vrot.lane.b32.xlu1 %v11215_v44, %s8393_s28 }
 0x92f   :  { %v4494_v26 = vpop.permute.xlu2 %4493 }
 0x930   :  { %4635 = vst.msk [vmem:[#allocation3 + $0x330] sm:$0xff] %vm4583_vm12, %v4494_v26  ;;  %v11302_v26 = vld [vmem:[#allocation2 + $0x1e8] sm:$0xff] }
 0x934   :  { %v5206_v55 = vpop.f32.mrf.mxu2  ;;  %v4111_v13 = vpop.permute.xlu0 %4110 }
 0x935   :  { %3727 = vrot.lane.b32.xlu2 %v10842_v50, %s8400_s10  ;;  %v5207_v47 = vadd.f32 %v11199_v45, %v5206_v55  ;;  %4112 = vrot.lane.b32.xlu1 %v11222_v29, %s8399_s7 }
 0x937   :  { %v2539_v0 = vpop.permute.xlu2 %2538  ;;  %v4699_v8 = vld [vmem:[#allocation3 + $0x330] sm:$0xff]  ;;  %v5304_v53 = vmax.f32 %v5207_v47, %v9649_v14 }
 0x938   :  { %2695 = vst.msk [vmem:[#allocation3 + $0x240] sm:$0xff] %vm2658_vm7, %v2539_v0  ;;  %v4827_v41 = vmul.f32 %v4763_v52, %v4699_v8  ;;  %v5447_v52 = vld [vmem:[#allocation4 + $0x100] sm:$0xff] }
 0x939   :  { %5368 = vst.msk [vmem:[#allocation4 + $0x188] sm:$0xff] %vm846_vm3, %v5304_v53  ;;  %v11308_v8 = vld [vmem:[#allocation2 + $0x1e0] sm:$0xff] }
 0x93a   :  { %8078 = vmatmul.msk.f32.gmra.mxu2 %vm4846_vm13, %v4827_v41 }
 0x93d   :  { %1772 = vrot.lane.b32.xlu2 %v10969_v2, %s8395_s13  ;;  %4497 = vrot.lane.b32.xlu1 %v11234_v42, %s8393_s28  ;;  %v4748_v2 = vld [vmem:[%s8453_s25 + $0x120] sm:$0xff] }
 0x93f   :  { %v2924_v51 = vpop.permute.xlu2 %2923  ;;  %v1302_v18 = vpop.xlane.xlu1 %1301 }
 0x940   :  { %3080 = vst.msk [vmem:[#allocation3 + $0x240] sm:$0xff] %vm3043_vm8, %v2924_v51  ;;  %v1372_v48 = vmul.f32 %v8296_v1, %v1302_v18  ;;  %v8297_v1 = vld [vmem:[%s8428_s5 + $0x1e8] sm:$0xff] }
 0x941   :  { %3465 = vst.msk [vmem:[#allocation3 + $0x240] sm:$0xff] %vm3428_vm9, %v3309_v15  ;;  %v11281_v15 = vld [vmem:[#allocation2 + $0x160] sm:$0xff] }
 0x942   :  { %3850 = vst.msk [vmem:[#allocation3 + $0x240] sm:$0xff] %vm3813_vm10, %v3694_v40  ;;  %v11296_v40 = vld [vmem:[#allocation2 + $0x161] sm:$0xff] }
 0x943   :  { %4235 = vst.msk [vmem:[#allocation3 + $0x240] sm:$0xff] %vm4198_vm11, %v4079_v46  ;;  %v11317_v46 = vld [vmem:[#allocation2 + $0x1e1] sm:$0xff] }
 0x944   :  { %4620 = vst.msk [vmem:[#allocation3 + $0x240] sm:$0xff] %vm4583_vm12, %v4464_v11  ;;  %v8298_v11 = vld [vmem:[%s8428_s5 + $0x1f0] sm:$0xff] }
 0x945   :  { %1436 = vst.msk [vmem:[#allocation2 + $0x200] sm:$0xff] %vm312_vm2, %v1372_v48  ;;  %2157 = vrot.lane.b32.xlu2 %v10978_v6, %s8396_s17  ;;  %2542 = vrot.lane.b32.xlu1 %v11057_v38, %s8398_s2  ;;  %v1309_v38 = vsel %vm846_vm3, %v1119_v22, 0.0 }
 0x947   :  { %v2956_v6 = vpop.permute.xlu2 %2955 }
 0x94b   :  { %v4684_v19 = vld [vmem:[#allocation3 + $0x240] sm:$0xff] }
 0x94c   :  { %v4812_v16 = vmul.f32 %v4748_v2, %v4684_v19  ;;  %v1502_v9 = vld [vmem:[#allocation2 + $0x1ff] sm:$0xff] }
 0x94d   :  { %1804 = vrot.lane.b32.xlu2 %v10998_v62, %s8395_s13  ;;  %2927 = vrot.lane.b32.xlu1 %v11065_v54, %s8397_s1  ;;  %1566 = vst.msk [vmem:[#allocation3 + $0x3e0] sm:$0xff] %vm312_vm2, %v1502_v9  ;;  %v4496_v62 = vpop.permute.xlu0 %4495 }
 0x94e   :  { %8063 = vmatmul.msk.f32.gmra.mxu1 %vm4846_vm13, %v4812_v16 }
 0x94f   :  { %v3341_v59 = vpop.permute.xlu2 %3340 }
 0x952   :  { %1310 = vadd.xlane.f32.xlu0 %v1309_v38  ;;  %v11360_v38 = vld [vmem:[#allocation2 + $0x168] sm:$0xff] }
 0x955   :  { %2189 = vrot.lane.b32.xlu2 %v11006_v25, %s8396_s17  ;;  %2959 = vrot.lane.b32.xlu1 %v11090_v35, %s8397_s1  ;;  %v2541_v25 = vpop.permute.xlu0 %2540 }
 0x957   :  { %v2571_v20 = vpop.permute.xlu1 %2570 }
 0x958   :  { %2711 = vst.msk [vmem:[#allocation3 + $0x340] sm:$0xff] %vm2658_vm7, %v2571_v20 }
 0x959   :  { %3096 = vst.msk [vmem:[#allocation3 + $0x340] sm:$0xff] %vm3043_vm8, %v2956_v6 }
 0x95a   :  { %3481 = vst.msk [vmem:[#allocation3 + $0x340] sm:$0xff] %vm3428_vm9, %v3341_v59  ;;  %v11372_v59 = vld [vmem:[#allocation2 + $0x1f1] sm:$0xff] }
 0x95d   :  { %3312 = vrot.lane.b32.xlu2 %v11079_v39, %s8401_s11  ;;  %3344 = vrot.lane.b32.xlu1 %v11103_v10, %s8401_s11  ;;  %v2926_v60 = vpop.permute.xlu0 %2925 }
 0x95f   :  { %v3726_v34 = vpop.permute.xlu1 %3725 }
 0x960   :  { %3866 = vst.msk [vmem:[#allocation3 + $0x340] sm:$0xff] %vm3813_vm10, %v3726_v34 }
 0x961   :  { %4251 = vst.msk [vmem:[#allocation3 + $0x340] sm:$0xff] %vm4198_vm11, %v4111_v13 }
 0x962   :  { %4636 = vst.msk [vmem:[#allocation3 + $0x340] sm:$0xff] %vm4583_vm12, %v4496_v62 }
 0x965   :  { %3697 = vrot.lane.b32.xlu2 %v10903_v33, %s8400_s10  ;;  %3729 = vrot.lane.b32.xlu1 %v10935_v27, %s8400_s10 }
 0x966   :  { %3314 = vrot.lane.b32.xlu0 %v11215_v44, %s8401_s11 }
 0x967   :  { %v1771_v31 = vpop.permute.xlu1 %1770 }
 0x968   :  { %1926 = vst.msk [vmem:[#allocation3 + $0x250] sm:$0xff] %vm1888_vm5, %v1771_v31 }
 0x969   :  { %v4700_v28 = vld [vmem:[#allocation3 + $0x340] sm:$0xff] }
 0x96a   :  { %v4828_v3 = vmul.f32 %v4764_v58, %v4700_v28 }
 0x96c   :  { %v5161_v32 = vpop.f32.mrf.mxu1  ;;  %8079 = vmatmul.msk.f32.gmra.mxu2 %vm4846_vm13, %v4828_v3 }
 0x96d   :  { %4082 = vrot.lane.b32.xlu2 %v11281_v15, %s8399_s7  ;;  %v5162_v21 = vadd.f32 %v11199_v45, %v5161_v32  ;;  %1774 = vrot.lane.b32.xlu1 %v11070_v4, %s8395_s13  ;;  %v2958_v4 = vpop.permute.xlu0 %2957  ;;  %v11387_v32 = vld [vmem:[#allocation2 + $0x1e9] sm:$0xff] }
 0x96e   :  { %3731 = vrot.lane.b32.xlu0 %v11025_v61, %s8400_s10 }
 0x96f   :  { %v5289_v23 = vmax.f32 %v5162_v21, %v9649_v14  ;;  %v2156_v37 = vpop.permute.xlu1 %2155 }
 0x970   :  { %2311 = vst.msk [vmem:[#allocation3 + $0x250] sm:$0xff] %vm2273_vm6, %v2156_v37  ;;  %v5448_v37 = vld [vmem:[#allocation4 + $0x108] sm:$0xff] }
 0x971   :  { %5353 = vst.msk [vmem:[#allocation4 + $0x110] sm:$0xff] %vm846_vm3, %v5289_v23 }
 0x972   :  { %2696 = vst.msk [vmem:[#allocation3 + $0x250] sm:$0xff] %vm2658_vm7, %v2541_v25  ;;  %v4749_v25 = vld [vmem:[%s8453_s25 + $0x128] sm:$0xff] }
 0x973   :  { %3081 = vst.msk [vmem:[#allocation3 + $0x250] sm:$0xff] %vm3043_vm8, %v2926_v60 }
 0x975   :  { %4467 = vrot.lane.b32.xlu2 %v11296_v40, %s8393_s28  ;;  %2159 = vrot.lane.b32.xlu1 %v11083_v12, %s8396_s17  ;;  %v3343_v12 = vpop.permute.xlu0 %3342 }
 0x976   :  { %4116 = vrot.lane.b32.xlu0 %v11302_v26, %s8399_s7 }
 0x977   :  { %v1803_v55 = vpop.permute.xlu1 %1802 }
 0x978   :  { %v5449_v47 = vld [vmem:[#allocation4 + $0x110] sm:$0xff]  ;;  %1942 = vst.msk [vmem:[#allocation3 + $0x350] sm:$0xff] %vm1888_vm5, %v1803_v55 }
 0x979   :  { %v5451_v0 = vmax.f32 %v5447_v52, %v5449_v47 }
 0x97b   :  { %5453 = vst.msk [vmem:[#allocation5 + $0x80] sm:$0xff] %vm846_vm3, %v5451_v0 }
 0x97d   :  { %4114 = vrot.lane.b32.xlu2 %v11308_v8, %s8399_s7  ;;  %1806 = vrot.lane.b32.xlu1 %v11094_v36, %s8395_s13 }
 0x97e   :  { %1808 = vrot.lane.b32.xlu0 %v11090_v35, %s8395_s13 }
 0x97f   :  { %v2188_v53 = vpop.permute.xlu1 %2187 }
 0x980   :  { %2327 = vst.msk [vmem:[#allocation3 + $0x350] sm:$0xff] %vm2273_vm6, %v2188_v53 }
 0x983   :  { %v5209_v41 = vpop.f32.mrf.mxu2 }
 0x984   :  { %v5210_v51 = vadd.f32 %v11199_v45, %v5209_v41 }
 0x985   :  { %4499 = vrot.lane.b32.xlu2 %v11317_v46, %s8393_s28  ;;  %2191 = vrot.lane.b32.xlu1 %v11107_v56, %s8396_s17  ;;  %v5479_v56 = vld [vmem:[#allocation4 + $0x180] sm:$0xff] }
 0x986   :  { %v5305_v36 = vmax.f32 %v5210_v51, %v9649_v14  ;;  %2931 = vrot.lane.b32.xlu0 %v11281_v15, %s8397_s1 }
 0x987   :  { %v1308_v18 = vpop.xlane.xlu0 %1307  ;;  %v3311_v19 = vpop.permute.xlu1 %3310 }
 0x988   :  { %v1305_v35 = vpop.xlane.xlu2 %1304  ;;  %5369 = vst.msk [vmem:[#allocation4 + $0x190] sm:$0xff] %vm846_vm3, %v5305_v36  ;;  %v1374_v2 = vmul.f32 %v8298_v11, %v1308_v18  ;;  %v8299_v18 = vld [vmem:[%s8428_s5 + $0x1f8] sm:$0xff]  ;;  %v5480_v11 = vld [vmem:[#allocation4 + $0x188] sm:$0xff]  ;;  %s8403_s5 = smov 124  }
 0x989   :  { %v1373_v48 = vmul.f32 %v8297_v1, %v1305_v35  ;;  %3466 = vst.msk [vmem:[#allocation3 + $0x250] sm:$0xff] %vm3428_vm9, %v3311_v19  ;;  %v11422_v35 = vld [vmem:[#allocation2 + $0x179] sm:$0xff] }
 0x98a   :  { %1438 = vst.msk [vmem:[#allocation2 + $0x210] sm:$0xff] %vm312_vm2, %v1374_v2 }
 0x98b   :  { %1437 = vst.msk [vmem:[#allocation2 + $0x208] sm:$0xff] %vm312_vm2, %v1373_v48 }
 0x98d   :  { %2544 = vrot.lane.b32.xlu2 %v10810_v5, %s8398_s2  ;;  %2576 = vrot.lane.b32.xlu1 %v10842_v50, %s8398_s2  ;;  %v11350_v5 = vld [vmem:[#allocation2 + $0x170] sm:$0xff] }
 0x98e   :  { %2963 = vrot.lane.b32.xlu0 %v11308_v8, %s8397_s1 }
 0x98f   :  { %v5481_v57 = vld [vmem:[#allocation4 + $0x190] sm:$0xff]  ;;  %v3696_v13 = vpop.permute.xlu1 %3695 }
 0x990   :  { %v2573_v16 = vpop.permute.xlu2 %2572  ;;  %v5483_v9 = vmax.f32 %v5479_v56, %v5481_v57  ;;  %3851 = vst.msk [vmem:[#allocation3 + $0x250] sm:$0xff] %vm3813_vm10, %v3696_v13 }
 0x991   :  { %2712 = vst.msk [vmem:[#allocation3 + $0x350] sm:$0xff] %vm2658_vm7, %v2573_v16  ;;  %v11434_v16 = vld [vmem:[#allocation2 + $0x171] sm:$0xff] }
 0x992   :  { %3097 = vst.msk [vmem:[#allocation3 + $0x350] sm:$0xff] %vm3043_vm8, %v2958_v4  ;;  %v11342_v22 = vld [vmem:[#allocation2 + $0x207] sm:$0xff] }
 0x993   :  { %5485 = vst.msk [vmem:[#allocation5 + $0xc0] sm:$0xff] %vm846_vm3, %v5483_v9 }
 0x994   :  { %3482 = vst.msk [vmem:[#allocation3 + $0x350] sm:$0xff] %vm3428_vm9, %v3343_v12 }
 0x995   :  { %2929 = vrot.lane.b32.xlu2 %v11203_v43, %s8397_s1  ;;  %3699 = vrot.lane.b32.xlu1 %v10988_v30, %s8400_s10  ;;  %1567 = vst.msk [vmem:[#allocation3 + $0x3f0] sm:$0xff] %vm312_vm2, %v11342_v22 }
 0x996   :  { %4086 = vrot.lane.b32.xlu0 %v11350_v5, %s8399_s7 }
 0x997   :  { %v4081_v6 = vpop.permute.xlu1 %4080 }
 0x998   :  { %v3728_v50 = vpop.permute.xlu2 %3727  ;;  %4236 = vst.msk [vmem:[#allocation3 + $0x250] sm:$0xff] %vm4198_vm11, %v4081_v6 }
 0x999   :  { %3867 = vst.msk [vmem:[#allocation3 + $0x350] sm:$0xff] %vm3813_vm10, %v3728_v50 }
 0x99a   :  { %v2575_v47 = vpop.permute.xlu0 %2574 }
 0x99d   :  { %2961 = vrot.lane.b32.xlu2 %v11222_v29, %s8397_s1  ;;  %4084 = vrot.lane.b32.xlu1 %v11360_v38, %s8399_s7 }
 0x99e   :  { %1778 = vrot.lane.b32.xlu0 %v11203_v43, %s8395_s13 }
 0x99f   :  { %v4466_v20 = vpop.permute.xlu1 %4465 }
 0x9a0   :  { %v1773_v62 = vpop.permute.xlu2 %1772  ;;  %4621 = vst.msk [vmem:[#allocation3 + $0x250] sm:$0xff] %vm4583_vm12, %v4466_v20  ;;  %v11452_v20 = vld [vmem:[#allocation2 + $0x1f0] sm:$0xff] }
 0x9a1   :  { %1927 = vst.msk [vmem:[#allocation3 + $0x260] sm:$0xff] %vm1888_vm5, %v1773_v62 }
 0x9a5   :  { %3346 = vrot.lane.b32.xlu2 %v11234_v42, %s8401_s11  ;;  %1776 = vrot.lane.b32.xlu1 %v11065_v54, %s8395_s13  ;;  %v11383_v54 = vld [vmem:[#allocation2 + $0x169] sm:$0xff] }
 0x9a6   :  { %4503 = vrot.lane.b32.xlu0 %v11372_v59, %s8393_s28 }
 0x9a7   :  { %v5164_v34 = vpop.f32.mrf.mxu1  ;;  %v4113_v58 = vpop.permute.xlu1 %4112  ;;  %v4685_v28 = vld [vmem:[#allocation3 + $0x250] sm:$0xff] }
 0x9a8   :  { %v5165_v43 = vadd.f32 %v11199_v45, %v5164_v34  ;;  %v2158_v31 = vpop.permute.xlu2 %2157  ;;  %4252 = vst.msk [vmem:[#allocation3 + $0x350] sm:$0xff] %vm4198_vm11, %v4113_v58  ;;  %v4813_v60 = vmul.f32 %v4749_v25, %v4685_v28  ;;  %v4750_v34 = vld [vmem:[%s8453_s25 + $0x130] sm:$0xff] }
 0x9a9   :  { %2312 = vst.msk [vmem:[#allocation3 + $0x260] sm:$0xff] %vm2273_vm6, %v2158_v31 }
 0x9aa   :  { %v5290_v3 = vmax.f32 %v5165_v43, %v9649_v14  ;;  %8064 = vmatmul.msk.f32.gmra.mxu1 %vm4846_vm13, %v4813_v60 }
 0x9ac   :  { %5354 = vst.msk [vmem:[#allocation4 + $0x118] sm:$0xff] %vm846_vm3, %v5290_v3  ;;  %v11476_v3 = vld [vmem:[#allocation2 + $0x177] sm:$0xff] }
 0x9ad   :  { %4469 = vrot.lane.b32.xlu2 %v11383_v54, %s8393_s28  ;;  %4501 = vrot.lane.b32.xlu1 %v11387_v32, %s8393_s28 }
 0x9ae   :  { %2195 = vrot.lane.b32.xlu0 %v11234_v42, %s8396_s17  ;;  %v4765_v42 = vld [vmem:[%s8453_s25 + $0x1a8] sm:$0xff] }
 0x9af   :  { %v4498_v23 = vpop.permute.xlu1 %4497 }
 0x9b0   :  { %v1805_v21 = vpop.permute.xlu2 %1804  ;;  %4637 = vst.msk [vmem:[#allocation3 + $0x350] sm:$0xff] %vm4583_vm12, %v4498_v23 }
 0x9b1   :  { %1943 = vst.msk [vmem:[#allocation3 + $0x360] sm:$0xff] %vm1888_vm5, %v1805_v21 }
 0x9b3   :  { %v5450_v4 = vld [vmem:[#allocation4 + $0x118] sm:$0xff] }
 0x9b4   :  { %v5452_v55 = vmax.f32 %v5448_v37, %v5450_v4 }
 0x9b5   :  { %2161 = vrot.lane.b32.xlu2 %v11079_v39, %s8396_s17  ;;  %2193 = vrot.lane.b32.xlu1 %v11103_v10, %s8396_s17 }
 0x9b6   :  { %5454 = vst.msk [vmem:[#allocation5 + $0x88] sm:$0xff] %vm846_vm3, %v5452_v55  ;;  %3318 = vrot.lane.b32.xlu0 %v11383_v54, %s8401_s11 }
 0x9b7   :  { %v2543_v0 = vpop.permute.xlu1 %2542  ;;  %v4701_v12 = vld [vmem:[#allocation3 + $0x350] sm:$0xff] }
 0x9b8   :  { %v2190_v52 = vpop.permute.xlu2 %2189  ;;  %v4829_v53 = vmul.f32 %v4765_v42, %v4701_v12  ;;  %2697 = vst.msk [vmem:[#allocation3 + $0x260] sm:$0xff] %vm2658_vm7, %v2543_v0 }
 0x9b9   :  { %2328 = vst.msk [vmem:[#allocation3 + $0x360] sm:$0xff] %vm2273_vm6, %v2190_v52 }
 0x9ba   :  { %2713 = vst.msk [vmem:[#allocation3 + $0x360] sm:$0xff] %vm2658_vm7, %v2575_v47  ;;  %8080 = vmatmul.msk.f32.gmra.mxu2 %vm4846_vm13, %v4829_v53  ;;  %v11494_v47 = vld [vmem:[#allocation2 + $0x200] sm:$0xff] }
 0x9bd   :  { %2546 = vrot.lane.b32.xlu2 %v10903_v33, %s8398_s2  ;;  %v5212_v39 = vpop.f32.mrf.mxu2  ;;  %3316 = vrot.lane.b32.xlu1 %v11296_v40, %s8401_s11 }
 0x9be   :  { %v5213_v10 = vadd.f32 %v11199_v45, %v5212_v39  ;;  %3350 = vrot.lane.b32.xlu0 %v11387_v32, %s8401_s11  ;;  %v3919_v39 = vld [vmem:[#allocation2 + $0x178] sm:$0xff] }
 0x9bf   :  { %v2928_v36 = vpop.permute.xlu1 %2927 }
 0x9c0   :  { %v5306_v41 = vmax.f32 %v5213_v10, %v9649_v14  ;;  %v3313_v51 = vpop.permute.xlu2 %3312  ;;  %3082 = vst.msk [vmem:[#allocation3 + $0x260] sm:$0xff] %vm3043_vm8, %v2928_v36  ;;  %v11504_v10 = vld [vmem:[#allocation2 + $0x1f8] sm:$0xff] }
 0x9c1   :  { %3467 = vst.msk [vmem:[#allocation3 + $0x260] sm:$0xff] %vm3428_vm9, %v3313_v51 }
 0x9c2   :  { %5370 = vst.msk [vmem:[#allocation4 + $0x198] sm:$0xff] %vm846_vm3, %v5306_v41 }
 0x9c5   :  { %2578 = vrot.lane.b32.xlu2 %v10935_v27, %s8398_s2  ;;  %v1311_v33 = vpop.xlane.xlu0 %1310  ;;  %3348 = vrot.lane.b32.xlu1 %v11317_v46, %s8401_s11 }
 0x9c6   :  { %v1375_v1 = vmul.f32 %v8299_v18, %v1311_v33  ;;  %4473 = vrot.lane.b32.xlu0 %v11422_v35, %s8393_s28 }
 0x9c7   :  { %v2960_v19 = vpop.permute.xlu1 %2959 }
 0x9c8   :  { %v3698_v48 = vpop.permute.xlu2 %3697  ;;  %1439 = vst.msk [vmem:[#allocation2 + $0x218] sm:$0xff] %vm312_vm2, %v1375_v1  ;;  %v11523_v1 = vld [vmem:[#allocation2 + $0x1f9] sm:$0xff]  ;;  %vm6093_vm2 = vcmask 64544  }
 0x9c9   :  { %v5482_v2 = vld [vmem:[#allocation4 + $0x198] sm:$0xff]  ;;  %3852 = vst.msk [vmem:[#allocation3 + $0x260] sm:$0xff] %vm3813_vm10, %v3698_v48 }
 0x9ca   :  { %v5484_v56 = vmax.f32 %v5480_v11, %v5482_v2  ;;  %3098 = vst.msk [vmem:[#allocation3 + $0x360] sm:$0xff] %vm3043_vm8, %v2960_v19  ;;  %v3921_v11 = vld [vmem:[#allocation2 + $0x188] sm:$0xff]  ;;  %v4751_v19 = vld [vmem:[%s8453_s25 + $0x138] sm:$0xff] }
 0x9cb   :  { %v5167_v27 = vpop.f32.mrf.mxu1 }
 0x9cc   :  { %5486 = vst.msk [vmem:[#allocation5 + $0xc8] sm:$0xff] %vm846_vm3, %v5484_v56  ;;  %v5168_v57 = vadd.f32 %v11199_v45, %v5167_v27 }
 0x9cd   :  { %3701 = vrot.lane.b32.xlu2 %v10990_v63, %s8400_s10  ;;  %4471 = vrot.lane.b32.xlu1 %v11434_v16, %s8393_s28 }
 0x9ce   :  { %v5291_v9 = vmax.f32 %v5168_v57, %v9649_v14  ;;  %2165 = vrot.lane.b32.xlu0 %v11296_v40, %s8396_s17 }
 0x9cf   :  { %v3345_v50 = vpop.permute.xlu1 %3344 }
 0x9d0   :  { %5355 = vst.msk [vmem:[#allocation4 + $0x120] sm:$0xff] %vm846_vm3, %v5291_v9  ;;  %v4083_v13 = vpop.permute.xlu2 %4082 }
 0x9d1   :  { %4237 = vst.msk [vmem:[#allocation3 + $0x260] sm:$0xff] %vm4198_vm11, %v4083_v13 }
 0x9d2   :  { %3483 = vst.msk [vmem:[#allocation3 + $0x360] sm:$0xff] %vm3428_vm9, %v3345_v50 }
 0x9d5   :  { %3733 = vrot.lane.b32.xlu2 %v11125_v49, %s8400_s10  ;;  %2163 = vrot.lane.b32.xlu1 %v11215_v44, %s8396_s17 }
 0x9d6   :  { %2550 = vrot.lane.b32.xlu0 %v10990_v63, %s8398_s2 }
 0x9d7   :  { %v3730_v40 = vpop.permute.xlu1 %3729 }
 0x9d8   :  { %v4468_v6 = vpop.permute.xlu2 %4467  ;;  %v3315_v62 = vpop.permute.xlu0 %3314  ;;  %3868 = vst.msk [vmem:[#allocation3 + $0x360] sm:$0xff] %vm3813_vm10, %v3730_v40  ;;  %v11562_v40 = vld [vmem:[#allocation2 + $0x209] sm:$0xff] }
 0x9d9   :  { %4622 = vst.msk [vmem:[#allocation3 + $0x260] sm:$0xff] %vm4583_vm12, %v4468_v6 }
 0x9dd   :  { %4118 = vrot.lane.b32.xlu2 %v11452_v20, %s8399_s7  ;;  %2548 = vrot.lane.b32.xlu1 %v10988_v30, %s8398_s2  ;;  %v11468_v30 = vld [vmem:[#allocation2 + $0x17f] sm:$0xff] }
 0x9de   :  { %2582 = vrot.lane.b32.xlu0 %v11125_v49, %s8398_s2 }
 0x9df   :  { %v1775_v25 = vpop.permute.xlu1 %1774 }
 0x9e0   :  { %v4115_v63 = vpop.permute.xlu2 %4114  ;;  %v4686_v44 = vld [vmem:[#allocation3 + $0x260] sm:$0xff]  ;;  %v3732_v43 = vpop.permute.xlu0 %3731  ;;  %1928 = vst.msk [vmem:[#allocation3 + $0x270] sm:$0xff] %vm1888_vm5, %v1775_v25 }
 0x9e1   :  { %4253 = vst.msk [vmem:[#allocation3 + $0x360] sm:$0xff] %vm4198_vm11, %v4115_v63  ;;  %v4814_v31 = vmul.f32 %v4750_v34, %v4686_v44 }
 0x9e3   :  { %8065 = vmatmul.msk.f32.gmra.mxu1 %vm4846_vm13, %v4814_v31 }
 0x9e5   :  { %1810 = vrot.lane.b32.xlu2 %v11222_v29, %s8395_s13  ;;  %2580 = vrot.lane.b32.xlu1 %v11025_v61, %s8398_s2  ;;  %v11480_v61 = vld [vmem:[#allocation2 + $0x1ff] sm:$0xff]  ;;  %v4766_v29 = vld [vmem:[%s8453_s25 + $0x1b0] sm:$0xff] }
 0x9e6   :  { %3705 = vrot.lane.b32.xlu0 %v11468_v30, %s8400_s10 }
 0x9e7   :  { %v2160_v58 = vpop.permute.xlu1 %2159 }
 0x9e8   :  { %v4500_v49 = vpop.permute.xlu2 %4499  ;;  %v4117_v28 = vpop.permute.xlu0 %4116  ;;  %2313 = vst.msk [vmem:[#allocation3 + $0x270] sm:$0xff] %vm2273_vm6, %v2160_v58  ;;  %v11576_v58 = vld [vmem:[#allocation2 + $0x201] sm:$0xff] }
 0x9e9   :  { %4638 = vst.msk [vmem:[#allocation3 + $0x360] sm:$0xff] %vm4583_vm12, %v4500_v49 }
 0x9ed   :  { %2933 = vrot.lane.b32.xlu2 %v11360_v38, %s8397_s1  ;;  %3703 = vrot.lane.b32.xlu1 %v11476_v3, %s8400_s10 }
 0x9ee   :  { %3737 = vrot.lane.b32.xlu0 %v11480_v61, %s8400_s10 }
 0x9ef   :  { %v5215_v21 = vpop.f32.mrf.mxu2  ;;  %v1807_v37 = vpop.permute.xlu1 %1806 }
 0x9f0   :  { %v2545_v60 = vpop.permute.xlu2 %2544  ;;  %v4702_v23 = vld [vmem:[#allocation3 + $0x360] sm:$0xff]  ;;  %v5216_v4 = vadd.f32 %v11199_v45, %v5215_v21  ;;  %v1809_v55 = vpop.permute.xlu0 %1808  ;;  %1944 = vst.msk [vmem:[#allocation3 + $0x370] sm:$0xff] %vm1888_vm5, %v1807_v37 }
 0x9f1   :  { %2698 = vst.msk [vmem:[#allocation3 + $0x270] sm:$0xff] %vm2658_vm7, %v2545_v60  ;;  %v4830_v42 = vmul.f32 %v4766_v29, %v4702_v23 }
 0x9f2   :  { %v5307_v52 = vmax.f32 %v5216_v4, %v9649_v14  ;;  %1945 = vst.msk [vmem:[#allocation3 + $0x380] sm:$0xff] %vm1888_vm5, %v1809_v55 }
 0x9f3   :  { %8081 = vmatmul.msk.f32.gmra.mxu2 %vm4846_vm13, %v4830_v42 }
 0x9f4   :  { %5371 = vst.msk [vmem:[#allocation4 + $0x1a0] sm:$0xff] %vm846_vm3, %v5307_v52 }
 0x9f5   :  { %2965 = vrot.lane.b32.xlu2 %v11302_v26, %s8397_s1  ;;  %3735 = vrot.lane.b32.xlu1 %v11134_v17, %s8400_s10 }
 0x9f6   :  { %4122 = vrot.lane.b32.xlu0 %v11494_v47, %s8399_s7 }
 0x9f7   :  { %v2192_v12 = vpop.permute.xlu1 %2191 }
 0x9f8   :  { %v2930_v0 = vpop.permute.xlu2 %2929  ;;  %v2932_v53 = vpop.permute.xlu0 %2931  ;;  %2329 = vst.msk [vmem:[#allocation3 + $0x370] sm:$0xff] %vm2273_vm6, %v2192_v12 }
 0x9f9   :  { %3083 = vst.msk [vmem:[#allocation3 + $0x270] sm:$0xff] %vm3043_vm8, %v2930_v0  ;;  %v4752_v0 = vld [vmem:[%s8453_s25 + $0x140] sm:$0xff] }
 0x9fa   :  { %3468 = vst.msk [vmem:[#allocation3 + $0x270] sm:$0xff] %vm3428_vm9, %v3315_v62  ;;  %v4767_v62 = vld [vmem:[%s8453_s25 + $0x1b8] sm:$0xff] }
 0x9fd   :  { %4088 = vrot.lane.b32.xlu2 %v3919_v39, %s8399_s7  ;;  %4120 = vrot.lane.b32.xlu1 %v11504_v10, %s8399_s7 }
 0x9fe   :  { %1814 = vrot.lane.b32.xlu0 %v11302_v26, %s8395_s13 }
 0x9ff   :  { %v2577_v51 = vpop.permute.xlu1 %2576 }
 0xa00   :  { %v2962_v41 = vpop.permute.xlu2 %2961  ;;  %v2964_v36 = vpop.permute.xlu0 %2963  ;;  %2714 = vst.msk [vmem:[#allocation3 + $0x370] sm:$0xff] %vm2658_vm7, %v2577_v51 }
 0xa01   :  { %3099 = vst.msk [vmem:[#allocation3 + $0x370] sm:$0xff] %vm3043_vm8, %v2962_v41 }
 0xa05   :  { %1780 = vrot.lane.b32.xlu2 %v11281_v15, %s8395_s13  ;;  %1812 = vrot.lane.b32.xlu1 %v11308_v8, %s8395_s13 }
 0xa06   :  { %2937 = vrot.lane.b32.xlu0 %v3919_v39, %s8397_s1 }
 0xa07   :  { %v3700_v18 = vpop.permute.xlu1 %3699 }
 0xa08   :  { %v3347_v33 = vpop.permute.xlu2 %3346  ;;  %v11518_v26 = vpop.permute.xlu0 %4086  ;;  %3853 = vst.msk [vmem:[#allocation3 + $0x270] sm:$0xff] %vm3813_vm10, %v3700_v18 }
 0xa09   :  { %3484 = vst.msk [vmem:[#allocation3 + $0x370] sm:$0xff] %vm3428_vm9, %v3347_v33  ;;  %v4306_v33 = vld [vmem:[#allocation2 + $0x189] sm:$0xff] }
 0xa0a   :  { %3869 = vst.msk [vmem:[#allocation3 + $0x370] sm:$0xff] %vm3813_vm10, %v3732_v43 }
 0xa0b   :  { %4254 = vst.msk [vmem:[#allocation3 + $0x370] sm:$0xff] %vm4198_vm11, %v4117_v28 }
 0xa0d   :  { %4505 = vrot.lane.b32.xlu2 %v11523_v1, %s8393_s28  ;;  %2935 = vrot.lane.b32.xlu1 %v11350_v5, %s8397_s1 }
 0xa0e   :  { %2969 = vrot.lane.b32.xlu0 %v11504_v10, %s8397_s1 }
 0xa0f   :  { %v4085_v8 = vpop.permute.xlu1 %4084 }
 0xa10   :  { %v4470_v15 = vpop.permute.xlu2 %4469  ;;  %v1779_v48 = vpop.permute.xlu0 %1778  ;;  %4238 = vst.msk [vmem:[#allocation3 + $0x270] sm:$0xff] %vm4198_vm11, %v4085_v8  ;;  %v11640_v8 = vld [vmem:[#allocation2 + $0x208] sm:$0xff] }
 0xa11   :  { %4623 = vst.msk [vmem:[#allocation3 + $0x270] sm:$0xff] %vm4583_vm12, %v4470_v15 }
 0xa12   :  { %1930 = vst.msk [vmem:[#allocation3 + $0x290] sm:$0xff] %vm1888_vm5, %v1779_v48 }
 0xa15   :  { %2197 = vrot.lane.b32.xlu2 %v11317_v46, %s8396_s17  ;;  %2967 = vrot.lane.b32.xlu1 %v11452_v20, %s8397_s1  ;;  %v11547_v46 = vld [vmem:[#allocation2 + $0x180] sm:$0xff] }
 0xa16   :  { %4092 = vrot.lane.b32.xlu0 %v3921_v11, %s8399_s7 }
 0xa17   :  { %v1777_v56 = vpop.permute.xlu1 %1776 }
 0xa18   :  { %v2162_v2 = vpop.permute.xlu2 %2161  ;;  %v11540_v27 = vpop.permute.xlu0 %4503  ;;  %1929 = vst.msk [vmem:[#allocation3 + $0x280] sm:$0xff] %vm1888_vm5, %v1777_v56  ;;  %v4687_v57 = vld [vmem:[#allocation3 + $0x270] sm:$0xff] }
 0xa19   :  { %2314 = vst.msk [vmem:[#allocation3 + $0x280] sm:$0xff] %vm2273_vm6, %v2162_v2  ;;  %v4815_v9 = vmul.f32 %v4751_v19, %v4687_v57 }
 0xa1b   :  { %8066 = vmatmul.msk.f32.gmra.mxu1 %vm4846_vm13, %v4815_v9 }
 0xa1d   :  { %3320 = vrot.lane.b32.xlu2 %v11434_v16, %s8401_s11  ;;  %4090 = vrot.lane.b32.xlu1 %v11547_v46, %s8399_s7 }
 0xa1e   :  { %1784 = vrot.lane.b32.xlu0 %v11350_v5, %s8395_s13 }
 0xa1f   :  { %v4502_v50 = vpop.permute.xlu1 %4501 }
 0xa20   :  { %v2547_v13 = vpop.permute.xlu2 %2546  ;;  %v11554_v6 = vpop.permute.xlu0 %2195  ;;  %4639 = vst.msk [vmem:[#allocation3 + $0x370] sm:$0xff] %vm4583_vm12, %v4502_v50 }
 0xa21   :  { %2699 = vst.msk [vmem:[#allocation3 + $0x280] sm:$0xff] %vm2658_vm7, %v2547_v13 }
 0xa22   :  { %3084 = vst.msk [vmem:[#allocation3 + $0x280] sm:$0xff] %vm3043_vm8, %v2932_v53 }
 0xa25   :  { %3352 = vrot.lane.b32.xlu2 %v11372_v59, %s8401_s11  ;;  %1782 = vrot.lane.b32.xlu1 %v11360_v38, %s8395_s13  ;;  %v4305_v38 = vld [vmem:[#allocation2 + $0x181] sm:$0xff] }
 0xa26   :  { %4509 = vrot.lane.b32.xlu0 %v11562_v40, %s8393_s28 }
 0xa27   :  { %v2194_v34 = vpop.permute.xlu1 %2193  ;;  %v5170_v44 = vpop.f32.mrf.mxu1  ;;  %v4703_v25 = vld [vmem:[#allocation3 + $0x370] sm:$0xff] }
 0xa28   :  { %v2579_v5 = vpop.permute.xlu2 %2578  ;;  %v11567_v63 = vpop.permute.xlu0 %3318  ;;  %2330 = vst.msk [vmem:[#allocation3 + $0x380] sm:$0xff] %vm2273_vm6, %v2194_v34  ;;  %v5171_v43 = vadd.f32 %v11199_v45, %v5170_v44  ;;  %v4831_v31 = vmul.f32 %v4767_v62, %v4703_v25  ;;  %v3170_v44 = vld [vmem:[#allocation2 + $0x211] sm:$0xff] }
 0xa29   :  { %2715 = vst.msk [vmem:[#allocation3 + $0x380] sm:$0xff] %vm2658_vm7, %v2579_v5 }
 0xa2a   :  { %3100 = vst.msk [vmem:[#allocation3 + $0x380] sm:$0xff] %vm3043_vm8, %v2964_v36  ;;  %v5292_v49 = vmax.f32 %v5171_v43, %v9649_v14  ;;  %8082 = vmatmul.msk.f32.gmra.mxu2 %vm4846_vm13, %v4831_v31  ;;  %v3536_v36 = vld [vmem:[#allocation2 + $0x187] sm:$0xff] }
 0xa2c   :  { %5356 = vst.msk [vmem:[#allocation4 + $0x128] sm:$0xff] %vm846_vm3, %v5292_v49 }
 0xa2d   :  { %4475 = vrot.lane.b32.xlu2 %v4305_v38, %s8393_s28  ;;  %4507 = vrot.lane.b32.xlu1 %v11576_v58, %s8393_s28 }
 0xa2e   :  { %2201 = vrot.lane.b32.xlu0 %v11372_v59, %s8396_s17 }
 0xa2f   :  { %v3317_v29 = vpop.permute.xlu1 %3316 }
 0xa30   :  { %v3702_v28 = vpop.permute.xlu2 %3701  ;;  %v11583_v60 = vpop.permute.xlu0 %3350  ;;  %3469 = vst.msk [vmem:[#allocation3 + $0x280] sm:$0xff] %vm3428_vm9, %v3317_v29  ;;  %v4769_v29 = vld [vmem:[%s8453_s25 + $0x1c8] sm:$0xff] }
 0xa31   :  { %3854 = vst.msk [vmem:[#allocation3 + $0x280] sm:$0xff] %vm3813_vm10, %v3702_v28 }
 0xa32   :  { %4239 = vst.msk [vmem:[#allocation3 + $0x280] sm:$0xff] %vm4198_vm11, %v11518_v26 }
 0xa35   :  { %2167 = vrot.lane.b32.xlu2 %v11383_v54, %s8396_s17  ;;  %2199 = vrot.lane.b32.xlu1 %v11387_v32, %s8396_s17 }
 0xa36   :  { %3324 = vrot.lane.b32.xlu0 %v4305_v38, %s8401_s11  ;;  %v11692_v38 = vld [vmem:[#allocation2 + $0x20f] sm:$0xff] }
 0xa37   :  { %v3349_v21 = vpop.permute.xlu1 %3348 }
 0xa38   :  { %v3734_v59 = vpop.permute.xlu2 %3733  ;;  %v11594_v23 = vpop.permute.xlu0 %4473  ;;  %3485 = vst.msk [vmem:[#allocation3 + $0x380] sm:$0xff] %vm3428_vm9, %v3349_v21 }
 0xa39   :  { %3870 = vst.msk [vmem:[#allocation3 + $0x380] sm:$0xff] %vm3813_vm10, %v3734_v59 }
 0xa3d   :  { %2552 = vrot.lane.b32.xlu2 %v11476_v3, %s8398_s2  ;;  %3322 = vrot.lane.b32.xlu1 %v11422_v35, %s8401_s11  ;;  %v5218_v54 = vpop.f32.mrf.mxu2  ;;  %v4307_v35 = vld [vmem:[#allocation2 + $0x191] sm:$0xff]  ;;  %v4768_v3 = vld [vmem:[%s8453_s25 + $0x1c0] sm:$0xff] }
 0xa3e   :  { %3356 = vrot.lane.b32.xlu0 %v11576_v58, %s8401_s11  ;;  %v5219_v32 = vadd.f32 %v11199_v45, %v5218_v54 }
 0xa3f   :  { %v4472_v4 = vpop.permute.xlu1 %4471 }
 0xa40   :  { %v4119_v37 = vpop.permute.xlu2 %4118  ;;  %v11606_v55 = vpop.permute.xlu0 %2165  ;;  %v5308_v42 = vmax.f32 %v5219_v32, %v9649_v14  ;;  %4624 = vst.msk [vmem:[#allocation3 + $0x280] sm:$0xff] %vm4583_vm12, %v4472_v4  ;;  %v3922_v32 = vld [vmem:[#allocation2 + $0x190] sm:$0xff] }
 0xa41   :  { %4255 = vst.msk [vmem:[#allocation3 + $0x380] sm:$0xff] %vm4198_vm11, %v4119_v37 }
 0xa42   :  { %4640 = vst.msk [vmem:[#allocation3 + $0x380] sm:$0xff] %vm4583_vm12, %v11540_v27 }
 0xa43   :  { %5372 = vst.msk [vmem:[#allocation4 + $0x1a8] sm:$0xff] %vm846_vm3, %v5308_v42  ;;  %v5487_v42 = vld [vmem:[#allocation4 + $0x1a0] sm:$0xff] }
 0xa45   :  { %2584 = vrot.lane.b32.xlu2 %v11134_v17, %s8398_s2  ;;  %3354 = vrot.lane.b32.xlu1 %v11523_v1, %s8401_s11 }
 0xa46   :  { %4479 = vrot.lane.b32.xlu0 %v4307_v35, %s8393_s28 }
 0xa47   :  { %v2164_v12 = vpop.permute.xlu1 %2163  ;;  %v4688_v41 = vld [vmem:[#allocation3 + $0x280] sm:$0xff] }
 0xa48   :  { %v1811_v52 = vpop.permute.xlu2 %1810  ;;  %v2551_v53 = vpop.permute.xlu0 %2550  ;;  %2315 = vst.msk [vmem:[#allocation3 + $0x290] sm:$0xff] %vm2273_vm6, %v2164_v12  ;;  %v4816_v17 = vmul.f32 %v4752_v0, %v4688_v41  ;;  %v3556_v0 = vld [vmem:[#allocation2 + $0x227] sm:$0xff] }
 0xa49   :  { %1946 = vst.msk [vmem:[#allocation3 + $0x390] sm:$0xff] %vm1888_vm5, %v1811_v52  ;;  %v4704_v39 = vld [vmem:[#allocation3 + $0x380] sm:$0xff]  ;;  %v3938_v52 = vld [vmem:[#allocation2 + $0x210] sm:$0xff] }
 0xa4a   :  { %2331 = vst.msk [vmem:[#allocation3 + $0x390] sm:$0xff] %vm2273_vm6, %v11554_v6  ;;  %v4832_v51 = vmul.f32 %v4768_v3, %v4704_v39  ;;  %8067 = vmatmul.msk.f32.gmra.mxu1 %vm4846_vm13, %v4816_v17  ;;  %v4753_v6 = vld [vmem:[%s8453_s25 + $0x148] sm:$0xff] }
 0xa4b   :  { %v5511_v41 = vld [vmem:[#allocation5] ss:$2 sm:$0xff] }
 0xa4c   :  { %8083 = vmatmul.msk.f32.gmra.mxu2 %vm4846_vm13, %v4832_v51  ;;  %v5543_v51 = vld [vmem:[#allocation5 + $0x1] ss:$2 sm:$0xff] }
 0xa4d   :  { %3707 = vrot.lane.b32.xlu2 %v3536_v36, %s8400_s10  ;;  %4477 = vrot.lane.b32.xlu1 %v4306_v33, %s8393_s28 }
 0xa4e   :  { %1818 = vrot.lane.b32.xlu0 %v11504_v10, %s8395_s13 }
 0xa4f   :  { %v2549_v26 = vpop.permute.xlu1 %2548 }
 0xa50   :  { %v2934_v18 = vpop.permute.xlu2 %2933  ;;  %v11630_v15 = vpop.permute.xlu0 %2582  ;;  %2700 = vst.msk [vmem:[#allocation3 + $0x290] sm:$0xff] %vm2658_vm7, %v2549_v26  ;;  %v5549_v26 = vld [vmem:[#allocation5 + $0x31] ss:$2 sm:$0xff] }
 0xa51   :  { %3085 = vst.msk [vmem:[#allocation3 + $0x290] sm:$0xff] %vm3043_vm8, %v2934_v18  ;;  %v5517_v18 = vld [vmem:[#allocation5 + $0x30] ss:$2 sm:$0xff] }
 0xa52   :  { %3470 = vst.msk [vmem:[#allocation3 + $0x290] sm:$0xff] %vm3428_vm9, %v11567_v63  ;;  %v3537_v63 = vld [vmem:[#allocation2 + $0x18f] sm:$0xff] }
 0xa55   :  { %3739 = vrot.lane.b32.xlu2 %v11342_v22, %s8400_s10  ;;  %2169 = vrot.lane.b32.xlu1 %v11434_v16, %s8396_s17  ;;  %v11654_v16 = vld [vmem:[#allocation2 + $0x218] sm:$0xff] }
 0xa56   :  { %2973 = vrot.lane.b32.xlu0 %v11640_v8, %s8397_s1 }
 0xa57   :  { %v2581_v48 = vpop.permute.xlu1 %2580 }
 0xa58   :  { %v2966_v10 = vpop.permute.xlu2 %2965  ;;  %v11644_v11 = vpop.permute.xlu0 %3705  ;;  %2716 = vst.msk [vmem:[#allocation3 + $0x390] sm:$0xff] %vm2658_vm7, %v2581_v48 }
 0xa59   :  { %3101 = vst.msk [vmem:[#allocation3 + $0x390] sm:$0xff] %vm3043_vm8, %v2966_v10  ;;  %v4754_v10 = vld [vmem:[%s8453_s25 + $0x150] sm:$0xff] }
 0xa5a   :  { %3486 = vst.msk [vmem:[#allocation3 + $0x390] sm:$0xff] %vm3428_vm9, %v11583_v60 }
 0xa5d   :  { %4124 = vrot.lane.b32.xlu2 %v11640_v8, %s8399_s7  ;;  %2554 = vrot.lane.b32.xlu1 %v11468_v30, %s8398_s2 }
 0xa5e   :  { %4128 = vrot.lane.b32.xlu0 %v11654_v16, %s8399_s7 }
 0xa5f   :  { %v3704_v27 = vpop.permute.xlu1 %3703 }
 0xa60   :  { %v4089_v2 = vpop.permute.xlu2 %4088  ;;  %v5173_v19 = vpop.f32.mrf.mxu1  ;;  %3855 = vst.msk [vmem:[#allocation3 + $0x290] sm:$0xff] %vm3813_vm10, %v3704_v27  ;;  %v5555_v27 = vld [vmem:[#allocation5 + $0x61] ss:$2 sm:$0xff] }
 0xa61   :  { %v5174_v56 = vadd.f32 %v11199_v45, %v5173_v19  ;;  %v11659_v57 = vpop.permute.xlu0 %3737  ;;  %4240 = vst.msk [vmem:[#allocation3 + $0x290] sm:$0xff] %vm4198_vm11, %v4089_v2 }
 0xa62   :  { %4625 = vst.msk [vmem:[#allocation3 + $0x290] sm:$0xff] %vm4583_vm12, %v11594_v23 }
 0xa63   :  { %v5293_v9 = vmax.f32 %v5174_v56, %v9649_v14  ;;  %v5523_v56 = vld [vmem:[#allocation5 + $0x60] ss:$2 sm:$0xff] }
 0xa65   :  { %5357 = vst.msk [vmem:[#allocation4 + $0x130] sm:$0xff] %vm846_vm3, %v5293_v9  ;;  %1816 = vrot.lane.b32.xlu2 %v11452_v20, %s8395_s13  ;;  %2586 = vrot.lane.b32.xlu1 %v11480_v61, %s8398_s2  ;;  %v5455_v20 = vld [vmem:[#allocation4 + $0x120] sm:$0xff] }
 0xa66   :  { %2205 = vrot.lane.b32.xlu0 %v11576_v58, %s8396_s17 }
 0xa67   :  { %v3736_v13 = vpop.permute.xlu1 %3735 }
 0xa68   :  { %v1781_v30 = vpop.permute.xlu2 %1780  ;;  %3871 = vst.msk [vmem:[#allocation3 + $0x390] sm:$0xff] %vm3813_vm10, %v3736_v13 }
 0xa69   :  { %1931 = vst.msk [vmem:[#allocation3 + $0x2a0] sm:$0xff] %vm1888_vm5, %v1781_v30  ;;  %v11674_v50 = vpop.permute.xlu0 %4122  ;;  %v4689_v5 = vld [vmem:[#allocation3 + $0x290] sm:$0xff]  ;;  %v4324_v30 = vld [vmem:[#allocation2 + $0x219] sm:$0xff] }
 0xa6a   :  { %2316 = vst.msk [vmem:[#allocation3 + $0x2a0] sm:$0xff] %vm2273_vm6, %v11606_v55  ;;  %v4817_v61 = vmul.f32 %v4753_v6, %v4689_v5 }
 0xa6b   :  { %2701 = vst.msk [vmem:[#allocation3 + $0x2a0] sm:$0xff] %vm2658_vm7, %v2551_v53 }
 0xa6c   :  { %v5457_v62 = vld [vmem:[#allocation4 + $0x130] sm:$0xff]  ;;  %8068 = vmatmul.msk.f32.gmra.mxu1 %vm4846_vm13, %v4817_v61  ;;  %v5456_v61 = vld [vmem:[#allocation4 + $0x128] sm:$0xff] }
 0xa6d   :  { %v5459_v34 = vmax.f32 %v5455_v20, %v5457_v62  ;;  %2939 = vrot.lane.b32.xlu2 %v11547_v46, %s8397_s1  ;;  %3709 = vrot.lane.b32.xlu1 %v3537_v63, %s8400_s10  ;;  %v4325_v46 = vld [vmem:[#allocation2 + $0x221] sm:$0xff] }
 0xa6e   :  { %3360 = vrot.lane.b32.xlu0 %v3170_v44, %s8401_s11  ;;  %v3940_v62 = vld [vmem:[#allocation2 + $0x220] sm:$0xff] }
 0xa6f   :  { %5461 = vst.msk [vmem:[#allocation5 + $0x90] sm:$0xff] %vm846_vm3, %v5459_v34  ;;  %v4121_v43 = vpop.permute.xlu1 %4120 }
 0xa70   :  { %v4506_v25 = vpop.permute.xlu2 %4505  ;;  %4256 = vst.msk [vmem:[#allocation3 + $0x390] sm:$0xff] %vm4198_vm11, %v4121_v43 }
 0xa71   :  { %v1815_v31 = vpop.permute.xlu0 %1814  ;;  %4641 = vst.msk [vmem:[#allocation3 + $0x390] sm:$0xff] %vm4583_vm12, %v4506_v25  ;;  %v4770_v25 = vld [vmem:[%s8453_s25 + $0x1d0] sm:$0xff] }
 0xa72   :  { %1948 = vst.msk [vmem:[#allocation3 + $0x3b0] sm:$0xff] %vm1888_vm5, %v1815_v31 }
 0xa75   :  { %2971 = vrot.lane.b32.xlu2 %v11494_v47, %s8397_s1  ;;  %3741 = vrot.lane.b32.xlu1 %v11692_v38, %s8400_s10 }
 0xa76   :  { %v5221_v49 = vpop.f32.mrf.mxu2  ;;  %4515 = vrot.lane.b32.xlu0 %v4325_v46, %s8393_s28 }
 0xa77   :  { %v5222_v58 = vadd.f32 %v11199_v45, %v5221_v49  ;;  %v1813_v59 = vpop.permute.xlu1 %1812  ;;  %v2401_v45 = vld [vmem:[#allocation2 + $0x217] sm:$0xff] }
 0xa78   :  { %v2198_v28 = vpop.permute.xlu2 %2197  ;;  %1947 = vst.msk [vmem:[#allocation3 + $0x3a0] sm:$0xff] %vm1888_vm5, %v1813_v59  ;;  %v4705_v23 = vld [vmem:[#allocation3 + $0x390] sm:$0xff] }
 0xa79   :  { %v5309_v60 = vmax.f32 %v5222_v58, %v9649_v14  ;;  %v11700_v21 = vpop.permute.xlu0 %2937  ;;  %v4833_v54 = vmul.f32 %v4769_v29, %v4705_v23  ;;  %2332 = vst.msk [vmem:[#allocation3 + $0x3a0] sm:$0xff] %vm2273_vm6, %v2198_v28 }
 0xa7a   :  { %2717 = vst.msk [vmem:[#allocation3 + $0x3a0] sm:$0xff] %vm2658_vm7, %v11630_v15 }
 0xa7b   :  { %5373 = vst.msk [vmem:[#allocation4 + $0x1b0] sm:$0xff] %vm846_vm3, %v5309_v60  ;;  %8084 = vmatmul.msk.f32.gmra.mxu2 %vm4846_vm13, %v4833_v54 }
 0xa7d   :  { %4094 = vrot.lane.b32.xlu2 %v3922_v32, %s8399_s7  ;;  %4511 = vrot.lane.b32.xlu1 %v3170_v44, %s8393_s28 }
 0xa7e   :  { %2592 = vrot.lane.b32.xlu0 %v2401_v45, %s8398_s2 }
 0xa7f   :  { %v2936_v4 = vpop.permute.xlu1 %2935 }
 0xa80   :  { %v3321_v37 = vpop.permute.xlu2 %3320  ;;  %3086 = vst.msk [vmem:[#allocation3 + $0x2a0] sm:$0xff] %vm3043_vm8, %v2936_v4 }
 0xa81   :  { %v11711_v55 = vpop.permute.xlu0 %2969  ;;  %3471 = vst.msk [vmem:[#allocation3 + $0x2a0] sm:$0xff] %vm3428_vm9, %v3321_v37 }
 0xa82   :  { %v5489_v35 = vld [vmem:[#allocation4 + $0x1b0] sm:$0xff]  ;;  %3856 = vst.msk [vmem:[#allocation3 + $0x2a0] sm:$0xff] %vm3813_vm10, %v11644_v11 }
 0xa83   :  { %v5491_v3 = vmax.f32 %v5487_v42, %v5489_v35  ;;  %v4326_v35 = vld [vmem:[#allocation2 + $0x229] sm:$0xff] }
 0xa85   :  { %5493 = vst.msk [vmem:[#allocation5 + $0xd0] sm:$0xff] %vm846_vm3, %v5491_v3  ;;  %4126 = vrot.lane.b32.xlu2 %v3938_v52, %s8399_s7  ;;  %2588 = vrot.lane.b32.xlu1 %v11342_v22, %s8398_s2  ;;  %v11732_v22 = vmax.f32 %v5511_v41, %v5543_v51  ;;  %v5488_v3 = vld [vmem:[#allocation4 + $0x1a8] sm:$0xff] }
 0xa86   :  { %3747 = vrot.lane.b32.xlu0 %v3556_v0, %s8400_s10  ;;  %v5547_v41 = vld [vmem:[#allocation5 + $0x21] ss:$2 sm:$0xff] }
 0xa87   :  { %v2968_v53 = vpop.permute.xlu1 %2967  ;;  %v3941_v51 = vld [vmem:[#allocation2 + $0x228] sm:$0xff] }
 0xa88   :  { %v3353_v12 = vpop.permute.xlu2 %3352  ;;  %3102 = vst.msk [vmem:[#allocation3 + $0x3a0] sm:$0xff] %vm3043_vm8, %v2968_v53 }
 0xa89   :  { %v11722_v39 = vpop.permute.xlu0 %4092  ;;  %3487 = vst.msk [vmem:[#allocation3 + $0x3a0] sm:$0xff] %vm3428_vm9, %v3353_v12 }
 0xa8a   :  { %3872 = vst.msk [vmem:[#allocation3 + $0x3a0] sm:$0xff] %vm3813_vm10, %v11659_v57  ;;  %v11754_v57 = vld [vmem:[%s8463_s3] ss:$0 sm:$0xff]  ;;  %s8407_s3 = smov 24  }
 0xa8b   :  { %4257 = vst.msk [vmem:[#allocation3 + $0x3a0] sm:$0xff] %vm4198_vm11, %v11674_v50  ;;  %v11760_v50 = vmax.f32 %v5523_v56, %v5555_v27 }
 0xa8d   :  { %2203 = vrot.lane.b32.xlu2 %v11523_v1, %s8396_s17  ;;  %3743 = vrot.lane.b32.xlu1 %v2401_v45, %s8400_s10  ;;  %v11742_v1 = vmax.f32 %v5517_v18, %v5549_v26  ;;  %v5567_v45 = vld [vmem:[#allocation5 + $0xc1] ss:$2 sm:$0xff]  ;;  %v5513_v18 = vld [vmem:[#allocation5 + $0x10] ss:$2 sm:$0xff]  ;;  %v5545_v26 = vld [vmem:[#allocation5 + $0x11] ss:$2 sm:$0xff] }
 0xa8e   :  { %5606 = vrot.lane.b32.xlu0 %v11732_v22, %s8403_s5 }
 0xa8f   :  { %v4091_v36 = vpop.permute.xlu1 %4090 }
 0xa90   :  { %v4476_v17 = vpop.permute.xlu2 %4475  ;;  %4241 = vst.msk [vmem:[#allocation3 + $0x2a0] sm:$0xff] %vm4198_vm11, %v4091_v36 }
 0xa91   :  { %v1785_v33 = vpop.permute.xlu0 %1784  ;;  %4626 = vst.msk [vmem:[#allocation3 + $0x2a0] sm:$0xff] %vm4583_vm12, %v4476_v17  ;;  %v4771_v17 = vld [vmem:[%s8453_s25 + $0x1d8] sm:$0xff] }
 0xa92   :  { %1933 = vst.msk [vmem:[#allocation3 + $0x2c0] sm:$0xff] %vm1888_vm5, %v1785_v33  ;;  %v4755_v33 = vld [vmem:[%s8453_s25 + $0x158] sm:$0xff] }
 0xa95   :  { %3358 = vrot.lane.b32.xlu2 %v11562_v40, %s8401_s11  ;;  %1820 = vrot.lane.b32.xlu1 %v11494_v47, %s8395_s13 }
 0xa96   :  { %5612 = vrot.lane.b32.xlu0 %v11742_v1, %s8403_s5 }
 0xa97   :  { %v1783_v48 = vpop.permute.xlu1 %1782 }
 0xa98   :  { %v2168_v15 = vpop.permute.xlu2 %2167  ;;  %1932 = vst.msk [vmem:[#allocation3 + $0x2b0] sm:$0xff] %vm1888_vm5, %v1783_v48  ;;  %v5176_v2 = vpop.f32.mrf.mxu1  ;;  %v4690_v19 = vld [vmem:[#allocation3 + $0x2a0] sm:$0xff]  ;;  %v5521_v48 = vld [vmem:[#allocation5 + $0x50] ss:$2 sm:$0xff] }
 0xa99   :  { %v11749_v11 = vpop.permute.xlu0 %4509  ;;  %2317 = vst.msk [vmem:[#allocation3 + $0x2b0] sm:$0xff] %vm2273_vm6, %v2168_v15  ;;  %v5177_v47 = vadd.f32 %v11754_v57, %v5176_v2  ;;  %v4818_v9 = vmul.f32 %v4754_v10, %v4690_v19 }
 0xa9b   :  { %v5294_v13 = vmax.f32 %v5177_v47, %v9649_v14  ;;  %8069 = vmatmul.msk.f32.gmra.mxu1 %vm4846_vm13, %v4818_v9  ;;  %v11832_v9 = vmax.f32 %v5513_v18, %v5545_v26 }
 0xa9d   :  { %4513 = vrot.lane.b32.xlu2 %v4324_v30, %s8393_s28  ;;  %2975 = vrot.lane.b32.xlu1 %v3938_v52, %s8397_s1  ;;  %5358 = vst.msk [vmem:[#allocation4 + $0x138] sm:$0xff] %vm846_vm3, %v5294_v13 }
 0xa9e   :  { %5618 = vrot.lane.b32.xlu0 %v11760_v50, %s8403_s5 }
 0xa9f   :  { %v4508_v5 = vpop.permute.xlu1 %4507 }
 0xaa0   :  { %v2553_v6 = vpop.permute.xlu2 %2552  ;;  %4642 = vst.msk [vmem:[#allocation3 + $0x3a0] sm:$0xff] %vm4583_vm12, %v4508_v5 }
 0xaa1   :  { %2702 = vst.msk [vmem:[#allocation3 + $0x2b0] sm:$0xff] %vm2658_vm7, %v2553_v6  ;;  %v11767_v20 = vpop.permute.xlu0 %2201 }
 0xaa2   :  { %3087 = vst.msk [vmem:[#allocation3 + $0x2b0] sm:$0xff] %vm3043_vm8, %v11700_v21 }
 0xaa4   :  { %v5458_v34 = vld [vmem:[#allocation4 + $0x138] sm:$0xff] }
 0xaa5   :  { %2590 = vrot.lane.b32.xlu2 %v11692_v38, %s8398_s2  ;;  %4130 = vrot.lane.b32.xlu1 %v3940_v62, %s8399_s7  ;;  %v5460_v63 = vmax.f32 %v5456_v61, %v5458_v34  ;;  %v3555_v38 = vld [vmem:[#allocation2 + $0x21f] sm:$0xff]  ;;  %s12862_s2 = sld [smem:[#allocation22_spill]] }
 0xaa6   :  { %v5519_v62 = vld [vmem:[#allocation5 + $0x40] ss:$2 sm:$0xff]  ;;  %v5551_v61 = vld [vmem:[#allocation5 + $0x41] ss:$2 sm:$0xff] }
 0xaa7   :  { %5462 = vst.msk [vmem:[#allocation5 + $0x98] sm:$0xff] %vm846_vm3, %v5460_v63  ;;  %v2200_v43 = vpop.permute.xlu1 %2199  ;;  %v4706_v46 = vld [vmem:[#allocation3 + $0x3a0] sm:$0xff] }
 0xaa8   :  { %v2585_v44 = vpop.permute.xlu2 %2584  ;;  %2333 = vst.msk [vmem:[#allocation3 + $0x3b0] sm:$0xff] %vm2273_vm6, %v2200_v43  ;;  %v4834_v49 = vmul.f32 %v4770_v25, %v4706_v46  ;;  %v5527_v63 = vld [vmem:[#allocation5 + $0x80] ss:$2 sm:$0xff]  ;;  %v11848_v43 = vmax.f32 %v5519_v62, %v5551_v61 }
 0xaa9   :  { %v11777_v31 = vpop.permute.xlu0 %3324  ;;  %2718 = vst.msk [vmem:[#allocation3 + $0x3b0] sm:$0xff] %vm2658_vm7, %v2585_v44  ;;  %v5559_v44 = vld [vmem:[#allocation5 + $0x81] ss:$2 sm:$0xff] }
 0xaaa   :  { %3103 = vst.msk [vmem:[#allocation3 + $0x3b0] sm:$0xff] %vm3043_vm8, %v11711_v55  ;;  %8085 = vmatmul.msk.f32.gmra.mxu2 %vm4846_vm13, %v4834_v49  ;;  %v11851_v46 = vmax.f32 %v5527_v63, %v5559_v44  ;;  %v5670_v62 = vld [vmem:[%s8473_s14] sm:$0xf]  ;;  %s8409_s14 = smov 32  }
 0xaab   :  { %8091 = vmatpush.msk.msrb.mxu2 %vm5720_vm15, %v5670_v62 }
 0xaad   :  { %3745 = vrot.lane.b32.xlu2 %v3555_v38, %s8400_s10  ;;  %2207 = vrot.lane.b32.xlu1 %v11562_v40, %s8396_s17  ;;  %v5224_v58 = vpop.f32.mrf.mxu2  ;;  %v5535_v40 = vld [vmem:[#allocation5 + $0xc0] ss:$2 sm:$0xff]  ;;  %v5525_v38 = vld [vmem:[#allocation5 + $0x70] ss:$2 sm:$0xff]  ;;  %s8415_s17 = smov 112   ;;  %s8416_s10 = smov 96  }
 0xaae   :  { %v5529_v29 = vld [vmem:[#allocation5 + $0x90] ss:$2 sm:$0xff]  ;;  %v5561_v60 = vld [vmem:[#allocation5 + $0x91] ss:$2 sm:$0xff]  ;;  %v5225_v59 = vadd.f32 %v11754_v57, %v5224_v58  ;;  %v11805_v42 = vmax.f32 %v5535_v40, %v5567_v45 }
 0xaaf   :  { %v3323_v21 = vpop.permute.xlu1 %3322  ;;  %v11790_v54 = vmax.f32 %v5529_v29, %v5561_v60  ;;  %v5557_v58 = vld [vmem:[#allocation5 + $0x71] ss:$2 sm:$0xff] }
 0xab0   :  { %v3708_v28 = vpop.permute.xlu2 %3707  ;;  %3472 = vst.msk [vmem:[#allocation3 + $0x2b0] sm:$0xff] %vm3428_vm9, %v3323_v21  ;;  %v5310_v32 = vmax.f32 %v5225_v59, %v9649_v14  ;;  %v11861_v29 = vmax.f32 %v5525_v38, %v5557_v58 }
 0xab1   :  { %v11788_v23 = vpop.permute.xlu0 %3356  ;;  %3857 = vst.msk [vmem:[#allocation3 + $0x2b0] sm:$0xff] %vm3813_vm10, %v3708_v28  ;;  %5624 = vrot.lane.b32.xlu0 %v11790_v54, %s8403_s5 }
 0xab2   :  { %4242 = vst.msk [vmem:[#allocation3 + $0x2b0] sm:$0xff] %vm4198_vm11, %v11722_v39  ;;  %v5515_v39 = vld [vmem:[#allocation5 + $0x20] ss:$2 sm:$0xff] }
 0xab3   :  { %5374 = vst.msk [vmem:[#allocation4 + $0x1b8] sm:$0xff] %vm846_vm3, %v5310_v32  ;;  %v4756_v32 = vld [vmem:[%s8453_s25 + $0x160] sm:$0xff] }
 0xab5   :  { %1822 = vrot.lane.b32.xlu2 %v11640_v8, %s8395_s13  ;;  %3362 = vrot.lane.b32.xlu1 %v4324_v30, %s8401_s11  ;;  %s12860_s13 = sld [smem:[#allocation18_spill]]  ;;  %s8417_s11 = smov 80  }
 0xab7   :  { %v3355_v4 = vpop.permute.xlu1 %3354 }
 0xab8   :  { %v3740_v37 = vpop.permute.xlu2 %3739  ;;  %3488 = vst.msk [vmem:[#allocation3 + $0x3b0] sm:$0xff] %vm3428_vm9, %v3355_v4 }
 0xab9   :  { %v11803_v55 = vpop.permute.xlu0 %4479  ;;  %3873 = vst.msk [vmem:[#allocation3 + $0x3b0] sm:$0xff] %vm3813_vm10, %v3740_v37  ;;  %5630 = vrot.lane.b32.xlu0 %v11805_v42, %s8403_s5 }
 0xaba   :  { %v5490_v8 = vld [vmem:[#allocation4 + $0x1b8] sm:$0xff] }
 0xabb   :  { %v5492_v52 = vmax.f32 %v5488_v3, %v5490_v8  ;;  %v4772_v8 = vld [vmem:[%s8453_s25 + $0x1e0] sm:$0xff] }
 0xabd   :  { %2977 = vrot.lane.b32.xlu2 %v11654_v16, %s8397_s1  ;;  %4517 = vrot.lane.b32.xlu1 %v4326_v35, %s8393_s28  ;;  %5494 = vst.msk [vmem:[#allocation5 + $0xd8] sm:$0xff] %vm846_vm3, %v5492_v52  ;;  %v11820_v16 = vmax.f32 %v5515_v39, %v5547_v41 }
 0xabf   :  { %v4478_v12 = vpop.permute.xlu1 %4477 }
 0xac0   :  { %v4125_v0 = vpop.permute.xlu2 %4124  ;;  %4627 = vst.msk [vmem:[#allocation3 + $0x2b0] sm:$0xff] %vm4583_vm12, %v4478_v12 }
 0xac1   :  { %4258 = vst.msk [vmem:[#allocation3 + $0x3b0] sm:$0xff] %vm4198_vm11, %v4125_v0  ;;  %v1819_v53 = vpop.permute.xlu0 %1818 }
 0xac2   :  { %4643 = vst.msk [vmem:[#allocation3 + $0x3b0] sm:$0xff] %vm4583_vm12, %v11749_v11  ;;  %v5553_v11 = vld [vmem:[#allocation5 + $0x51] ss:$2 sm:$0xff] }
 0xac3   :  { %1950 = vst.msk [vmem:[#allocation3 + $0x3d0] sm:$0xff] %vm1888_vm5, %v1819_v53  ;;  %v11835_v30 = vmax.f32 %v5521_v48, %v5553_v11 }
 0xac5   :  { %4132 = vrot.lane.b32.xlu2 %v3941_v51, %s8399_s7  ;;  %5610 = vrot.lane.b32.xlu1 %v11820_v16, %s8403_s5  ;;  %s12863_s7 = sld [smem:[#allocation21_spill]] }
 0xac7   :  { %v2170_v15 = vpop.permute.xlu1 %2169  ;;  %v5179_v2 = vpop.f32.mrf.mxu1  ;;  %v4691_v19 = vld [vmem:[#allocation3 + $0x2b0] sm:$0xff] }
 0xac8   :  { %v1817_v36 = vpop.permute.xlu2 %1816  ;;  %2318 = vst.msk [vmem:[#allocation3 + $0x2c0] sm:$0xff] %vm2273_vm6, %v2170_v15  ;;  %v5180_v27 = vadd.f32 %v11754_v57, %v5179_v2  ;;  %v4819_v47 = vmul.f32 %v4755_v33, %v4691_v19 }
 0xac9   :  { %1949 = vst.msk [vmem:[#allocation3 + $0x3c0] sm:$0xff] %vm1888_vm5, %v1817_v36  ;;  %v4707_v10 = vld [vmem:[#allocation3 + $0x3b0] sm:$0xff]  ;;  %v2974_v4 = vpop.permute.xlu0 %2973 }
 0xaca   :  { %2334 = vst.msk [vmem:[#allocation3 + $0x3c0] sm:$0xff] %vm2273_vm6, %v11767_v20  ;;  %v4835_v56 = vmul.f32 %v4771_v17, %v4707_v10  ;;  %v5295_v13 = vmax.f32 %v5180_v27, %v9649_v14  ;;  %8070 = vmatmul.msk.f32.gmra.mxu1 %vm4846_vm13, %v4819_v47  ;;  %v4773_v10 = vld [vmem:[%s8453_s25 + $0x1e8] sm:$0xff] }
 0xacc   :  { %8086 = vmatmul.msk.f32.gmra.mxu2 %vm4846_vm13, %v4835_v56  ;;  %5359 = vst.msk [vmem:[#allocation4 + $0x140] sm:$0xff] %vm846_vm3, %v5295_v13 }
 0xacd   :  { %5608 = vrot.lane.b32.xlu2 %v11832_v9, %s8403_s5  ;;  %5616 = vrot.lane.b32.xlu1 %v11835_v30, %s8403_s5 }
 0xacf   :  { %v5227_v6 = vpop.f32.mrf.mxu2  ;;  %v2555_v34 = vpop.permute.xlu1 %2554 }
 0xad0   :  { %v5228_v5 = vadd.f32 %v11754_v57, %v5227_v6  ;;  %v2940_v20 = vpop.permute.xlu2 %2939  ;;  %2703 = vst.msk [vmem:[#allocation3 + $0x2c0] sm:$0xff] %vm2658_vm7, %v2555_v34  ;;  %v4774_v34 = vld [vmem:[%s8453_s25 + $0x1f0] sm:$0xff] }
 0xad1   :  { %3088 = vst.msk [vmem:[#allocation3 + $0x2c0] sm:$0xff] %vm3043_vm8, %v2940_v20  ;;  %v4129_v52 = vpop.permute.xlu0 %4128 }
 0xad2   :  { %v5311_v25 = vmax.f32 %v5228_v5, %v9649_v14  ;;  %3473 = vst.msk [vmem:[#allocation3 + $0x2c0] sm:$0xff] %vm3428_vm9, %v11777_v31 }
 0xad3   :  { %v5463_v38 = vld [vmem:[#allocation4 + $0x140] sm:$0xff] }
 0xad4   :  { %5375 = vst.msk [vmem:[#allocation4 + $0x1c0] sm:$0xff] %vm846_vm3, %v5311_v25 }
 0xad5   :  { %5614 = vrot.lane.b32.xlu2 %v11848_v43, %s8403_s5  ;;  %5622 = vrot.lane.b32.xlu1 %v11851_v46, %s8403_s5 }
 0xad7   :  { %v2587_v28 = vpop.permute.xlu1 %2586 }
 0xad8   :  { %v2972_v49 = vpop.permute.xlu2 %2971  ;;  %2719 = vst.msk [vmem:[#allocation3 + $0x3c0] sm:$0xff] %vm2658_vm7, %v2587_v28 }
 0xad9   :  { %3104 = vst.msk [vmem:[#allocation3 + $0x3c0] sm:$0xff] %vm3043_vm8, %v2972_v49  ;;  %v2206_v33 = vpop.permute.xlu0 %2205 }
 0xada   :  { %3489 = vst.msk [vmem:[#allocation3 + $0x3c0] sm:$0xff] %vm3428_vm9, %v11788_v23 }
 0xadd   :  { %5620 = vrot.lane.b32.xlu2 %v11861_v29, %s8403_s5 }
 0xadf   :  { %v3710_v60 = vpop.permute.xlu1 %3709 }
 0xae0   :  { %v4095_v31 = vpop.permute.xlu2 %4094  ;;  %3858 = vst.msk [vmem:[#allocation3 + $0x2c0] sm:$0xff] %vm3813_vm10, %v3710_v60 }
 0xae1   :  { %4243 = vst.msk [vmem:[#allocation3 + $0x2c0] sm:$0xff] %vm4198_vm11, %v4095_v31  ;;  %v3361_v11 = vpop.permute.xlu0 %3360 }
 0xae2   :  { %4628 = vst.msk [vmem:[#allocation3 + $0x2c0] sm:$0xff] %vm4583_vm12, %v11803_v55 }
 0xae7   :  { %v3742_v21 = vpop.permute.xlu1 %3741 }
 0xae8   :  { %v4127_v59 = vpop.permute.xlu2 %4126  ;;  %3874 = vst.msk [vmem:[#allocation3 + $0x3c0] sm:$0xff] %vm3813_vm10, %v3742_v21 }
 0xae9   :  { %4259 = vst.msk [vmem:[#allocation3 + $0x3c0] sm:$0xff] %vm4198_vm11, %v4127_v59  ;;  %v5182_v23 = vpop.f32.mrf.mxu1  ;;  %v4692_v40 = vld [vmem:[#allocation3 + $0x2c0] sm:$0xff]  ;;  %v4516_v27 = vpop.permute.xlu0 %4515 }
 0xaea   :  { %v5183_v45 = vadd.f32 %v11754_v57, %v5182_v23  ;;  %v4820_v37 = vmul.f32 %v4756_v32, %v4692_v40 }
 0xaec   :  { %v5296_v35 = vmax.f32 %v5183_v45, %v9649_v14  ;;  %8071 = vmatmul.msk.f32.gmra.mxu1 %vm4846_vm13, %v4820_v37  ;;  %v4775_v45 = vld [vmem:[%s8453_s25 + $0x1f8] sm:$0xff]  ;;  %s8405_s25 = smov 12  }
 0xaee   :  { %5360 = vst.msk [vmem:[#allocation4 + $0x148] sm:$0xff] %vm846_vm3, %v5296_v35  ;;  %v5495_v35 = vld [vmem:[#allocation4 + $0x1c0] sm:$0xff] }
 0xaef   :  { %v4512_v3 = vpop.permute.xlu1 %4511 }
 0xaf0   :  { %v2204_v55 = vpop.permute.xlu2 %2203  ;;  %4644 = vst.msk [vmem:[#allocation3 + $0x3c0] sm:$0xff] %vm4583_vm12, %v4512_v3 }
 0xaf1   :  { %2335 = vst.msk [vmem:[#allocation3 + $0x3d0] sm:$0xff] %vm2273_vm6, %v2204_v55  ;;  %v2593_v61 = vpop.permute.xlu0 %2592 }
 0xaf7   :  { %v2589_v12 = vpop.permute.xlu1 %2588  ;;  %v4708_v53 = vld [vmem:[#allocation3 + $0x3c0] sm:$0xff] }
 0xaf8   :  { %v3359_v0 = vpop.permute.xlu2 %3358  ;;  %2720 = vst.msk [vmem:[#allocation3 + $0x3d0] sm:$0xff] %vm2658_vm7, %v2589_v12  ;;  %v4836_v39 = vmul.f32 %v4772_v8, %v4708_v53 }
 0xaf9   :  { %3105 = vst.msk [vmem:[#allocation3 + $0x3d0] sm:$0xff] %vm3043_vm8, %v2974_v4  ;;  %v3748_v60 = vpop.permute.xlu0 %3747 }
 0xafa   :  { %3490 = vst.msk [vmem:[#allocation3 + $0x3d0] sm:$0xff] %vm3428_vm9, %v3359_v0  ;;  %8087 = vmatmul.msk.f32.gmra.mxu2 %vm4846_vm13, %v4836_v39 }
 0xafe   :  { %v5230_v51 = vpop.f32.mrf.mxu2 }
 0xaff   :  { %v5231_v17 = vadd.f32 %v11754_v57, %v5230_v51  ;;  %v3744_v36 = vpop.permute.xlu1 %3743 }
 0xb00   :  { %v4514_v41 = vpop.permute.xlu2 %4513  ;;  %3875 = vst.msk [vmem:[#allocation3 + $0x3d0] sm:$0xff] %vm3813_vm10, %v3744_v36 }
 0xb01   :  { %v5312_v18 = vmax.f32 %v5231_v17, %v9649_v14  ;;  %4260 = vst.msk [vmem:[#allocation3 + $0x3d0] sm:$0xff] %vm4198_vm11, %v4129_v52  ;;  %v5607_v8 = vpop.permute.xlu0 %5606 }
 0xb02   :  { %4645 = vst.msk [vmem:[#allocation3 + $0x3d0] sm:$0xff] %vm4583_vm12, %v4514_v41  ;;  %v11924_v52 = vadd.f32 %v5607_v8, %v11732_v22 }
 0xb03   :  { %5376 = vst.msk [vmem:[#allocation4 + $0x1c8] sm:$0xff] %vm846_vm3, %v5312_v18 }
 0xb07   :  { %v1821_v15 = vpop.permute.xlu1 %1820 }
 0xb08   :  { %v2591_v26 = vpop.permute.xlu2 %2590  ;;  %1951 = vst.msk [vmem:[#allocation3 + $0x3e0] sm:$0xff] %vm1888_vm5, %v1821_v15 }
 0xb09   :  { %2336 = vst.msk [vmem:[#allocation3 + $0x3e0] sm:$0xff] %vm2273_vm6, %v2206_v33  ;;  %v4709_v48 = vld [vmem:[#allocation3 + $0x3d0] sm:$0xff]  ;;  %v5464_v33 = vld [vmem:[#allocation4 + $0x148] sm:$0xff] }
 0xb0a   :  { %2721 = vst.msk [vmem:[#allocation3 + $0x3e0] sm:$0xff] %vm2658_vm7, %v2591_v26  ;;  %v4837_v2 = vmul.f32 %v4773_v10, %v4709_v48  ;;  %v5613_v26 = vpop.permute.xlu0 %5612  ;;  %v5496_v48 = vld [vmem:[#allocation4 + $0x1c8] sm:$0xff] }
 0xb0b   :  { %v11946_v10 = vadd.f32 %v5613_v26, %v11742_v1  ;;  %v5537_v1 = vld [vmem:[#allocation5 + $0xd0] ss:$2 sm:$0xff] }
 0xb0c   :  { %8088 = vmatmul.msk.f32.gmra.mxu2 %vm4846_vm13, %v4837_v2 }
 0xb0f   :  { %v2976_v56 = vpop.permute.xlu1 %2975 }
 0xb10   :  { %v3746_v19 = vpop.permute.xlu2 %3745  ;;  %3106 = vst.msk [vmem:[#allocation3 + $0x3e0] sm:$0xff] %vm3043_vm8, %v2976_v56 }
 0xb11   :  { %3491 = vst.msk [vmem:[#allocation3 + $0x3e0] sm:$0xff] %vm3428_vm9, %v3361_v11 }
 0xb12   :  { %3876 = vst.msk [vmem:[#allocation3 + $0x3e0] sm:$0xff] %vm3813_vm10, %v3746_v19 }
 0xb17   :  { %v4131_v13 = vpop.permute.xlu1 %4130 }
 0xb18   :  { %v1823_v47 = vpop.permute.xlu2 %1822  ;;  %4261 = vst.msk [vmem:[#allocation3 + $0x3e0] sm:$0xff] %vm4198_vm11, %v4131_v13  ;;  %v5185_v6 = vpop.f32.mrf.mxu1  ;;  %v5569_v13 = vld [vmem:[#allocation5 + $0xd1] ss:$2 sm:$0xff] }
 0xb19   :  { %1952 = vst.msk [vmem:[#allocation3 + $0x3f0] sm:$0xff] %vm1888_vm5, %v1823_v47  ;;  %v5186_v5 = vadd.f32 %v11754_v57, %v5185_v6  ;;  %vm6190_vm5 = vcmask 97344  }
 0xb1a   :  { %4646 = vst.msk [vmem:[#allocation3 + $0x3e0] sm:$0xff] %vm4583_vm12, %v4516_v27 }
 0xb1b   :  { %v5297_v20 = vmax.f32 %v5186_v5, %v9649_v14  ;;  %v11957_v5 = vmax.f32 %v5537_v1, %v5569_v13 }
 0xb1d   :  { %5361 = vst.msk [vmem:[#allocation4 + $0x150] sm:$0xff] %vm846_vm3, %v5297_v20 }
 0xb1f   :  { %v2208_v44 = vpop.permute.xlu1 %2207 }
 0xb20   :  { %v2978_v63 = vpop.permute.xlu2 %2977  ;;  %2337 = vst.msk [vmem:[#allocation3 + $0x3f0] sm:$0xff] %vm2273_vm6, %v2208_v44  ;;  %vm6287_vm6 = vcmask 130144  }
 0xb21   :  { %v4710_v25 = vld [vmem:[#allocation3 + $0x3e0] sm:$0xff]  ;;  %2722 = vst.msk [vmem:[#allocation3 + $0x3f0] sm:$0xff] %vm2658_vm7, %v2593_v61  ;;  %vm6384_vm7 = vcmask 162944  }
 0xb22   :  { %v4838_v49 = vmul.f32 %v4774_v34, %v4710_v25  ;;  %3107 = vst.msk [vmem:[#allocation3 + $0x3f0] sm:$0xff] %vm3043_vm8, %v2978_v63  ;;  %v5619_v34 = vpop.permute.xlu0 %5618  ;;  %vm6481_vm8 = vcmask 195744  }
 0xb23   :  { %v11970_v63 = vadd.f32 %v5619_v34, %v11760_v50  ;;  %v5792_v34 = vld [vmem:[%s8468_s8 + $0x18] sm:$0xff] }
 0xb24   :  { %8089 = vmatmul.msk.f32.gmra.mxu2 %vm4846_vm13, %v4838_v49  ;;  %v5465_v58 = vld [vmem:[#allocation4 + $0x150] sm:$0xff] }
 0xb25   :  { %v5467_v28 = vmax.f32 %v5463_v38, %v5465_v58 }
 0xb27   :  { %5469 = vst.msk [vmem:[#allocation5 + $0xa0] sm:$0xff] %vm846_vm3, %v5467_v28  ;;  %v3363_v31 = vpop.permute.xlu1 %3362 }
 0xb28   :  { %3492 = vst.msk [vmem:[#allocation3 + $0x3f0] sm:$0xff] %vm3428_vm9, %v3363_v31  ;;  %v4133_v59 = vpop.permute.xlu2 %4132  ;;  %vm6578_vm9 = vcmask 228544  }
 0xb29   :  { %3877 = vst.msk [vmem:[#allocation3 + $0x3f0] sm:$0xff] %vm3813_vm10, %v3748_v60  ;;  %vm6675_vm10 = vcmask 261344  }
 0xb2a   :  { %4262 = vst.msk [vmem:[#allocation3 + $0x3f0] sm:$0xff] %vm4198_vm11, %v4133_v59  ;;  %vm6772_vm11 = vcmask 294144  }
 0xb2d   :  { %v5233_v21 = vpop.f32.mrf.mxu2 }
 0xb2e   :  { %v5234_v32 = vadd.f32 %v11754_v57, %v5233_v21 }
 0xb2f   :  { %v4518_v23 = vpop.permute.xlu1 %4517 }
 0xb30   :  { %4647 = vst.msk [vmem:[#allocation3 + $0x3f0] sm:$0xff] %vm4583_vm12, %v4518_v23  ;;  %v5313_v40 = vmax.f32 %v5234_v32, %v9649_v14  ;;  %v5609_v0 = vpop.permute.xlu2 %5608  ;;  %vm6846_vm12 = vcmask 293888  }
 0xb31   :  { %v11929_v12 = vadd.f32 %v5609_v0, %v11832_v9 }
 0xb32   :  { %5377 = vst.msk [vmem:[#allocation4 + $0x1d0] sm:$0xff] %vm846_vm3, %v5313_v40 }
 0xb37   :  { %v4711_v37 = vld [vmem:[#allocation3 + $0x3f0] sm:$0xff]  ;;  %v5611_v51 = vpop.permute.xlu1 %5610 }
 0xb38   :  { %v4839_v4 = vmul.f32 %v4775_v45, %v4711_v37  ;;  %v11938_v36 = vadd.f32 %v5611_v51, %v11820_v16  ;;  %v5615_v2 = vpop.permute.xlu2 %5614 }
 0xb39   :  { %v5497_v55 = vld [vmem:[#allocation4 + $0x1d0] sm:$0xff]  ;;  %v11952_v47 = vadd.f32 %v5615_v2, %v11848_v43 }
 0xb3a   :  { %8090 = vmatmul.msk.f32.gmra.mxu2 %vm4846_vm13, %v4839_v4  ;;  %v5499_v3 = vmax.f32 %v5495_v35, %v5497_v55  ;;  %vm6963_vm13 = vcmp.lt.s32.totalorder %v9631_v7, 8 }
 0xb3c   :  { %5501 = vst.msk [vmem:[#allocation5 + $0xe0] sm:$0xff] %vm846_vm3, %v5499_v3 }
 0xb3f   :  { %v5617_v6 = vpop.permute.xlu1 %5616 }
 0xb40   :  { %v11960_v20 = vadd.f32 %v5617_v6, %v11835_v30  ;;  %v5473_v30 = vld [vmem:[#allocation4 + $0x170] sm:$0xff]  ;;  %v5621_v44 = vpop.permute.xlu2 %5620 }
 0xb41   :  { %v11975_v38 = vadd.f32 %v5621_v44, %v11861_v29  ;;  %v5625_v29 = vpop.permute.xlu0 %5624 }
 0xb42   :  { %8092 = vmatmul.msk.f32.vlgmr.msrb.gmra.mxu2 %vm5671_vm1, %v11924_v52  ;;  %v11993_v45 = vadd.f32 %v5625_v29, %v11790_v54 }
 0xb47   :  { %v5188_v53 = vpop.f32.mrf.mxu1  ;;  %v5623_v58 = vpop.permute.xlu1 %5622 }
 0xb48   :  { %v5189_v39 = vadd.f32 %v11754_v57, %v5188_v53  ;;  %v11982_v59 = vadd.f32 %v5623_v58, %v11851_v46  ;;  %v5793_v58 = vld [vmem:[%s8468_s8 + $0x20] sm:$0xff] }
 0xb4a   :  { %8093 = vmatmul.msk.f32.gmra.mxu2 %vm5671_vm1, %v11929_v12  ;;  %v5298_v41 = vmax.f32 %v5189_v39, %v9649_v14 }
 0xb4c   :  { %5362 = vst.msk [vmem:[#allocation4 + $0x158] sm:$0xff] %vm846_vm3, %v5298_v41 }
 0xb4f   :  { %v5236_v22 = vpop.f32.mrf.mxu2 }
 0xb50   :  { %v5237_v17 = vadd.f32 %v11754_v57, %v5236_v22 }
 0xb52   :  { %v5314_v9 = vmax.f32 %v5237_v17, %v9649_v14  ;;  %8094 = vmatmul.msk.f32.gmra.mxu2 %vm5671_vm1, %v11938_v36 }
 0xb53   :  { %v5466_v18 = vld [vmem:[#allocation4 + $0x158] sm:$0xff] }
 0xb54   :  { %5378 = vst.msk [vmem:[#allocation4 + $0x1d8] sm:$0xff] %vm846_vm3, %v5314_v9  ;;  %v5468_v15 = vmax.f32 %v5464_v33, %v5466_v18 }
 0xb56   :  { %5470 = vst.msk [vmem:[#allocation5 + $0xa8] sm:$0xff] %vm846_vm3, %v5468_v15 }
 0xb5a   :  { %8095 = vmatmul.msk.f32.gmra.mxu2 %vm5671_vm1, %v11946_v10 }
 0xb5b   :  { %v5498_v11 = vld [vmem:[#allocation4 + $0x1d8] sm:$0xff] }
 0xb5c   :  { %v5500_v16 = vmax.f32 %v5496_v48, %v5498_v11  ;;  %v5790_v48 = vld [vmem:[%s8468_s8 + $0x8] sm:$0xff]  ;;  %v5789_v11 = vld [vmem:[%s8468_s8] sm:$0xff] }
 0xb5d   :  { %v5531_v19 = vld [vmem:[#allocation5 + $0xa0] ss:$2 sm:$0xff]  ;;  %v5563_v56 = vld [vmem:[#allocation5 + $0xa1] ss:$2 sm:$0xff] }
 0xb5e   :  { %5502 = vst.msk [vmem:[#allocation5 + $0xe8] sm:$0xff] %vm846_vm3, %v5500_v16  ;;  %v5584_v27 = vmax.f32 %v5531_v19, %v5563_v56 }
 0xb60   :  { %5626 = vrot.lane.b32.xlu2 %v5584_v27, %s8403_s5 }
 0xb62   :  { %8096 = vmatmul.msk.f32.gmra.mxu2 %vm5671_vm1, %v11952_v47 }
 0xb65   :  { %v5539_v23 = vld [vmem:[#allocation5 + $0xe0] ss:$2 sm:$0xff]  ;;  %v5571_v40 = vld [vmem:[#allocation5 + $0xe1] ss:$2 sm:$0xff] }
 0xb66   :  { %v11995_v46 = vmax.f32 %v5539_v23, %v5571_v40  ;;  %v5631_v23 = vpop.permute.xlu0 %5630 }
 0xb67   :  { %v12033_v40 = vadd.f32 %v5631_v23, %v11805_v42 }
 0xb68   :  { %5632 = vrot.lane.b32.xlu2 %v11957_v5, %s8403_s5 }
 0xb69   :  { %v5191_v62 = vpop.f32.mrf.mxu1 }
 0xb6a   :  { %v5192_v43 = vadd.f32 %v11754_v57, %v5191_v62  ;;  %8097 = vmatmul.msk.f32.gmra.mxu2 %vm5671_vm1, %v11960_v20 }
 0xb6c   :  { %v5299_v61 = vmax.f32 %v5192_v43, %v9649_v14 }
 0xb6e   :  { %5363 = vst.msk [vmem:[#allocation4 + $0x160] sm:$0xff] %vm846_vm3, %v5299_v61 }
 0xb72   :  { %8098 = vmatmul.msk.f32.gmra.mxu2 %vm5671_vm1, %v11970_v63 }
 0xb75   :  { %v5471_v25 = vld [vmem:[#allocation4 + $0x160] sm:$0xff] }
 0xb76   :  { %v5475_v49 = vmax.f32 %v5471_v25, %v5473_v30 }
 0xb78   :  { %5477 = vst.msk [vmem:[#allocation5 + $0xb0] sm:$0xff] %vm846_vm3, %v5475_v49 }
 0xb7a   :  { %8099 = vmatmul.msk.f32.gmra.mxu2 %vm5671_vm1, %v11975_v38 }
 0xb7d   :  { %v5239_v28 = vpop.f32.mrf.mxu2 }
 0xb7e   :  { %v5240_v50 = vadd.f32 %v11754_v57, %v5239_v28 }
 0xb7f   :  { %v5533_v31 = vld [vmem:[#allocation5 + $0xb0] ss:$2 sm:$0xff]  ;;  %v5565_v60 = vld [vmem:[#allocation5 + $0xb1] ss:$2 sm:$0xff] }
 0xb80   :  { %v5315_v21 = vmax.f32 %v5240_v50, %v9649_v14  ;;  %v11985_v32 = vmax.f32 %v5533_v31, %v5565_v60 }
 0xb82   :  { %5379 = vst.msk [vmem:[#allocation4 + $0x1e0] sm:$0xff] %vm846_vm3, %v5315_v21  ;;  %5628 = vrot.lane.b32.xlu1 %v11985_v32, %s8403_s5  ;;  %8100 = vmatmul.msk.f32.gmra.mxu2 %vm5671_vm1, %v11982_v59 }
 0xb89   :  { %v5503_v8 = vld [vmem:[#allocation4 + $0x1e0] sm:$0xff] }
 0xb8a   :  { %5634 = vrot.lane.b32.xlu1 %v11995_v46, %s8403_s5  ;;  %8101 = vmatmul.msk.f32.gmra.mxu2 %vm5671_vm1, %v11993_v45 }
 0xb8f   :  { %v5242_v37 = vpop.f32.mrf.mxu2 }
 0xb90   :  { %v5243_v4 = vadd.f32 %v11754_v57, %v5242_v37 }
 0xb92   :  { %v5316_v35 = vmax.f32 %v5243_v4, %v9649_v14 }
 0xb94   :  { %5380 = vst.msk [vmem:[#allocation4 + $0x1e8] sm:$0xff] %vm846_vm3, %v5316_v35 }
 0xb9b   :  { %v5504_v33 = vld [vmem:[#allocation4 + $0x1e8] sm:$0xff] }
 0xba7   :  { %v5245_v55 = vpop.f32.mrf.mxu2 }
 0xba8   :  { %v5246_v3 = vadd.f32 %v11754_v57, %v5245_v55 }
 0xbaa   :  { %v5317_v54 = vmax.f32 %v5246_v3, %v9649_v14 }
 0xbac   :  { %5381 = vst.msk [vmem:[#allocation4 + $0x1f0] sm:$0xff] %vm846_vm3, %v5317_v54 }
 0xbb3   :  { %v5505_v0 = vld [vmem:[#allocation4 + $0x1f0] sm:$0xff] }
 0xbb4   :  { %v5507_v53 = vmax.f32 %v5503_v8, %v5505_v0 }
 0xbb6   :  { %5509 = vst.msk [vmem:[#allocation5 + $0xf0] sm:$0xff] %vm846_vm3, %v5507_v53 }
 0xbba   :  { %v5627_v39 = vpop.permute.xlu2 %5626 }
 0xbbb   :  { %v12008_v41 = vadd.f32 %v5627_v39, %v5584_v27 }
 0xbbd   :  { %v5248_v51 = vpop.f32.mrf.mxu2  ;;  %8102 = vmatmul.msk.f32.gmra.mxu2 %vm5671_vm1, %v12008_v41 }
 0xbbe   :  { %v5249_v22 = vadd.f32 %v11754_v57, %v5248_v51  ;;  %v5791_v57 = vld [vmem:[%s8468_s8 + $0x10] sm:$0xff]  ;;  %v5794_v51 = vld [vmem:[%s8468_s8 + $0x28] sm:$0xff] }
 0xbc0   :  { %v5318_v17 = vmax.f32 %v5249_v22, %v9649_v14  ;;  %v5795_v22 = vld [vmem:[%s8468_s8 + $0x30] sm:$0xff] }
 0xbc2   :  { %5382 = vst.msk [vmem:[#allocation4 + $0x1f8] sm:$0xff] %vm846_vm3, %v5318_v17  ;;  %v5633_v37 = vpop.permute.xlu2 %5632 }
 0xbc3   :  { %v12038_v4 = vadd.f32 %v5633_v37, %v11957_v5 }
 0xbc5   :  { %v5741_v9 = vpop.f32.mrf.mxu2 }
 0xbc6   :  { %v5805_v2 = vmul.f32 %v5789_v11, %v5741_v9  ;;  %v5796_v9 = vld [vmem:[%s8468_s8 + $0x38] sm:$0xff] }
 0xbc8   :  { %v5821_v13 = vsel %vm846_vm3, %v5805_v2, 0.0 }
 0xbc9   :  { %v5506_v18 = vld [vmem:[#allocation4 + $0x1f8] sm:$0xff] }
 0xbca   :  { %v5508_v26 = vmax.f32 %v5504_v33, %v5506_v18  ;;  %v5797_v18 = vld [vmem:[%s8468_s8 + $0x40] sm:$0xff] }
 0xbcc   :  { %5510 = vst.msk [vmem:[#allocation5 + $0xf8] sm:$0xff] %vm846_vm3, %v5508_v26 }
 0xbcd   :  { %v5744_v15 = vpop.f32.mrf.mxu2 }
 0xbce   :  { %v5806_v16 = vmul.f32 %v5790_v48, %v5744_v15  ;;  %v5798_v48 = vld [vmem:[%s8468_s8 + $0x48] sm:$0xff] }
 0xbd0   :  { %v5822_v14 = vsel %vm846_vm3, %v5806_v16, 0.0 }
 0xbd1   :  { %v5823_v62 = vadd.f32 %v5822_v14, %v5821_v13 }
 0xbd3   :  { %v5541_v19 = vld [vmem:[#allocation5 + $0xf0] ss:$2 sm:$0xff]  ;;  %v5573_v56 = vld [vmem:[#allocation5 + $0xf1] ss:$2 sm:$0xff] }
 0xbd4   :  { %v5589_v27 = vmax.f32 %v5541_v19, %v5573_v56  ;;  %v5799_v19 = vld [vmem:[%s8468_s8 + $0x50] sm:$0xff] }
 0xbd5   :  { %v5747_v1 = vpop.f32.mrf.mxu2 }
 0xbd6   :  { %v5807_v6 = vmul.f32 %v5791_v57, %v5747_v1  ;;  %5636 = vrot.lane.b32.xlu0 %v5589_v27, %s8403_s5  ;;  %v5800_v1 = vld [vmem:[%s8468_s8 + $0x58] sm:$0xff]  ;;  %s12864_s5 = sld [smem:[#allocation25_spill]] }
 0xbd8   :  { %v5824_v43 = vsel %vm846_vm3, %v5807_v6, 0.0 }
 0xbd9   :  { %v5825_v61 = vadd.f32 %v5824_v43, %v5823_v62  ;;  %v5801_v43 = vld [vmem:[%s8468_s8 + $0x60] sm:$0xff] }
 0xbdd   :  { %v5750_v30 = vpop.f32.mrf.mxu2 }
 0xbde   :  { %v5808_v44 = vmul.f32 %v5792_v34, %v5750_v30 }
 0xbe0   :  { %v5826_v25 = vsel %vm846_vm3, %v5808_v44, 0.0  ;;  %v5802_v44 = vld [vmem:[%s8468_s8 + $0x68] sm:$0xff] }
 0xbe1   :  { %v5827_v49 = vadd.f32 %v5826_v25, %v5825_v61 }
 0xbe5   :  { %v5753_v28 = vpop.f32.mrf.mxu2 }
 0xbe6   :  { %v5809_v50 = vmul.f32 %v5793_v58, %v5753_v28 }
 0xbe8   :  { %v5828_v31 = vsel %vm846_vm3, %v5809_v50, 0.0  ;;  %v5803_v50 = vld [vmem:[%s8468_s8 + $0x70] sm:$0xff] }
 0xbe9   :  { %v5829_v60 = vadd.f32 %v5828_v31, %v5827_v49 }
 0xbed   :  { %v5756_v5 = vpop.f32.mrf.mxu2 }
 0xbee   :  { %v5810_v17 = vmul.f32 %v5794_v51, %v5756_v5 }
 0xbf0   :  { %v5830_v26 = vsel %vm846_vm3, %v5810_v17, 0.0 }
 0xbf1   :  { %v5831_v57 = vadd.f32 %v5830_v26, %v5829_v60 }
 0xbf4   :  { %v5629_v21 = vpop.permute.xlu1 %5628 }
 0xbf5   :  { %v12028_v29 = vadd.f32 %v5629_v21, %v11985_v32  ;;  %v5759_v3 = vpop.f32.mrf.mxu2 }
 0xbf6   :  { %v5811_v33 = vmul.f32 %v5795_v22, %v5759_v3  ;;  %v5804_v3 = vld [vmem:[%s8468_s8 + $0x78] sm:$0xff]  ;;  %s8408_s8 = smov 16  }
 0xbf7   :  { %8103 = vmatmul.msk.f32.gmra.mxu2 %vm5671_vm1, %v12028_v29 }
 0xbf8   :  { %v5832_v16 = vsel %vm846_vm3, %v5811_v33, 0.0 }
 0xbfc   :  { %v5635_v32 = vpop.permute.xlu1 %5634 }
 0xbfd   :  { %v12043_v35 = vadd.f32 %v5635_v32, %v11995_v46  ;;  %v5762_v54 = vpop.f32.mrf.mxu2 }
 0xbfe   :  { %v5812_v15 = vmul.f32 %v5796_v9, %v5762_v54 }
 0xbff   :  { %8104 = vmatmul.msk.f32.gmra.mxu2 %vm5671_vm1, %v12033_v40 }
 0xc00   :  { %v5834_v56 = vsel %vm846_vm3, %v5812_v15, 0.0 }
 0xc05   :  { %v5765_v8 = vpop.f32.mrf.mxu2 }
 0xc06   :  { %v5813_v2 = vmul.f32 %v5797_v18, %v5765_v8 }
 0xc07   :  { %8105 = vmatmul.msk.f32.gmra.mxu2 %vm5671_vm1, %v12038_v4 }
 0xc08   :  { %v5836_v13 = vsel %vm846_vm3, %v5813_v2, 0.0 }
 0xc0d   :  { %v5768_v0 = vpop.f32.mrf.mxu2 }
 0xc0e   :  { %v5814_v14 = vmul.f32 %v5798_v48, %v5768_v0  ;;  %v5860_v48 = vld [vmem:[%s8433_s9 + $0x1] sm:$0x1] }
 0xc0f   :  { %8106 = vmatmul.msk.f32.gmra.mxu2 %vm5671_vm1, %v12043_v35 }
 0xc10   :  { %v5838_v61 = vsel %vm846_vm3, %v5814_v14, 0.0 }
 0xc40   :  { %v5771_v53 = vpop.f32.mrf.mxu2 }
 0xc41   :  { %v5815_v6 = vmul.f32 %v5799_v19, %v5771_v53 }
 0xc43   :  { %v5840_v25 = vsel %vm846_vm3, %v5815_v6, 0.0 }
 0xc48   :  { %v5637_v42 = vpop.permute.xlu0 %5636 }
 0xc49   :  { %v12047_v55 = vadd.f32 %v5637_v42, %v5589_v27  ;;  %v5833_v27 = vadd.f32 %v5832_v16, %v5831_v57  ;;  %v5861_v16 = vmul.f32 0.9, %v5860_v48 }
 0xc4b   :  { %8107 = vmatmul.msk.f32.gmra.mxu2 %vm5671_vm1, %v12047_v55  ;;  %v5835_v62 = vadd.f32 %v5834_v56, %v5833_v27  ;;  %v5870_v27 = vld [vmem:[%s8478_s19 + $0x10] sm:$0xff] }
 0xc4d   :  { %v5837_v30 = vadd.f32 %v5836_v13, %v5835_v62  ;;  %v5868_v13 = vld [vmem:[%s8478_s19] sm:$0xff] }
 0xc4f   :  { %v5839_v58 = vadd.f32 %v5838_v61, %v5837_v30 }
 0xc51   :  { %v5841_v21 = vadd.f32 %v5840_v25, %v5839_v58  ;;  %v5874_v25 = vld [vmem:[%s8478_s19 + $0x30] sm:$0xff]  ;;  %v5871_v58 = vld [vmem:[%s8478_s19 + $0x18] sm:$0xff] }
 0xc7a   :  { %v5774_v46 = vpop.f32.mrf.mxu2 }
 0xc7b   :  { %v5816_v34 = vmul.f32 %v5800_v1, %v5774_v46  ;;  %v5869_v1 = vld [vmem:[%s8478_s19 + $0x8] sm:$0xff] }
 0xc7d   :  { %v5842_v31 = vsel %vm846_vm3, %v5816_v34, 0.0 }
 0xc7e   :  { %v5843_v32 = vadd.f32 %v5842_v31, %v5841_v21 }
 0xc82   :  { %v5777_v39 = vpop.f32.mrf.mxu2 }
 0xc83   :  { %v5817_v49 = vmul.f32 %v5801_v43, %v5777_v39 }
 0xc85   :  { %v5844_v23 = vsel %vm846_vm3, %v5817_v49, 0.0  ;;  %v5872_v49 = vld [vmem:[%s8478_s19 + $0x20] sm:$0xff] }
 0xc86   :  { %v5845_v5 = vadd.f32 %v5844_v23, %v5843_v32  ;;  %v5873_v32 = vld [vmem:[%s8478_s19 + $0x28] sm:$0xff] }
 0xc8a   :  { %v5780_v11 = vpop.f32.mrf.mxu2 }
 0xc8b   :  { %v5818_v60 = vmul.f32 %v5802_v44, %v5780_v11 }
 0xc8d   :  { %v5846_v42 = vsel %vm846_vm3, %v5818_v60, 0.0 }
 0xc8e   :  { %v5847_v8 = vadd.f32 %v5846_v42, %v5845_v5 }
 0xc92   :  { %v5783_v28 = vpop.f32.mrf.mxu2 }
 0xc93   :  { %v5819_v37 = vmul.f32 %v5803_v50, %v5783_v28 }
 0xc95   :  { %v5848_v54 = vsel %vm846_vm3, %v5819_v37, 0.0  ;;  %v5875_v37 = vld [vmem:[%s8478_s19 + $0x38] sm:$0xff] }
 0xc96   :  { %v5849_v46 = vadd.f32 %v5848_v54, %v5847_v8  ;;  %v6013_v8 = vld [vmem:[#allocation2 + $0x18] sm:$0xff] }
 0xcce   :  { %v5786_v0 = vpop.f32.mrf.mxu2 }
 0xccf   :  { %v5820_v53 = vmul.f32 %v5804_v3, %v5786_v0 }
 0xcd1   :  { %v5850_v39 = vsel %vm846_vm3, %v5820_v53, 0.0 }
 0xcd2   :  { %v5851_v51 = vadd.f32 %v5850_v39, %v5849_v46 }
 0xcd4   :  { %v5852_v22 = vrot.slane %v5851_v51, 4 }
 0xcd6   :  { %v5853_v17 = vadd.f32 %v5852_v22, %v5851_v51 }
 0xcd8   :  { %v5854_v9 = vrot.slane %v5853_v17, 2 }
 0xcda   :  { %v5855_v33 = vadd.f32 %v5854_v9, %v5853_v17 }
 0xcdc   :  { %v5856_v18 = vrot.slane %v5855_v33, 1 }
 0xcde   :  { %v5857_v26 = vadd.f32 %v5856_v18, %v5855_v33 }
 0xce0   :  { %v5858_v15 = vmul.f32 0.35, %v5857_v26 }
 0xce2   :  { %8221 = vtanh.f32 %v5858_v15 }
 0xce8   :  { %v8222_v11 = vpop.eup %8221 }
 0xce9   :  { %v5862_v2 = vadd.f32 1.0, %v8222_v11 }
 0xceb   :  { %v5863_v57 = vmul.f32 0.1, %v5862_v2 }
 0xced   :  { %v5864_v19 = vadd.f32 %v5863_v57, %v5861_v16 }
 0xcef   :  { %v5865_v56 = vmax.f32 %v5864_v19, 0.8 }
 0xcf1   :  { %v5866_v14 = vmin.f32 %v5865_v56, 1.2 }
 0xcf3   :  { %v12077_v6 = vperm.slane %v5866_v14, 0  ;;  %5867 = vst.msk [vmem:[%s8618_s12 + $0x1] sm:$0x1] %vm989_vm4, %v5866_v14 }
 0xcf5   :  { %v5887_v62 = vmul.f32 %v12077_v6, %v5870_v27  ;;  %v5886_v43 = vmul.f32 %v12077_v6, %v5869_v1  ;;  %v5885_v61 = vmul.f32 %v12077_v6, %v5868_v13  ;;  %v5891_v28 = vmul.f32 %v12077_v6, %v5874_v25  ;;  %v5876_v1 = vld [vmem:[%s8478_s19 + $0x40] sm:$0xff] }
 0xcf6   :  { %v5889_v50 = vmul.f32 %v12077_v6, %v5872_v49  ;;  %v5888_v31 = vmul.f32 %v12077_v6, %v5871_v58  ;;  %v5892_v42 = vmul.f32 %v12077_v6, %v5875_v37  ;;  %v5890_v5 = vmul.f32 %v12077_v6, %v5873_v32  ;;  %v5878_v58 = vld [vmem:[%s8478_s19 + $0x50] sm:$0xff]  ;;  %v6840_v37 = vld [vmem:[%s8488_s30 + $0x18] sm:$0xff] }
 0xcf7   :  { %v5907_v34 = vsel %vm846_vm3, %v5887_v62, 0.0  ;;  %v5904_v30 = vsel %vm846_vm3, %v5886_v43, 0.0  ;;  %v5901_v44 = vsel %vm846_vm3, %v5885_v61, 0.0  ;;  %v5919_v60 = vsel %vm846_vm3, %v5891_v28, 0.0  ;;  %v5981_v61 = vld [vmem:[#allocation2 + $0x17] sm:$0xff] }
 0xcf8   :  { %5908 = vadd.xlane.f32.xlu0 %v5907_v34  ;;  %5905 = vadd.xlane.f32.xlu1 %v5904_v30  ;;  %v5913_v21 = vsel %vm846_vm3, %v5889_v50, 0.0  ;;  %v5910_v23 = vsel %vm846_vm3, %v5888_v31, 0.0  ;;  %v5922_v3 = vsel %vm846_vm3, %v5892_v42, 0.0  ;;  %v5916_v54 = vsel %vm846_vm3, %v5890_v5, 0.0  ;;  %5997 = vst.msk [vmem:[#allocation3] sm:$0xff] %vm5671_vm1, %v5981_v61  ;;  %v5877_v30 = vld [vmem:[%s8478_s19 + $0x48] sm:$0xff] }
 0xcf9   :  { %5902 = vadd.xlane.f32.xlu2 %v5901_v44  ;;  %v5893_v13 = vmul.f32 %v12077_v6, %v5876_v1  ;;  %v5894_v44 = vmul.f32 %v12077_v6, %v5877_v30  ;;  %v5895_v28 = vmul.f32 %v12077_v6, %v5878_v58  ;;  %v6839_v32 = vld [vmem:[%s8488_s30 + $0x10] sm:$0xff]  ;;  %v6838_v5 = vld [vmem:[%s8488_s30 + $0x8] sm:$0xff]  ;;  %v5880_v1 = vld [vmem:[%s8478_s19 + $0x60] sm:$0xff] }
 0xcfb   :  { %v5925_v43 = vsel %vm846_vm3, %v5893_v13, 0.0  ;;  %v5928_v49 = vsel %vm846_vm3, %v5894_v44, 0.0  ;;  %v5931_v50 = vsel %vm846_vm3, %v5895_v28, 0.0  ;;  %v5897_v13 = vmul.f32 %v12077_v6, %v5880_v1 }
 0xcfc   :  { %v12318_v1 = vsel %vm6963_vm13, 0.0, %v8402_v24  ;;  %vm7533_vm13 = vcmask 261248  }
 0xd00   :  { %5920 = vadd.xlane.f32.xlu0 %v5919_v60  ;;  %5914 = vadd.xlane.f32.xlu1 %v5913_v21 }
 0xd01   :  { %5911 = vadd.xlane.f32.xlu2 %v5910_v23  ;;  %v6841_v23 = vld [vmem:[%s8488_s30 + $0x20] sm:$0xf] }
 0xd02   :  { %8108 = vmatpush.msk.msrb.mxu3 %vm5720_vm15, %v6841_v23  ;;  %vm7216_vm15 = vcmask 195712  }
 0xd04   :  { %6910 = vmatpush.msrb.mxu3 %v6840_v37 }
 0xd06   :  { %6911 = vmatpush.msrb.mxu3 %v6839_v32 }
 0xd08   :  { %5923 = vadd.xlane.f32.xlu1 %v5922_v3  ;;  %6912 = vmatpush.msrb.mxu3 %v6838_v5 }
 0xd09   :  { %5917 = vadd.xlane.f32.xlu2 %v5916_v54  ;;  %v6837_v54 = vld [vmem:[%s8488_s30] sm:$0xff]  ;;  %s12853_s30 = sld [smem:[#allocation13_spill]] }
 0xd0a   :  { %6913 = vmatpush.msrb.mxu3 %v6837_v54 }
 0xd21   :  { %6045 = vrot.lane.b32.xlu2 %v6013_v8, %s8397_s1 }
 0xd6b   :  { %v5909_v0 = vpop.xlane.xlu0 %5908  ;;  %v5906_v53 = vpop.xlane.xlu1 %5905 }
 0xd6c   :  { %v5951_v46 = vmul.f32 %v5909_v0, %v11938_v36  ;;  %v5950_v39 = vmul.f32 %v5906_v53, %v11929_v12  ;;  %v5903_v51 = vpop.xlane.xlu2 %5902 }
 0xd6d   :  { %v5949_v22 = vmul.f32 %v5903_v51, %v11924_v52 }
 0xd6e   :  { %5967 = vst.msk [vmem:[#allocation2 + $0x30] sm:$0xff] %vm5671_vm1, %v5951_v46 }
 0xd6f   :  { %5966 = vst.msk [vmem:[#allocation2 + $0x28] sm:$0xff] %vm5671_vm1, %v5950_v39 }
 0xd70   :  { %5965 = vst.msk [vmem:[#allocation2 + $0x20] sm:$0xff] %vm5671_vm1, %v5949_v22 }
 0xd73   :  { %v5921_v17 = vpop.xlane.xlu0 %5920  ;;  %v5915_v9 = vpop.xlane.xlu1 %5914 }
 0xd74   :  { %v5955_v33 = vmul.f32 %v5921_v17, %v11970_v63  ;;  %v5953_v18 = vmul.f32 %v5915_v9, %v11952_v47  ;;  %v5912_v26 = vpop.xlane.xlu2 %5911 }
 0xd75   :  { %v5952_v36 = vmul.f32 %v5912_v26, %v11946_v10  ;;  %v6596_v25 = vld [vmem:[#allocation2 + $0x30] sm:$0xff] }
 0xd76   :  { %5971 = vst.msk [vmem:[#allocation2 + $0x50] sm:$0xff] %vm5671_vm1, %v5955_v33  ;;  %v6499_v47 = vld [vmem:[#allocation2 + $0x2f] sm:$0xff] }
 0xd77   :  { %5969 = vst.msk [vmem:[#allocation2 + $0x40] sm:$0xff] %vm5671_vm1, %v5953_v18  ;;  %v6401_v52 = vld [vmem:[#allocation2 + $0x21] sm:$0xff]  ;;  %v6110_v15 = vld [vmem:[#allocation2 + $0x19] sm:$0xff]  ;;  %v6692_v14 = vld [vmem:[#allocation2 + $0x29] sm:$0xff] }
 0xd78   :  { %v6207_v12 = vld [vmem:[#allocation2 + $0x1f] sm:$0xff]  ;;  %5968 = vst.msk [vmem:[#allocation2 + $0x38] sm:$0xff] %vm5671_vm1, %v5952_v36  ;;  %6433 = vrot.lane.b32.xlu2 %v6401_v52, %s8404_s21  ;;  %v6498_v63 = vld [vmem:[#allocation2 + $0x27] sm:$0xff]  ;;  %6142 = vrot.lane.b32.xlu0 %v6110_v15, %s8393_s28 }
 0xd79   :  { %6239 = vrot.lane.b32.xlu1 %v6207_v12, %s8405_s25  ;;  %5998 = vst.msk [vmem:[#allocation3 + $0x10] sm:$0xff] %vm5671_vm1, %v6207_v12  ;;  %v6595_v2 = vld [vmem:[#allocation2 + $0x28] sm:$0xff]  ;;  %v6304_v19 = vld [vmem:[#allocation2 + $0x20] sm:$0xff]  ;;  %v5879_v15 = vld [vmem:[%s8478_s19 + $0x58] sm:$0xff] }
 0xd7a   :  { %5999 = vst.msk [vmem:[#allocation3 + $0x20] sm:$0xff] %vm5671_vm1, %v6498_v63  ;;  %v6805_v18 = vld [vmem:[%s8483_s24] sm:$0xff] }
 0xd7b   :  { %v5924_v10 = vpop.xlane.xlu1 %5923  ;;  %6000 = vst.msk [vmem:[#allocation3 + $0x30] sm:$0xff] %vm5671_vm1, %v6499_v47 }
 0xd7c   :  { %v5956_v48 = vmul.f32 %v5924_v10, %v11975_v38  ;;  %v5918_v11 = vpop.xlane.xlu2 %5917  ;;  %v5896_v10 = vmul.f32 %v12077_v6, %v5879_v15 }
 0xd7d   :  { %v5954_v16 = vmul.f32 %v5918_v11, %v11960_v20  ;;  %v6600_v37 = vld [vmem:[#allocation2 + $0x50] sm:$0xff] }
 0xd7e   :  { %5972 = vst.msk [vmem:[#allocation2 + $0x58] sm:$0xff] %vm5671_vm1, %v5956_v48  ;;  %v6598_v8 = vld [vmem:[#allocation2 + $0x40] sm:$0xff]  ;;  %v5934_v11 = vsel %vm846_vm3, %v5896_v10, 0.0 }
 0xd7f   :  { %5970 = vst.msk [vmem:[#allocation2 + $0x48] sm:$0xff] %vm5671_vm1, %v5954_v16  ;;  %v6500_v57 = vld [vmem:[#allocation2 + $0x37] sm:$0xff]  ;;  %v12127_v56 = vld [vmem:[#allocation2 + $0x3f] sm:$0xff] }
 0xd80   :  { %6627 = vrot.lane.b32.xlu2 %v6595_v2, %s8406_s29  ;;  %6001 = vst.msk [vmem:[#allocation3 + $0x40] sm:$0xff] %vm5671_vm1, %v6500_v57  ;;  %6336 = vrot.lane.b32.xlu0 %v6304_v19, %s8408_s8  ;;  %v6693_v62 = vld [vmem:[#allocation2 + $0x31] sm:$0xff]  ;;  %v6404_v42 = vld [vmem:[#allocation2 + $0x39] sm:$0xff] }
 0xd81   :  { %6530 = vrot.lane.b32.xlu1 %v6498_v63, %s8407_s3  ;;  %6002 = vst.msk [vmem:[#allocation3 + $0x50] sm:$0xff] %vm5671_vm1, %v12127_v56  ;;  %v6597_v60 = vld [vmem:[#allocation2 + $0x38] sm:$0xff] }
 0xd84   :  { %v6046_v34 = vpop.permute.xlu2 %6045 }
 0xd85   :  { %v12133_v20 = vld [vmem:[#allocation2 + $0x57] sm:$0xff]  ;;  %6094 = vst.msk [vmem:[#allocation3] sm:$0xff] %vm6093_vm2, %v6046_v34 }
 0xd86   :  { %v12135_v38 = vld [vmem:[#allocation2 + $0x47] sm:$0xff]  ;;  %6005 = vst.msk [vmem:[#allocation3 + $0x80] sm:$0xff] %vm5671_vm1, %v12133_v20  ;;  %v12139_v27 = vld [vmem:[#allocation2 + $0x4f] sm:$0xff] }
 0xd87   :  { %6003 = vst.msk [vmem:[#allocation3 + $0x60] sm:$0xff] %vm5671_vm1, %v12135_v38  ;;  %v6695_v22 = vld [vmem:[#allocation2 + $0x41] sm:$0xff]  ;;  %v12214_v48 = vld [vmem:[#allocation2 + $0x49] sm:$0xff]  ;;  %v6697_v23 = vld [vmem:[#allocation2 + $0x51] sm:$0xff] }
 0xd88   :  { %6047 = vrot.lane.b32.xlu2 %v6304_v19, %s8397_s1  ;;  %6004 = vst.msk [vmem:[#allocation3 + $0x70] sm:$0xff] %vm5671_vm1, %v12139_v27 }
 0xd89   :  { %6724 = vrot.lane.b32.xlu1 %v6692_v14, %s8409_s14 }
 0xd90   :  { %6241 = vrot.lane.b32.xlu2 %v6498_v63, %s8405_s25 }
 0xd91   :  { %6144 = vrot.lane.b32.xlu1 %v6401_v52, %s8393_s28 }
 0xd98   :  { %6435 = vrot.lane.b32.xlu2 %v6692_v14, %s8404_s21 }
 0xd99   :  { %6338 = vrot.lane.b32.xlu1 %v6595_v2, %s8408_s8 }
 0xda0   :  { %6532 = vrot.lane.b32.xlu2 %v6499_v47, %s8407_s3 }
 0xda8   :  { %6726 = vrot.lane.b32.xlu2 %v6693_v62, %s8409_s14 }
 0xdaa   :  { %5926 = vadd.xlane.f32.xlu0 %v5925_v43  ;;  %v5937_v43 = vsel %vm846_vm3, %v5897_v13, 0.0 }
 0xdb0   :  { %6049 = vrot.lane.b32.xlu2 %v6595_v2, %s8397_s1 }
 0xdb8   :  { %6146 = vrot.lane.b32.xlu2 %v6692_v14, %s8393_s28  ;;  %v6599_v14 = vld [vmem:[#allocation2 + $0x48] sm:$0xff] }
 0xdbe   :  { %6629 = vrot.lane.b32.xlu0 %v6596_v25, %s8406_s29 }
 0xdc0   :  { %6340 = vrot.lane.b32.xlu2 %v6596_v25, %s8408_s8 }
 0xdc3   :  { %5929 = vadd.xlane.f32.xlu1 %v5928_v49 }
 0xdc6   :  { %6243 = vrot.lane.b32.xlu0 %v6499_v47, %s8405_s25 }
 0xdc8   :  { %6534 = vrot.lane.b32.xlu2 %v6500_v57, %s8407_s3 }
 0xdcb   :  { %5932 = vadd.xlane.f32.xlu1 %v5931_v50 }
 0xdce   :  { %6437 = vrot.lane.b32.xlu0 %v6693_v62, %s8404_s21 }
 0xdd0   :  { %6051 = vrot.lane.b32.xlu2 %v6596_v25, %s8397_s1  ;;  %v6806_v25 = vld [vmem:[%s8483_s24 + $0x8] sm:$0xff] }
 0xdd2   :  { %v6434_v31 = vpop.permute.xlu2 %6433 }
 0xdd6   :  { %6631 = vrot.lane.b32.xlu0 %v6597_v60, %s8406_s29 }
 0xdd8   :  { %6245 = vrot.lane.b32.xlu2 %v6500_v57, %s8405_s25 }
 0xdda   :  { %v6628_v21 = vpop.permute.xlu2 %6627 }
 0xdde   :  { %6148 = vrot.lane.b32.xlu0 %v6693_v62, %s8393_s28 }
 0xde0   :  { %6439 = vrot.lane.b32.xlu2 %v6404_v42, %s8404_s21 }
 0xde2   :  { %v6048_v3 = vpop.permute.xlu2 %6047 }
 0xde3   :  { %6095 = vst.msk [vmem:[#allocation3 + $0x10] sm:$0xff] %vm6093_vm2, %v6048_v3 }
 0xde4   :  { %6728 = vrot.lane.b32.xlu1 %v6404_v42, %s8409_s14 }
 0xde6   :  { %6342 = vrot.lane.b32.xlu0 %v6597_v60, %s8408_s8 }
 0xde8   :  { %6633 = vrot.lane.b32.xlu2 %v6598_v8, %s8406_s29 }
 0xdea   :  { %v6242_v53 = vpop.permute.xlu2 %6241  ;;  %v6143_v46 = vpop.permute.xlu0 %6142 }
 0xdeb   :  { %v6240_v0 = vpop.permute.xlu1 %6239  ;;  %6191 = vst.msk [vmem:[#allocation3] sm:$0xff] %vm6190_vm5, %v6143_v46 }
 0xdec   :  { %6536 = vrot.lane.b32.xlu1 %v12127_v56, %s8407_s3  ;;  %6288 = vst.msk [vmem:[#allocation3] sm:$0xff] %vm6287_vm6, %v6240_v0 }
 0xdf0   :  { %6053 = vrot.lane.b32.xlu2 %v6597_v60, %s8397_s1 }
 0xdf2   :  { %v6436_v51 = vpop.permute.xlu2 %6435  ;;  %v6337_v17 = vpop.permute.xlu0 %6336 }
 0xdf3   :  { %v6531_v39 = vpop.permute.xlu1 %6530  ;;  %6385 = vst.msk [vmem:[#allocation3] sm:$0xff] %vm6384_vm7, %v6337_v17 }
 0xdf4   :  { %6730 = vrot.lane.b32.xlu1 %v6695_v22, %s8409_s14  ;;  %6482 = vst.msk [vmem:[#allocation3] sm:$0xff] %vm6481_vm8, %v6434_v31 }
 0xdf5   :  { %6579 = vst.msk [vmem:[#allocation3] sm:$0xff] %vm6578_vm9, %v6531_v39  ;;  %v6807_v39 = vld [vmem:[%s8483_s24 + $0x10] sm:$0xff] }
 0xdf6   :  { %6676 = vst.msk [vmem:[#allocation3] sm:$0xff] %vm6675_vm10, %v6628_v21 }
 0xdf8   :  { %6247 = vrot.lane.b32.xlu2 %v12127_v56, %s8405_s25 }
 0xdfa   :  { %v6533_v33 = vpop.permute.xlu2 %6532 }
 0xdfb   :  { %v6725_v9 = vpop.permute.xlu1 %6724 }
 0xdfc   :  { %6773 = vst.msk [vmem:[#allocation3] sm:$0xff] %vm6772_vm11, %v6725_v9  ;;  %6150 = vrot.lane.b32.xlu1 %v6404_v42, %s8393_s28  ;;  %v5881_v42 = vld [vmem:[%s8478_s19 + $0x68] sm:$0xff] }
 0xdfd   :  { %v5898_v3 = vmul.f32 %v12077_v6, %v5881_v42  ;;  %v6810_v42 = vld [vmem:[%s8483_s24 + $0x28] sm:$0xff] }
 0xdff   :  { %v5940_v54 = vsel %vm846_vm3, %v5898_v3, 0.0 }
 0xe00   :  { %6441 = vrot.lane.b32.xlu2 %v6695_v22, %s8404_s21 }
 0xe02   :  { %v6727_v36 = vpop.permute.xlu2 %6726 }
 0xe03   :  { %v6145_v26 = vpop.permute.xlu1 %6144  ;;  %v6789_v52 = vld [vmem:[#allocation3] sm:$0xff] }
 0xe04   :  { %6192 = vst.msk [vmem:[#allocation3 + $0x10] sm:$0xff] %vm6190_vm5, %v6145_v26  ;;  %6344 = vrot.lane.b32.xlu1 %v6598_v8, %s8408_s8  ;;  %v6821_v12 = vmul.f32 %v6805_v18, %v6789_v52  ;;  %v6808_v52 = vld [vmem:[%s8483_s24 + $0x18] sm:$0xff] }
 0xe05   :  { %6289 = vst.msk [vmem:[#allocation3 + $0x10] sm:$0xff] %vm6287_vm6, %v6242_v53 }
 0xe06   :  { %8109 = vmatmul.msk.f32.vlgmr.msrb.gmra.mxu3 %vm6846_vm12, %v6821_v12 }
 0xe08   :  { %6538 = vrot.lane.b32.xlu2 %v12135_v38, %s8407_s3 }
 0xe0a   :  { %v6050_v47 = vpop.permute.xlu2 %6049 }
 0xe0b   :  { %v6339_v63 = vpop.permute.xlu1 %6338  ;;  %6096 = vst.msk [vmem:[#allocation3 + $0x20] sm:$0xff] %vm6093_vm2, %v6050_v47 }
 0xe0c   :  { %6386 = vst.msk [vmem:[#allocation3 + $0x10] sm:$0xff] %vm6384_vm7, %v6339_v63 }
 0xe0d   :  { %6483 = vst.msk [vmem:[#allocation3 + $0x10] sm:$0xff] %vm6481_vm8, %v6436_v51 }
 0xe0e   :  { %6580 = vst.msk [vmem:[#allocation3 + $0x10] sm:$0xff] %vm6578_vm9, %v6533_v33 }
 0xe10   :  { %6732 = vrot.lane.b32.xlu2 %v12214_v48, %s8409_s14  ;;  %5935 = vadd.xlane.f32.xlu0 %v5934_v11  ;;  %v5882_v11 = vld [vmem:[%s8478_s19 + $0x70] sm:$0xff] }
 0xe12   :  { %v6147_v16 = vpop.permute.xlu2 %6146 }
 0xe13   :  { %6193 = vst.msk [vmem:[#allocation3 + $0x20] sm:$0xff] %vm6190_vm5, %v6147_v16  ;;  %v5899_v16 = vmul.f32 %v12077_v6, %v5882_v11 }
 0xe18   :  { %6055 = vrot.lane.b32.xlu2 %v6598_v8, %s8397_s1 }
 0xe1a   :  { %v6341_v2 = vpop.permute.xlu2 %6340 }
 0xe1d   :  { %v5927_v57 = vpop.xlane.xlu0 %5926 }
 0xe1e   :  { %v5957_v19 = vmul.f32 %v5927_v57, %v11982_v59 }
 0xe20   :  { %6152 = vrot.lane.b32.xlu2 %v6695_v22, %s8393_s28  ;;  %5973 = vst.msk [vmem:[#allocation2 + $0x60] sm:$0xff] %vm5671_vm1, %v5957_v19  ;;  %v6601_v22 = vld [vmem:[#allocation2 + $0x58] sm:$0xff] }
 0xe22   :  { %v6535_v56 = vpop.permute.xlu2 %6534 }
 0xe24   :  { %6635 = vrot.lane.b32.xlu0 %v6599_v14, %s8406_s29 }
 0xe27   :  { %v12228_v62 = vld [vmem:[#allocation2 + $0x5f] sm:$0xff] }
 0xe28   :  { %6346 = vrot.lane.b32.xlu2 %v6599_v14, %s8408_s8  ;;  %6006 = vst.msk [vmem:[#allocation3 + $0x90] sm:$0xff] %vm5671_vm1, %v12228_v62  ;;  %v12284_v26 = vld [vmem:[#allocation2 + $0x59] sm:$0xff] }
 0xe29   :  { %v6602_v19 = vld [vmem:[#allocation2 + $0x60] sm:$0xff] }
 0xe2a   :  { %v6052_v59 = vpop.permute.xlu2 %6051 }
 0xe2b   :  { %6097 = vst.msk [vmem:[#allocation3 + $0x30] sm:$0xff] %vm6093_vm2, %v6052_v59 }
 0xe2c   :  { %6249 = vrot.lane.b32.xlu0 %v12135_v38, %s8405_s25 }
 0xe2e   :  { %5938 = vadd.xlane.f32.xlu1 %v5937_v43 }
 0xe30   :  { %v6630_v61 = vpop.permute.xlu0 %6629 }
 0xe31   :  { %6677 = vst.msk [vmem:[#allocation3 + $0x10] sm:$0xff] %vm6675_vm10, %v6630_v61 }
 0xe32   :  { %v6246_v34 = vpop.permute.xlu2 %6245  ;;  %6774 = vst.msk [vmem:[#allocation3 + $0x10] sm:$0xff] %vm6772_vm11, %v6727_v36 }
 0xe34   :  { %6443 = vrot.lane.b32.xlu0 %v12214_v48, %s8404_s21 }
 0xe36   :  { %v5930_v30 = vpop.xlane.xlu1 %5929 }
 0xe37   :  { %v5958_v44 = vmul.f32 %v5930_v30, %v11993_v45 }
 0xe38   :  { %v6244_v49 = vpop.permute.xlu0 %6243 }
 0xe39   :  { %5974 = vst.msk [vmem:[#allocation2 + $0x68] sm:$0xff] %vm5671_vm1, %v5958_v44  ;;  %v6790_v58 = vld [vmem:[#allocation3 + $0x10] sm:$0xff]  ;;  %v6809_v44 = vld [vmem:[%s8483_s24 + $0x20] sm:$0xff] }
 0xe3a   :  { %6290 = vst.msk [vmem:[#allocation3 + $0x20] sm:$0xff] %vm6287_vm6, %v6244_v49  ;;  %v6440_v38 = vpop.permute.xlu2 %6439  ;;  %v6822_v28 = vmul.f32 %v6806_v25, %v6790_v58 }
 0xe3b   :  { %6387 = vst.msk [vmem:[#allocation3 + $0x20] sm:$0xff] %vm6384_vm7, %v6341_v2 }
 0xe3c   :  { %6540 = vrot.lane.b32.xlu0 %v12139_v27, %s8407_s3  ;;  %8110 = vmatmul.msk.f32.gmra.mxu3 %vm6846_vm12, %v6822_v28 }
 0xe3e   :  { %v5933_v50 = vpop.xlane.xlu1 %5932 }
 0xe3f   :  { %v5959_v45 = vmul.f32 %v5933_v50, %v12008_v41 }
 0xe40   :  { %v12249_v31 = vld [vmem:[#allocation2 + $0x67] sm:$0xff]  ;;  %v6438_v60 = vpop.permute.xlu0 %6437 }
 0xe41   :  { %5975 = vst.msk [vmem:[#allocation2 + $0x70] sm:$0xff] %vm5671_vm1, %v5959_v45  ;;  %v6699_v59 = vld [vmem:[#allocation2 + $0x61] sm:$0xff] }
 0xe42   :  { %6007 = vst.msk [vmem:[#allocation3 + $0xa0] sm:$0xff] %vm5671_vm1, %v12249_v31  ;;  %v6634_v21 = vpop.permute.xlu2 %6633 }
 0xe43   :  { %6484 = vst.msk [vmem:[#allocation3 + $0x20] sm:$0xff] %vm6481_vm8, %v6438_v60 }
 0xe44   :  { %6581 = vst.msk [vmem:[#allocation3 + $0x20] sm:$0xff] %vm6578_vm9, %v6535_v56  ;;  %6734 = vrot.lane.b32.xlu0 %v6697_v23, %s8409_s14  ;;  %v5943_v56 = vsel %vm846_vm3, %v5899_v16, 0.0 }
 0xe47   :  { %6637 = vrot.lane.b32.xlu1 %v6600_v37, %s8406_s29 }
 0xe48   :  { %v12258_v41 = vld [vmem:[#allocation2 + $0x6f] sm:$0xff]  ;;  %v6632_v32 = vpop.permute.xlu0 %6631 }
 0xe49   :  { %6008 = vst.msk [vmem:[#allocation3 + $0xb0] sm:$0xff] %vm5671_vm1, %v12258_v41 }
 0xe4a   :  { %6678 = vst.msk [vmem:[#allocation3 + $0x20] sm:$0xff] %vm6675_vm10, %v6632_v32  ;;  %v6054_v5 = vpop.permute.xlu2 %6053 }
 0xe4b   :  { %6098 = vst.msk [vmem:[#allocation3 + $0x40] sm:$0xff] %vm6093_vm2, %v6054_v5 }
 0xe4c   :  { %6057 = vrot.lane.b32.xlu0 %v6599_v14, %s8397_s1 }
 0xe4f   :  { %6251 = vrot.lane.b32.xlu1 %v12139_v27, %s8405_s25 }
 0xe50   :  { %v6149_v8 = vpop.permute.xlu0 %6148 }
 0xe51   :  { %5941 = vadd.xlane.f32.xlu2 %v5940_v54  ;;  %6194 = vst.msk [vmem:[#allocation3 + $0x30] sm:$0xff] %vm6190_vm5, %v6149_v8 }
 0xe52   :  { %v6248_v0 = vpop.permute.xlu2 %6247  ;;  %6291 = vst.msk [vmem:[#allocation3 + $0x30] sm:$0xff] %vm6287_vm6, %v6246_v34  ;;  %v5883_v34 = vld [vmem:[%s8478_s19 + $0x78] sm:$0xff]  ;;  %s8410_s19 = smov 120  }
 0xe53   :  { %v5900_v30 = vmul.f32 %v12077_v6, %v5883_v34 }
 0xe54   :  { %6154 = vrot.lane.b32.xlu0 %v12214_v48, %s8393_s28 }
 0xe55   :  { %v5946_v50 = vsel %vm846_vm3, %v5900_v30, 0.0 }
 0xe56   :  { %v6729_v53 = vpop.permute.xlu1 %6728 }
 0xe57   :  { %6775 = vst.msk [vmem:[#allocation3 + $0x20] sm:$0xff] %vm6772_vm11, %v6729_v53  ;;  %6445 = vrot.lane.b32.xlu1 %v6697_v23, %s8404_s21 }
 0xe58   :  { %v6343_v46 = vpop.permute.xlu0 %6342 }
 0xe59   :  { %6388 = vst.msk [vmem:[#allocation3 + $0x30] sm:$0xff] %vm6384_vm7, %v6343_v46 }
 0xe5a   :  { %v6442_v27 = vpop.permute.xlu2 %6441  ;;  %6485 = vst.msk [vmem:[#allocation3 + $0x30] sm:$0xff] %vm6481_vm8, %v6440_v38 }
 0xe5c   :  { %6348 = vrot.lane.b32.xlu0 %v6600_v37, %s8408_s8 }
 0xe5e   :  { %v6537_v51 = vpop.permute.xlu1 %6536  ;;  %v6791_v17 = vld [vmem:[#allocation3 + $0x20] sm:$0xff] }
 0xe5f   :  { %6582 = vst.msk [vmem:[#allocation3 + $0x30] sm:$0xff] %vm6578_vm9, %v6537_v51  ;;  %6639 = vrot.lane.b32.xlu1 %v6601_v22, %s8406_s29  ;;  %v6823_v9 = vmul.f32 %v6807_v39, %v6791_v17  ;;  %v6604_v39 = vld [vmem:[#allocation2 + $0x70] sm:$0xff] }
 0xe60   :  { %6679 = vst.msk [vmem:[#allocation3 + $0x30] sm:$0xff] %vm6675_vm10, %v6634_v21 }
 0xe61   :  { %8111 = vmatmul.msk.f32.gmra.mxu3 %vm6846_vm12, %v6823_v9 }
 0xe62   :  { %v6539_v33 = vpop.permute.xlu2 %6538 }
 0xe66   :  { %v6731_v18 = vpop.permute.xlu1 %6730 }
 0xe67   :  { %6776 = vst.msk [vmem:[#allocation3 + $0x30] sm:$0xff] %vm6772_vm11, %v6731_v18  ;;  %6736 = vrot.lane.b32.xlu1 %v12284_v26, %s8409_s14 }
 0xe69   :  { %6542 = vrot.lane.b32.xlu2 %v12133_v20, %s8407_s3 }
 0xe6a   :  { %v6733_v36 = vpop.permute.xlu2 %6732 }
 0xe6e   :  { %v6151_v12 = vpop.permute.xlu1 %6150  ;;  %v6792_v15 = vld [vmem:[#allocation3 + $0x30] sm:$0xff] }
 0xe6f   :  { %6195 = vst.msk [vmem:[#allocation3 + $0x40] sm:$0xff] %vm6190_vm5, %v6151_v12  ;;  %6059 = vrot.lane.b32.xlu1 %v6600_v37, %s8397_s1  ;;  %v6824_v63 = vmul.f32 %v6808_v52, %v6792_v15  ;;  %v6603_v37 = vld [vmem:[#allocation2 + $0x68] sm:$0xff] }
 0xe70   :  { %6292 = vst.msk [vmem:[#allocation3 + $0x40] sm:$0xff] %vm6287_vm6, %v6248_v0 }
 0xe71   :  { %8112 = vmatmul.msk.f32.gmra.mxu3 %vm6846_vm12, %v6824_v63  ;;  %6156 = vrot.lane.b32.xlu2 %v6697_v23, %s8393_s28  ;;  %v6811_v63 = vld [vmem:[%s8483_s24 + $0x30] sm:$0xff] }
 0xe72   :  { %v6056_v47 = vpop.permute.xlu2 %6055 }
 0xe73   :  { %6099 = vst.msk [vmem:[#allocation3 + $0x50] sm:$0xff] %vm6093_vm2, %v6056_v47 }
 0xe76   :  { %v6345_v10 = vpop.permute.xlu1 %6344 }
 0xe77   :  { %6389 = vst.msk [vmem:[#allocation3 + $0x40] sm:$0xff] %vm6384_vm7, %v6345_v10  ;;  %6253 = vrot.lane.b32.xlu1 %v12133_v20, %s8405_s25  ;;  %v12311_v20 = vld [vmem:[%s8493_s6] ss:$0 sm:$0xff]  ;;  %s12855_s6 = sld [smem:[#allocation14_spill]] }
 0xe78   :  { %6486 = vst.msk [vmem:[#allocation3 + $0x40] sm:$0xff] %vm6481_vm8, %v6442_v27 }
 0xe79   :  { %6583 = vst.msk [vmem:[#allocation3 + $0x40] sm:$0xff] %vm6578_vm9, %v6539_v33  ;;  %6350 = vrot.lane.b32.xlu2 %v6601_v22, %s8408_s8 }
 0xe7a   :  { %v6153_v48 = vpop.permute.xlu2 %6152 }
 0xe7b   :  { %6196 = vst.msk [vmem:[#allocation3 + $0x50] sm:$0xff] %vm6190_vm5, %v6153_v48 }
 0xe7f   :  { %6447 = vrot.lane.b32.xlu1 %v12284_v26, %s8404_s21 }
 0xe82   :  { %v6347_v49 = vpop.permute.xlu2 %6346 }
 0xe83   :  { %v5936_v2 = vpop.xlane.xlu0 %5935 }
 0xe84   :  { %v5960_v57 = vmul.f32 %v5936_v2, %v12028_v29 }
 0xe86   :  { %5976 = vst.msk [vmem:[#allocation2 + $0x78] sm:$0xff] %vm5671_vm1, %v5960_v57  ;;  %5944 = vadd.xlane.f32.xlu0 %v5943_v56 }
 0xe87   :  { %6641 = vrot.lane.b32.xlu1 %v6602_v19, %s8406_s29 }
 0xe89   :  { %v6915_v14 = vpop.f32.mrf.mxu3 }
 0xe8a   :  { %v6916_v29 = vadd.f32 %v12311_v20, %v6915_v14 }
 0xe8c   :  { %v6965_v13 = vmax.f32 %v6916_v29, %v12318_v1 }
 0xe8d   :  { %v12324_v43 = vld [vmem:[#allocation2 + $0x77] sm:$0xff] }
 0xe8e   :  { %6981 = vst.msk [vmem:[#allocation4] sm:$0xff] %vm174_vm0, %v6965_v13  ;;  %v6605_v12 = vld [vmem:[#allocation2 + $0x78] sm:$0xff] }
 0xe8f   :  { %6738 = vrot.lane.b32.xlu1 %v6699_v59, %s8409_s14  ;;  %6009 = vst.msk [vmem:[#allocation3 + $0xc0] sm:$0xff] %vm5671_vm1, %v12324_v43 }
 0xe96   :  { %v6636_v61 = vpop.permute.xlu0 %6635 }
 0xe97   :  { %6061 = vrot.lane.b32.xlu1 %v6601_v22, %s8397_s1  ;;  %6680 = vst.msk [vmem:[#allocation3 + $0x40] sm:$0xff] %vm6675_vm10, %v6636_v61 }
 0xe98   :  { %6777 = vst.msk [vmem:[#allocation3 + $0x40] sm:$0xff] %vm6772_vm11, %v6733_v36  ;;  %v6701_v36 = vld [vmem:[#allocation2 + $0x71] sm:$0xff] }
 0xe9a   :  { %6544 = vrot.lane.b32.xlu0 %v12228_v62, %s8407_s3 }
 0xe9e   :  { %v6250_v25 = vpop.permute.xlu0 %6249 }
 0xe9f   :  { %6255 = vrot.lane.b32.xlu1 %v12228_v62, %s8405_s25  ;;  %6293 = vst.msk [vmem:[#allocation3 + $0x50] sm:$0xff] %vm6287_vm6, %v6250_v25  ;;  %v6793_v58 = vld [vmem:[#allocation3 + $0x40] sm:$0xff] }
 0xea0   :  { %6390 = vst.msk [vmem:[#allocation3 + $0x50] sm:$0xff] %vm6384_vm7, %v6347_v49  ;;  %v6825_v45 = vmul.f32 %v6809_v44, %v6793_v58 }
 0xea1   :  { %v5939_v38 = vpop.xlane.xlu1 %5938 }
 0xea2   :  { %v5961_v28 = vmul.f32 %v5939_v38, %v12033_v40  ;;  %5947 = vadd.xlane.f32.xlu2 %v5946_v50  ;;  %6158 = vrot.lane.b32.xlu0 %v12284_v26, %s8393_s28  ;;  %v6700_v40 = vld [vmem:[#allocation2 + $0x69] sm:$0xff] }
 0xea3   :  { %8113 = vmatmul.msk.f32.gmra.mxu3 %vm6846_vm12, %v6825_v45 }
 0xea4   :  { %5977 = vst.msk [vmem:[#allocation2 + $0x80] sm:$0xff] %vm5671_vm1, %v5961_v28 }
 0xea6   :  { %v6444_v6 = vpop.permute.xlu0 %6443 }
 0xea7   :  { %6449 = vrot.lane.b32.xlu1 %v6699_v59, %s8404_s21  ;;  %6487 = vst.msk [vmem:[#allocation3 + $0x50] sm:$0xff] %vm6481_vm8, %v6444_v6 }
 0xeaa   :  { %6352 = vrot.lane.b32.xlu0 %v6602_v19, %s8408_s8 }
 0xeab   :  { %v12348_v62 = vld [vmem:[#allocation2 + $0x7f] sm:$0xff] }
 0xeac   :  { %6010 = vst.msk [vmem:[#allocation3 + $0xd0] sm:$0xff] %vm5671_vm1, %v12348_v62  ;;  %v6702_v15 = vld [vmem:[#allocation2 + $0x79] sm:$0xff] }
 0xead   :  { %v6606_v34 = vld [vmem:[#allocation2 + $0x80] sm:$0xff] }
 0xeae   :  { %v6541_v60 = vpop.permute.xlu0 %6540 }
 0xeaf   :  { %6740 = vrot.lane.b32.xlu1 %v6700_v40, %s8409_s14  ;;  %6584 = vst.msk [vmem:[#allocation3 + $0x50] sm:$0xff] %vm6578_vm9, %v6541_v60  ;;  %v6812_v60 = vld [vmem:[%s8483_s24 + $0x38] sm:$0xff] }
 0xeb2   :  { %6546 = vrot.lane.b32.xlu0 %v12249_v31, %s8407_s3 }
 0xeb6   :  { %v6735_v21 = vpop.permute.xlu0 %6734 }
 0xeb7   :  { %6160 = vrot.lane.b32.xlu1 %v6699_v59, %s8393_s28 }
 0xeb9   :  { %v6638_v23 = vpop.permute.xlu1 %6637 }
 0xeba   :  { %6681 = vst.msk [vmem:[#allocation3 + $0x50] sm:$0xff] %vm6675_vm10, %v6638_v23  ;;  %6643 = vrot.lane.b32.xlu2 %v6603_v37, %s8406_s29  ;;  %6063 = vrot.lane.b32.xlu0 %v6602_v19, %s8397_s1 }
 0xebb   :  { %6778 = vst.msk [vmem:[#allocation3 + $0x50] sm:$0xff] %vm6772_vm11, %v6735_v21 }
 0xebe   :  { %v6058_v32 = vpop.permute.xlu0 %6057 }
 0xebf   :  { %6354 = vrot.lane.b32.xlu1 %v6603_v37, %s8408_s8  ;;  %6100 = vst.msk [vmem:[#allocation3 + $0x60] sm:$0xff] %vm6093_vm2, %v6058_v32  ;;  %v6918_v5 = vpop.f32.mrf.mxu3 }
 0xec0   :  { %v6919_v54 = vadd.f32 %v12311_v20, %v6918_v5 }
 0xec1   :  { %v6252_v3 = vpop.permute.xlu1 %6251 }
 0xec2   :  { %v6794_v8 = vld [vmem:[#allocation3 + $0x50] sm:$0xff]  ;;  %6548 = vrot.lane.b32.xlu2 %v12258_v41, %s8407_s3  ;;  %v6966_v53 = vmax.f32 %v6919_v54, %v12318_v1  ;;  %6257 = vrot.lane.b32.xlu0 %v12249_v31, %s8405_s25  ;;  %v6997_v31 = vld [vmem:[#allocation4] sm:$0xff] }
 0xec3   :  { %v6826_v0 = vmul.f32 %v6810_v42, %v6794_v8 }
 0xec4   :  { %v5942_v46 = vpop.xlane.xlu2 %5941  ;;  %6982 = vst.msk [vmem:[#allocation4 + $0x8] sm:$0xff] %vm174_vm0, %v6966_v53 }
 0xec5   :  { %8114 = vmatmul.msk.f32.gmra.mxu3 %vm6846_vm12, %v6826_v0  ;;  %v5962_v27 = vmul.f32 %v5942_v46, %v12038_v4 }
 0xec6   :  { %v6155_v51 = vpop.permute.xlu0 %6154 }
 0xec7   :  { %6645 = vrot.lane.b32.xlu1 %v6604_v39, %s8406_s29  ;;  %5978 = vst.msk [vmem:[#allocation2 + $0x88] sm:$0xff] %vm5671_vm1, %v5962_v27 }
 0xec8   :  { %6197 = vst.msk [vmem:[#allocation3 + $0x60] sm:$0xff] %vm6190_vm5, %v6155_v51 }
 0xec9   :  { %v6446_v22 = vpop.permute.xlu1 %6445  ;;  %6294 = vst.msk [vmem:[#allocation3 + $0x60] sm:$0xff] %vm6287_vm6, %v6252_v3 }
 0xeca   :  { %6065 = vrot.lane.b32.xlu2 %v6603_v37, %s8397_s1  ;;  %6451 = vrot.lane.b32.xlu0 %v6700_v40, %s8404_s21 }
 0xecb   :  { %v6998_v17 = vld [vmem:[#allocation4 + $0x8] sm:$0xff] }
 0xecc   :  { %v6999_v9 = vmax.f32 %v6997_v31, %v6998_v17  ;;  %v6543_v18 = vpop.permute.xlu2 %6542  ;;  %v6813_v31 = vld [vmem:[%s8483_s24 + $0x40] sm:$0xff] }
 0xece   :  { %7000 = vst.msk [vmem:[#allocation5] sm:$0xff] %vm174_vm0, %v6999_v9  ;;  %v6349_v4 = vpop.permute.xlu0 %6348  ;;  %v12384_v26 = vld [vmem:[#allocation2 + $0x87] sm:$0xff] }
 0xecf   :  { %6162 = vrot.lane.b32.xlu1 %v6700_v40, %s8393_s28  ;;  %6391 = vst.msk [vmem:[#allocation3 + $0x60] sm:$0xff] %vm6384_vm7, %v6349_v4  ;;  %v6703_v14 = vld [vmem:[#allocation2 + $0x81] sm:$0xff] }
 0xed0   :  { %6488 = vst.msk [vmem:[#allocation3 + $0x60] sm:$0xff] %vm6481_vm8, %v6446_v22  ;;  %v6607_v28 = vld [vmem:[#allocation2 + $0x88] sm:$0xff] }
 0xed1   :  { %v6640_v33 = vpop.permute.xlu1 %6639  ;;  %6585 = vst.msk [vmem:[#allocation3 + $0x60] sm:$0xff] %vm6578_vm9, %v6543_v18 }
 0xed2   :  { %6356 = vrot.lane.b32.xlu2 %v6604_v39, %s8408_s8  ;;  %6682 = vst.msk [vmem:[#allocation3 + $0x60] sm:$0xff] %vm6675_vm10, %v6640_v33  ;;  %6742 = vrot.lane.b32.xlu0 %v6701_v36, %s8409_s14 }
 0xed3   :  { %6011 = vst.msk [vmem:[#allocation3 + $0xe0] sm:$0xff] %vm5671_vm1, %v12384_v26 }
 0xed4   :  { %v6157_v47 = vpop.permute.xlu2 %6156 }
 0xed7   :  { %6453 = vrot.lane.b32.xlu1 %v6701_v36, %s8404_s21 }
 0xed9   :  { %v6737_v52 = vpop.permute.xlu1 %6736 }
 0xeda   :  { %6779 = vst.msk [vmem:[#allocation3 + $0x60] sm:$0xff] %vm6772_vm11, %v6737_v52  ;;  %6647 = vrot.lane.b32.xlu2 %v6605_v12, %s8406_s29  ;;  %6259 = vrot.lane.b32.xlu0 %v12258_v41, %s8405_s25 }
 0xedc   :  { %v6351_v19 = vpop.permute.xlu2 %6350 }
 0xedf   :  { %6744 = vrot.lane.b32.xlu1 %v6702_v15, %s8409_s14 }
 0xee1   :  { %v6060_v10 = vpop.permute.xlu1 %6059  ;;  %v6795_v48 = vld [vmem:[#allocation3 + $0x60] sm:$0xff] }
 0xee2   :  { %6101 = vst.msk [vmem:[#allocation3 + $0x70] sm:$0xff] %vm6093_vm2, %v6060_v10  ;;  %v6827_v11 = vmul.f32 %v6811_v63, %v6795_v48  ;;  %6164 = vrot.lane.b32.xlu2 %v6701_v36, %s8393_s28  ;;  %6550 = vrot.lane.b32.xlu0 %v12324_v43, %s8407_s3 }
 0xee3   :  { %6198 = vst.msk [vmem:[#allocation3 + $0x70] sm:$0xff] %vm6190_vm5, %v6157_v47 }
 0xee4   :  { %v6921_v16 = vpop.f32.mrf.mxu3  ;;  %8115 = vmatmul.msk.f32.gmra.mxu3 %vm6846_vm12, %v6827_v11 }
 0xee5   :  { %v6922_v41 = vadd.f32 %v12311_v20, %v6921_v16 }
 0xee7   :  { %v6967_v2 = vmax.f32 %v6922_v41, %v12318_v1  ;;  %6261 = vrot.lane.b32.xlu1 %v12324_v43, %s8405_s25 }
 0xee9   :  { %6983 = vst.msk [vmem:[#allocation4 + $0x10] sm:$0xff] %vm174_vm0, %v6967_v2  ;;  %v6254_v57 = vpop.permute.xlu1 %6253 }
 0xeea   :  { %6295 = vst.msk [vmem:[#allocation3 + $0x70] sm:$0xff] %vm6287_vm6, %v6254_v57  ;;  %6455 = vrot.lane.b32.xlu2 %v6702_v15, %s8404_s21  ;;  %6067 = vrot.lane.b32.xlu0 %v6604_v39, %s8397_s1  ;;  %v6610_v57 = vld [vmem:[#allocation2 + $0xa0] sm:$0xff] }
 0xeeb   :  { %6392 = vst.msk [vmem:[#allocation3 + $0x70] sm:$0xff] %vm6384_vm7, %v6351_v19 }
 0xeef   :  { %6552 = vrot.lane.b32.xlu1 %v12348_v62, %s8407_s3 }
 0xef0   :  { %v7001_v44 = vld [vmem:[#allocation4 + $0x10] sm:$0xff] }
 0xef1   :  { %v6448_v56 = vpop.permute.xlu1 %6447 }
 0xef2   :  { %6489 = vst.msk [vmem:[#allocation3 + $0x70] sm:$0xff] %vm6481_vm8, %v6448_v56  ;;  %6746 = vrot.lane.b32.xlu2 %v6703_v14, %s8409_s14  ;;  %6358 = vrot.lane.b32.xlu0 %v6605_v12, %s8408_s8 }
 0xef4   :  { %v6924_v29 = vpop.f32.mrf.mxu3 }
 0xef5   :  { %v6925_v13 = vadd.f32 %v12311_v20, %v6924_v29 }
 0xef7   :  { %v6968_v59 = vmax.f32 %v6925_v13, %v12318_v1  ;;  %6069 = vrot.lane.b32.xlu1 %v6605_v12, %s8397_s1  ;;  %v6814_v13 = vld [vmem:[%s8483_s24 + $0x48] sm:$0xff] }
 0xef9   :  { %6984 = vst.msk [vmem:[#allocation4 + $0x18] sm:$0xff] %vm174_vm0, %v6968_v59  ;;  %v6642_v43 = vpop.permute.xlu1 %6641  ;;  %v5945_v61 = vpop.xlane.xlu0 %5944 }
 0xefa   :  { %6263 = vrot.lane.b32.xlu2 %v12348_v62, %s8405_s25  ;;  %v5963_v30 = vmul.f32 %v5945_v61, %v12043_v35  ;;  %6649 = vrot.lane.b32.xlu0 %v6606_v34, %s8406_s29 }
 0xefc   :  { %5979 = vst.msk [vmem:[#allocation2 + $0x90] sm:$0xff] %vm5671_vm1, %v5963_v30 }
 0xeff   :  { %6360 = vrot.lane.b32.xlu1 %v6606_v34, %s8408_s8 }
 0xf00   :  { %v7002_v25 = vld [vmem:[#allocation4 + $0x18] sm:$0xff] }
 0xf01   :  { %v7003_v49 = vmax.f32 %v7001_v44, %v7002_v25  ;;  %v6739_v38 = vpop.permute.xlu1 %6738  ;;  %v6707_v44 = vld [vmem:[#allocation2 + $0xa1] sm:$0xff] }
 0xf02   :  { %6554 = vrot.lane.b32.xlu2 %v12384_v26, %s8407_s3  ;;  %6166 = vrot.lane.b32.xlu0 %v6702_v15, %s8393_s28 }
 0xf03   :  { %7004 = vst.msk [vmem:[#allocation5 + $0x8] sm:$0xff] %vm174_vm0, %v7003_v49  ;;  %v6511_v58 = vld [vmem:[#allocation2 + $0x8f] sm:$0xff] }
 0xf04   :  { %6012 = vst.msk [vmem:[#allocation3 + $0xf0] sm:$0xff] %vm5671_vm1, %v6511_v58  ;;  %v6704_v6 = vld [vmem:[#allocation2 + $0x89] sm:$0xff] }
 0xf05   :  { %v6608_v42 = vld [vmem:[#allocation2 + $0x90] sm:$0xff] }
 0xf07   :  { %6651 = vrot.lane.b32.xlu1 %v6607_v28, %s8406_s29 }
 0xf09   :  { %v6062_v35 = vpop.permute.xlu1 %6061 }
 0xf0a   :  { %6102 = vst.msk [vmem:[#allocation3 + $0x80] sm:$0xff] %vm6093_vm2, %v6062_v35  ;;  %6071 = vrot.lane.b32.xlu2 %v6606_v34, %s8397_s1  ;;  %6457 = vrot.lane.b32.xlu0 %v6703_v14, %s8404_s21  ;;  %v7029_v16 = vld [vmem:[#allocation5] ss:$2 sm:$0xff]  ;;  %v7033_v41 = vld [vmem:[#allocation5 + $0x1] ss:$2 sm:$0xff] }
 0xf0c   :  { %v6545_v50 = vpop.permute.xlu0 %6544 }
 0xf0d   :  { %6586 = vst.msk [vmem:[#allocation3 + $0x70] sm:$0xff] %vm6578_vm9, %v6545_v50 }
 0xf0e   :  { %6683 = vst.msk [vmem:[#allocation3 + $0x70] sm:$0xff] %vm6675_vm10, %v6642_v43 }
 0xf0f   :  { %6168 = vrot.lane.b32.xlu1 %v6703_v14, %s8393_s28  ;;  %6780 = vst.msk [vmem:[#allocation3 + $0x70] sm:$0xff] %vm6772_vm11, %v6739_v38  ;;  %v12491_v14 = vmax.f32 %v7029_v16, %v7033_v41  ;;  %v6818_v16 = vld [vmem:[%s8483_s24 + $0x68] sm:$0xff] }
 0xf11   :  { %v6256_v45 = vpop.permute.xlu1 %6255 }
 0xf12   :  { %6362 = vrot.lane.b32.xlu2 %v6607_v28, %s8408_s8  ;;  %6748 = vrot.lane.b32.xlu0 %v6704_v6, %s8409_s14 }
 0xf14   :  { %v6159_v62 = vpop.permute.xlu0 %6158 }
 0xf15   :  { %v5948_v40 = vpop.xlane.xlu2 %5947  ;;  %6199 = vst.msk [vmem:[#allocation3 + $0x80] sm:$0xff] %vm6190_vm5, %v6159_v62 }
 0xf16   :  { %v5964_v21 = vmul.f32 %v5948_v40, %v12047_v55  ;;  %6296 = vst.msk [vmem:[#allocation3 + $0x80] sm:$0xff] %vm6287_vm6, %v6256_v45  ;;  %v6796_v23 = vld [vmem:[#allocation3 + $0x70] sm:$0xff] }
 0xf17   :  { %6459 = vrot.lane.b32.xlu1 %v6704_v6, %s8404_s21  ;;  %v6828_v32 = vmul.f32 %v6812_v60, %v6796_v23 }
 0xf18   :  { %5980 = vst.msk [vmem:[#allocation2 + $0x98] sm:$0xff] %vm5671_vm1, %v5964_v21  ;;  %vm7241_vm1 = vcmask 261312  }
 0xf19   :  { %v6450_v37 = vpop.permute.xlu1 %6449  ;;  %8116 = vmatmul.msk.f32.gmra.mxu3 %vm6846_vm12, %v6828_v32 }
 0xf1a   :  { %6653 = vrot.lane.b32.xlu2 %v6608_v42, %s8406_s29  ;;  %6265 = vrot.lane.b32.xlu0 %v12384_v26, %s8405_s25 }
 0xf1c   :  { %v6353_v5 = vpop.permute.xlu0 %6352 }
 0xf1d   :  { %v6644_v3 = vpop.permute.xlu2 %6643  ;;  %6393 = vst.msk [vmem:[#allocation3 + $0x80] sm:$0xff] %vm6384_vm7, %v6353_v5 }
 0xf1e   :  { %6490 = vst.msk [vmem:[#allocation3 + $0x80] sm:$0xff] %vm6481_vm8, %v6450_v37 }
 0xf1f   :  { %v6705_v55 = vld [vmem:[#allocation2 + $0x91] sm:$0xff]  ;;  %v6706_v18 = vld [vmem:[#allocation2 + $0x99] sm:$0xff] }
 0xf20   :  { %6750 = vrot.lane.b32.xlu1 %v6705_v55, %s8409_s14  ;;  %v6512_v17 = vld [vmem:[#allocation2 + $0x97] sm:$0xff]  ;;  %v6513_v10 = vld [vmem:[#allocation2 + $0x9f] sm:$0xff] }
 0xf21   :  { %v6741_v54 = vpop.permute.xlu1 %6740  ;;  %v6609_v12 = vld [vmem:[#allocation2 + $0x98] sm:$0xff] }
 0xf22   :  { %6170 = vrot.lane.b32.xlu2 %v6704_v6, %s8393_s28  ;;  %6556 = vrot.lane.b32.xlu0 %v6511_v58, %s8407_s3  ;;  %v6815_v6 = vld [vmem:[%s8483_s24 + $0x50] sm:$0xff] }
 0xf24   :  { %v6547_v8 = vpop.permute.xlu0 %6546 }
 0xf25   :  { %v6549_v0 = vpop.permute.xlu2 %6548  ;;  %6587 = vst.msk [vmem:[#allocation3 + $0x80] sm:$0xff] %vm6578_vm9, %v6547_v8  ;;  %v6816_v8 = vld [vmem:[%s8483_s24 + $0x58] sm:$0xff] }
 0xf26   :  { %v6927_v53 = vpop.f32.mrf.mxu3  ;;  %6684 = vst.msk [vmem:[#allocation3 + $0x80] sm:$0xff] %vm6675_vm10, %v6644_v3 }
 0xf27   :  { %v6928_v46 = vadd.f32 %v12311_v20, %v6927_v53  ;;  %6781 = vst.msk [vmem:[#allocation3 + $0x80] sm:$0xff] %vm6772_vm11, %v6741_v54 }
 0xf28   :  { %6267 = vrot.lane.b32.xlu1 %v6511_v58, %s8405_s25 }
 0xf29   :  { %v6161_v27 = vpop.permute.xlu1 %6160  ;;  %v6969_v39 = vmax.f32 %v6928_v46, %v12318_v1 }
 0xf2a   :  { %6461 = vrot.lane.b32.xlu2 %v6705_v55, %s8404_s21  ;;  %6073 = vrot.lane.b32.xlu0 %v6607_v28, %s8397_s1 }
 0xf2b   :  { %6985 = vst.msk [vmem:[#allocation4 + $0x20] sm:$0xff] %vm174_vm0, %v6969_v39 }
 0xf2c   :  { %v6064_v51 = vpop.permute.xlu0 %6063 }
 0xf2d   :  { %v6066_v22 = vpop.permute.xlu2 %6065  ;;  %6103 = vst.msk [vmem:[#allocation3 + $0x90] sm:$0xff] %vm6093_vm2, %v6064_v51 }
 0xf2e   :  { %6200 = vst.msk [vmem:[#allocation3 + $0x90] sm:$0xff] %vm6190_vm5, %v6161_v27  ;;  %v6797_v9 = vld [vmem:[#allocation3 + $0x80] sm:$0xff] }
 0xf2f   :  { %6104 = vst.msk [vmem:[#allocation3 + $0xa0] sm:$0xff] %vm6093_vm2, %v6066_v22  ;;  %v6829_v33 = vmul.f32 %v6813_v31, %v6797_v9 }
 0xf30   :  { %6558 = vrot.lane.b32.xlu1 %v6512_v17, %s8407_s3 }
 0xf31   :  { %v6355_v4 = vpop.permute.xlu1 %6354  ;;  %8117 = vmatmul.msk.f32.gmra.mxu3 %vm6846_vm12, %v6829_v33  ;;  %v6817_v33 = vld [vmem:[%s8483_s24 + $0x60] sm:$0xff] }
 0xf32   :  { %6752 = vrot.lane.b32.xlu2 %v6706_v18, %s8409_s14  ;;  %6364 = vrot.lane.b32.xlu0 %v6608_v42, %s8408_s8  ;;  %v7005_v25 = vld [vmem:[#allocation4 + $0x20] sm:$0xff] }
 0xf34   :  { %v6258_v26 = vpop.permute.xlu0 %6257 }
 0xf35   :  { %v6357_v36 = vpop.permute.xlu2 %6356  ;;  %6297 = vst.msk [vmem:[#allocation3 + $0x90] sm:$0xff] %vm6287_vm6, %v6258_v26 }
 0xf36   :  { %6394 = vst.msk [vmem:[#allocation3 + $0x90] sm:$0xff] %vm6384_vm7, %v6355_v4 }
 0xf38   :  { %6075 = vrot.lane.b32.xlu1 %v6608_v42, %s8397_s1  ;;  %s12861_s1 = sld [smem:[#allocation20_spill]] }
 0xf39   :  { %v6646_v52 = vpop.permute.xlu1 %6645 }
 0xf3a   :  { %6269 = vrot.lane.b32.xlu2 %v6512_v17, %s8405_s25  ;;  %6655 = vrot.lane.b32.xlu0 %v6609_v12, %s8406_s29  ;;  %s12866_s25 = sld [smem:[#allocation24_spill]] }
 0xf3c   :  { %v6452_v15 = vpop.permute.xlu0 %6451 }
 0xf3d   :  { %v6648_v63 = vpop.permute.xlu2 %6647  ;;  %6491 = vst.msk [vmem:[#allocation3 + $0x90] sm:$0xff] %vm6481_vm8, %v6452_v15 }
 0xf3e   :  { %6588 = vst.msk [vmem:[#allocation3 + $0x90] sm:$0xff] %vm6578_vm9, %v6549_v0 }
 0xf3f   :  { %6685 = vst.msk [vmem:[#allocation3 + $0x90] sm:$0xff] %vm6675_vm10, %v6646_v52 }
 0xf40   :  { %6366 = vrot.lane.b32.xlu1 %v6609_v12, %s8408_s8  ;;  %v7061_v12 = vld [vmem:[%s12853_s30] sm:$0xff]  ;;  %s12872_s30 = sld [smem:[#allocation30_spill]] }
 0xf41   :  { %v6163_v47 = vpop.permute.xlu1 %6162  ;;  %7089 = vmatpush.msra.mxu2 %v7061_v12 }
 0xf42   :  { %6201 = vst.msk [vmem:[#allocation3 + $0xa0] sm:$0xff] %vm6190_vm5, %v6163_v47  ;;  %6560 = vrot.lane.b32.xlu2 %v6513_v10, %s8407_s3  ;;  %6172 = vrot.lane.b32.xlu0 %v6705_v55, %s8393_s28 }
 0xf44   :  { %v6743_v48 = vpop.permute.xlu0 %6742 }
 0xf45   :  { %v6165_v11 = vpop.permute.xlu2 %6164  ;;  %6782 = vst.msk [vmem:[#allocation3 + $0x90] sm:$0xff] %vm6772_vm11, %v6743_v48 }
 0xf48   :  { %v6930_v2 = vpop.f32.mrf.mxu3  ;;  %6657 = vrot.lane.b32.xlu1 %v6610_v57, %s8406_s29  ;;  %s12867_s29 = sld [smem:[#allocation27_spill]] }
 0xf49   :  { %v6931_v19 = vadd.f32 %v12311_v20, %v6930_v2  ;;  %v6454_v56 = vpop.permute.xlu1 %6453 }
 0xf4a   :  { %7045 = vrot.lane.b32.xlu2 %v12491_v14, %s8410_s19  ;;  %6463 = vrot.lane.b32.xlu0 %v6706_v18, %s8404_s21  ;;  %s12865_s21 = sld [smem:[#allocation23_spill]] }
 0xf4b   :  { %v6970_v29 = vmax.f32 %v6931_v19, %v12318_v1 }
 0xf4c   :  { %v6260_v59 = vpop.permute.xlu0 %6259  ;;  %v6798_v61 = vld [vmem:[#allocation3 + $0x90] sm:$0xff] }
 0xf4d   :  { %6986 = vst.msk [vmem:[#allocation4 + $0x28] sm:$0xff] %vm174_vm0, %v6970_v29  ;;  %v6456_v43 = vpop.permute.xlu2 %6455  ;;  %v6830_v34 = vmul.f32 %v6814_v13, %v6798_v61 }
 0xf4e   :  { %6298 = vst.msk [vmem:[#allocation3 + $0xa0] sm:$0xff] %vm6287_vm6, %v6260_v59 }
 0xf4f   :  { %6395 = vst.msk [vmem:[#allocation3 + $0xa0] sm:$0xff] %vm6384_vm7, %v6357_v36  ;;  %8118 = vmatmul.msk.f32.gmra.mxu3 %vm6846_vm12, %v6830_v34 }
 0xf50   :  { %6492 = vst.msk [vmem:[#allocation3 + $0xa0] sm:$0xff] %vm6481_vm8, %v6454_v56 }
 0xf51   :  { %v6745_v30 = vpop.permute.xlu1 %6744 }
 0xf52   :  { %6754 = vrot.lane.b32.xlu0 %v6707_v44, %s8409_s14 }
 0xf54   :  { %v7006_v49 = vld [vmem:[#allocation4 + $0x28] sm:$0xff]  ;;  %v6551_v58 = vpop.permute.xlu0 %6550 }
 0xf55   :  { %v7007_v38 = vmax.f32 %v7005_v25, %v7006_v49  ;;  %v6747_v28 = vpop.permute.xlu2 %6746  ;;  %6589 = vst.msk [vmem:[#allocation3 + $0xa0] sm:$0xff] %vm6578_vm9, %v6551_v58 }
 0xf56   :  { %6686 = vst.msk [vmem:[#allocation3 + $0xa0] sm:$0xff] %vm6675_vm10, %v6648_v63 }
 0xf57   :  { %7008 = vst.msk [vmem:[#allocation5 + $0x10] sm:$0xff] %vm174_vm0, %v7007_v38 }
 0xf58   :  { %6783 = vst.msk [vmem:[#allocation3 + $0xa0] sm:$0xff] %vm6772_vm11, %v6745_v30 }
 0xf59   :  { %v6262_v35 = vpop.permute.xlu1 %6261 }
 0xf5c   :  { %v6068_v50 = vpop.permute.xlu0 %6067 }
 0xf5d   :  { %v6264_v45 = vpop.permute.xlu2 %6263  ;;  %6105 = vst.msk [vmem:[#allocation3 + $0xb0] sm:$0xff] %vm6093_vm2, %v6068_v50  ;;  %v6819_v50 = vld [vmem:[%s8483_s24 + $0x70] sm:$0xff] }
 0xf5e   :  { %6202 = vst.msk [vmem:[#allocation3 + $0xb0] sm:$0xff] %vm6190_vm5, %v6165_v11 }
 0xf5f   :  { %6299 = vst.msk [vmem:[#allocation3 + $0xb0] sm:$0xff] %vm6287_vm6, %v6262_v35  ;;  %v6799_v40 = vld [vmem:[#allocation3 + $0xa0] sm:$0xff] }
 0xf60   :  { %v6831_v60 = vmul.f32 %v6815_v6, %v6799_v40 }
 0xf61   :  { %v6553_v62 = vpop.permute.xlu1 %6552 }
 0xf62   :  { %8119 = vmatmul.msk.f32.gmra.mxu3 %vm6846_vm12, %v6831_v60 }
 0xf64   :  { %v6359_v21 = vpop.permute.xlu0 %6358 }
 0xf65   :  { %v6555_v23 = vpop.permute.xlu2 %6554  ;;  %6396 = vst.msk [vmem:[#allocation3 + $0xb0] sm:$0xff] %vm6384_vm7, %v6359_v21 }
 0xf66   :  { %6493 = vst.msk [vmem:[#allocation3 + $0xb0] sm:$0xff] %vm6481_vm8, %v6456_v43 }
 0xf67   :  { %v6933_v37 = vpop.f32.mrf.mxu3  ;;  %6590 = vst.msk [vmem:[#allocation3 + $0xb0] sm:$0xff] %vm6578_vm9, %v6553_v62 }
 0xf68   :  { %v6934_v32 = vadd.f32 %v12311_v20, %v6933_v37 }
 0xf69   :  { %v6070_v42 = vpop.permute.xlu1 %6069 }
 0xf6a   :  { %v6971_v5 = vmax.f32 %v6934_v32, %v12318_v1  ;;  %6106 = vst.msk [vmem:[#allocation3 + $0xc0] sm:$0xff] %vm6093_vm2, %v6070_v42  ;;  %v6820_v32 = vld [vmem:[%s8483_s24 + $0x78] sm:$0xff]  ;;  %s12854_s24 = sld [smem:[#allocation12_spill]] }
 0xf6c   :  { %6987 = vst.msk [vmem:[#allocation4 + $0x30] sm:$0xff] %vm174_vm0, %v6971_v5  ;;  %v6650_v3 = vpop.permute.xlu0 %6649 }
 0xf6d   :  { %v6072_v55 = vpop.permute.xlu2 %6071  ;;  %6687 = vst.msk [vmem:[#allocation3 + $0xb0] sm:$0xff] %vm6675_vm10, %v6650_v3 }
 0xf6e   :  { %6784 = vst.msk [vmem:[#allocation3 + $0xb0] sm:$0xff] %vm6772_vm11, %v6747_v28 }
 0xf6f   :  { %6107 = vst.msk [vmem:[#allocation3 + $0xd0] sm:$0xff] %vm6093_vm2, %v6072_v55 }
 0xf71   :  { %v6361_v54 = vpop.permute.xlu1 %6360 }
 0xf73   :  { %v7009_v43 = vld [vmem:[#allocation4 + $0x30] sm:$0xff] }
 0xf74   :  { %v6167_v0 = vpop.permute.xlu0 %6166 }
 0xf75   :  { %v6363_v53 = vpop.permute.xlu2 %6362  ;;  %6203 = vst.msk [vmem:[#allocation3 + $0xc0] sm:$0xff] %vm6190_vm5, %v6167_v0  ;;  %v6800_v46 = vld [vmem:[#allocation3 + $0xb0] sm:$0xff] }
 0xf76   :  { %6300 = vst.msk [vmem:[#allocation3 + $0xc0] sm:$0xff] %vm6287_vm6, %v6264_v45  ;;  %v6832_v27 = vmul.f32 %v6816_v8, %v6800_v46 }
 0xf77   :  { %6397 = vst.msk [vmem:[#allocation3 + $0xc0] sm:$0xff] %vm6384_vm7, %v6361_v54 }
 0xf78   :  { %8120 = vmatmul.msk.f32.gmra.mxu3 %vm6846_vm12, %v6832_v27 }
 0xf79   :  { %v6652_v39 = vpop.permute.xlu1 %6651 }
 0xf7c   :  { %v6458_v51 = vpop.permute.xlu0 %6457 }
 0xf7d   :  { %v6654_v22 = vpop.permute.xlu2 %6653  ;;  %6494 = vst.msk [vmem:[#allocation3 + $0xc0] sm:$0xff] %vm6481_vm8, %v6458_v51 }
 0xf7e   :  { %6591 = vst.msk [vmem:[#allocation3 + $0xc0] sm:$0xff] %vm6578_vm9, %v6555_v23 }
 0xf7f   :  { %6688 = vst.msk [vmem:[#allocation3 + $0xc0] sm:$0xff] %vm6675_vm10, %v6652_v39 }
 0xf81   :  { %v6169_v31 = vpop.permute.xlu1 %6168 }
 0xf82   :  { %6204 = vst.msk [vmem:[#allocation3 + $0xd0] sm:$0xff] %vm6190_vm5, %v6169_v31 }
 0xf84   :  { %v6749_v17 = vpop.permute.xlu0 %6748 }
 0xf85   :  { %v6171_v9 = vpop.permute.xlu2 %6170  ;;  %6785 = vst.msk [vmem:[#allocation3 + $0xc0] sm:$0xff] %vm6772_vm11, %v6749_v17 }
 0xf89   :  { %v6460_v4 = vpop.permute.xlu1 %6459 }
 0xf8c   :  { %v6266_v18 = vpop.permute.xlu0 %6265  ;;  %v6801_v36 = vld [vmem:[#allocation3 + $0xc0] sm:$0xff] }
 0xf8d   :  { %v6462_v26 = vpop.permute.xlu2 %6461  ;;  %6301 = vst.msk [vmem:[#allocation3 + $0xd0] sm:$0xff] %vm6287_vm6, %v6266_v18  ;;  %v6833_v52 = vmul.f32 %v6817_v33, %v6801_v36 }
 0xf8e   :  { %6398 = vst.msk [vmem:[#allocation3 + $0xd0] sm:$0xff] %vm6384_vm7, %v6363_v53 }
 0xf8f   :  { %6495 = vst.msk [vmem:[#allocation3 + $0xd0] sm:$0xff] %vm6481_vm8, %v6460_v4  ;;  %8121 = vmatmul.msk.f32.gmra.mxu3 %vm6846_vm12, %v6833_v52 }
 0xf92   :  { %v6751_v15 = vpop.permute.xlu1 %6750 }
 0xf94   :  { %v6557_v63 = vpop.permute.xlu0 %6556 }
 0xf95   :  { %v6753_v47 = vpop.permute.xlu2 %6752  ;;  %6592 = vst.msk [vmem:[#allocation3 + $0xd0] sm:$0xff] %vm6578_vm9, %v6557_v63 }
 0xf96   :  { %6689 = vst.msk [vmem:[#allocation3 + $0xd0] sm:$0xff] %vm6675_vm10, %v6654_v22 }
 0xf97   :  { %6786 = vst.msk [vmem:[#allocation3 + $0xd0] sm:$0xff] %vm6772_vm11, %v6751_v15 }
 0xf9a   :  { %v6268_v10 = vpop.permute.xlu1 %6267 }
 0xf9c   :  { %v6074_v48 = vpop.permute.xlu0 %6073  ;;  %v6936_v11 = vpop.f32.mrf.mxu3 }
 0xf9d   :  { %6108 = vst.msk [vmem:[#allocation3 + $0xe0] sm:$0xff] %vm6093_vm2, %v6074_v48  ;;  %v6937_v41 = vadd.f32 %v12311_v20, %v6936_v11  ;;  %v6270_v2 = vpop.permute.xlu2 %6269 }
 0xf9e   :  { %6205 = vst.msk [vmem:[#allocation3 + $0xe0] sm:$0xff] %vm6190_vm5, %v6171_v9  ;;  %v6802_v57 = vld [vmem:[#allocation3 + $0xd0] sm:$0xff] }
 0xf9f   :  { %6302 = vst.msk [vmem:[#allocation3 + $0xe0] sm:$0xff] %vm6287_vm6, %v6268_v10  ;;  %v6972_v19 = vmax.f32 %v6937_v41, %v12318_v1  ;;  %v6834_v56 = vmul.f32 %v6818_v16, %v6802_v57 }
 0xfa1   :  { %6988 = vst.msk [vmem:[#allocation4 + $0x38] sm:$0xff] %vm174_vm0, %v6972_v19  ;;  %8122 = vmatmul.msk.f32.gmra.mxu3 %vm6846_vm12, %v6834_v56 }
 0xfa2   :  { %v6559_v29 = vpop.permute.xlu1 %6558 }
 0xfa4   :  { %v6365_v13 = vpop.permute.xlu0 %6364 }
 0xfa5   :  { %6399 = vst.msk [vmem:[#allocation3 + $0xe0] sm:$0xff] %vm6384_vm7, %v6365_v13  ;;  %v6561_v59 = vpop.permute.xlu2 %6560 }
 0xfa6   :  { %6496 = vst.msk [vmem:[#allocation3 + $0xe0] sm:$0xff] %vm6481_vm8, %v6462_v26 }
 0xfa7   :  { %6593 = vst.msk [vmem:[#allocation3 + $0xe0] sm:$0xff] %vm6578_vm9, %v6559_v29 }
 0xfa8   :  { %v7010_v61 = vld [vmem:[#allocation4 + $0x38] sm:$0xff] }
 0xfa9   :  { %v7011_v34 = vmax.f32 %v7009_v43, %v7010_v61 }
 0xfaa   :  { %v6076_v30 = vpop.permute.xlu1 %6075 }
 0xfab   :  { %6109 = vst.msk [vmem:[#allocation3 + $0xf0] sm:$0xff] %vm6093_vm2, %v6076_v30  ;;  %vm7266_vm2 = vcmask 326912  }
 0xfac   :  { %7012 = vst.msk [vmem:[#allocation5 + $0x18] sm:$0xff] %vm174_vm0, %v7011_v34  ;;  %v6656_v44 = vpop.permute.xlu0 %6655 }
 0xfad   :  { %6690 = vst.msk [vmem:[#allocation3 + $0xe0] sm:$0xff] %vm6675_vm10, %v6656_v44  ;;  %v7046_v25 = vpop.permute.xlu2 %7045 }
 0xfae   :  { %6787 = vst.msk [vmem:[#allocation3 + $0xe0] sm:$0xff] %vm6772_vm11, %v6753_v47  ;;  %v12558_v49 = vadd.f32 %v7046_v25, %v12491_v14 }
 0xfb0   :  { %8125 = vmatmul.msk.f32.vlgmr.msra.gmra.mxu2 %vm846_vm3, %v12558_v49 }
 0xfb2   :  { %v6367_v28 = vpop.permute.xlu1 %6366 }
 0xfb3   :  { %v7030_v38 = vld [vmem:[#allocation5 + $0x10] ss:$2 sm:$0xff]  ;;  %v7034_v58 = vld [vmem:[#allocation5 + $0x11] ss:$2 sm:$0xff] }
 0xfb4   :  { %v7038_v35 = vmax.f32 %v7030_v38, %v7034_v58  ;;  %v6173_v45 = vpop.permute.xlu0 %6172  ;;  %v6939_v6 = vpop.f32.mrf.mxu3 }
 0xfb5   :  { %6206 = vst.msk [vmem:[#allocation3 + $0xf0] sm:$0xff] %vm6190_vm5, %v6173_v45  ;;  %v6940_v62 = vadd.f32 %v12311_v20, %v6939_v6  ;;  %v6803_v40 = vld [vmem:[#allocation3 + $0xe0] sm:$0xff]  ;;  %v7105_v6 = vld [vmem:[%s12854_s24 + $0x10] sm:$0xff]  ;;  %vm7291_vm5 = vcmask 392512  }
 0xfb6   :  { %7047 = vrot.lane.b32.xlu1 %v7038_v35, %s8410_s19  ;;  %6303 = vst.msk [vmem:[#allocation3 + $0xf0] sm:$0xff] %vm6287_vm6, %v6270_v2  ;;  %v6835_v14 = vmul.f32 %v6819_v50, %v6803_v40  ;;  %v7103_v50 = vld [vmem:[%s12854_s24] sm:$0xff]  ;;  %vm7316_vm6 = vcmask 458112  }
 0xfb7   :  { %6400 = vst.msk [vmem:[#allocation3 + $0xf0] sm:$0xff] %vm6384_vm7, %v6367_v28  ;;  %v6973_v60 = vmax.f32 %v6940_v62, %v12318_v1  ;;  %vm7341_vm7 = vcmask 523712  }
 0xfb8   :  { %8123 = vmatmul.msk.f32.gmra.mxu3 %vm6846_vm12, %v6835_v14 }
 0xfb9   :  { %6989 = vst.msk [vmem:[#allocation4 + $0x40] sm:$0xff] %vm174_vm0, %v6973_v60 }
 0xfba   :  { %v6658_v23 = vpop.permute.xlu1 %6657 }
 0xfbc   :  { %v6464_v21 = vpop.permute.xlu0 %6463 }
 0xfbd   :  { %6497 = vst.msk [vmem:[#allocation3 + $0xf0] sm:$0xff] %vm6481_vm8, %v6464_v21  ;;  %v7106_v21 = vld [vmem:[%s12854_s24 + $0x18] sm:$0xff]  ;;  %vm7366_vm8 = vcmask 589312  }
 0xfbe   :  { %6594 = vst.msk [vmem:[#allocation3 + $0xf0] sm:$0xff] %vm6578_vm9, %v6561_v59  ;;  %vm7396_vm9 = vcmask 588800  }
 0xfbf   :  { %6691 = vst.msk [vmem:[#allocation3 + $0xf0] sm:$0xff] %vm6675_vm10, %v6658_v23  ;;  %vm7438_vm10 = vcmp.lt.s32.totalorder %v9631_v7, 16 }
 0xfc0   :  { %v7013_v8 = vld [vmem:[#allocation4 + $0x40] sm:$0xff] }
 0xfc4   :  { %v6755_v37 = vpop.permute.xlu0 %6754 }
 0xfc5   :  { %6788 = vst.msk [vmem:[#allocation3 + $0xf0] sm:$0xff] %vm6772_vm11, %v6755_v37  ;;  %vm7444_vm11 = vcmask 261120  }
 0xfcc   :  { %v6804_v42 = vld [vmem:[#allocation3 + $0xf0] sm:$0xff] }
 0xfcd   :  { %v6836_v5 = vmul.f32 %v6820_v32, %v6804_v42 }
 0xfcf   :  { %8124 = vmatmul.msk.f32.gmra.mxu3 %vm6846_vm12, %v6836_v5  ;;  %vm7452_vm12 = vcmask 257024  }
 0xfd2   :  { %v6942_v3 = vpop.f32.mrf.mxu3 }
 0xfd3   :  { %v6943_v55 = vadd.f32 %v12311_v20, %v6942_v3 }
 0xfd5   :  { %v6974_v54 = vmax.f32 %v6943_v55, %v12318_v1 }
 0xfd7   :  { %6990 = vst.msk [vmem:[#allocation4 + $0x48] sm:$0xff] %vm174_vm0, %v6974_v54 }
 0xfde   :  { %v7014_v0 = vld [vmem:[#allocation4 + $0x48] sm:$0xff] }
 0xfdf   :  { %v7015_v53 = vmax.f32 %v7013_v8, %v7014_v0 }
 0xfe1   :  { %7016 = vst.msk [vmem:[#allocation5 + $0x20] sm:$0xff] %vm174_vm0, %v7015_v53 }
 0xfe5   :  { %v6945_v46 = vpop.f32.mrf.mxu3 }
 0xfe6   :  { %v6946_v27 = vadd.f32 %v12311_v20, %v6945_v46 }
 0xfe8   :  { %v6975_v39 = vmax.f32 %v6946_v27, %v12318_v1 }
 0xfea   :  { %6991 = vst.msk [vmem:[#allocation4 + $0x50] sm:$0xff] %vm174_vm0, %v6975_v39 }
 0xff1   :  { %v7017_v17 = vld [vmem:[#allocation4 + $0x50] sm:$0xff] }
 0xffb   :  { %v6948_v51 = vpop.f32.mrf.mxu3 }
 0xffc   :  { %v6949_v22 = vadd.f32 %v12311_v20, %v6948_v51 }
 0xffe   :  { %v6976_v31 = vmax.f32 %v6949_v22, %v12318_v1  ;;  %v7126_v22 = vld [vmem:[%s8433_s9 + $0x2] sm:$0x1] }
0x1000   :  { %6992 = vst.msk [vmem:[#allocation4 + $0x58] sm:$0xff] %vm174_vm0, %v6976_v31 }
0x1007   :  { %v7018_v9 = vld [vmem:[#allocation4 + $0x58] sm:$0xff] }
0x1008   :  { %v7019_v4 = vmax.f32 %v7017_v17, %v7018_v9  ;;  %v7127_v9 = vmul.f32 0.9, %v7126_v22  ;;  %v7386_v22 = vld [vmem:[%s12856_s15 + $0x18] sm:$0xff] }
0x100a   :  { %7020 = vst.msk [vmem:[#allocation5 + $0x28] sm:$0xff] %vm174_vm0, %v7019_v4 }
0x1011   :  { %v7031_v33 = vld [vmem:[#allocation5 + $0x20] ss:$2 sm:$0xff]  ;;  %v7035_v18 = vld [vmem:[#allocation5 + $0x21] ss:$2 sm:$0xff] }
0x1012   :  { %v6951_v26 = vpop.f32.mrf.mxu3  ;;  %v7039_v36 = vmax.f32 %v7031_v33, %v7035_v18 }
0x1013   :  { %v6952_v52 = vadd.f32 %v12311_v20, %v6951_v26 }
0x1014   :  { %7049 = vrot.lane.b32.xlu0 %v7039_v36, %s8410_s19 }
0x1015   :  { %v6977_v12 = vmax.f32 %v6952_v52, %v12318_v1  ;;  %v7135_v52 = vld [vmem:[%s12855_s6 + $0x8] sm:$0xff] }
0x1017   :  { %6993 = vst.msk [vmem:[#allocation4 + $0x60] sm:$0xff] %vm174_vm0, %v6977_v12  ;;  %v7134_v12 = vld [vmem:[%s12855_s6] sm:$0xff] }
0x101e   :  { %v7021_v11 = vld [vmem:[#allocation4 + $0x60] sm:$0xff] }
0x1024   :  { %v6954_v15 = vpop.f32.mrf.mxu3 }
0x1025   :  { %v6955_v63 = vadd.f32 %v12311_v20, %v6954_v15 }
0x1027   :  { %v6978_v47 = vmax.f32 %v6955_v63, %v12318_v1 }
0x1028   :  { %v7048_v10 = vpop.permute.xlu1 %7047 }
0x1029   :  { %v12594_v48 = vadd.f32 %v7048_v10, %v7038_v35  ;;  %6994 = vst.msk [vmem:[#allocation4 + $0x68] sm:$0xff] %vm174_vm0, %v6978_v47  ;;  %v7104_v35 = vld [vmem:[%s12854_s24 + $0x8] sm:$0xff]  ;;  %s12873_s24 = sld [smem:[#allocation32_spill]] }
0x102b   :  { %8126 = vmatmul.msk.f32.gmra.mxu2 %vm846_vm3, %v12594_v48 }
0x1030   :  { %v7022_v16 = vld [vmem:[#allocation4 + $0x68] sm:$0xff] }
0x1031   :  { %v7023_v41 = vmax.f32 %v7021_v11, %v7022_v16 }
0x1033   :  { %7024 = vst.msk [vmem:[#allocation5 + $0x30] sm:$0xff] %vm174_vm0, %v7023_v41  ;;  %v7091_v58 = vpop.f32.mrf.mxu2 }
0x1034   :  { %v7107_v40 = vmul.f32 %v7103_v50, %v7091_v58 }
0x1036   :  { %v7111_v23 = vsel %vm846_vm3, %v7107_v40, 0.0 }
0x103b   :  { %v6957_v2 = vpop.f32.mrf.mxu3 }
0x103c   :  { %v6958_v57 = vadd.f32 %v12311_v20, %v6957_v2  ;;  %v7137_v2 = vld [vmem:[%s12855_s6 + $0x18] sm:$0xff] }
0x103e   :  { %v6979_v19 = vmax.f32 %v6958_v57, %v12318_v1 }
0x1040   :  { %6995 = vst.msk [vmem:[#allocation4 + $0x70] sm:$0xff] %vm174_vm0, %v6979_v19 }
0x1047   :  { %v7025_v59 = vld [vmem:[#allocation4 + $0x70] sm:$0xff] }
0x1052   :  { %v6960_v56 = vpop.f32.mrf.mxu3 }
0x1053   :  { %v6961_v29 = vadd.f32 %v12311_v20, %v6960_v56 }
0x1055   :  { %v6980_v13 = vmax.f32 %v6961_v29, %v12318_v1 }
0x1057   :  { %6996 = vst.msk [vmem:[#allocation4 + $0x78] sm:$0xff] %vm174_vm0, %v6980_v13 }
0x105e   :  { %v7026_v43 = vld [vmem:[#allocation4 + $0x78] sm:$0xff] }
0x105f   :  { %v7027_v61 = vmax.f32 %v7025_v59, %v7026_v43 }
0x1061   :  { %7028 = vst.msk [vmem:[#allocation5 + $0x38] sm:$0xff] %vm174_vm0, %v7027_v61 }
0x1068   :  { %v7032_v34 = vld [vmem:[#allocation5 + $0x30] ss:$2 sm:$0xff]  ;;  %v7036_v30 = vld [vmem:[#allocation5 + $0x31] ss:$2 sm:$0xff] }
0x1069   :  { %v7040_v44 = vmax.f32 %v7032_v34, %v7036_v30 }
0x106b   :  { %7051 = vrot.lane.b32.xlu2 %v7040_v44, %s8410_s19  ;;  %s12871_s19 = sld [smem:[#allocation28_spill]] }
0x1086   :  { %v7050_v25 = vpop.permute.xlu0 %7049 }
0x1087   :  { %v7059_v20 = vadd.f32 %v7050_v25, %v7039_v36  ;;  %v7136_v36 = vld [vmem:[%s12855_s6 + $0x10] sm:$0xff]  ;;  %s7909_s6 = sshll.u32 %s8613_s4, 4  ;;  %s7910_s6 = int_to_ptr.hbm [resolvable:$true] %s7909_s6 }
0x1089   :  { %8127 = vmatmul.msk.f32.gmra.mxu2 %vm846_vm3, %v7059_v20 }
0x10ae   :  { %v7094_v28 = vpop.f32.mrf.mxu2 }
0x10af   :  { %v7108_v62 = vmul.f32 %v7104_v35, %v7094_v28 }
0x10b1   :  { %v7112_v60 = vsel %vm846_vm3, %v7108_v62, 0.0 }
0x10b2   :  { %v7113_v32 = vadd.f32 %v7112_v60, %v7111_v23  ;;  %v7390_v60 = vld [vmem:[%s12856_s15 + $0x38] sm:$0xff] }
0x10c5   :  { %v7052_v1 = vpop.permute.xlu2 %7051 }
0x10c6   :  { %v12609_v38 = vadd.f32 %v7052_v1, %v7040_v44 }
0x10c8   :  { %8128 = vmatmul.msk.f32.gmra.mxu2 %vm846_vm3, %v12609_v38 }
0x110c   :  { %v7097_v45 = vpop.f32.mrf.mxu2 }
0x110d   :  { %v7109_v14 = vmul.f32 %v7105_v6, %v7097_v45  ;;  %v7391_v45 = vld [vmem:[%s12856_s15 + $0x40] sm:$0xff] }
0x110e   :  { %7416 = vmatpush.msra.mxu3 %v7391_v45 }
0x110f   :  { %v7114_v37 = vsel %vm846_vm3, %v7109_v14, 0.0 }
0x1110   :  { %v7115_v3 = vadd.f32 %v7114_v37, %v7113_v32  ;;  %7417 = vmatpush.msra.mxu3 %v7390_v60  ;;  %v7389_v32 = vld [vmem:[%s12856_s15 + $0x30] sm:$0xff] }
0x1112   :  { %7418 = vmatpush.msra.mxu3 %v7389_v32  ;;  %v7439_v32 = vsel %vm7438_vm10, 0.0, %v8402_v24  ;;  %vm7701_vm10 = vcmask 58368  }
0x114b   :  { %v7100_v42 = vpop.f32.mrf.mxu2 }
0x114c   :  { %v7110_v5 = vmul.f32 %v7106_v21, %v7100_v42 }
0x114e   :  { %v7116_v55 = vsel %vm846_vm3, %v7110_v5, 0.0 }
0x114f   :  { %v7117_v54 = vadd.f32 %v7116_v55, %v7115_v3  ;;  %v7388_v3 = vld [vmem:[%s12856_s15 + $0x28] sm:$0xff] }
0x1150   :  { %7419 = vmatpush.msra.mxu3 %v7388_v3 }
0x1151   :  { %v7118_v8 = vrot.slane %v7117_v54, 4 }
0x1153   :  { %v7119_v0 = vadd.f32 %v7118_v8, %v7117_v54 }
0x1155   :  { %v7120_v53 = vrot.slane %v7119_v0, 2 }
0x1157   :  { %v7121_v46 = vadd.f32 %v7120_v53, %v7119_v0 }
0x1159   :  { %v7122_v27 = vrot.slane %v7121_v46, 1 }
0x115b   :  { %v7123_v39 = vadd.f32 %v7122_v27, %v7121_v46  ;;  %v7387_v46 = vld [vmem:[%s12856_s15 + $0x20] sm:$0xff] }
0x115c   :  { %7420 = vmatpush.msra.mxu3 %v7387_v46 }
0x115d   :  { %v7124_v51 = vmul.f32 0.35, %v7123_v39 }
0x115e   :  { %7421 = vmatpush.msra.mxu3 %v7386_v22 }
0x115f   :  { %8223 = vtanh.f32 %v7124_v51 }
0x1165   :  { %v8224_v31 = vpop.eup %8223 }
0x1166   :  { %v7128_v17 = vadd.f32 1.0, %v8224_v31 }
0x1168   :  { %v7129_v4 = vmul.f32 0.1, %v7128_v17  ;;  %v7385_v17 = vld [vmem:[%s12856_s15 + $0x10] sm:$0xff] }
0x1169   :  { %7422 = vmatpush.msra.mxu3 %v7385_v17 }
0x116a   :  { %v7130_v33 = vadd.f32 %v7129_v4, %v7127_v9  ;;  %v7384_v4 = vld [vmem:[%s12856_s15 + $0x8] sm:$0xff] }
0x116b   :  { %7423 = vmatpush.msra.mxu3 %v7384_v4 }
0x116c   :  { %v7131_v18 = vmax.f32 %v7130_v33, 0.8  ;;  %v7383_v33 = vld [vmem:[%s12856_s15] sm:$0xff] }
0x116d   :  { %7424 = vmatpush.msra.mxu3 %v7383_v33 }
0x116e   :  { %v7132_v26 = vmin.f32 %v7131_v18, 1.2 }
0x1170   :  { %v7138_v15 = vperm.slane %v7132_v26, 0  ;;  %7133 = vst.msk [vmem:[%s8618_s12 + $0x2] sm:$0x1] %vm989_vm4, %v7132_v26 }
0x1172   :  { %v7141_v63 = vmul.f32 %v7138_v15, %v7136_v36  ;;  %v7140_v47 = vmul.f32 %v7138_v15, %v7135_v52  ;;  %v7139_v10 = vmul.f32 %v7138_v15, %v7134_v12  ;;  %v7142_v57 = vmul.f32 %v7138_v15, %v7137_v2 }
0x1174   :  { %v7149_v11 = vsel %vm846_vm3, %v7141_v63, 0.0  ;;  %v7146_v16 = vsel %vm846_vm3, %v7140_v47, 0.0  ;;  %v7143_v41 = vsel %vm846_vm3, %v7139_v10, 0.0  ;;  %v7152_v19 = vsel %vm846_vm3, %v7142_v57, 0.0 }
0x1175   :  { %7150 = vadd.xlane.f32.xlu2 %v7149_v11  ;;  %7147 = vadd.xlane.f32.xlu0 %v7146_v16 }
0x1176   :  { %7144 = vadd.xlane.f32.xlu1 %v7143_v41  ;;  %v7375_v41 = vld [vmem:[%s12857_s26] sm:$0xff] }
0x117e   :  { %7153 = vadd.xlane.f32.xlu1 %v7152_v19 }
0x11e8   :  { %v7151_v56 = vpop.xlane.xlu2 %7150  ;;  %v7148_v29 = vpop.xlane.xlu0 %7147 }
0x11e9   :  { %v7157_v13 = vmul.f32 %v7151_v56, %v7059_v20  ;;  %v7156_v59 = vmul.f32 %v7148_v29, %v12594_v48  ;;  %v7145_v43 = vpop.xlane.xlu1 %7144 }
0x11ea   :  { %v7155_v61 = vmul.f32 %v7145_v43, %v12558_v49 }
0x11eb   :  { %7161 = vst.msk [vmem:[#allocation2 + $0x30] sm:$0xff] %vm846_vm3, %v7157_v13 }
0x11ec   :  { %7160 = vst.msk [vmem:[#allocation2 + $0x28] sm:$0xff] %vm846_vm3, %v7156_v59 }
0x11ed   :  { %7159 = vst.msk [vmem:[#allocation2 + $0x20] sm:$0xff] %vm846_vm3, %v7155_v61  ;;  %v7376_v61 = vld [vmem:[%s12857_s26 + $0x8] sm:$0xff] }
0x11f1   :  { %v7154_v34 = vpop.xlane.xlu1 %7153 }
0x11f2   :  { %v7158_v30 = vmul.f32 %v7154_v34, %v12609_v38  ;;  %v7248_v37 = vld [vmem:[#allocation2 + $0x30] sm:$0xff] }
0x11f3   :  { %v7297_v44 = vld [vmem:[#allocation2 + $0x2b] sm:$0xff] }
0x11f4   :  { %7162 = vst.msk [vmem:[#allocation2 + $0x38] sm:$0xff] %vm846_vm3, %v7158_v30  ;;  %v7221_v25 = vld [vmem:[#allocation2 + $0x1f] sm:$0xff]  ;;  %v7272_v6 = vld [vmem:[#allocation2 + $0x29] sm:$0xff] }
0x11f5   :  { %v7196_v1 = vld [vmem:[#allocation2 + $0x1d] sm:$0xff]  ;;  %7229 = vrot.lane.b32.xlu1 %v7221_v25, %s8407_s3  ;;  %7169 = vst.msk [vmem:[#allocation3 + $0x20] sm:$0xff] %vm846_vm3, %v7297_v44  ;;  %v7197_v50 = vld [vmem:[#allocation2 + $0x25] sm:$0xff]  ;;  %v7347_v40 = vld [vmem:[#allocation2 + $0x2d] sm:$0xff] }
0x11f6   :  { %v7171_v20 = vld [vmem:[#allocation2 + $0x1c] sm:$0xff]  ;;  %7204 = vrot.lane.b32.xlu2 %v7196_v1, %s8408_s8  ;;  %v7321_v58 = vld [vmem:[#allocation2 + $0x24] sm:$0xff]  ;;  %v7223_v21 = vld [vmem:[#allocation2 + $0x2f] sm:$0xff] }
0x11f7   :  { %7179 = vrot.lane.b32.xlu0 %v7171_v20, %s8393_s28  ;;  %v7296_v49 = vld [vmem:[#allocation2 + $0x23] sm:$0xff]  ;;  %v7163_v48 = vld [vmem:[#allocation2 + $0x1b] sm:$0xff]  ;;  %v7173_v23 = vld [vmem:[#allocation2 + $0x2c] sm:$0xff] }
0x11f8   :  { %7168 = vst.msk [vmem:[#allocation3 + $0x10] sm:$0xff] %vm846_vm3, %v7296_v49  ;;  %v7271_v28 = vld [vmem:[#allocation2 + $0x21] sm:$0xff] }
0x11f9   :  { %7167 = vst.msk [vmem:[#allocation3] sm:$0xff] %vm846_vm3, %v7163_v48  ;;  %v7246_v35 = vld [vmem:[#allocation2 + $0x20] sm:$0xff]  ;;  %v7247_v14 = vld [vmem:[#allocation2 + $0x28] sm:$0xff] }
0x11fa   :  { %v7222_v62 = vld [vmem:[#allocation2 + $0x27] sm:$0xff] }
0x11fb   :  { %v7298_v38 = vld [vmem:[#allocation2 + $0x33] sm:$0xff]  ;;  %v7324_v0 = vld [vmem:[#allocation2 + $0x3c] sm:$0xff] }
0x11fc   :  { %7170 = vst.msk [vmem:[#allocation3 + $0x30] sm:$0xff] %vm846_vm3, %v7298_v38  ;;  %v7323_v42 = vld [vmem:[#allocation2 + $0x34] sm:$0xff]  ;;  %v7349_v27 = vld [vmem:[#allocation2 + $0x3d] sm:$0xff] }
0x11fd   :  { %7329 = vrot.lane.b32.xlu1 %v7321_v58, %s8411_s16  ;;  %v7273_v5 = vld [vmem:[#allocation2 + $0x31] sm:$0xff]  ;;  %v7274_v8 = vld [vmem:[#allocation2 + $0x39] sm:$0xff] }
0x11fe   :  { %7279 = vrot.lane.b32.xlu2 %v7271_v28, %s8412_s18  ;;  %v7348_v55 = vld [vmem:[#allocation2 + $0x35] sm:$0xff] }
0x11ff   :  { %7254 = vrot.lane.b32.xlu0 %v7246_v35, %s8409_s14  ;;  %v7249_v54 = vld [vmem:[#allocation2 + $0x38] sm:$0xff] }
0x1200   :  { %v7224_v53 = vld [vmem:[#allocation2 + $0x37] sm:$0xff] }
0x1201   :  { %v7299_v39 = vld [vmem:[#allocation2 + $0x3b] sm:$0xff] }
0x1205   :  { %7206 = vrot.lane.b32.xlu1 %v7197_v50, %s8408_s8 }
0x1206   :  { %7354 = vrot.lane.b32.xlu2 %v7197_v50, %s8413_s22 }
0x1207   :  { %7304 = vrot.lane.b32.xlu0 %v7296_v49, %s8414_s23 }
0x120d   :  { %7281 = vrot.lane.b32.xlu1 %v7272_v6, %s8412_s18 }
0x120e   :  { %7231 = vrot.lane.b32.xlu2 %v7222_v62, %s8407_s3 }
0x120f   :  { %7181 = vrot.lane.b32.xlu0 %v7321_v58, %s8393_s28 }
0x1215   :  { %7356 = vrot.lane.b32.xlu1 %v7347_v40, %s8413_s22 }
0x1216   :  { %7306 = vrot.lane.b32.xlu2 %v7297_v44, %s8414_s23 }
0x1217   :  { %7256 = vrot.lane.b32.xlu0 %v7247_v14, %s8409_s14  ;;  %v7378_v14 = vld [vmem:[%s12857_s26 + $0x18] sm:$0xff] }
0x121d   :  { %7233 = vrot.lane.b32.xlu1 %v7223_v21, %s8407_s3 }
0x121e   :  { %7183 = vrot.lane.b32.xlu2 %v7173_v23, %s8393_s28 }
0x121f   :  { %7331 = vrot.lane.b32.xlu0 %v7173_v23, %s8411_s16  ;;  %v8214_v23 = vld [vmem:[%s12858_s0] ss:$0 sm:$0xff] }
0x1225   :  { %7308 = vrot.lane.b32.xlu1 %v7298_v38, %s8414_s23  ;;  %v7377_v38 = vld [vmem:[%s12857_s26 + $0x10] sm:$0xff] }
0x1226   :  { %7258 = vrot.lane.b32.xlu2 %v7248_v37, %s8409_s14 }
0x1227   :  { %7208 = vrot.lane.b32.xlu0 %v7347_v40, %s8408_s8 }
0x122d   :  { %7185 = vrot.lane.b32.xlu1 %v7323_v42, %s8393_s28  ;;  %s12859_s28 = sld [smem:[#allocation19_spill]] }
0x122e   :  { %7333 = vrot.lane.b32.xlu2 %v7323_v42, %s8411_s16 }
0x122f   :  { %7283 = vrot.lane.b32.xlu0 %v7273_v5, %s8412_s18 }
0x1233   :  { %v7475_v17 = vld [vmem:[%s12859_s28 + $0x8] sm:$0xff] }
0x1234   :  { %7493 = vmatpush.msrb.mxu2 %v7475_v17  ;;  %v7592_v17 = vld [vmem:[%s12862_s2 + $0x38] sm:$0xff] }
0x1235   :  { %7260 = vrot.lane.b32.xlu1 %v7249_v54, %s8409_s14 }
0x1236   :  { %7210 = vrot.lane.b32.xlu2 %v7348_v55, %s8408_s8 }
0x1237   :  { %7358 = vrot.lane.b32.xlu0 %v7348_v55, %s8413_s22 }
0x123d   :  { %7335 = vrot.lane.b32.xlu1 %v7324_v0, %s8411_s16  ;;  %s8341_s16 = scalar_lea.hbm %s8613_s4, 2 }
0x123e   :  { %7285 = vrot.lane.b32.xlu2 %v7274_v8, %s8412_s18 }
0x123f   :  { %7235 = vrot.lane.b32.xlu0 %v7224_v53, %s8407_s3  ;;  %s12868_s3 = sld [smem:[#allocation26_spill]] }
0x1246   :  { %7360 = vrot.lane.b32.xlu2 %v7349_v27, %s8413_s22 }
0x1247   :  { %7310 = vrot.lane.b32.xlu0 %v7299_v39, %s8414_s23 }
0x1250   :  { %v7205_v51 = vpop.permute.xlu2 %7204 }
0x1258   :  { %v7280_v31 = vpop.permute.xlu2 %7279 }
0x1260   :  { %v7355_v9 = vpop.permute.xlu2 %7354 }
0x1267   :  { %v7230_v26 = vpop.permute.xlu1 %7229 }
0x1268   :  { %v7232_v18 = vpop.permute.xlu2 %7231 }
0x1269   :  { %v7180_v36 = vpop.permute.xlu0 %7179 }
0x126a   :  { %7192 = vst.msk [vmem:[#allocation3] sm:$0xff] %vm7191_vm14, %v7180_v36 }
0x126b   :  { %7217 = vst.msk [vmem:[#allocation3] sm:$0xff] %vm7216_vm15, %v7205_v51 }
0x126c   :  { %7242 = vst.msk [vmem:[#allocation3] sm:$0xff] %vm7241_vm1, %v7230_v26 }
0x126f   :  { %v7330_v12 = vpop.permute.xlu1 %7329 }
0x1270   :  { %v7307_v52 = vpop.permute.xlu2 %7306 }
0x1271   :  { %v7255_v15 = vpop.permute.xlu0 %7254 }
0x1272   :  { %7267 = vst.msk [vmem:[#allocation3] sm:$0xff] %vm7266_vm2, %v7255_v15 }
0x1273   :  { %7292 = vst.msk [vmem:[#allocation3] sm:$0xff] %vm7291_vm5, %v7280_v31 }
0x1277   :  { %v7207_v47 = vpop.permute.xlu1 %7206 }
0x1278   :  { %v7184_v63 = vpop.permute.xlu2 %7183 }
0x1279   :  { %7194 = vst.msk [vmem:[#allocation3 + $0x20] sm:$0xff] %vm7191_vm14, %v7184_v63  ;;  %v7305_v10 = vpop.permute.xlu0 %7304 }
0x127a   :  { %7317 = vst.msk [vmem:[#allocation3] sm:$0xff] %vm7316_vm6, %v7305_v10 }
0x127b   :  { %7342 = vst.msk [vmem:[#allocation3] sm:$0xff] %vm7341_vm7, %v7330_v12 }
0x127c   :  { %7367 = vst.msk [vmem:[#allocation3] sm:$0xff] %vm7366_vm8, %v7355_v9  ;;  %v7474_v9 = vld [vmem:[%s12859_s28] sm:$0xff] }
0x127d   :  { %7494 = vmatpush.msrb.mxu2 %v7474_v9  ;;  %v7591_v9 = vld [vmem:[%s12862_s2 + $0x30] sm:$0xff] }
0x127f   :  { %v7282_v11 = vpop.permute.xlu1 %7281 }
0x1280   :  { %v7259_v29 = vpop.permute.xlu2 %7258 }
0x1281   :  { %v7182_v16 = vpop.permute.xlu0 %7181 }
0x1282   :  { %7193 = vst.msk [vmem:[#allocation3 + $0x10] sm:$0xff] %vm7191_vm14, %v7182_v16 }
0x1283   :  { %7218 = vst.msk [vmem:[#allocation3 + $0x10] sm:$0xff] %vm7216_vm15, %v7207_v47  ;;  %v7371_v2 = vld [vmem:[#allocation3] sm:$0xff] }
0x1284   :  { %7243 = vst.msk [vmem:[#allocation3 + $0x10] sm:$0xff] %vm7241_vm1, %v7232_v18  ;;  %v7379_v57 = vmul.f32 %v7375_v41, %v7371_v2  ;;  %v7499_v2 = vld [vmem:[%s12860_s13] sm:$0xff] }
0x1286   :  { %8129 = vmatmul.msk.f32.vlgmr.msra.gmra.mxu3 %vm7396_vm9, %v7379_v57 }
0x1287   :  { %v7357_v19 = vpop.permute.xlu1 %7356 }
0x1288   :  { %v7334_v30 = vpop.permute.xlu2 %7333 }
0x1289   :  { %v7257_v56 = vpop.permute.xlu0 %7256 }
0x128a   :  { %7268 = vst.msk [vmem:[#allocation3 + $0x10] sm:$0xff] %vm7266_vm2, %v7257_v56 }
0x128b   :  { %7293 = vst.msk [vmem:[#allocation3 + $0x10] sm:$0xff] %vm7291_vm5, %v7282_v11 }
0x128c   :  { %7318 = vst.msk [vmem:[#allocation3 + $0x10] sm:$0xff] %vm7316_vm6, %v7307_v52 }
0x128f   :  { %v7234_v13 = vpop.permute.xlu1 %7233 }
0x1290   :  { %v7211_v49 = vpop.permute.xlu2 %7210 }
0x1291   :  { %v7332_v59 = vpop.permute.xlu0 %7331 }
0x1292   :  { %7343 = vst.msk [vmem:[#allocation3 + $0x10] sm:$0xff] %vm7341_vm7, %v7332_v59 }
0x1293   :  { %7368 = vst.msk [vmem:[#allocation3 + $0x10] sm:$0xff] %vm7366_vm8, %v7357_v19 }
0x1297   :  { %v7309_v43 = vpop.permute.xlu1 %7308 }
0x1298   :  { %v7286_v28 = vpop.permute.xlu2 %7285 }
0x1299   :  { %v7209_v34 = vpop.permute.xlu0 %7208 }
0x129a   :  { %7219 = vst.msk [vmem:[#allocation3 + $0x20] sm:$0xff] %vm7216_vm15, %v7209_v34  ;;  %v7372_v44 = vld [vmem:[#allocation3 + $0x10] sm:$0xff] }
0x129b   :  { %7244 = vst.msk [vmem:[#allocation3 + $0x20] sm:$0xff] %vm7241_vm1, %v7234_v13  ;;  %v7380_v25 = vmul.f32 %v7376_v61, %v7372_v44  ;;  %v7510_v44 = vld [vmem:[%s8433_s9 + $0x3] sm:$0x1] }
0x129c   :  { %7269 = vst.msk [vmem:[#allocation3 + $0x20] sm:$0xff] %vm7266_vm2, %v7259_v29 }
0x129d   :  { %8130 = vmatmul.msk.f32.gmra.mxu3 %vm7396_vm9, %v7380_v25 }
0x129f   :  { %v7186_v1 = vpop.permute.xlu1 %7185 }
0x12a0   :  { %7195 = vst.msk [vmem:[#allocation3 + $0x30] sm:$0xff] %vm7191_vm14, %v7186_v1  ;;  %v7361_v40 = vpop.permute.xlu2 %7360  ;;  %vm7540_vm14 = vcmask 392448  }
0x12a1   :  { %v7284_v20 = vpop.permute.xlu0 %7283  ;;  %7220 = vst.msk [vmem:[#allocation3 + $0x30] sm:$0xff] %vm7216_vm15, %v7211_v49  ;;  %vm7547_vm15 = vcmask 523648  }
0x12a2   :  { %7294 = vst.msk [vmem:[#allocation3 + $0x20] sm:$0xff] %vm7291_vm5, %v7284_v20  ;;  %v7511_v20 = vmul.f32 0.9, %v7510_v44 }
0x12a3   :  { %7319 = vst.msk [vmem:[#allocation3 + $0x20] sm:$0xff] %vm7316_vm6, %v7309_v43 }
0x12a4   :  { %7344 = vst.msk [vmem:[#allocation3 + $0x20] sm:$0xff] %vm7341_vm7, %v7334_v30 }
0x12a7   :  { %v7261_v58 = vpop.permute.xlu1 %7260 }
0x12a9   :  { %v7359_v48 = vpop.permute.xlu0 %7358 }
0x12aa   :  { %7369 = vst.msk [vmem:[#allocation3 + $0x20] sm:$0xff] %vm7366_vm8, %v7359_v48 }
0x12af   :  { %v7336_v62 = vpop.permute.xlu1 %7335 }
0x12b1   :  { %v7236_v35 = vpop.permute.xlu0 %7235  ;;  %v7373_v50 = vld [vmem:[#allocation3 + $0x20] sm:$0xff] }
0x12b2   :  { %7245 = vst.msk [vmem:[#allocation3 + $0x30] sm:$0xff] %vm7241_vm1, %v7236_v35  ;;  %v7381_v45 = vmul.f32 %v7377_v38, %v7373_v50  ;;  %vm7554_vm1 = vcmask 654848  }
0x12b3   :  { %7270 = vst.msk [vmem:[#allocation3 + $0x30] sm:$0xff] %vm7266_vm2, %v7261_v58  ;;  %vm7561_vm2 = vcmask 786048  }
0x12b4   :  { %7295 = vst.msk [vmem:[#allocation3 + $0x30] sm:$0xff] %vm7291_vm5, %v7286_v28  ;;  %8131 = vmatmul.msk.f32.gmra.mxu3 %vm7396_vm9, %v7381_v45  ;;  %v7518_v28 = vld [vmem:[%s12861_s1] sm:$0xff]  ;;  %vm7568_vm5 = vcmask 917248  }
0x12b9   :  { %v7311_v6 = vpop.permute.xlu0 %7310 }
0x12ba   :  { %7320 = vst.msk [vmem:[#allocation3 + $0x30] sm:$0xff] %vm7316_vm6, %v7311_v6  ;;  %v7602_v6 = vld [vmem:[%s12862_s2 + $0x88] sm:$0xff]  ;;  %vm7575_vm6 = vcmask 1048448  }
0x12bb   :  { %7345 = vst.msk [vmem:[#allocation3 + $0x30] sm:$0xff] %vm7341_vm7, %v7336_v62  ;;  %7644 = vmatpush.msra.mxu2 %v7602_v6  ;;  %v7601_v62 = vld [vmem:[%s12862_s2 + $0x80] sm:$0xff]  ;;  %vm7650_vm7 = vcmp.lt.s32.totalorder %v9631_v7, 32 }
0x12bc   :  { %7370 = vst.msk [vmem:[#allocation3 + $0x30] sm:$0xff] %vm7366_vm8, %v7361_v40  ;;  %vm7653_vm8 = vcmask 523264  }
0x12bd   :  { %7645 = vmatpush.msra.mxu2 %v7601_v62 }
0x12c3   :  { %v7374_v60 = vld [vmem:[#allocation3 + $0x30] sm:$0xff] }
0x12c4   :  { %v7382_v21 = vmul.f32 %v7378_v14, %v7374_v60 }
0x12c6   :  { %8132 = vmatmul.msk.f32.gmra.mxu3 %vm7396_vm9, %v7382_v21  ;;  %vm7658_vm9 = vcmask 517120  }
0x1309   :  { %v7426_v37 = vpop.f32.mrf.mxu3 }
0x130a   :  { %v7427_v42 = vadd.f32 %v8214_v23, %v7426_v37 }
0x130c   :  { %v7440_v5 = vmax.f32 %v7427_v42, %v7439_v32 }
0x130e   :  { %7445 = vst.msk [vmem:[#allocation4] sm:$0xff] %vm7444_vm11, %v7440_v5 }
0x1315   :  { %v7449_v3 = vld [vmem:[#allocation4] sm:$0xf]  ;;  %v7450_v55 = vld [vmem:[#allocation4 + $0x4] sm:$0xf] }
0x1316   :  { %v7451_v54 = vmax.f32 %v7449_v3, %v7450_v55 }
0x1318   :  { %7453 = vst.msk [vmem:[#allocation5] sm:$0xf] %vm7452_vm12, %v7451_v54 }
0x1320   :  { %v7429_v8 = vpop.f32.mrf.mxu3 }
0x1321   :  { %v7430_v0 = vadd.f32 %v8214_v23, %v7429_v8  ;;  %v7600_v8 = vld [vmem:[%s12862_s2 + $0x78] sm:$0xff] }
0x1322   :  { %7610 = vmatpush.msrb.mxu3 %v7600_v8 }
0x1323   :  { %v7441_v53 = vmax.f32 %v7430_v0, %v7439_v32  ;;  %v7599_v0 = vld [vmem:[%s12862_s2 + $0x70] sm:$0xff] }
0x1324   :  { %7611 = vmatpush.msrb.mxu3 %v7599_v0 }
0x1325   :  { %7446 = vst.msk [vmem:[#allocation4 + $0x8] sm:$0xff] %vm7444_vm11, %v7441_v53  ;;  %v7598_v53 = vld [vmem:[%s12862_s2 + $0x68] sm:$0xff] }
0x1326   :  { %7612 = vmatpush.msrb.mxu3 %v7598_v53 }
0x132c   :  { %v7454_v46 = vld [vmem:[#allocation4 + $0x8] sm:$0xf]  ;;  %v7455_v27 = vld [vmem:[#allocation4 + $0xc] sm:$0xf] }
0x132d   :  { %v7456_v39 = vmax.f32 %v7454_v46, %v7455_v27  ;;  %v7597_v46 = vld [vmem:[%s12862_s2 + $0x60] sm:$0xff]  ;;  %v7596_v27 = vld [vmem:[%s12862_s2 + $0x58] sm:$0xff] }
0x132e   :  { %7613 = vmatpush.msrb.mxu3 %v7597_v46 }
0x132f   :  { %7457 = vst.msk [vmem:[#allocation5 + $0x4] sm:$0xf] %vm7452_vm12, %v7456_v39  ;;  %v7595_v39 = vld [vmem:[%s12862_s2 + $0x50] sm:$0xff] }
0x1330   :  { %7614 = vmatpush.msrb.mxu3 %v7596_v27 }
0x1332   :  { %7615 = vmatpush.msrb.mxu3 %v7595_v39 }
0x1337   :  { %v7432_v51 = vpop.f32.mrf.mxu3 }
0x1338   :  { %v7433_v22 = vadd.f32 %v8214_v23, %v7432_v51  ;;  %v7594_v51 = vld [vmem:[%s12862_s2 + $0x48] sm:$0xff] }
0x1339   :  { %7616 = vmatpush.msrb.mxu3 %v7594_v51  ;;  %v7719_v51 = vld [vmem:[%s12868_s3] sm:$0x3] }
0x133a   :  { %v7442_v31 = vmax.f32 %v7433_v22, %v7439_v32 }
0x133c   :  { %7447 = vst.msk [vmem:[#allocation4 + $0x10] sm:$0xff] %vm7444_vm11, %v7442_v31  ;;  %v7593_v31 = vld [vmem:[%s12862_s2 + $0x40] sm:$0xff] }
0x133d   :  { %7617 = vmatpush.msrb.mxu3 %v7593_v31 }
0x133f   :  { %7618 = vmatpush.msrb.mxu3 %v7592_v17 }
0x1341   :  { %7619 = vmatpush.msrb.mxu3 %v7591_v9  ;;  %v7726_v9 = vld [vmem:[%s12867_s29] sm:$0xff] }
0x1343   :  { %v7458_v4 = vld [vmem:[#allocation4 + $0x10] sm:$0xf]  ;;  %v7459_v33 = vld [vmem:[#allocation4 + $0x14] sm:$0xf] }
0x1344   :  { %v7460_v18 = vmax.f32 %v7458_v4, %v7459_v33  ;;  %v7590_v4 = vld [vmem:[%s12862_s2 + $0x28] sm:$0xff]  ;;  %v7589_v33 = vld [vmem:[%s12862_s2 + $0x20] sm:$0xff] }
0x1345   :  { %7620 = vmatpush.msrb.mxu3 %v7590_v4 }
0x1346   :  { %7461 = vst.msk [vmem:[#allocation5 + $0x8] sm:$0xf] %vm7452_vm12, %v7460_v18  ;;  %v7588_v18 = vld [vmem:[%s12862_s2 + $0x18] sm:$0xff] }
0x1347   :  { %7621 = vmatpush.msrb.mxu3 %v7589_v33 }
0x1349   :  { %v7435_v26 = vpop.f32.mrf.mxu3  ;;  %7622 = vmatpush.msrb.mxu3 %v7588_v18 }
0x134a   :  { %v7436_v36 = vadd.f32 %v8214_v23, %v7435_v26  ;;  %v7587_v26 = vld [vmem:[%s12862_s2 + $0x10] sm:$0xff] }
0x134b   :  { %7623 = vmatpush.msrb.mxu3 %v7587_v26 }
0x134c   :  { %v7443_v52 = vmax.f32 %v7436_v36, %v7439_v32  ;;  %v7582_v32 = vld [vmem:[%s12863_s7 + $0x8] sm:$0xff] }
0x134d   :  { %v7586_v36 = vld [vmem:[%s12862_s2 + $0x8] sm:$0xff] }
0x134e   :  { %7448 = vst.msk [vmem:[#allocation4 + $0x18] sm:$0xff] %vm7444_vm11, %v7443_v52  ;;  %v7585_v52 = vld [vmem:[%s12862_s2] sm:$0xff]  ;;  %7624 = vmatpush.msrb.mxu3 %v7586_v36 }
0x1350   :  { %7625 = vmatpush.msrb.mxu3 %v7585_v52 }
0x1355   :  { %v7462_v12 = vld [vmem:[#allocation4 + $0x18] sm:$0xf]  ;;  %v7463_v15 = vld [vmem:[#allocation4 + $0x1c] sm:$0xf] }
0x1356   :  { %v7464_v63 = vmax.f32 %v7462_v12, %v7463_v15 }
0x1358   :  { %7465 = vst.msk [vmem:[#allocation5 + $0xc] sm:$0xf] %vm7452_vm12, %v7464_v63  ;;  %vm7841_vm12 = vcmask 1041408  }
0x135f   :  { %v7466_v47 = vld [vmem:[#allocation5] ss:$2 sm:$0xff]  ;;  %v7467_v10 = vld [vmem:[#allocation5 + $0x1] ss:$2 sm:$0xff] }
0x1360   :  { %v7468_v11 = vmax.f32 %v7466_v47, %v7467_v10 }
0x1362   :  { %7470 = vrot.lane.b32.xlu0 %v7468_v11, %s8415_s17 }
0x13d4   :  { %v7471_v16 = vpop.permute.xlu0 %7470 }
0x13d5   :  { %v7473_v41 = vadd.f32 %v7471_v16, %v7468_v11  ;;  %v7581_v16 = vld [vmem:[%s12863_s7] sm:$0xff] }
0x13d7   :  { %8133 = vmatmul.msk.f32.vlgmr.msrb.gmra.mxu2 %vm174_vm0, %v7473_v41 }
0x145a   :  { %v7496_v57 = vpop.f32.mrf.mxu2 }
0x145b   :  { %v7500_v19 = vmul.f32 %v7499_v2, %v7496_v57  ;;  %v7675_v57 = vld [vmem:[%s12864_s5 + $0x18] sm:$0xff] }
0x145c   :  { %7691 = vmatpush.msrb.mxu2 %v7675_v57 }
0x145d   :  { %v7501_v56 = vsel %vm846_vm3, %v7500_v19, 0.0  ;;  %v7674_v19 = vld [vmem:[%s12864_s5 + $0x10] sm:$0xff] }
0x145e   :  { %v7502_v29 = vrot.slane %v7501_v56, 4  ;;  %7692 = vmatpush.msrb.mxu2 %v7674_v19  ;;  %v7836_v19 = vld [vmem:[%s8603_s20 + $0x8] sm:$0x3] }
0x1460   :  { %v7503_v13 = vadd.f32 %v7502_v29, %v7501_v56  ;;  %v8215_v56 = vld [vmem:[%s12865_s21] ss:$0 sm:$0xff]  ;;  %v7673_v29 = vld [vmem:[%s12864_s5 + $0x8] sm:$0xff] }
0x1461   :  { %7693 = vmatpush.msrb.mxu2 %v7673_v29  ;;  %v8418_v29 = vmov 2.0  }
0x1462   :  { %v7504_v59 = vrot.slane %v7503_v13, 2 }
0x1464   :  { %v7505_v43 = vadd.f32 %v7504_v59, %v7503_v13 }
0x1466   :  { %v7506_v61 = vrot.slane %v7505_v43, 1 }
0x1468   :  { %v7507_v34 = vadd.f32 %v7506_v61, %v7505_v43  ;;  %v7651_v61 = vsel %vm7650_vm7, 0.0, %v8402_v24  ;;  %v7672_v24 = vld [vmem:[%s12864_s5] sm:$0xff] }
0x1469   :  { %7694 = vmatpush.msrb.mxu2 %v7672_v24 }
0x146a   :  { %v7508_v30 = vmul.f32 0.35, %v7507_v34 }
0x146c   :  { %8225 = vtanh.f32 %v7508_v30 }
0x1472   :  { %v8226_v25 = vpop.eup %8225 }
0x1473   :  { %v7512_v1 = vadd.f32 1.0, %v8226_v25 }
0x1475   :  { %v7513_v49 = vmul.f32 0.1, %v7512_v1 }
0x1477   :  { %v7514_v48 = vadd.f32 %v7513_v49, %v7511_v20 }
0x1479   :  { %v7515_v38 = vmax.f32 %v7514_v48, 0.8 }
0x147b   :  { %v7516_v58 = vmin.f32 %v7515_v38, 1.2 }
0x147d   :  { %v7519_v35 = vperm.slane %v7516_v58, 0  ;;  %7517 = vst.msk [vmem:[%s8618_s12 + $0x3] sm:$0x1] %vm989_vm4, %v7516_v58 }
0x147f   :  { %v7520_v50 = vmul.f32 %v7519_v35, %v7518_v28 }
0x1481   :  { %v7521_v45 = vsel %vm846_vm3, %v7520_v50, 0.0  ;;  %v7699_v50 = vld [vmem:[%s12866_s25] sm:$0x3] }
0x1482   :  { %7522 = vadd.xlane.f32.xlu1 %v7521_v45 }
0x14f5   :  { %v7523_v40 = vpop.xlane.xlu1 %7522 }
0x14f6   :  { %v7524_v14 = vmul.f32 %v7523_v40, %v7473_v41 }
0x14f8   :  { %7525 = vst.msk [vmem:[#allocation2 + $0x20] sm:$0xff] %vm174_vm0, %v7524_v14 }
0x14ff   :  { %v7535_v60 = vld [vmem:[#allocation2 + $0x1f] sm:$0xff] }
0x1500   :  { %v7528_v21 = vld [vmem:[#allocation2 + $0x1e] sm:$0xff]  ;;  %7537 = vrot.lane.b32.xlu0 %v7535_v60, %s8409_s14  ;;  %s12870_s14 = sld [smem:[#allocation31_spill]] }
0x1501   :  { %7530 = vrot.lane.b32.xlu2 %v7528_v21, %s8408_s8  ;;  %v7577_v23 = vld [vmem:[#allocation2 + $0x23] sm:$0xff]  ;;  %v7729_v21 = vld [vmem:[%s12867_s29 + $0x18] sm:$0xff]  ;;  %s12869_s8 = sld [smem:[#allocation29_spill]] }
0x1502   :  { %7578 = vst.msk [vmem:[#allocation3 + $0x8] sm:$0xff] %vm174_vm0, %v7577_v23  ;;  %v7526_v37 = vld [vmem:[#allocation2 + $0x1d] sm:$0xff]  ;;  %v7728_v23 = vld [vmem:[%s12867_s29 + $0x10] sm:$0xff]  ;;  %7749 = vmatpush.msra.mxu3 %v7729_v21 }
0x1503   :  { %7527 = vst.msk [vmem:[#allocation3] sm:$0xff] %vm174_vm0, %v7526_v37  ;;  %v7549_v42 = vld [vmem:[#allocation2 + $0x20] sm:$0xff] }
0x1504   :  { %v7563_v55 = vld [vmem:[#allocation2 + $0x21] sm:$0xff]  ;;  %7750 = vmatpush.msra.mxu3 %v7728_v23 }
0x1505   :  { %v7570_v54 = vld [vmem:[#allocation2 + $0x22] sm:$0xff] }
0x1507   :  { %v7761_v4 = vld [vmem:[%s12869_s8 + $0x18] sm:$0xff]  ;;  %v7760_v33 = vld [vmem:[%s12869_s8 + $0x10] sm:$0xff]  ;;  %v7759_v36 = vld [vmem:[%s12869_s8 + $0x8] sm:$0xff] }
0x1508   :  { %7551 = vrot.lane.b32.xlu0 %v7549_v42, %s8413_s22  ;;  %v7758_v52 = vld [vmem:[%s12869_s8] sm:$0xff] }
0x1509   :  { %7544 = vrot.lane.b32.xlu2 %v7535_v60, %s8414_s23  ;;  %v7580_v5 = vld [vmem:[#allocation3 + $0x8] sm:$0xff] }
0x150a   :  { %v7584_v3 = vmul.f32 %v7582_v32, %v7580_v5  ;;  %v7727_v32 = vld [vmem:[%s12867_s29 + $0x8] sm:$0xff] }
0x150b   :  { %7751 = vmatpush.msra.mxu3 %v7727_v32 }
0x150c   :  { %8134 = vmatmul.msk.f32.vlgmr.msra.gmra.mxu2 %vm174_vm0, %v7584_v3 }
0x150d   :  { %7752 = vmatpush.msra.mxu3 %v7726_v9  ;;  %7781 = vmatpush.msra.mxu2 %v7761_v4 }
0x150f   :  { %7782 = vmatpush.msra.mxu2 %v7760_v33 }
0x1510   :  { %7565 = vrot.lane.b32.xlu0 %v7563_v55, %s8416_s10 }
0x1511   :  { %7558 = vrot.lane.b32.xlu2 %v7563_v55, %s8417_s11  ;;  %v7711_v55 = vld [vmem:[%s8433_s9 + $0x4] sm:$0x1]  ;;  %7783 = vmatpush.msra.mxu2 %v7759_v36 }
0x1512   :  { %v7712_v0 = vmul.f32 0.9, %v7711_v55 }
0x1513   :  { %7784 = vmatpush.msra.mxu2 %v7758_v52 }
0x1519   :  { %7572 = vrot.lane.b32.xlu2 %v7570_v54, %s8415_s17 }
0x155b   :  { %v7531_v22 = vpop.permute.xlu2 %7530 }
0x155c   :  { %7534 = vst.msk [vmem:[#allocation3] sm:$0xff] %vm7533_vm13, %v7531_v22  ;;  %vm7837_vm13 = vcmask 80896  }
0x1563   :  { %v7545_v12 = vpop.permute.xlu2 %7544 }
0x156b   :  { %v7559_v63 = vpop.permute.xlu2 %7558 }
0x1572   :  { %v7538_v15 = vpop.permute.xlu0 %7537 }
0x1573   :  { %7541 = vst.msk [vmem:[#allocation3] sm:$0xff] %vm7540_vm14, %v7538_v15  ;;  %v7573_v11 = vpop.permute.xlu2 %7572  ;;  %v8216_v15 = vld [vmem:[%s12871_s19] ss:$0 sm:$0xff] }
0x1574   :  { %7548 = vst.msk [vmem:[#allocation3] sm:$0xff] %vm7547_vm15, %v7545_v12  ;;  %v7791_v12 = vld [vmem:[%s12870_s14 + $0x8] sm:$0xff] }
0x157a   :  { %v7552_v47 = vpop.permute.xlu0 %7551 }
0x157b   :  { %7555 = vst.msk [vmem:[#allocation3] sm:$0xff] %vm7554_vm1, %v7552_v47 }
0x157c   :  { %7562 = vst.msk [vmem:[#allocation3] sm:$0xff] %vm7561_vm2, %v7559_v63 }
0x1582   :  { %v7566_v10 = vpop.permute.xlu0 %7565 }
0x1583   :  { %7569 = vst.msk [vmem:[#allocation3] sm:$0xff] %vm7568_vm5, %v7566_v10 }
0x1584   :  { %7576 = vst.msk [vmem:[#allocation3] sm:$0xff] %vm7575_vm6, %v7573_v11  ;;  %v7790_v11 = vld [vmem:[%s12870_s14] sm:$0xff] }
0x158b   :  { %v7579_v41 = vld [vmem:[#allocation3] sm:$0xff] }
0x158c   :  { %v7583_v2 = vmul.f32 %v7581_v16, %v7579_v41  ;;  %v8217_v16 = vld [vmem:[%s12872_s30] ss:$0 sm:$0xff] }
0x158e   :  { %7626 = vmatmul.f32.vlgmr.msrb.gmra.mxu3 %v7583_v2 }
0x158f   :  { %v7647_v43 = vpop.f32.mrf.mxu2  ;;  %7813 = vmatpush.msrb.mxu3 %v7791_v12 }
0x1591   :  { %7814 = vmatpush.msrb.mxu3 %v7790_v11 }
0x1611   :  { %v7627_v13 = vpop.f32.mrf.mxu3 }
0x1612   :  { %v7628_v59 = vadd.f32 %v8215_v56, %v7627_v13  ;;  %v7835_v56 = vld [vmem:[%s8603_s20] sm:$0xff]  ;;  %s8419_s20 = smov [#allocation9]  }
0x1614   :  { %v7648_v34 = vadd.f32 %v7647_v43, %v7628_v59  ;;  %v8218_v59 = vld [vmem:[%s12873_s24] ss:$0 sm:$0xff] }
0x1616   :  { %v7652_v30 = vmax.f32 %v7648_v34, %v7651_v61 }
0x1618   :  { %7654 = vst.msk [vmem:[#allocation4] sm:$0xff] %vm7653_vm8, %v7652_v30 }
0x161f   :  { %v7655_v44 = vld [vmem:[#allocation4] sm:$0x3]  ;;  %v7656_v25 = vld [vmem:[#allocation4 + $0x2] sm:$0x3]  ;;  %v7660_v1 = vld [vmem:[#allocation4 + $0x4] sm:$0x3] }
0x1620   :  { %v7657_v20 = vmax.f32 %v7655_v44, %v7656_v25  ;;  %v7661_v49 = vld [vmem:[#allocation4 + $0x6] sm:$0x3] }
0x1621   :  { %v7662_v7 = vmax.f32 %v7660_v1, %v7661_v49 }
0x1622   :  { %7659 = vst.msk [vmem:[#allocation5] sm:$0x3] %vm7658_vm9, %v7657_v20 }
0x1623   :  { %7663 = vst.msk [vmem:[#allocation5 + $0x2] sm:$0x3] %vm7658_vm9, %v7662_v7 }
0x162a   :  { %v7664_v48 = vld [vmem:[#allocation5] ss:$2 sm:$0x3]  ;;  %v7665_v38 = vld [vmem:[#allocation5 + $0x1] ss:$2 sm:$0x3] }
0x162b   :  { %v7666_v58 = vmax.f32 %v7664_v48, %v7665_v38 }
0x162d   :  { %7668 = vrot.lane.b32.xlu0 %v7666_v58, %s8416_s10 }
0x169f   :  { %v7669_v28 = vpop.permute.xlu0 %7668 }
0x16a0   :  { %v7671_v35 = vadd.f32 %v7669_v28, %v7666_v58 }
0x16a2   :  { %8135 = vmatmul.msk.f32.vlgmr.msrb.gmra.mxu2 %vm7444_vm11, %v7671_v35 }
0x16a3   :  { %8139 = vmatpush.msk.msrb.mxu2 %vm7841_vm12, %v7836_v19 }
0x16a5   :  { %7860 = vmatpush.msrb.mxu2 %v7835_v56 }
0x1725   :  { %v7696_v45 = vpop.f32.mrf.mxu2 }
0x1726   :  { %v7700_v6 = vmul.f32 %v7699_v50, %v7696_v45 }
0x1728   :  { %v7702_v62 = vsel %vm7701_vm10, %v7700_v6, 0.0  ;;  %v7867_v6 = vld [vmem:[%s8433_s9 + $0x5] sm:$0x1]  ;;  %s8337_s9 = sshra.s32 %s7910_s6, 4  ;;  %s8338_s9 = int_to_ptr.hbm [resolvable:$true] %s8337_s9 }
0x1729   :  { %v7703_v40 = vrot.slane %v7702_v62, 4  ;;  %s8339_s15 = scalar_lea.hbm %s8338_s9, 2  ;;  %p8342_p6 = scmp.lt.s32.totalorder %s8338_s9, %s8613_s4 }
0x172a   :  { %p8340_p5 = scmp.ne.s32.totalorder %s8338_s9, %s8339_s15  ;;  %p8343_p7 = scmp.lt.s32.totalorder %s8341_s16, %s8339_s15 }
0x172b   :  { %v7704_v14 = vadd.f32 %v7703_v40, %v7702_v62  ;;  %v7868_v40 = vmul.f32 0.9, %v7867_v6 }
0x172c   :  { %p8344_p8 = por %p8343_p7, %p8342_p6 }
0x172d   :  { %v7705_v60 = vrot.slane %v7704_v14, 2 }
0x172e   :  { %p8345_p9 = pnand %p8344_p8, %p8340_p5 }
0x172f   :  { %v7706_v37 = vadd.f32 %v7705_v60, %v7704_v14 }
0x1731   :  { %v7707_v42 = vrot.slane %v7706_v37, 1 }
0x1733   :  { %v7708_v5 = vadd.f32 %v7707_v42, %v7706_v37 }
0x1735   :  { %v7709_v3 = vmul.f32 0.35, %v7708_v5 }
0x1737   :  { %8227 = vtanh.f32 %v7709_v3 }
0x1738   :  { %8229 = vrcp.f32 %v8418_v29 }
0x173d   :  { %v8228_v54 = vpop.eup %8227 }
0x173e   :  { %v7713_v8 = vadd.f32 1.0, %v8228_v54  ;;  %v8230_v13 = vpop.eup %8229 }
0x173f   :  { %v7828_v43 = vmul.f32 2.0, %v8230_v13 }
0x1740   :  { %v7714_v53 = vmul.f32 0.1, %v7713_v8 }
0x1741   :  { %v7829_v30 = vsub.f32 1.0, %v7828_v43 }
0x1742   :  { %v7715_v46 = vadd.f32 %v7714_v53, %v7712_v0 }
0x1743   :  { %v7830_v1 = vmul.f32 %v8230_v13, %v7829_v30 }
0x1744   :  { %v7716_v27 = vmax.f32 %v7715_v46, 0.8 }
0x1745   :  { %v7831_v7 = vadd.f32 %v8230_v13, %v7830_v1 }
0x1746   :  { %v7717_v39 = vmin.f32 %v7716_v27, 1.2 }
0x1748   :  { %v7720_v22 = vperm.slane %v7717_v39, 0  ;;  %7718 = vst.msk [vmem:[%s8618_s12 + $0x4] sm:$0x1] %vm989_vm4, %v7717_v39 }
0x174a   :  { %v7721_v31 = vmul.f32 %v7720_v22, %v7719_v51 }
0x174c   :  { %v7722_v17 = vsel %vm7701_vm10, %v7721_v31, 0.0 }
0x174d   :  { %7723 = vadd.xlane.f32.xlu2 %v7722_v17 }
0x17c0   :  { %v7724_v18 = vpop.xlane.xlu2 %7723 }
0x17c1   :  { %v7725_v26 = vmul.f32 %v7724_v18, %v7671_v35  ;;  %v7875_v35 = vld [vmem:[%s8608_s27] sm:$0xff]  ;;  %s7907_s27 = sshll.u32 %s8419_s20, 4  ;;  %s7908_s27 = int_to_ptr.vmem [resolvable:$true] %s7907_s27 }
0x17c3   :  { %8136 = vmatmul.msk.f32.vlgmr.msra.gmra.mxu3 %vm7444_vm11, %v7725_v26 }
0x17c4   :  { %7894 = vmatpush.msra.mxu3 %v7875_v35 }
0x1846   :  { %v7754_v63 = vpop.f32.mrf.mxu3 }
0x1847   :  { %v7755_v47 = vadd.f32 %v8216_v15, %v7754_v63 }
0x1849   :  { %v7757_v10 = vmax.f32 %v7755_v47, 0.0 }
0x184b   :  { %8137 = vmatmul.msk.f32.vlgmr.msra.gmra.mxu2 %vm7444_vm11, %v7757_v10  ;;  %vm7819_vm11 = vcmask 74752  }
0x18ce   :  { %v7786_v41 = vpop.f32.mrf.mxu2 }
0x18cf   :  { %v7787_v2 = vadd.f32 %v8217_v16, %v7786_v41 }
0x18d1   :  { %v7789_v57 = vmax.f32 %v7787_v2, 0.0 }
0x18d3   :  { %8138 = vmatmul.msk.f32.vlgmr.msrb.gmra.mxu3 %vm174_vm0, %v7789_v57  ;;  %vm7832_vm0 = vweird.f32 %v8230_v13 }
0x18d4   :  { %v7833_v58 = vsel %vm7832_vm0, %v8230_v13, %v7831_v7 }
0x1956   :  { %v7816_v61 = vpop.f32.mrf.mxu3 }
0x1957   :  { %v7817_v34 = vadd.f32 %v8218_v59, %v7816_v61 }
0x1959   :  { %v7820_v44 = vsel %vm7819_vm11, %v7817_v34, 0.0 }
0x195a   :  { %v7821_v25 = vrot.slane %v7820_v44, 4 }
0x195c   :  { %v7822_v20 = vadd.f32 %v7821_v25, %v7820_v44 }
0x195e   :  { %v7823_v49 = vrot.slane %v7822_v20, 2 }
0x1960   :  { %v7824_v48 = vadd.f32 %v7823_v49, %v7822_v20 }
0x1962   :  { %v7825_v38 = vrot.slane %v7824_v48, 1 }
0x1964   :  { %v7826_v24 = vadd.f32 %v7825_v38, %v7824_v48 }
0x1966   :  { %v7834_v28 = vmul.f32 %v7833_v58, %v7826_v24 }
0x1968   :  { %8140 = vmatmul.msk.f32.vlgmr.msrb.gmra.mxu2 %vm7837_vm13, %v7834_v28 }
0x19eb   :  { %v7862_v50 = vpop.f32.mrf.mxu2 }
0x19ec   :  { %v7865_v45 = vmul.f32 0.35, %v7862_v50 }
0x19ee   :  { %8231 = vtanh.f32 %v7865_v45 }
0x19f4   :  { %v8232_v62 = vpop.eup %8231 }
0x19f5   :  { %v7869_v14 = vadd.f32 1.0, %v8232_v62 }
0x19f7   :  { %v7870_v60 = vmul.f32 0.1, %v7869_v14 }
0x19f9   :  { %v7871_v21 = vadd.f32 %v7870_v60, %v7868_v40 }
0x19fb   :  { %v7872_v23 = vmax.f32 %v7871_v21, 0.8 }
0x19fd   :  { %v7873_v37 = vmin.f32 %v7872_v23, 1.2 }
0x19ff   :  { %7874 = vst.msk [vmem:[%s8618_s12 + $0x5] sm:$0x1] %vm989_vm4, %v7873_v37  ;;  %8141 = vmatmul.msk.f32.vlgmr.msra.gmra.mxu3 %vm846_vm3, %v7873_v37 }
0x1a82   :  { %v7896_v32 = vpop.f32.mrf.mxu3 }
0x1a83   :  { %v7899_v42 = vperm.slane %v7896_v32, 0 }
0x1a85   :  { %v7900_v5 = vmul.f32 %v7899_v42, %v7817_v34 }
0x1a87   :  { %7901 = vst.msk [vmem:[#allocation9] sm:$0x3] %vm7819_vm11, %v7900_v5 }
0x1a88   :  { %8348 = shalt.err (!%p8345_p9)
}
0x1a89   :  { %7912 = dma.vmem_to_hbm [thread:$0]  %s7908_s27, 32, %s7910_s6, [#allocation8]  }
0x1a8a   :  { %8351 = dma.done.wait [#allocation8], 32  }
0x1a8b   :  { %8352 = vsyncadd [#allocation8], 4294967264 }
0x1a8c   :  { %7921 = vsyncpa [#allocation7], 1 }
0x1a8d   :  { %7922 = vsyncpa [#allocation8], 1 }

</bundles_post_ra>
